<compile_context>
chip_gen: v7x
topology: tpu7x:2x2x1
jax: 0.10.0
libtpu: 0.0.40
codegen_flags: <defaults>
</compile_context>

<pallas_src>
import functools

import jax
import jax.numpy as jnp
from jax import lax
from jax.experimental import pallas as pl
from jax.experimental.pallas import tpu as pltpu

NEG_SLOPE = 0.01   # PyTorch nn.LeakyReLU default
BN_EPS = 1e-5      # PyTorch nn.BatchNorm2d default


def _conv_bias_lrelu(x0_ref, x1_ref, x2_ref, w_ref, b_ref, *, th, width, c_in):
    """Conv(3x3, padding pre-applied) + bias + LeakyReLU for one row-block tile.

    x{0,1,2}_ref: [1, th, width+2, c_in]  row-shifted input windows (kh = 0,1,2)
    w_ref:        [9, c_in, c_out_pad]    taps ordered (kh, kw); C_out padded to 128
    b_ref:        [1, c_out_pad]          f32 bias
    returns       [th*width, c_out_pad]   f32
    """
    p = th * width
    c_out_pad = w_ref.shape[-1]
    rows = (x0_ref[0], x1_ref[0], x2_ref[0])            # each [th, width+2, c_in]
    y = jnp.broadcast_to(b_ref[...], (p, c_out_pad)).astype(jnp.float32)
    for kh in range(3):
        xt = rows[kh]
        for kw in range(3):
            xs = xt[:, kw:kw + width, :].reshape(p, c_in)     # [p, c_in]
            wt = w_ref[kh * 3 + kw]                           # [c_in, c_out_pad]
            if c_in < 8:
                # Tiny contraction: broadcast-FMA on the VPU (avoid K<8 matmul).
                for ci in range(c_in):
                    y = y + (xs[:, ci:ci + 1].astype(jnp.float32)
                             * wt[ci:ci + 1, :].astype(jnp.float32))
            else:
                y = y + jnp.dot(xs, wt, preferred_element_type=jnp.float32)
    return jnp.where(y > 0, y, NEG_SLOPE * y)


def _stats_kernel(x0_ref, x1_ref, x2_ref, w_ref, b_ref, stats_ref,
                  *, th, width, c_in):
    y = _conv_bias_lrelu(x0_ref, x1_ref, x2_ref, w_ref, b_ref,
                         th=th, width=width, c_in=c_in)
    stats_ref[0, 0:1, :] = jnp.sum(y, axis=0, keepdims=True)
    stats_ref[0, 1:2, :] = jnp.sum(y * y, axis=0, keepdims=True)


def _normalize_kernel(x0_ref, x1_ref, x2_ref, w_ref, b_ref, scale_ref, shift_ref,
                      out_ref, *, th, width, c_in):
    y = _conv_bias_lrelu(x0_ref, x1_ref, x2_ref, w_ref, b_ref,
                         th=th, width=width, c_in=c_in)
    out_ref[...] = (y * scale_ref[...] + shift_ref[...]).astype(out_ref.dtype)


def _pick_row_tile(h, width, target_rows=1024):
    """Largest divisor `th` of h with th*width <= ~target activation rows."""
    budget = max(1, target_rows // max(width, 1))
    th = 1
    for d in range(1, h + 1):
        if h % d == 0 and d <= budget and (d * width) % 8 == 0:
            th = d
    if (th * width) % 8 != 0:
        th = h      # fall back to whole-image row tiles
    return th


def conv_block_forward(x, weight, bias, gamma, beta, *,
                       compute_dtype=jnp.float32, tile_target_rows=1024):
    """x: [N, C_in, H, W] (NCHW). weight: [C_out, C_in, 3, 3]. Returns NCHW f32."""
    n, c_in, h, width = x.shape
    c_out = weight.shape[0]
    c_out_pad = ((c_out + 127) // 128) * 128          # lane-dense channel dim
    th = _pick_row_tile(h, width, tile_target_rows)
    hb = h // th
    p = th * width                                    # activation rows per tile
    m = n * h * width
    assert (p % 8 == 0) or (p == m), "tile rows must be a multiple of 8"

    # NCHW -> NHWC, zero-pad H/W by 1 (conv padding), build 3 row-shifted views.
    x_nhwc = jnp.transpose(x, (0, 2, 3, 1)).astype(compute_dtype)
    xp = jnp.pad(x_nhwc, ((0, 0), (1, 1), (1, 1), (0, 0)))
    x_rows = [xp[:, kh:kh + h, :, :] for kh in range(3)]   # 3 x [N, H, W+2, C_in]

    # Weights as 9 taps [kh*3+kw, c_in, c_out_pad]; contraction dim NOT padded.
    w_taps = jnp.transpose(weight, (2, 3, 1, 0)).reshape(9, c_in, c_out)
    w_taps = jnp.pad(w_taps, ((0, 0), (0, 0), (0, c_out_pad - c_out)))
    w_taps = w_taps.astype(compute_dtype)

    b_p = jnp.pad(bias.astype(jnp.float32), (0, c_out_pad - c_out)).reshape(1, c_out_pad)
    g_p = jnp.pad(gamma.astype(jnp.float32), (0, c_out_pad - c_out))
    be_p = jnp.pad(beta.astype(jnp.float32), (0, c_out_pad - c_out))

    row_spec = pl.BlockSpec((1, th, width + 2, c_in), lambda ni, hi: (ni, hi, 0, 0))
    w_spec = pl.BlockSpec((9, c_in, c_out_pad), lambda ni, hi: (0, 0, 0))
    vec_spec = pl.BlockSpec((1, c_out_pad), lambda ni, hi: (0, 0))

    cparams = pltpu.CompilerParams(
        dimension_semantics=("parallel", "parallel"),   # v7x: shard tiles over 2 TCs
        vmem_limit_bytes=32 * 1024 * 1024,              # safe on v5e/v6e/v7x
    )

    # --- Pass A: per-tile channel sum / sum-of-squares of LeakyReLU(conv). ---
    stats = pl.pallas_call(
        functools.partial(_stats_kernel, th=th, width=width, c_in=c_in),
        out_shape=jax.ShapeDtypeStruct((n * hb, 2, c_out_pad), jnp.float32),
        grid_spec=pltpu.PrefetchScalarGridSpec(
            num_scalar_prefetch=0,
            grid=(n, hb),
            in_specs=[row_spec, row_spec, row_spec, w_spec, vec_spec],
            out_specs=pl.BlockSpec((1, 2, c_out_pad),
                                   lambda ni, hi: (ni * hb + hi, 0, 0)),
        ),
        compiler_params=cparams,
    )(x_rows[0], x_rows[1], x_rows[2], w_taps, b_p)

    # Finalize BatchNorm (training-mode biased stats) into fused scale/shift.
    tot = jnp.sum(stats, axis=0)                        # [2, c_out_pad] f32
    mean = tot[0] / m
    var = jnp.maximum(tot[1] / m - mean * mean, 0.0)    # E[y^2] - E[y]^2 (f32)
    inv = lax.rsqrt(var + BN_EPS)
    scale = (g_p * inv).reshape(1, c_out_pad)
    shift = (be_p - mean * g_p * inv).reshape(1, c_out_pad)
    # TODO(synk): nn.BatchNorm2d running_mean/running_var (momentum) buffer
    # updates are not produced; only the training-mode forward output is.

    # --- Pass B: recompute conv tile, apply y*scale + shift, lane-dense out. ---
    out_flat = pl.pallas_call(
        functools.partial(_normalize_kernel, th=th, width=width, c_in=c_in),
        out_shape=jax.ShapeDtypeStruct((m, c_out_pad), jnp.float32),
        grid_spec=pltpu.PrefetchScalarGridSpec(
            num_scalar_prefetch=0,
            grid=(n, hb),
            in_specs=[row_spec, row_spec, row_spec, w_spec,
                      vec_spec, vec_spec, vec_spec],
            out_specs=pl.BlockSpec((p, c_out_pad),
                                   lambda ni, hi: (ni * hb + hi, 0)),
        ),
        compiler_params=cparams,
    )(x_rows[0], x_rows[1], x_rows[2], w_taps, b_p, scale, shift)

    out = out_flat[:, :c_out].reshape(n, h, width, c_out)
    return jnp.transpose(out, (0, 3, 1, 2))             # back to NCHW


conv_block_forward = jax.jit(
    conv_block_forward, static_argnames=("compute_dtype", "tile_target_rows"))


def reference_forward(x, weight, bias, gamma, beta):
    """Pure-JAX reference matching PyTorch semantics (training-mode BN)."""
    y = lax.conv_general_dilated(
        x.astype(jnp.float32), weight.astype(jnp.float32),
        window_strides=(1, 1), padding=((1, 1), (1, 1)),
        dimension_numbers=("NCHW", "OIHW", "NCHW"))
    y = y + bias.reshape(1, -1, 1, 1)
    y = jnp.where(y > 0, y, NEG_SLOPE * y)
    mean = jnp.mean(y, axis=(0, 2, 3), keepdims=True)
    var = jnp.mean((y - mean) ** 2, axis=(0, 2, 3), keepdims=True)
    y = (y - mean) * lax.rsqrt(var + BN_EPS)
    return gamma.reshape(1, -1, 1, 1) * y + beta.reshape(1, -1, 1, 1)


if __name__ == "__main__":
    key = jax.random.PRNGKey(0)
    k_x, k_w, k_b = jax.random.split(key, 3)

    N, C_IN, H, W = 2, 1, 16, 16      # module defaults: in_channels=1, out_channels=16
    C_OUT = 16

    x = jax.random.normal(k_x, (N, C_IN, H, W), dtype=jnp.float32)

    fan_in = C_IN * 3 * 3
    bound = 1.0 / (fan_in ** 0.5)
    weight = jax.random.uniform(k_w, (C_OUT, C_IN, 3, 3), jnp.float32, -bound, bound)
    bias = jax.random.uniform(k_b, (C_OUT,), jnp.float32, -bound, bound)
    gamma = jnp.ones((C_OUT,), jnp.float32)   # BN weight init
    beta = jnp.zeros((C_OUT,), jnp.float32)   # BN bias init

    ref = reference_forward(x, weight, bias, gamma, beta)

    # f32 path: matches the PyTorch module tightly.
    out = jax.block_until_ready(conv_block_forward(x, weight, bias, gamma, beta))
    assert out.shape == (N, C_OUT, H, W)
    assert jnp.allclose(out, ref, rtol=2e-4, atol=2e-4), "f32 kernel mismatch"

    # bf16-operand path (halves input DMA; bf16 MXU on v6e/v7x); f32 accumulation.
    out_bf16 = jax.block_until_ready(
        conv_block_forward(x, weight, bias, gamma, beta, compute_dtype=jnp.bfloat16))
    assert jnp.allclose(out_bf16, ref, rtol=5e-2, atol=5e-2), "bf16 kernel mismatch"

    print("KERNEL_OK")
</pallas_src>

<mosaic_0001>
module attributes {stable_mosaic.version = 11 : i64} {
  func.func @_stats_kernel(%arg0: i32, %arg1: i32, %arg2: memref<1x16x18x1xf32, #tpu.memory_space<vmem>>, %arg3: memref<1x16x18x1xf32, #tpu.memory_space<vmem>>, %arg4: memref<1x16x18x1xf32, #tpu.memory_space<vmem>>, %arg5: memref<9x1x128xf32, #tpu.memory_space<vmem>>, %arg6: memref<1x128xf32, #tpu.memory_space<vmem>>, %arg7: memref<1x2x128xf32, #tpu.memory_space<vmem>>) attributes {dimension_semantics = [#tpu.dimension_semantics<parallel>, #tpu.dimension_semantics<parallel>], iteration_bounds = array<i64: 2, 1>, scalar_prefetch = 0 : i64, scratch_operands = 0 : i64, tpu.core_type = #tpu.core_type<tc>, window_params = [{transform_indices = @transform_0, window_bounds = array<i64: 1, 16, 18, 1>}, {transform_indices = @transform_1, window_bounds = array<i64: 1, 16, 18, 1>}, {transform_indices = @transform_2, window_bounds = array<i64: 1, 16, 18, 1>}, {pipeline_mode = #tpu.pipeline_mode<synchronous>, transform_indices = @transform_3, window_bounds = array<i64: 9, 1, 128>}, {pipeline_mode = #tpu.pipeline_mode<synchronous>, transform_indices = @transform_4, window_bounds = array<i64: 1, 128>}, {transform_indices = @transform_5, window_bounds = array<i64: 1, 2, 128>}]} {
    %c0 = arith.constant 0 : index
    %c0_0 = arith.constant 0 : index
    %c0_1 = arith.constant 0 : index
    %c0_2 = arith.constant 0 : index
    %0 = vector.load %arg2[%c0, %c0_0, %c0_1, %c0_2] : memref<1x16x18x1xf32, #tpu.memory_space<vmem>>, vector<1x16x18x1xf32>
    %1 = vector.shape_cast %0 : vector<1x16x18x1xf32> to vector<16x18x1xf32>
    %c0_3 = arith.constant 0 : index
    %c0_4 = arith.constant 0 : index
    %c0_5 = arith.constant 0 : index
    %c0_6 = arith.constant 0 : index
    %2 = vector.load %arg3[%c0_3, %c0_4, %c0_5, %c0_6] : memref<1x16x18x1xf32, #tpu.memory_space<vmem>>, vector<1x16x18x1xf32>
    %3 = vector.shape_cast %2 : vector<1x16x18x1xf32> to vector<16x18x1xf32>
    %c0_7 = arith.constant 0 : index
    %c0_8 = arith.constant 0 : index
    %c0_9 = arith.constant 0 : index
    %c0_10 = arith.constant 0 : index
    %4 = vector.load %arg4[%c0_7, %c0_8, %c0_9, %c0_10] : memref<1x16x18x1xf32, #tpu.memory_space<vmem>>, vector<1x16x18x1xf32>
    %5 = vector.shape_cast %4 : vector<1x16x18x1xf32> to vector<16x18x1xf32>
    %c0_11 = arith.constant 0 : index
    %c0_12 = arith.constant 0 : index
    %6 = vector.load %arg6[%c0_11, %c0_12] : memref<1x128xf32, #tpu.memory_space<vmem>>, vector<1x128xf32>
    %7 = vector.shape_cast %6 : vector<1x128xf32> to vector<1x128xf32>
    %8 = vector.broadcast %7 : vector<1x128xf32> to vector<256x128xf32>
    %9 = vector.extract_strided_slice %1 {offsets = [0, 0, 0], sizes = [16, 16, 1], strides = [1, 1, 1]} : vector<16x18x1xf32> to vector<16x16x1xf32>
    %10 = vector.shape_cast %9 : vector<16x16x1xf32> to vector<256x1xf32>
    %c0_13 = arith.constant 0 : index
    %c0_14 = arith.constant 0 : index
    %c0_15 = arith.constant 0 : index
    %11 = vector.load %arg5[%c0_13, %c0_14, %c0_15] : memref<9x1x128xf32, #tpu.memory_space<vmem>>, vector<1x1x128xf32>
    %12 = vector.shape_cast %11 : vector<1x1x128xf32> to vector<1x128xf32>
    %13 = vector.broadcast %10 : vector<256x1xf32> to vector<256x128xf32>
    %14 = vector.broadcast %12 : vector<1x128xf32> to vector<256x128xf32>
    %15 = arith.mulf %13, %14 : vector<256x128xf32>
    %16 = arith.addf %8, %15 : vector<256x128xf32>
    %17 = vector.extract_strided_slice %1 {offsets = [0, 1, 0], sizes = [16, 16, 1], strides = [1, 1, 1]} : vector<16x18x1xf32> to vector<16x16x1xf32>
    %18 = vector.shape_cast %17 : vector<16x16x1xf32> to vector<256x1xf32>
    %c1 = arith.constant 1 : index
    %c0_16 = arith.constant 0 : index
    %c0_17 = arith.constant 0 : index
    %19 = vector.load %arg5[%c1, %c0_16, %c0_17] : memref<9x1x128xf32, #tpu.memory_space<vmem>>, vector<1x1x128xf32>
    %20 = vector.shape_cast %19 : vector<1x1x128xf32> to vector<1x128xf32>
    %21 = vector.broadcast %18 : vector<256x1xf32> to vector<256x128xf32>
    %22 = vector.broadcast %20 : vector<1x128xf32> to vector<256x128xf32>
    %23 = arith.mulf %21, %22 : vector<256x128xf32>
    %24 = arith.addf %16, %23 : vector<256x128xf32>
    %25 = vector.extract_strided_slice %1 {offsets = [0, 2, 0], sizes = [16, 16, 1], strides = [1, 1, 1]} : vector<16x18x1xf32> to vector<16x16x1xf32>
    %26 = vector.shape_cast %25 : vector<16x16x1xf32> to vector<256x1xf32>
    %c2 = arith.constant 2 : index
    %c0_18 = arith.constant 0 : index
    %c0_19 = arith.constant 0 : index
    %27 = vector.load %arg5[%c2, %c0_18, %c0_19] : memref<9x1x128xf32, #tpu.memory_space<vmem>>, vector<1x1x128xf32>
    %28 = vector.shape_cast %27 : vector<1x1x128xf32> to vector<1x128xf32>
    %29 = vector.broadcast %26 : vector<256x1xf32> to vector<256x128xf32>
    %30 = vector.broadcast %28 : vector<1x128xf32> to vector<256x128xf32>
    %31 = arith.mulf %29, %30 : vector<256x128xf32>
    %32 = arith.addf %24, %31 : vector<256x128xf32>
    %33 = vector.extract_strided_slice %3 {offsets = [0, 0, 0], sizes = [16, 16, 1], strides = [1, 1, 1]} : vector<16x18x1xf32> to vector<16x16x1xf32>
    %34 = vector.shape_cast %33 : vector<16x16x1xf32> to vector<256x1xf32>
    %c3 = arith.constant 3 : index
    %c0_20 = arith.constant 0 : index
    %c0_21 = arith.constant 0 : index
    %35 = vector.load %arg5[%c3, %c0_20, %c0_21] : memref<9x1x128xf32, #tpu.memory_space<vmem>>, vector<1x1x128xf32>
    %36 = vector.shape_cast %35 : vector<1x1x128xf32> to vector<1x128xf32>
    %37 = vector.broadcast %34 : vector<256x1xf32> to vector<256x128xf32>
    %38 = vector.broadcast %36 : vector<1x128xf32> to vector<256x128xf32>
    %39 = arith.mulf %37, %38 : vector<256x128xf32>
    %40 = arith.addf %32, %39 : vector<256x128xf32>
    %41 = vector.extract_strided_slice %3 {offsets = [0, 1, 0], sizes = [16, 16, 1], strides = [1, 1, 1]} : vector<16x18x1xf32> to vector<16x16x1xf32>
    %42 = vector.shape_cast %41 : vector<16x16x1xf32> to vector<256x1xf32>
    %c4 = arith.constant 4 : index
    %c0_22 = arith.constant 0 : index
    %c0_23 = arith.constant 0 : index
    %43 = vector.load %arg5[%c4, %c0_22, %c0_23] : memref<9x1x128xf32, #tpu.memory_space<vmem>>, vector<1x1x128xf32>
    %44 = vector.shape_cast %43 : vector<1x1x128xf32> to vector<1x128xf32>
    %45 = vector.broadcast %42 : vector<256x1xf32> to vector<256x128xf32>
    %46 = vector.broadcast %44 : vector<1x128xf32> to vector<256x128xf32>
    %47 = arith.mulf %45, %46 : vector<256x128xf32>
    %48 = arith.addf %40, %47 : vector<256x128xf32>
    %49 = vector.extract_strided_slice %3 {offsets = [0, 2, 0], sizes = [16, 16, 1], strides = [1, 1, 1]} : vector<16x18x1xf32> to vector<16x16x1xf32>
    %50 = vector.shape_cast %49 : vector<16x16x1xf32> to vector<256x1xf32>
    %c5 = arith.constant 5 : index
    %c0_24 = arith.constant 0 : index
    %c0_25 = arith.constant 0 : index
    %51 = vector.load %arg5[%c5, %c0_24, %c0_25] : memref<9x1x128xf32, #tpu.memory_space<vmem>>, vector<1x1x128xf32>
    %52 = vector.shape_cast %51 : vector<1x1x128xf32> to vector<1x128xf32>
    %53 = vector.broadcast %50 : vector<256x1xf32> to vector<256x128xf32>
    %54 = vector.broadcast %52 : vector<1x128xf32> to vector<256x128xf32>
    %55 = arith.mulf %53, %54 : vector<256x128xf32>
    %56 = arith.addf %48, %55 : vector<256x128xf32>
    %57 = vector.extract_strided_slice %5 {offsets = [0, 0, 0], sizes = [16, 16, 1], strides = [1, 1, 1]} : vector<16x18x1xf32> to vector<16x16x1xf32>
    %58 = vector.shape_cast %57 : vector<16x16x1xf32> to vector<256x1xf32>
    %c6 = arith.constant 6 : index
    %c0_26 = arith.constant 0 : index
    %c0_27 = arith.constant 0 : index
    %59 = vector.load %arg5[%c6, %c0_26, %c0_27] : memref<9x1x128xf32, #tpu.memory_space<vmem>>, vector<1x1x128xf32>
    %60 = vector.shape_cast %59 : vector<1x1x128xf32> to vector<1x128xf32>
    %61 = vector.broadcast %58 : vector<256x1xf32> to vector<256x128xf32>
    %62 = vector.broadcast %60 : vector<1x128xf32> to vector<256x128xf32>
    %63 = arith.mulf %61, %62 : vector<256x128xf32>
    %64 = arith.addf %56, %63 : vector<256x128xf32>
    %65 = vector.extract_strided_slice %5 {offsets = [0, 1, 0], sizes = [16, 16, 1], strides = [1, 1, 1]} : vector<16x18x1xf32> to vector<16x16x1xf32>
    %66 = vector.shape_cast %65 : vector<16x16x1xf32> to vector<256x1xf32>
    %c7 = arith.constant 7 : index
    %c0_28 = arith.constant 0 : index
    %c0_29 = arith.constant 0 : index
    %67 = vector.load %arg5[%c7, %c0_28, %c0_29] : memref<9x1x128xf32, #tpu.memory_space<vmem>>, vector<1x1x128xf32>
    %68 = vector.shape_cast %67 : vector<1x1x128xf32> to vector<1x128xf32>
    %69 = vector.broadcast %66 : vector<256x1xf32> to vector<256x128xf32>
    %70 = vector.broadcast %68 : vector<1x128xf32> to vector<256x128xf32>
    %71 = arith.mulf %69, %70 : vector<256x128xf32>
    %72 = arith.addf %64, %71 : vector<256x128xf32>
    %73 = vector.extract_strided_slice %5 {offsets = [0, 2, 0], sizes = [16, 16, 1], strides = [1, 1, 1]} : vector<16x18x1xf32> to vector<16x16x1xf32>
    %74 = vector.shape_cast %73 : vector<16x16x1xf32> to vector<256x1xf32>
    %c8 = arith.constant 8 : index
    %c0_30 = arith.constant 0 : index
    %c0_31 = arith.constant 0 : index
    %75 = vector.load %arg5[%c8, %c0_30, %c0_31] : memref<9x1x128xf32, #tpu.memory_space<vmem>>, vector<1x1x128xf32>
    %76 = vector.shape_cast %75 : vector<1x1x128xf32> to vector<1x128xf32>
    %77 = vector.broadcast %74 : vector<256x1xf32> to vector<256x128xf32>
    %78 = vector.broadcast %76 : vector<1x128xf32> to vector<256x128xf32>
    %79 = arith.mulf %77, %78 : vector<256x128xf32>
    %80 = arith.addf %72, %79 : vector<256x128xf32>
    %cst = arith.constant 0.000000e+00 : f32
    %81 = vector.broadcast %cst : f32 to vector<256x128xf32>
    %82 = arith.cmpf ogt, %80, %81 : vector<256x128xf32>
    %cst_32 = arith.constant 0.00999999977 : f32
    %83 = vector.broadcast %cst_32 : f32 to vector<256x128xf32>
    %84 = arith.mulf %83, %80 : vector<256x128xf32>
    %85 = arith.select %82, %80, %84 : vector<256x128xi1>, vector<256x128xf32>
    %cst_33 = arith.constant dense<0.000000e+00> : vector<128xf32>
    %86 = vector.multi_reduction <add>, %85, %cst_33 [0] : vector<256x128xf32> to vector<128xf32>
    %87 = vector.shape_cast %86 : vector<128xf32> to vector<1x128xf32>
    %c0_34 = arith.constant 0 : index
    %c0_35 = arith.constant 0 : index
    %c0_36 = arith.constant 0 : index
    %88 = vector.load %arg7[%c0_34, %c0_35, %c0_36] : memref<1x2x128xf32, #tpu.memory_space<vmem>>, vector<1x1x128xf32>
    %89 = vector.shape_cast %88 : vector<1x1x128xf32> to vector<1x128xf32>
    %90 = vector.shape_cast %87 : vector<1x128xf32> to vector<1x1x128xf32>
    tpu.vector_store %arg7[%c0_34, %c0_35, %c0_36], %90 {strides = array<i32>} : memref<1x2x128xf32, #tpu.memory_space<vmem>>, vector<1x1x128xf32>,
    %91 = arith.mulf %85, %85 : vector<256x128xf32>
    %cst_37 = arith.constant dense<0.000000e+00> : vector<128xf32>
    %92 = vector.multi_reduction <add>, %91, %cst_37 [0] : vector<256x128xf32> to vector<128xf32>
    %93 = vector.shape_cast %92 : vector<128xf32> to vector<1x128xf32>
    %c0_38 = arith.constant 0 : index
    %c1_39 = arith.constant 1 : index
    %c0_40 = arith.constant 0 : index
    %94 = vector.load %arg7[%c0_38, %c1_39, %c0_40] : memref<1x2x128xf32, #tpu.memory_space<vmem>>, vector<1x1x128xf32>
    %95 = vector.shape_cast %94 : vector<1x1x128xf32> to vector<1x128xf32>
    %96 = vector.shape_cast %93 : vector<1x128xf32> to vector<1x1x128xf32>
    tpu.vector_store %arg7[%c0_38, %c1_39, %c0_40], %96 {strides = array<i32>} : memref<1x2x128xf32, #tpu.memory_space<vmem>>, vector<1x1x128xf32>,
    return
  }
  func.func @transform_0(%arg0: i32, %arg1: i32) -> (i32, i32, i32, i32) {
    %c0_i32 = arith.constant 0 : i32
    %c0_i32_0 = arith.constant 0 : i32
    %c0_i32_1 = arith.constant 0 : i32
    return %arg0, %arg1, %c0_i32, %c0_i32_0 : i32, i32, i32, i32
  }
  func.func @transform_1(%arg0: i32, %arg1: i32) -> (i32, i32, i32, i32) {
    %c0_i32 = arith.constant 0 : i32
    %c0_i32_0 = arith.constant 0 : i32
    %c0_i32_1 = arith.constant 0 : i32
    return %arg0, %arg1, %c0_i32, %c0_i32_0 : i32, i32, i32, i32
  }
  func.func @transform_2(%arg0: i32, %arg1: i32) -> (i32, i32, i32, i32) {
    %c0_i32 = arith.constant 0 : i32
    %c0_i32_0 = arith.constant 0 : i32
    %c0_i32_1 = arith.constant 0 : i32
    return %arg0, %arg1, %c0_i32, %c0_i32_0 : i32, i32, i32, i32
  }
  func.func @transform_3(%arg0: i32, %arg1: i32) -> (i32, i32, i32) {
    %c0_i32 = arith.constant 0 : i32
    %c0_i32_0 = arith.constant 0 : i32
    %c0_i32_1 = arith.constant 0 : i32
    %c0_i32_2 = arith.constant 0 : i32
    return %c0_i32, %c0_i32_0, %c0_i32_1 : i32, i32, i32
  }
  func.func @transform_4(%arg0: i32, %arg1: i32) -> (i32, i32) {
    %c0_i32 = arith.constant 0 : i32
    %c0_i32_0 = arith.constant 0 : i32
    %c0_i32_1 = arith.constant 0 : i32
    return %c0_i32, %c0_i32_0 : i32, i32
  }
  func.func @transform_5(%arg0: i32, %arg1: i32) -> (i32, i32, i32) {
    %c1_i32 = arith.constant 1 : i32
    %0 = arith.muli %arg0, %c1_i32 : i32
    %1 = arith.addi %0, %arg1 : i32
    %c0_i32 = arith.constant 0 : i32
    %c0_i32_0 = arith.constant 0 : i32
    %c0_i32_1 = arith.constant 0 : i32
    return %1, %c0_i32, %c0_i32_0 : i32, i32, i32
  }
}

module attributes {stable_mosaic.version = 11 : i64} {
  func.func @_normalize_kernel(%arg0: i32, %arg1: i32, %arg2: memref<1x16x18x1xf32, #tpu.memory_space<vmem>>, %arg3: memref<1x16x18x1xf32, #tpu.memory_space<vmem>>, %arg4: memref<1x16x18x1xf32, #tpu.memory_space<vmem>>, %arg5: memref<9x1x128xf32, #tpu.memory_space<vmem>>, %arg6: memref<1x128xf32, #tpu.memory_space<vmem>>, %arg7: memref<1x128xf32, #tpu.memory_space<vmem>>, %arg8: memref<1x128xf32, #tpu.memory_space<vmem>>, %arg9: memref<256x128xf32, #tpu.memory_space<vmem>>) attributes {dimension_semantics = [#tpu.dimension_semantics<parallel>, #tpu.dimension_semantics<parallel>], iteration_bounds = array<i64: 2, 1>, scalar_prefetch = 0 : i64, scratch_operands = 0 : i64, tpu.core_type = #tpu.core_type<tc>, window_params = [{transform_indices = @transform_0, window_bounds = array<i64: 1, 16, 18, 1>}, {transform_indices = @transform_1, window_bounds = array<i64: 1, 16, 18, 1>}, {transform_indices = @transform_2, window_bounds = array<i64: 1, 16, 18, 1>}, {pipeline_mode = #tpu.pipeline_mode<synchronous>, transform_indices = @transform_3, window_bounds = array<i64: 9, 1, 128>}, {pipeline_mode = #tpu.pipeline_mode<synchronous>, transform_indices = @transform_4, window_bounds = array<i64: 1, 128>}, {pipeline_mode = #tpu.pipeline_mode<synchronous>, transform_indices = @transform_5, window_bounds = array<i64: 1, 128>}, {pipeline_mode = #tpu.pipeline_mode<synchronous>, transform_indices = @transform_6, window_bounds = array<i64: 1, 128>}, {transform_indices = @transform_7, window_bounds = array<i64: 256, 128>}]} {
    %c0 = arith.constant 0 : index
    %c0_0 = arith.constant 0 : index
    %c0_1 = arith.constant 0 : index
    %c0_2 = arith.constant 0 : index
    %0 = vector.load %arg2[%c0, %c0_0, %c0_1, %c0_2] : memref<1x16x18x1xf32, #tpu.memory_space<vmem>>, vector<1x16x18x1xf32>
    %1 = vector.shape_cast %0 : vector<1x16x18x1xf32> to vector<16x18x1xf32>
    %c0_3 = arith.constant 0 : index
    %c0_4 = arith.constant 0 : index
    %c0_5 = arith.constant 0 : index
    %c0_6 = arith.constant 0 : index
    %2 = vector.load %arg3[%c0_3, %c0_4, %c0_5, %c0_6] : memref<1x16x18x1xf32, #tpu.memory_space<vmem>>, vector<1x16x18x1xf32>
    %3 = vector.shape_cast %2 : vector<1x16x18x1xf32> to vector<16x18x1xf32>
    %c0_7 = arith.constant 0 : index
    %c0_8 = arith.constant 0 : index
    %c0_9 = arith.constant 0 : index
    %c0_10 = arith.constant 0 : index
    %4 = vector.load %arg4[%c0_7, %c0_8, %c0_9, %c0_10] : memref<1x16x18x1xf32, #tpu.memory_space<vmem>>, vector<1x16x18x1xf32>
    %5 = vector.shape_cast %4 : vector<1x16x18x1xf32> to vector<16x18x1xf32>
    %c0_11 = arith.constant 0 : index
    %c0_12 = arith.constant 0 : index
    %6 = vector.load %arg6[%c0_11, %c0_12] : memref<1x128xf32, #tpu.memory_space<vmem>>, vector<1x128xf32>
    %7 = vector.shape_cast %6 : vector<1x128xf32> to vector<1x128xf32>
    %8 = vector.broadcast %7 : vector<1x128xf32> to vector<256x128xf32>
    %9 = vector.extract_strided_slice %1 {offsets = [0, 0, 0], sizes = [16, 16, 1], strides = [1, 1, 1]} : vector<16x18x1xf32> to vector<16x16x1xf32>
    %10 = vector.shape_cast %9 : vector<16x16x1xf32> to vector<256x1xf32>
    %c0_13 = arith.constant 0 : index
    %c0_14 = arith.constant 0 : index
    %c0_15 = arith.constant 0 : index
    %11 = vector.load %arg5[%c0_13, %c0_14, %c0_15] : memref<9x1x128xf32, #tpu.memory_space<vmem>>, vector<1x1x128xf32>
    %12 = vector.shape_cast %11 : vector<1x1x128xf32> to vector<1x128xf32>
    %13 = vector.broadcast %10 : vector<256x1xf32> to vector<256x128xf32>
    %14 = vector.broadcast %12 : vector<1x128xf32> to vector<256x128xf32>
    %15 = arith.mulf %13, %14 : vector<256x128xf32>
    %16 = arith.addf %8, %15 : vector<256x128xf32>
    %17 = vector.extract_strided_slice %1 {offsets = [0, 1, 0], sizes = [16, 16, 1], strides = [1, 1, 1]} : vector<16x18x1xf32> to vector<16x16x1xf32>
    %18 = vector.shape_cast %17 : vector<16x16x1xf32> to vector<256x1xf32>
    %c1 = arith.constant 1 : index
    %c0_16 = arith.constant 0 : index
    %c0_17 = arith.constant 0 : index
    %19 = vector.load %arg5[%c1, %c0_16, %c0_17] : memref<9x1x128xf32, #tpu.memory_space<vmem>>, vector<1x1x128xf32>
    %20 = vector.shape_cast %19 : vector<1x1x128xf32> to vector<1x128xf32>
    %21 = vector.broadcast %18 : vector<256x1xf32> to vector<256x128xf32>
    %22 = vector.broadcast %20 : vector<1x128xf32> to vector<256x128xf32>
    %23 = arith.mulf %21, %22 : vector<256x128xf32>
    %24 = arith.addf %16, %23 : vector<256x128xf32>
    %25 = vector.extract_strided_slice %1 {offsets = [0, 2, 0], sizes = [16, 16, 1], strides = [1, 1, 1]} : vector<16x18x1xf32> to vector<16x16x1xf32>
    %26 = vector.shape_cast %25 : vector<16x16x1xf32> to vector<256x1xf32>
    %c2 = arith.constant 2 : index
    %c0_18 = arith.constant 0 : index
    %c0_19 = arith.constant 0 : index
    %27 = vector.load %arg5[%c2, %c0_18, %c0_19] : memref<9x1x128xf32, #tpu.memory_space<vmem>>, vector<1x1x128xf32>
    %28 = vector.shape_cast %27 : vector<1x1x128xf32> to vector<1x128xf32>
    %29 = vector.broadcast %26 : vector<256x1xf32> to vector<256x128xf32>
    %30 = vector.broadcast %28 : vector<1x128xf32> to vector<256x128xf32>
    %31 = arith.mulf %29, %30 : vector<256x128xf32>
    %32 = arith.addf %24, %31 : vector<256x128xf32>
    %33 = vector.extract_strided_slice %3 {offsets = [0, 0, 0], sizes = [16, 16, 1], strides = [1, 1, 1]} : vector<16x18x1xf32> to vector<16x16x1xf32>
    %34 = vector.shape_cast %33 : vector<16x16x1xf32> to vector<256x1xf32>
    %c3 = arith.constant 3 : index
    %c0_20 = arith.constant 0 : index
    %c0_21 = arith.constant 0 : index
    %35 = vector.load %arg5[%c3, %c0_20, %c0_21] : memref<9x1x128xf32, #tpu.memory_space<vmem>>, vector<1x1x128xf32>
    %36 = vector.shape_cast %35 : vector<1x1x128xf32> to vector<1x128xf32>
    %37 = vector.broadcast %34 : vector<256x1xf32> to vector<256x128xf32>
    %38 = vector.broadcast %36 : vector<1x128xf32> to vector<256x128xf32>
    %39 = arith.mulf %37, %38 : vector<256x128xf32>
    %40 = arith.addf %32, %39 : vector<256x128xf32>
    %41 = vector.extract_strided_slice %3 {offsets = [0, 1, 0], sizes = [16, 16, 1], strides = [1, 1, 1]} : vector<16x18x1xf32> to vector<16x16x1xf32>
    %42 = vector.shape_cast %41 : vector<16x16x1xf32> to vector<256x1xf32>
    %c4 = arith.constant 4 : index
    %c0_22 = arith.constant 0 : index
    %c0_23 = arith.constant 0 : index
    %43 = vector.load %arg5[%c4, %c0_22, %c0_23] : memref<9x1x128xf32, #tpu.memory_space<vmem>>, vector<1x1x128xf32>
    %44 = vector.shape_cast %43 : vector<1x1x128xf32> to vector<1x128xf32>
    %45 = vector.broadcast %42 : vector<256x1xf32> to vector<256x128xf32>
    %46 = vector.broadcast %44 : vector<1x128xf32> to vector<256x128xf32>
    %47 = arith.mulf %45, %46 : vector<256x128xf32>
    %48 = arith.addf %40, %47 : vector<256x128xf32>
    %49 = vector.extract_strided_slice %3 {offsets = [0, 2, 0], sizes = [16, 16, 1], strides = [1, 1, 1]} : vector<16x18x1xf32> to vector<16x16x1xf32>
    %50 = vector.shape_cast %49 : vector<16x16x1xf32> to vector<256x1xf32>
    %c5 = arith.constant 5 : index
    %c0_24 = arith.constant 0 : index
    %c0_25 = arith.constant 0 : index
    %51 = vector.load %arg5[%c5, %c0_24, %c0_25] : memref<9x1x128xf32, #tpu.memory_space<vmem>>, vector<1x1x128xf32>
    %52 = vector.shape_cast %51 : vector<1x1x128xf32> to vector<1x128xf32>
    %53 = vector.broadcast %50 : vector<256x1xf32> to vector<256x128xf32>
    %54 = vector.broadcast %52 : vector<1x128xf32> to vector<256x128xf32>
    %55 = arith.mulf %53, %54 : vector<256x128xf32>
    %56 = arith.addf %48, %55 : vector<256x128xf32>
    %57 = vector.extract_strided_slice %5 {offsets = [0, 0, 0], sizes = [16, 16, 1], strides = [1, 1, 1]} : vector<16x18x1xf32> to vector<16x16x1xf32>
    %58 = vector.shape_cast %57 : vector<16x16x1xf32> to vector<256x1xf32>
    %c6 = arith.constant 6 : index
    %c0_26 = arith.constant 0 : index
    %c0_27 = arith.constant 0 : index
    %59 = vector.load %arg5[%c6, %c0_26, %c0_27] : memref<9x1x128xf32, #tpu.memory_space<vmem>>, vector<1x1x128xf32>
    %60 = vector.shape_cast %59 : vector<1x1x128xf32> to vector<1x128xf32>
    %61 = vector.broadcast %58 : vector<256x1xf32> to vector<256x128xf32>
    %62 = vector.broadcast %60 : vector<1x128xf32> to vector<256x128xf32>
    %63 = arith.mulf %61, %62 : vector<256x128xf32>
    %64 = arith.addf %56, %63 : vector<256x128xf32>
    %65 = vector.extract_strided_slice %5 {offsets = [0, 1, 0], sizes = [16, 16, 1], strides = [1, 1, 1]} : vector<16x18x1xf32> to vector<16x16x1xf32>
    %66 = vector.shape_cast %65 : vector<16x16x1xf32> to vector<256x1xf32>
    %c7 = arith.constant 7 : index
    %c0_28 = arith.constant 0 : index
    %c0_29 = arith.constant 0 : index
    %67 = vector.load %arg5[%c7, %c0_28, %c0_29] : memref<9x1x128xf32, #tpu.memory_space<vmem>>, vector<1x1x128xf32>
    %68 = vector.shape_cast %67 : vector<1x1x128xf32> to vector<1x128xf32>
    %69 = vector.broadcast %66 : vector<256x1xf32> to vector<256x128xf32>
    %70 = vector.broadcast %68 : vector<1x128xf32> to vector<256x128xf32>
    %71 = arith.mulf %69, %70 : vector<256x128xf32>
    %72 = arith.addf %64, %71 : vector<256x128xf32>
    %73 = vector.extract_strided_slice %5 {offsets = [0, 2, 0], sizes = [16, 16, 1], strides = [1, 1, 1]} : vector<16x18x1xf32> to vector<16x16x1xf32>
    %74 = vector.shape_cast %73 : vector<16x16x1xf32> to vector<256x1xf32>
    %c8 = arith.constant 8 : index
    %c0_30 = arith.constant 0 : index
    %c0_31 = arith.constant 0 : index
    %75 = vector.load %arg5[%c8, %c0_30, %c0_31] : memref<9x1x128xf32, #tpu.memory_space<vmem>>, vector<1x1x128xf32>
    %76 = vector.shape_cast %75 : vector<1x1x128xf32> to vector<1x128xf32>
    %77 = vector.broadcast %74 : vector<256x1xf32> to vector<256x128xf32>
    %78 = vector.broadcast %76 : vector<1x128xf32> to vector<256x128xf32>
    %79 = arith.mulf %77, %78 : vector<256x128xf32>
    %80 = arith.addf %72, %79 : vector<256x128xf32>
    %cst = arith.constant 0.000000e+00 : f32
    %81 = vector.broadcast %cst : f32 to vector<256x128xf32>
    %82 = arith.cmpf ogt, %80, %81 : vector<256x128xf32>
    %cst_32 = arith.constant 0.00999999977 : f32
    %83 = vector.broadcast %cst_32 : f32 to vector<256x128xf32>
    %84 = arith.mulf %83, %80 : vector<256x128xf32>
    %85 = arith.select %82, %80, %84 : vector<256x128xi1>, vector<256x128xf32>
    %c0_33 = arith.constant 0 : index
    %c0_34 = arith.constant 0 : index
    %86 = vector.load %arg7[%c0_33, %c0_34] : memref<1x128xf32, #tpu.memory_space<vmem>>, vector<1x128xf32>
    %87 = vector.broadcast %86 : vector<1x128xf32> to vector<256x128xf32>
    %88 = arith.mulf %85, %87 : vector<256x128xf32>
    %c0_35 = arith.constant 0 : index
    %c0_36 = arith.constant 0 : index
    %89 = vector.load %arg8[%c0_35, %c0_36] : memref<1x128xf32, #tpu.memory_space<vmem>>, vector<1x128xf32>
    %90 = vector.broadcast %89 : vector<1x128xf32> to vector<256x128xf32>
    %91 = arith.addf %88, %90 : vector<256x128xf32>
    %c0_37 = arith.constant 0 : index
    %c0_38 = arith.constant 0 : index
    %92 = vector.load %arg9[%c0_37, %c0_38] : memref<256x128xf32, #tpu.memory_space<vmem>>, vector<256x128xf32>
    tpu.vector_store %arg9[%c0_37, %c0_38], %91 {strides = array<i32>} : memref<256x128xf32, #tpu.memory_space<vmem>>, vector<256x128xf32>,
    return
  }
  func.func @transform_0(%arg0: i32, %arg1: i32) -> (i32, i32, i32, i32) {
    %c0_i32 = arith.constant 0 : i32
    %c0_i32_0 = arith.constant 0 : i32
    %c0_i32_1 = arith.constant 0 : i32
    return %arg0, %arg1, %c0_i32, %c0_i32_0 : i32, i32, i32, i32
  }
  func.func @transform_1(%arg0: i32, %arg1: i32) -> (i32, i32, i32, i32) {
    %c0_i32 = arith.constant 0 : i32
    %c0_i32_0 = arith.constant 0 : i32
    %c0_i32_1 = arith.constant 0 : i32
    return %arg0, %arg1, %c0_i32, %c0_i32_0 : i32, i32, i32, i32
  }
  func.func @transform_2(%arg0: i32, %arg1: i32) -> (i32, i32, i32, i32) {
    %c0_i32 = arith.constant 0 : i32
    %c0_i32_0 = arith.constant 0 : i32
    %c0_i32_1 = arith.constant 0 : i32
    return %arg0, %arg1, %c0_i32, %c0_i32_0 : i32, i32, i32, i32
  }
  func.func @transform_3(%arg0: i32, %arg1: i32) -> (i32, i32, i32) {
    %c0_i32 = arith.constant 0 : i32
    %c0_i32_0 = arith.constant 0 : i32
    %c0_i32_1 = arith.constant 0 : i32
    %c0_i32_2 = arith.constant 0 : i32
    return %c0_i32, %c0_i32_0, %c0_i32_1 : i32, i32, i32
  }
  func.func @transform_4(%arg0: i32, %arg1: i32) -> (i32, i32) {
    %c0_i32 = arith.constant 0 : i32
    %c0_i32_0 = arith.constant 0 : i32
    %c0_i32_1 = arith.constant 0 : i32
    return %c0_i32, %c0_i32_0 : i32, i32
  }
  func.func @transform_5(%arg0: i32, %arg1: i32) -> (i32, i32) {
    %c0_i32 = arith.constant 0 : i32
    %c0_i32_0 = arith.constant 0 : i32
    %c0_i32_1 = arith.constant 0 : i32
    return %c0_i32, %c0_i32_0 : i32, i32
  }
  func.func @transform_6(%arg0: i32, %arg1: i32) -> (i32, i32) {
    %c0_i32 = arith.constant 0 : i32
    %c0_i32_0 = arith.constant 0 : i32
    %c0_i32_1 = arith.constant 0 : i32
    return %c0_i32, %c0_i32_0 : i32, i32
  }
  func.func @transform_7(%arg0: i32, %arg1: i32) -> (i32, i32) {
    %c1_i32 = arith.constant 1 : i32
    %0 = arith.muli %arg0, %c1_i32 : i32
    %1 = arith.addi %0, %arg1 : i32
    %c0_i32 = arith.constant 0 : i32
    %c0_i32_0 = arith.constant 0 : i32
    return %1, %c0_i32 : i32, i32
  }
}

</mosaic_0001>

<bundles_post_ra>
// kernel: conv_block_forward.3
= control target key start
LH: loop header
LB: loop body
LE: loop exit
PB: predicated region body
PF: predicated region fallthrough
CT: control target
= control target key end

     0   :  { %s3421_s24 = smov 0   ;;  %s3423_s25 = smov 0   ;;  %s6386_s0 = inlined_call_operand.vmem [shape: f32[2,16,18,1], index: 0, kind: input, shape index: {}]   ;;  %s6387_s1 = inlined_call_operand.vmem [shape: f32[2,16,18,1], index: 1, kind: input, shape index: {}]   ;;  %s6388_s2 = inlined_call_operand.vmem [shape: f32[2,16,18,1], index: 2, kind: input, shape index: {}]   ;;  %s6389_s3 = inlined_call_operand.vmem [shape: f32[9,1,128], index: 3, kind: input, shape index: {}]   ;;  %s6390_s4 = inlined_call_operand.vmem [shape: f32[1,128], index: 4, kind: input, shape index: {}]   ;;  %s6391_s5 = inlined_call_operand.vmem [shape: f32[1,128], index: 5, kind: input, shape index: {}]   ;;  %s6392_s6 = inlined_call_operand.vmem [shape: f32[1,128], index: 6, kind: input, shape index: {}]   ;;  %s6393_s7 = inlined_call_operand.vmem [shape: f32[512,128], index: 7, kind: output, shape index: {}]  }
   0x1   :  { %s3425_s26 = smov 0  }
   0x2 LB: > { %s29_s27 = sadd.s32 1, %s3374_s25  ;;  %p3299_p0 = scmp.ge.s32.totalorder %s3378_s26, 1  ;;  %s3378_s26 = sphi %s3425_s26, %s17_s26   ;;  %s3374_s25 = sphi %s3423_s25, %s6970_s25   ;;  %s3370_s24 = sphi %s3421_s24, %s6969_s24  }
   0x3   : > { %p31_p1 = scmp.ge.s32.totalorder %s29_s27, 2  ;;  %p295_p2 = scmp.lt.s32.totalorder %s3378_s26, 3 }
   0x5   : > { %s6972_s27 = smov (%p31_p1, %s29_s27), 0  ;;  %p296_p3 = pnand %p3299_p0, %p295_p2 }
   0x7   : > { %299 = sbr.rel (%p296_p3) target bundleno = 735 (0x2df), region = 48 }
   0xe   : > { %p354_p4 = scmp.lt.s32.totalorder %s3370_s24, 1  ;;  %v3380_v0 = vmov 0   ;;  %vm1073_vm0 = vcmask 1045504   ;;  %vm792_vm1 = vcmask 1046528  }
   0xf   : > { %3354 = vset.pattern.permute.xlu1 %v3380_v0  ;;  %3353 = vset.pattern.permute.xlu0 %v3380_v0 }
  0x10   : > { %s355_s28 = scalar_select %p354_p4, %s3370_s24, 1 }
  0x12   : > { %s3443_s29 = smul.u32 384, %s355_s28 }
  0x14   : > { %s3449_s9 = scalar_lea.vmem %s6386_s0, %s3443_s29  ;;  %s3945_s12 = scalar_lea.vmem %s6387_s1, %s3443_s29 }
  0x15   : > { %v3452_v1 = vld [vmem:[%s3449_s9 + $0x18] sm:$0xff]  ;;  %v3455_v2 = vld [vmem:[%s3449_s9] sm:$0xff]  ;;  %v3463_v4 = vld [vmem:[%s3449_s9 + $0x8] sm:$0xff]  ;;  %s4481_s15 = scalar_lea.vmem %s6388_s2, %s3443_s29 }
  0x16   : > { %558 = vperm.xlu1 %3354, %v3452_v1   ;;  %548 = vperm.xlu0 %3353, %v3455_v2   ;;  %v3460_v3 = vld [vmem:[%s3449_s9 + $0x20] sm:$0xff]  ;;  %v3468_v5 = vld [vmem:[%s3449_s9 + $0x38] sm:$0xff]  ;;  %v3471_v6 = vld [vmem:[%s3449_s9 + $0x30] sm:$0xff]  ;;  %v1079_v15 = vrot.slane %v3452_v1, 2  ;;  %v1074_v16 = vrot.slane %v3455_v2, 2  ;;  %v1075_v18 = vrot.slane %v3463_v4, 2 }
  0x17   : > { %v3476_v7 = vld [vmem:[%s3449_s9 + $0x50] sm:$0xff]  ;;  %v3479_v8 = vld [vmem:[%s3449_s9 + $0x48] sm:$0xff]  ;;  %v3487_v10 = vld [vmem:[%s3449_s9 + $0x60] sm:$0xff]  ;;  %v1080_v17 = vrot.slane %v3460_v3, 2  ;;  %v1085_v19 = vrot.slane %v3468_v5, 2  ;;  %v1084_v20 = vrot.slane %v3471_v6, 2 }
  0x18   : > { %v3484_v9 = vld [vmem:[%s3449_s9 + $0x68] sm:$0xff]  ;;  %v3492_v11 = vld [vmem:[%s3449_s9 + $0x80] sm:$0xff]  ;;  %v3495_v12 = vld [vmem:[%s3449_s9 + $0x78] sm:$0xff]  ;;  %v1090_v21 = vrot.slane %v3476_v7, 2  ;;  %v1089_v22 = vrot.slane %v3479_v8, 2  ;;  %v1094_v24 = vrot.slane %v3487_v10, 2  ;;  %v3552_v43 = vsel %vm1073_vm0, %v1074_v16, %v1075_v18 }
  0x19   : > { %v3500_v13 = vld [vmem:[%s3449_s9 + $0x98] sm:$0xff]  ;;  %v3503_v14 = vld [vmem:[%s3449_s9 + $0x90] sm:$0xff]  ;;  %v1095_v23 = vrot.slane %v3484_v9, 2  ;;  %v1100_v25 = vrot.slane %v3492_v11, 2  ;;  %v1099_v27 = vrot.slane %v3495_v12, 2  ;;  %v3526_v31 = vld [vmem:[%s3449_s9 + $0xa8] sm:$0xff]  ;;  %v3565_v48 = vsel %vm1073_vm0, %v1079_v15, %v1080_v17 }
  0x1a   : > { %563 = vperm.xlu1 %3354, %v3460_v3   ;;  %553 = vperm.xlu0 %3353, %v3463_v4   ;;  %v3519_v26 = vld [vmem:[%s3449_s9 + $0xb0] sm:$0xff]  ;;  %v1105_v28 = vrot.slane %v3500_v13, 2  ;;  %v1104_v29 = vrot.slane %v3503_v14, 2  ;;  %v3529_v32 = vld [vmem:[%s3449_s9 + $0xc8] sm:$0xff]  ;;  %v1109_v33 = vrot.slane %v3526_v31, 2  ;;  %v3534_v35 = vld [vmem:[%s3449_s9 + $0xc0] sm:$0xff]  ;;  %v3575_v52 = vsel %vm1073_vm0, %v1084_v20, %v1085_v19 }
  0x1b   : > { %v1110_v30 = vrot.slane %v3519_v26, 2  ;;  %v1115_v34 = vrot.slane %v3529_v32, 2  ;;  %v3537_v36 = vld [vmem:[%s3449_s9 + $0xe0] sm:$0xff]  ;;  %v3540_v37 = vld [vmem:[%s3449_s9 + $0x10] sm:$0x3]  ;;  %v1114_v38 = vrot.slane %v3534_v35, 2  ;;  %v3585_v56 = vsel %vm1073_vm0, %v1089_v22, %v1090_v21 }
  0x1c   : > { %v1120_v39 = vrot.slane %v3537_v36, 2  ;;  %v3545_v40 = vld [vmem:[%s3449_s9 + $0xd8] sm:$0xff]  ;;  %v3548_v41 = vld [vmem:[%s3449_s9 + $0x28] sm:$0x3]  ;;  %v1077_v42 = vrot.slane %v3540_v37, 2  ;;  %6412 = vst [vmem:[#allocation2_spill] sm:$0xff] %v3575_v52  ;;  %v3589_v58 = vsel %vm1073_vm0, %v1094_v24, %v1095_v23  ;;  %v3605_v0 = vsel %vm1073_vm0, %v1099_v27, %v1100_v25 }
  0x1d   : > { %v1119_v44 = vrot.slane %v3545_v40, 2  ;;  %v3558_v45 = vld [vmem:[%s3449_s9 + $0x40] sm:$0x3]  ;;  %v3561_v46 = vld [vmem:[%s3449_s9 + $0x58] sm:$0x3]  ;;  %v1082_v47 = vrot.slane %v3548_v41, 2  ;;  %v3627_v22 = vsel %vm1073_vm0, %v1109_v33, %v1110_v30 }
  0x1e   : > { %573 = vperm.xlu1 %3354, %v3468_v5   ;;  %568 = vperm.xlu0 %3353, %v3471_v6   ;;  %v3568_v49 = vld [vmem:[%s3449_s9 + $0x70] sm:$0x3]  ;;  %v3571_v50 = vsel %vm1073_vm0, %v1075_v18, %v1077_v42  ;;  %v1087_v51 = vrot.slane %v3558_v45, 2  ;;  %v1092_v53 = vrot.slane %v3561_v46, 2  ;;  %v3579_v54 = vld [vmem:[%s3449_s9 + $0x88] sm:$0x3]  ;;  %v3617_v18 = vsel %vm1073_vm0, %v1104_v29, %v1105_v28 }
  0x1f   : > { %v3582_v55 = vsel %vm1073_vm0, %v1080_v17, %v1082_v47  ;;  %6413 = vst [vmem:[#allocation3_spill] sm:$0xff] %v3585_v56  ;;  %v1097_v57 = vrot.slane %v3568_v49, 2  ;;  %6414 = vst [vmem:[#allocation4_spill] sm:$0xff] %v3589_v58  ;;  %v3592_v59 = vld [vmem:[%s3449_s9 + $0xa0] sm:$0x3]  ;;  %v1102_v63 = vrot.slane %v3579_v54, 2 }
  0x20   : > { %v3595_v60 = vld [vmem:[%s3449_s9 + $0xb8] sm:$0x3]  ;;  %v3598_v61 = vsel %vm1073_vm0, %v1085_v19, %v1087_v51  ;;  %v3601_v62 = vsel %vm1073_vm0, %v1090_v21, %v1092_v53  ;;  %6416 = vst [vmem:[#allocation6_spill] sm:$0xff] %v3605_v0  ;;  %v3610_v15 = vld [vmem:[%s3449_s9 + $0xd0] sm:$0x3]  ;;  %v1107_v17 = vrot.slane %v3592_v59, 2  ;;  %v3652_v53 = vsel %vm1073_vm0, %v1119_v44, %v1120_v39 }
  0x21   : > { %6415 = vst [vmem:[#allocation5_spill] sm:$0xff] %v3601_v62  ;;  %v3613_v16 = vsel %vm1073_vm0, %v1095_v23, %v1097_v57  ;;  %6418 = vst [vmem:[#allocation8_spill] sm:$0xff] %v3617_v18  ;;  %v1112_v19 = vrot.slane %v3595_v60, 2  ;;  %v3621_v20 = vld [vmem:[%s3449_s9 + $0xe8] sm:$0x3]  ;;  %v3624_v21 = vsel %vm1073_vm0, %v1100_v25, %v1102_v63  ;;  %v1117_v24 = vrot.slane %v3610_v15, 2 }
  0x22   : > { %583 = vperm.xlu1 %3354, %v3476_v7   ;;  %578 = vperm.xlu0 %3353, %v3479_v8   ;;  %6417 = vst [vmem:[#allocation7_spill] sm:$0xff] %v3613_v16  ;;  %6419 = vst [vmem:[#allocation9_spill] sm:$0xff] %v3624_v21  ;;  %v3631_v23 = vsel %vm1073_vm0, %v1114_v38, %v1115_v34  ;;  %v3634_v27 = vld [vmem:[%s3449_s9 + $0xf8] sm:$0xff]  ;;  %v3637_v29 = vld [vmem:[%s3449_s9 + $0xf0] sm:$0xff]  ;;  %v3640_v42 = vsel %vm1073_vm0, %v1105_v28, %v1107_v17  ;;  %v1122_v33 = vrot.slane %v3621_v20, 2 }
  0x23   : > { %6420 = vst [vmem:[#allocation10_spill] sm:$0xff] %v3627_v22  ;;  %6421 = vst [vmem:[#allocation11_spill] sm:$0xff] %v3631_v23  ;;  %v3643_v25 = vsel %vm1073_vm0, %v1110_v30, %v1112_v19  ;;  %v1125_v47 = vrot.slane %v3634_v27, 2  ;;  %v1124_v51 = vrot.slane %v3637_v29, 2  ;;  %v3649_v38 = vsel %vm1073_vm0, %v1115_v34, %v1117_v24  ;;  %v3657_v28 = vld [vmem:[%s3449_s9 + $0x100] sm:$0x3] }
  0x24   : > { %6422 = vst [vmem:[#allocation12_spill] sm:$0xff] %v3640_v42  ;;  %6423 = vst [vmem:[#allocation13_spill] sm:$0xff] %v3643_v25  ;;  %v3660_v30 = vsel %vm1073_vm0, %v1120_v39, %v1122_v33  ;;  %v1127_v57 = vrot.slane %v3657_v28, 2  ;;  %v3664_v63 = vld [vmem:[%s3449_s9 + $0x110] sm:$0xff]  ;;  %v3667_v34 = vld [vmem:[%s3449_s9 + $0x108] sm:$0xff]  ;;  %v794_v56 = vrot.slane %v3463_v4, 1 }
  0x25   : > { %6424 = vst [vmem:[#allocation14_spill] sm:$0xff] %v3649_v38  ;;  %6425 = vst [vmem:[#allocation15_spill] sm:$0xff] %v3652_v53  ;;  %v1130_v44 = vrot.slane %v3664_v63, 2  ;;  %v1129_v17 = vrot.slane %v3667_v34, 2  ;;  %v3675_v24 = vsel %vm1073_vm0, %v1124_v51, %v1125_v47  ;;  %v3680_v39 = vld [vmem:[%s3449_s9 + $0x118] sm:$0x3] }
  0x26   : > { %593 = vperm.xlu1 %3354, %v3484_v9   ;;  %588 = vperm.xlu0 %3353, %v3487_v10   ;;  %6426 = vst [vmem:[#allocation16_spill] sm:$0xff] %v3660_v30  ;;  %v3672_v19 = vsel %vm1073_vm0, %v1125_v47, %v1127_v57  ;;  %6428 = vst [vmem:[#allocation18_spill] sm:$0xff] %v3675_v24  ;;  %v1132_v33 = vrot.slane %v3680_v39, 2  ;;  %v3684_v53 = vld [vmem:[%s3449_s9 + $0x128] sm:$0xff]  ;;  %v3687_v30 = vld [vmem:[%s3449_s9 + $0x120] sm:$0xff]  ;;  %v796_v62 = vrot.slane %v3540_v37, 1 }
  0x27   : > { %6427 = vst [vmem:[#allocation17_spill] sm:$0xff] %v3672_v19  ;;  %v1135_v57 = vrot.slane %v3684_v53, 2  ;;  %v1134_v19 = vrot.slane %v3687_v30, 2  ;;  %v3695_v51 = vsel %vm1073_vm0, %v1129_v17, %v1130_v44  ;;  %v3700_v24 = vld [vmem:[%s3449_s9 + $0x130] sm:$0x3]  ;;  %v3704_v38 = vld [vmem:[%s3449_s9 + $0x140] sm:$0xff] }
  0x28   : > { %v3692_v47 = vsel %vm1073_vm0, %v1130_v44, %v1132_v33  ;;  %6430 = vst [vmem:[#allocation20_spill] sm:$0xff] %v3695_v51  ;;  %v1137_v23 = vrot.slane %v3700_v24, 2  ;;  %v3707_v22 = vld [vmem:[%s3449_s9 + $0x138] sm:$0xff]  ;;  %v1140_v33 = vrot.slane %v3704_v38, 2  ;;  %v3720_v51 = vld [vmem:[%s3449_s9 + $0x148] sm:$0x3]  ;;  %v797_v4 = vsel %vm792_vm1, %v794_v56, %v796_v62 }
  0x29   : > { %6429 = vst [vmem:[#allocation19_spill] sm:$0xff] %v3692_v47  ;;  %v1139_v47 = vrot.slane %v3707_v22, 2  ;;  %v3715_v17 = vsel %vm1073_vm0, %v1134_v19, %v1135_v57  ;;  %v1142_v25 = vrot.slane %v3720_v51, 2  ;;  %v3724_v18 = vld [vmem:[%s3449_s9 + $0x158] sm:$0xff]  ;;  %v3727_v42 = vld [vmem:[%s3449_s9 + $0x150] sm:$0xff]  ;;  %v3747_v58 = vld [vmem:[%s3449_s9 + $0x168] sm:$0xff] }
  0x2a   : > { %603 = vperm.xlu1 %3354, %v3492_v11   ;;  %598 = vperm.xlu0 %3353, %v3495_v12   ;;  %v3712_v44 = vsel %vm1073_vm0, %v1135_v57, %v1137_v23  ;;  %6432 = vst [vmem:[#allocation22_spill] sm:$0xff] %v3715_v17  ;;  %v1145_v23 = vrot.slane %v3724_v18, 2  ;;  %v3740_v17 = vld [vmem:[%s3449_s9 + $0x160] sm:$0x3]  ;;  %v3744_v21 = vld [vmem:[%s3449_s9 + $0x170] sm:$0xff]  ;;  %v811_v62 = vrot.slane %v3561_v46, 1 }
  0x2b   : > { %6431 = vst [vmem:[#allocation21_spill] sm:$0xff] %v3712_v44  ;;  %v1144_v44 = vrot.slane %v3727_v42, 2  ;;  %v3732_v19 = vsel %vm1073_vm0, %v1140_v33, %v1142_v25  ;;  %v3735_v57 = vsel %vm1073_vm0, %v1139_v47, %v1140_v33  ;;  %v1147_v0 = vrot.slane %v3740_v17, 2  ;;  %v3760_v33 = vld [vmem:[%s3449_s9 + $0x178] sm:$0x3] }
  0x2c   : > { %6433 = vst [vmem:[#allocation23_spill] sm:$0xff] %v3732_v19  ;;  %6434 = vst [vmem:[#allocation24_spill] sm:$0xff] %v3735_v57  ;;  %v1150_v16 = vrot.slane %v3744_v21, 2  ;;  %v1149_v25 = vrot.slane %v3747_v58, 2  ;;  %v793_v57 = vrot.slane %v3455_v2, 1  ;;  %v1152_v52 = vrot.slane %v3760_v33, 2 }
  0x2d   : > { %v3752_v19 = vsel %vm1073_vm0, %v1145_v23, %v1147_v0  ;;  %v3755_v47 = vsel %vm1073_vm0, %v1144_v44, %v1145_v23  ;;  %v798_v23 = vrot.slane %v3452_v1, 1  ;;  %v799_v2 = vrot.slane %v3460_v3, 1 }
  0x2e   : > { %613 = vperm.xlu1 %3354, %v3500_v13   ;;  %608 = vperm.xlu0 %3353, %v3503_v14   ;;  %6435 = vst [vmem:[#allocation25_spill] sm:$0xff] %v3755_v47  ;;  %v3767_v0 = vsel %vm1073_vm0, %v1150_v16, %v1152_v52  ;;  %v3770_v44 = vsel %vm1073_vm0, %v1149_v25, %v1150_v16  ;;  %v801_v47 = vrot.slane %v3548_v41, 1  ;;  %v804_v52 = vrot.slane %v3468_v5, 1 }
  0x2f   : > { %6436 = vst [vmem:[#allocation26_spill] sm:$0xff] %v3770_v44  ;;  %v795_v37 = vsel %vm792_vm1, %v793_v57, %v794_v56  ;;  %v803_v16 = vrot.slane %v3471_v6, 1  ;;  %v800_v25 = vsel %vm792_vm1, %v798_v23, %v799_v2  ;;  %v806_v44 = vrot.slane %v3558_v45, 1 }
  0x30   : > { %v802_v1 = vsel %vm792_vm1, %v799_v2, %v801_v47  ;;  %v809_v3 = vrot.slane %v3476_v7, 1  ;;  %v808_v56 = vrot.slane %v3479_v8, 1  ;;  %v814_v6 = vrot.slane %v3484_v9, 1 }
  0x31   : > { %v807_v41 = vsel %vm792_vm1, %v804_v52, %v806_v44  ;;  %v805_v5 = vsel %vm792_vm1, %v803_v16, %v804_v52  ;;  %v813_v57 = vrot.slane %v3487_v10, 1  ;;  %v816_v47 = vrot.slane %v3568_v49, 1 }
  0x32   : > { %623 = vperm.xlu1 %3354, %v3519_v26   ;;  %618 = vperm.xlu0 %3353, %v3526_v31   ;;  %v812_v45 = vsel %vm792_vm1, %v809_v3, %v811_v62  ;;  %v810_v7 = vsel %vm792_vm1, %v808_v56, %v809_v3  ;;  %v819_v8 = vrot.slane %v3492_v11, 1  ;;  %v818_v44 = vrot.slane %v3495_v12, 1 }
  0x33   : > { %v817_v46 = vsel %vm792_vm1, %v814_v6, %v816_v47  ;;  %v815_v9 = vsel %vm792_vm1, %v813_v57, %v814_v6  ;;  %v821_v23 = vrot.slane %v3579_v54, 1  ;;  %v824_v10 = vrot.slane %v3500_v13, 1 }
  0x34   : > { %v823_v2 = vrot.slane %v3503_v14, 1  ;;  %v820_v11 = vsel %vm792_vm1, %v818_v44, %v819_v8  ;;  %v829_v12 = vrot.slane %v3519_v26, 1  ;;  %v831_v52 = vrot.slane %v3595_v60, 1 }
  0x35   : > { %v822_v49 = vsel %vm792_vm1, %v819_v8, %v821_v23  ;;  %v834_v14 = vrot.slane %v3529_v32, 1  ;;  %v833_v16 = vrot.slane %v3534_v35, 1  ;;  %v841_v3 = vrot.slane %v3621_v20, 1 }
  0x36   : > { %633 = vperm.xlu1 %3354, %v3529_v32   ;;  %628 = vperm.xlu0 %3353, %v3534_v35   ;;  %v825_v13 = vsel %vm792_vm1, %v823_v2, %v824_v10  ;;  %v844_v35 = vrot.slane %v3634_v27, 1  ;;  %v843_v56 = vrot.slane %v3637_v29, 1  ;;  %v851_v62 = vrot.slane %v3680_v39, 1  ;;  %v6442_v2 = vld [vmem:[#allocation2_spill] sm:$0xff] }
  0x37   : > { %v835_v32 = vsel %vm792_vm1, %v833_v16, %v834_v14  ;;  %v853_v6 = vrot.slane %v3687_v30, 1  ;;  %v856_v57 = vrot.slane %v3700_v24, 1  ;;  %v863_v47 = vrot.slane %v3727_v42, 1  ;;  %v6457_v16 = vld [vmem:[#allocation12_spill] sm:$0xff] }
  0x38   : > { %v866_v8 = vrot.slane %v3740_v17, 1  ;;  %v868_v44 = vrot.slane %v3747_v58, 1 }
  0x3a   : > { %643 = vperm.xlu1 %3354, %v3537_v36   ;;  %638 = vperm.xlu0 %3353, %v3545_v40  }
  0x3e   : > { %653 = vperm.xlu1 %3354, %v3634_v27   ;;  %648 = vperm.xlu0 %3353, %v3637_v29   ;;  %v845_v27 = vsel %vm792_vm1, %v843_v56, %v844_v35  ;;  %v854_v29 = vrot.slane %v3684_v53, 1 }
  0x40   : > { %v857_v39 = vsel %vm792_vm1, %v854_v29, %v856_v57 }
  0x42   : > { %663 = vperm.xlu1 %3354, %v3664_v63   ;;  %658 = vperm.xlu0 %3353, %v3667_v34  }
  0x46   : > { %673 = vperm.xlu1 %3354, %v3684_v53   ;;  %668 = vperm.xlu0 %3353, %v3687_v30   ;;  %v855_v53 = vsel %vm792_vm1, %v853_v6, %v854_v29  ;;  %v864_v30 = vrot.slane %v3724_v18, 1  ;;  %v6477_v6 = vld [vmem:[#allocation19_spill] sm:$0xff] }
  0x4a   : > { %683 = vperm.xlu1 %3354, %v3704_v38   ;;  %678 = vperm.xlu0 %3353, %v3707_v22  }
  0x4e   : > { %693 = vperm.xlu1 %3354, %v3724_v18   ;;  %688 = vperm.xlu0 %3353, %v3727_v42   ;;  %v865_v18 = vsel %vm792_vm1, %v863_v47, %v864_v30 }
  0x52   : > { %703 = vperm.xlu1 %3354, %v3744_v21   ;;  %698 = vperm.xlu0 %3353, %v3747_v58  }
  0x56   : > { %880 = vperm.xlu1 %3354, %v797_v4   ;;  %876 = vperm.xlu0 %3353, %v795_v37   ;;  %v826_v4 = vrot.slane %v3592_v59, 1  ;;  %v828_v37 = vrot.slane %v3526_v31, 1  ;;  %v832_v59 = vsel %vm792_vm1, %v829_v12, %v831_v52  ;;  %v839_v31 = vrot.slane %v3537_v36, 1 }
  0x58   : > { %v827_v54 = vsel %vm792_vm1, %v824_v10, %v826_v4  ;;  %v830_v26 = vsel %vm792_vm1, %v828_v37, %v829_v12  ;;  %v6450_v12 = vld [vmem:[#allocation4_spill] sm:$0xff] }
  0x5a   : > { %888 = vperm.xlu1 %3354, %v802_v1   ;;  %884 = vperm.xlu0 %3353, %v800_v25   ;;  %v836_v1 = vrot.slane %v3610_v15, 1  ;;  %v838_v25 = vrot.slane %v3545_v40, 1  ;;  %v842_v15 = vsel %vm792_vm1, %v839_v31, %v841_v3  ;;  %v849_v40 = vrot.slane %v3664_v63, 1  ;;  %v6465_v3 = vld [vmem:[#allocation14_spill] sm:$0xff] }
  0x5c   : > { %v837_v60 = vsel %vm792_vm1, %v834_v14, %v836_v1  ;;  %v840_v36 = vsel %vm792_vm1, %v838_v25, %v839_v31  ;;  %v6461_v31 = vld [vmem:[#allocation13_spill] sm:$0xff]  ;;  %v6462_v25 = vld [vmem:[#allocation10_spill] sm:$0xff] }
  0x5e   : > { %896 = vperm.xlu1 %3354, %v807_v41   ;;  %892 = vperm.xlu0 %3353, %v805_v5   ;;  %v846_v41 = vrot.slane %v3657_v28, 1  ;;  %v848_v5 = vrot.slane %v3667_v34, 1  ;;  %v852_v28 = vsel %vm792_vm1, %v849_v40, %v851_v62  ;;  %v859_v34 = vrot.slane %v3704_v38, 1 }
  0x60   : > { %v847_v20 = vsel %vm792_vm1, %v844_v35, %v846_v41  ;;  %v850_v63 = vsel %vm792_vm1, %v848_v5, %v849_v40  ;;  %v6466_v35 = vld [vmem:[#allocation11_spill] sm:$0xff] }
  0x61   : > { %v6470_v41 = vld [vmem:[#allocation15_spill] sm:$0xff] }
  0x62   : > { %904 = vperm.xlu1 %3354, %v812_v45   ;;  %900 = vperm.xlu0 %3353, %v810_v7   ;;  %v858_v45 = vrot.slane %v3707_v22, 1  ;;  %v861_v7 = vrot.slane %v3720_v51, 1  ;;  %v869_v22 = vrot.slane %v3744_v21, 1  ;;  %v867_v51 = vsel %vm792_vm1, %v864_v30, %v866_v8  ;;  %v6486_v30 = vld [vmem:[#allocation24_spill] sm:$0xff] }
  0x64   : > { %v862_v24 = vsel %vm792_vm1, %v859_v34, %v861_v7  ;;  %v860_v38 = vsel %vm792_vm1, %v858_v45, %v859_v34  ;;  %v6481_v34 = vld [vmem:[#allocation21_spill] sm:$0xff]  ;;  %v6482_v45 = vld [vmem:[#allocation22_spill] sm:$0xff]  ;;  %v6485_v7 = vld [vmem:[#allocation23_spill] sm:$0xff] }
  0x66   : > { %912 = vperm.xlu1 %3354, %v817_v46   ;;  %908 = vperm.xlu0 %3353, %v815_v9   ;;  %v871_v46 = vrot.slane %v3760_v33, 1  ;;  %v870_v9 = vsel %vm792_vm1, %v868_v44, %v869_v22  ;;  %v3954_v44 = vld [vmem:[%s3945_s12 + $0x8] sm:$0xff] }
  0x68   : > { %v872_v42 = vsel %vm792_vm1, %v869_v22, %v871_v46 }
  0x6a   : > { %920 = vperm.xlu1 %3354, %v822_v49   ;;  %916 = vperm.xlu0 %3353, %v820_v11   ;;  %v6446_v11 = vld [vmem:[#allocation3_spill] sm:$0xff] }
  0x6e   : > { %928 = vperm.xlu1 %3354, %v827_v54   ;;  %924 = vperm.xlu0 %3353, %v825_v13   ;;  %v6453_v54 = vld [vmem:[#allocation9_spill] sm:$0xff]  ;;  %v6454_v13 = vld [vmem:[#allocation6_spill] sm:$0xff] }
  0x72   : > { %936 = vperm.xlu1 %3354, %v832_v59   ;;  %932 = vperm.xlu0 %3353, %v830_v26   ;;  %v6458_v59 = vld [vmem:[#allocation8_spill] sm:$0xff] }
  0x76   : > { %944 = vperm.xlu1 %3354, %v837_v60   ;;  %940 = vperm.xlu0 %3353, %v835_v32  }
  0x7a   : > { %952 = vperm.xlu1 %3354, %v842_v15   ;;  %948 = vperm.xlu0 %3353, %v840_v36   ;;  %v6469_v36 = vld [vmem:[#allocation16_spill] sm:$0xff] }
  0x7e   : > { %960 = vperm.xlu1 %3354, %v847_v20   ;;  %956 = vperm.xlu0 %3353, %v845_v27   ;;  %v6473_v20 = vld [vmem:[#allocation17_spill] sm:$0xff]  ;;  %v6474_v27 = vld [vmem:[#allocation18_spill] sm:$0xff] }
  0x82   : > { %968 = vperm.xlu1 %3354, %v852_v28   ;;  %964 = vperm.xlu0 %3353, %v850_v63   ;;  %v6478_v28 = vld [vmem:[#allocation20_spill] sm:$0xff] }
  0x86   : > { %976 = vperm.xlu1 %3354, %v857_v39   ;;  %972 = vperm.xlu0 %3353, %v855_v53  }
  0x8a   : > { %984 = vperm.xlu1 %3354, %v862_v24   ;;  %980 = vperm.xlu0 %3353, %v860_v38   ;;  %v6489_v38 = vld [vmem:[#allocation25_spill] sm:$0xff] }
  0x8e   : > { %992 = vperm.xlu1 %3354, %v867_v51   ;;  %988 = vperm.xlu0 %3353, %v865_v18   ;;  %v3957_v51 = vld [vmem:[%s3945_s12] sm:$0xff] }
  0x92   : > { %1000 = vperm.xlu1 %3354, %v872_v42   ;;  %996 = vperm.xlu0 %3353, %v870_v9   ;;  %v3966_v42 = vld [vmem:[%s3945_s12 + $0x20] sm:$0xff]  ;;  %v3969_v9 = vld [vmem:[%s3945_s12 + $0x18] sm:$0xff] }
  0x95   : > { %v3851_v17 = vpop.permute.xlu1 %558  ;;  %v3853_v21 = vpop.permute.xlu0 %548 }
  0x96   : > { %6437 = vst [vmem:[#allocation27_spill] sm:$0xff] %v3853_v21  ;;  %1161 = vperm.xlu1 %3354, %v3571_v50   ;;  %1157 = vperm.xlu0 %3353, %v3552_v43   ;;  %v6445_v43 = vld [vmem:[#allocation5_spill] sm:$0xff] }
  0x99   : > { %v3857_v58 = vpop.permute.xlu1 %563  ;;  %v3859_v23 = vpop.permute.xlu0 %553 }
  0x9a   : > { %6438 = vst [vmem:[#allocation28_spill] sm:$0xff] %v3857_v58  ;;  %6439 = vst [vmem:[#allocation29_spill] sm:$0xff] %v3859_v23  ;;  %1169 = vperm.xlu1 %3354, %v3582_v55   ;;  %1165 = vperm.xlu0 %3353, %v3565_v48   ;;  %v6449_v48 = vld [vmem:[#allocation7_spill] sm:$0xff] }
  0x9d   : > { %v3863_v33 = vpop.permute.xlu1 %573  ;;  %v3865_v10 = vpop.permute.xlu0 %568 }
  0x9e   : > { %6440 = vst [vmem:[#allocation30_spill] sm:$0xff] %v3863_v33  ;;  %6441 = vst [vmem:[#allocation31_spill] sm:$0xff] %v3865_v10  ;;  %1177 = vperm.xlu1 %3354, %v3598_v61   ;;  %1173 = vperm.xlu0 %3353, %v6442_v2  }
  0xa1   : > { %v3869_v49 = vpop.permute.xlu1 %583  ;;  %v3871_v50 = vpop.permute.xlu0 %578 }
  0xa2   : > { %6443 = vst [vmem:[#allocation2_spill] sm:$0xff] %v3869_v49  ;;  %6444 = vst [vmem:[#allocation32_spill] sm:$0xff] %v3871_v50  ;;  %1185 = vperm.xlu1 %3354, %v6445_v43   ;;  %1181 = vperm.xlu0 %3353, %v6446_v11   ;;  %v3978_v43 = vld [vmem:[%s3945_s12 + $0x38] sm:$0xff]  ;;  %v3981_v11 = vld [vmem:[%s3945_s12 + $0x30] sm:$0xff] }
  0xa5   : > { %v3875_v4 = vpop.permute.xlu1 %593  ;;  %v3877_v55 = vpop.permute.xlu0 %588 }
  0xa6   : > { %6447 = vst [vmem:[#allocation5_spill] sm:$0xff] %v3875_v4  ;;  %6448 = vst [vmem:[#allocation3_spill] sm:$0xff] %v3877_v55  ;;  %1193 = vperm.xlu1 %3354, %v6449_v48   ;;  %1189 = vperm.xlu0 %3353, %v6450_v12  }
  0xa9   : > { %v3881_v37 = vpop.permute.xlu1 %603  ;;  %v3883_v61 = vpop.permute.xlu0 %598 }
  0xaa   : > { %6451 = vst [vmem:[#allocation7_spill] sm:$0xff] %v3881_v37  ;;  %6452 = vst [vmem:[#allocation4_spill] sm:$0xff] %v3883_v61  ;;  %1201 = vperm.xlu1 %3354, %v6453_v54   ;;  %1197 = vperm.xlu0 %3353, %v6454_v13   ;;  %v3990_v54 = vld [vmem:[%s3945_s12 + $0x50] sm:$0xff]  ;;  %v3993_v13 = vld [vmem:[%s3945_s12 + $0x48] sm:$0xff] }
  0xad   : > { %v3887_v52 = vpop.permute.xlu1 %613  ;;  %v3889_v14 = vpop.permute.xlu0 %608 }
  0xae   : > { %6455 = vst [vmem:[#allocation9_spill] sm:$0xff] %v3887_v52  ;;  %6456 = vst [vmem:[#allocation6_spill] sm:$0xff] %v3889_v14  ;;  %1209 = vperm.xlu1 %3354, %v6457_v16   ;;  %1205 = vperm.xlu0 %3353, %v6458_v59  }
  0xb1   : > { %v3893_v26 = vpop.permute.xlu1 %623  ;;  %v3895_v1 = vpop.permute.xlu0 %618 }
  0xb2   : > { %6459 = vst [vmem:[#allocation12_spill] sm:$0xff] %v3893_v26  ;;  %6460 = vst [vmem:[#allocation8_spill] sm:$0xff] %v3895_v1  ;;  %1217 = vperm.xlu1 %3354, %v6461_v31   ;;  %1213 = vperm.xlu0 %3353, %v6462_v25   ;;  %v4002_v31 = vld [vmem:[%s3945_s12 + $0x68] sm:$0xff]  ;;  %v4005_v25 = vld [vmem:[%s3945_s12 + $0x60] sm:$0xff] }
  0xb5   : > { %v3899_v60 = vpop.permute.xlu1 %633  ;;  %v3901_v32 = vpop.permute.xlu0 %628 }
  0xb6   : > { %6463 = vst [vmem:[#allocation13_spill] sm:$0xff] %v3899_v60  ;;  %6464 = vst [vmem:[#allocation10_spill] sm:$0xff] %v3901_v32  ;;  %1225 = vperm.xlu1 %3354, %v6465_v3   ;;  %1221 = vperm.xlu0 %3353, %v6466_v35   ;;  %v1612_v32 = vrot.slane %v3981_v11, 1 }
  0xb9   : > { %v3905_v56 = vpop.permute.xlu1 %643  ;;  %v3907_v15 = vpop.permute.xlu0 %638 }
  0xba   : > { %6467 = vst [vmem:[#allocation14_spill] sm:$0xff] %v3905_v56  ;;  %6468 = vst [vmem:[#allocation11_spill] sm:$0xff] %v3907_v15  ;;  %1233 = vperm.xlu1 %3354, %v6469_v36   ;;  %1229 = vperm.xlu0 %3353, %v6470_v41   ;;  %v4014_v36 = vld [vmem:[%s3945_s12 + $0x80] sm:$0xff]  ;;  %v4017_v41 = vld [vmem:[%s3945_s12 + $0x78] sm:$0xff]  ;;  %v1613_v56 = vrot.slane %v3978_v43, 1 }
  0xbb   : > { %v4160_v15 = vld [vmem:[%s3945_s12 + $0x40] sm:$0x3] }
  0xbd   : > { %v3911_v40 = vpop.permute.xlu1 %653  ;;  %v3913_v5 = vpop.permute.xlu0 %648 }
  0xbe   : > { %6471 = vst [vmem:[#allocation16_spill] sm:$0xff] %v3911_v40  ;;  %6472 = vst [vmem:[#allocation15_spill] sm:$0xff] %v3913_v5  ;;  %1241 = vperm.xlu1 %3354, %v6473_v20   ;;  %1237 = vperm.xlu0 %3353, %v6474_v27  }
  0xc1   : > { %v3917_v62 = vpop.permute.xlu1 %663  ;;  %v3919_v29 = vpop.permute.xlu0 %658 }
  0xc2   : > { %6475 = vst [vmem:[#allocation17_spill] sm:$0xff] %v3917_v62  ;;  %6476 = vst [vmem:[#allocation18_spill] sm:$0xff] %v3919_v29  ;;  %1249 = vperm.xlu1 %3354, %v6477_v6   ;;  %1245 = vperm.xlu0 %3353, %v6478_v28   ;;  %v4026_v6 = vld [vmem:[%s3945_s12 + $0x98] sm:$0xff]  ;;  %v4029_v28 = vld [vmem:[%s3945_s12 + $0x90] sm:$0xff]  ;;  %v1607_v29 = vrot.slane %v3969_v9, 1 }
  0xc5   : > { %v3923_v63 = vpop.permute.xlu1 %673  ;;  %v3925_v57 = vpop.permute.xlu0 %668 }
  0xc6   : > { %6479 = vst [vmem:[#allocation19_spill] sm:$0xff] %v3923_v63  ;;  %6480 = vst [vmem:[#allocation20_spill] sm:$0xff] %v3925_v57  ;;  %1257 = vperm.xlu1 %3354, %v6481_v34   ;;  %1253 = vperm.xlu0 %3353, %v6482_v45   ;;  %v4146_v57 = vld [vmem:[%s3945_s12 + $0x28] sm:$0x3]  ;;  %v1608_v63 = vrot.slane %v3966_v42, 1 }
  0xc7   : > { %v1610_v40 = vrot.slane %v4146_v57, 1 }
  0xc9   : > { %v3929_v39 = vpop.permute.xlu1 %683  ;;  %v3931_v53 = vpop.permute.xlu0 %678  ;;  %v1611_v60 = vsel %vm792_vm1, %v1608_v63, %v1610_v40  ;;  %v1614_v40 = vsel %vm792_vm1, %v1612_v32, %v1613_v56 }
  0xca   : > { %6483 = vst [vmem:[#allocation21_spill] sm:$0xff] %v3929_v39  ;;  %6484 = vst [vmem:[#allocation22_spill] sm:$0xff] %v3931_v53  ;;  %1265 = vperm.xlu1 %3354, %v6485_v7   ;;  %1261 = vperm.xlu0 %3353, %v6486_v30   ;;  %v4038_v7 = vld [vmem:[%s3945_s12 + $0xb0] sm:$0xff]  ;;  %v4041_v30 = vld [vmem:[%s3945_s12 + $0xa8] sm:$0xff] }
  0xcb   : > { %v4142_v53 = vld [vmem:[%s3945_s12 + $0x168] sm:$0xff] }
  0xcd   : > { %v3935_v47 = vpop.permute.xlu1 %693  ;;  %v3937_v24 = vpop.permute.xlu0 %688 }
  0xce   : > { %6487 = vst [vmem:[#allocation23_spill] sm:$0xff] %v3935_v47  ;;  %6488 = vst [vmem:[#allocation24_spill] sm:$0xff] %v3937_v24  ;;  %1273 = vperm.xlu1 %3354, %v3752_v19   ;;  %1269 = vperm.xlu0 %3353, %v6489_v38   ;;  %v6492_v19 = vld [vmem:[#allocation26_spill] sm:$0xff]  ;;  %v4139_v47 = vld [vmem:[%s3945_s12 + $0x170] sm:$0xff] }
  0xd1   : > { %v3947_v8 = vpop.permute.xlu1 %703  ;;  %v3949_v22 = vpop.permute.xlu0 %698 }
  0xd2   : > { %6490 = vst [vmem:[#allocation25_spill] sm:$0xff] %v3947_v8  ;;  %6491 = vst [vmem:[#allocation33_spill] sm:$0xff] %v3949_v22  ;;  %1281 = vperm.xlu1 %3354, %v3767_v0   ;;  %1277 = vperm.xlu0 %3353, %v6492_v19   ;;  %v4128_v22 = vld [vmem:[%s3945_s12 + $0x10] sm:$0x3] }
  0xd3   : > { %v1605_v39 = vrot.slane %v4128_v22, 1 }
  0xd5   : > { %v3959_v18 = vpop.permute.xlu1 %880  ;;  %v3961_v46 = vpop.permute.xlu0 %876 }
  0xd6   : > { %6493 = vst [vmem:[#allocation26_spill] sm:$0xff] %v3959_v18  ;;  %6494 = vst [vmem:[#allocation34_spill] sm:$0xff] %v3961_v46  ;;  %1363 = vperm.xlu1 %3354, %v3954_v44   ;;  %1358 = vperm.xlu0 %3353, %v3957_v51  }
  0xd9   : > { %v3971_v0 = vpop.permute.xlu1 %888  ;;  %v3973_v2 = vpop.permute.xlu0 %884 }
  0xda   : > { %6495 = vst [vmem:[#allocation35_spill] sm:$0xff] %v3971_v0  ;;  %6496 = vst [vmem:[#allocation36_spill] sm:$0xff] %v3973_v2  ;;  %1373 = vperm.xlu1 %3354, %v3966_v42   ;;  %1368 = vperm.xlu0 %3353, %v3969_v9  }
  0xdd   : > { %v3983_v48 = vpop.permute.xlu1 %896  ;;  %v3985_v12 = vpop.permute.xlu0 %892 }
  0xde   : > { %6497 = vst [vmem:[#allocation37_spill] sm:$0xff] %v3983_v48  ;;  %6498 = vst [vmem:[#allocation38_spill] sm:$0xff] %v3985_v12  ;;  %1383 = vperm.xlu1 %3354, %v3978_v43   ;;  %1378 = vperm.xlu0 %3353, %v3981_v11  }
  0xe1   : > { %v3995_v16 = vpop.permute.xlu1 %904  ;;  %v3997_v59 = vpop.permute.xlu0 %900 }
  0xe2   : > { %6499 = vst [vmem:[#allocation39_spill] sm:$0xff] %v3995_v16  ;;  %6500 = vst [vmem:[#allocation40_spill] sm:$0xff] %v3997_v59  ;;  %1393 = vperm.xlu1 %3354, %v3990_v54   ;;  %1388 = vperm.xlu0 %3353, %v3993_v13  }
  0xe5   : > { %v4007_v3 = vpop.permute.xlu1 %912  ;;  %v4009_v35 = vpop.permute.xlu0 %908 }
  0xe6   : > { %6501 = vst [vmem:[#allocation41_spill] sm:$0xff] %v4007_v3  ;;  %6502 = vst [vmem:[#allocation42_spill] sm:$0xff] %v4009_v35  ;;  %1403 = vperm.xlu1 %3354, %v4002_v31   ;;  %1398 = vperm.xlu0 %3353, %v4005_v25  }
  0xe9   : > { %v4019_v20 = vpop.permute.xlu1 %920  ;;  %v4021_v27 = vpop.permute.xlu0 %916 }
  0xea   : > { %6503 = vst [vmem:[#allocation43_spill] sm:$0xff] %v4019_v20  ;;  %6504 = vst [vmem:[#allocation44_spill] sm:$0xff] %v4021_v27  ;;  %1413 = vperm.xlu1 %3354, %v4014_v36   ;;  %1408 = vperm.xlu0 %3353, %v4017_v41  }
  0xed   : > { %v4031_v34 = vpop.permute.xlu1 %928  ;;  %v4033_v45 = vpop.permute.xlu0 %924 }
  0xee   : > { %6505 = vst [vmem:[#allocation45_spill] sm:$0xff] %v4031_v34  ;;  %6506 = vst [vmem:[#allocation46_spill] sm:$0xff] %v4033_v45  ;;  %1423 = vperm.xlu1 %3354, %v4026_v6   ;;  %1418 = vperm.xlu0 %3353, %v4029_v28   ;;  %v4050_v45 = vld [vmem:[%s3945_s12 + $0xc8] sm:$0xff]  ;;  %v4053_v34 = vld [vmem:[%s3945_s12 + $0xc0] sm:$0xff] }
  0xf1   : > { %v4043_v38 = vpop.permute.xlu1 %936  ;;  %v4045_v19 = vpop.permute.xlu0 %932 }
  0xf2   : > { %6507 = vst [vmem:[#allocation47_spill] sm:$0xff] %v4043_v38  ;;  %6508 = vst [vmem:[#allocation48_spill] sm:$0xff] %v4045_v19  ;;  %1433 = vperm.xlu1 %3354, %v4038_v7   ;;  %1428 = vperm.xlu0 %3353, %v4041_v30   ;;  %v4062_v19 = vld [vmem:[%s3945_s12 + $0xe0] sm:$0xff]  ;;  %v4065_v38 = vld [vmem:[%s3945_s12 + $0xd8] sm:$0xff] }
  0xf5   : > { %v4055_v27 = vpop.permute.xlu1 %944  ;;  %v4057_v20 = vpop.permute.xlu0 %940 }
  0xf6   : > { %6509 = vst [vmem:[#allocation49_spill] sm:$0xff] %v4055_v27  ;;  %6510 = vst [vmem:[#allocation50_spill] sm:$0xff] %v4057_v20  ;;  %1443 = vperm.xlu1 %3354, %v4050_v45   ;;  %1438 = vperm.xlu0 %3353, %v4053_v34   ;;  %v4074_v20 = vld [vmem:[%s3945_s12 + $0xf8] sm:$0xff]  ;;  %v4077_v27 = vld [vmem:[%s3945_s12 + $0xf0] sm:$0xff] }
  0xf9   : > { %v4067_v35 = vpop.permute.xlu1 %952  ;;  %v4069_v3 = vpop.permute.xlu0 %948 }
  0xfa   : > { %6511 = vst [vmem:[#allocation51_spill] sm:$0xff] %v4067_v35  ;;  %6512 = vst [vmem:[#allocation52_spill] sm:$0xff] %v4069_v3  ;;  %1453 = vperm.xlu1 %3354, %v4062_v19   ;;  %1448 = vperm.xlu0 %3353, %v4065_v38   ;;  %v4086_v3 = vld [vmem:[%s3945_s12 + $0x110] sm:$0xff]  ;;  %v4089_v35 = vld [vmem:[%s3945_s12 + $0x108] sm:$0xff] }
  0xfd   : > { %v4079_v59 = vpop.permute.xlu1 %960  ;;  %v4081_v16 = vpop.permute.xlu0 %956 }
  0xfe   : > { %6513 = vst [vmem:[#allocation53_spill] sm:$0xff] %v4079_v59  ;;  %6514 = vst [vmem:[#allocation54_spill] sm:$0xff] %v4081_v16  ;;  %1463 = vperm.xlu1 %3354, %v4074_v20   ;;  %1458 = vperm.xlu0 %3353, %v4077_v27   ;;  %v4098_v16 = vld [vmem:[%s3945_s12 + $0x128] sm:$0xff]  ;;  %v4101_v59 = vld [vmem:[%s3945_s12 + $0x120] sm:$0xff] }
 0x101   : > { %v4091_v12 = vpop.permute.xlu1 %968  ;;  %v4093_v48 = vpop.permute.xlu0 %964 }
 0x102   : > { %6515 = vst [vmem:[#allocation55_spill] sm:$0xff] %v4091_v12  ;;  %6516 = vst [vmem:[#allocation56_spill] sm:$0xff] %v4093_v48  ;;  %1473 = vperm.xlu1 %3354, %v4086_v3   ;;  %1468 = vperm.xlu0 %3353, %v4089_v35   ;;  %v4110_v48 = vld [vmem:[%s3945_s12 + $0x140] sm:$0xff]  ;;  %v4113_v12 = vld [vmem:[%s3945_s12 + $0x138] sm:$0xff] }
 0x105   : > { %v4103_v2 = vpop.permute.xlu1 %976  ;;  %v4105_v0 = vpop.permute.xlu0 %972 }
 0x106   : > { %6517 = vst [vmem:[#allocation57_spill] sm:$0xff] %v4103_v2  ;;  %6518 = vst [vmem:[#allocation58_spill] sm:$0xff] %v4105_v0  ;;  %1483 = vperm.xlu1 %3354, %v4098_v16   ;;  %1478 = vperm.xlu0 %3353, %v4101_v59   ;;  %v4122_v0 = vld [vmem:[%s3945_s12 + $0x158] sm:$0xff]  ;;  %v4125_v2 = vld [vmem:[%s3945_s12 + $0x150] sm:$0xff] }
 0x109   : > { %v4115_v46 = vpop.permute.xlu1 %984  ;;  %v4117_v18 = vpop.permute.xlu0 %980 }
 0x10a   : > { %6519 = vst [vmem:[#allocation59_spill] sm:$0xff] %v4115_v46  ;;  %6520 = vst [vmem:[#allocation60_spill] sm:$0xff] %v4117_v18  ;;  %1493 = vperm.xlu1 %3354, %v4110_v48   ;;  %1488 = vperm.xlu0 %3353, %v4113_v12   ;;  %v1603_v18 = vrot.slane %v3954_v44, 1  ;;  %v1602_v46 = vrot.slane %v3957_v51, 1 }
 0x10c   : > { %v1606_v62 = vsel %vm792_vm1, %v1603_v18, %v1605_v39  ;;  %v1604_v5 = vsel %vm792_vm1, %v1602_v46, %v1603_v18  ;;  %v1609_v39 = vsel %vm792_vm1, %v1607_v29, %v1608_v63  ;;  %v1615_v18 = vrot.slane %v4160_v15, 1  ;;  %v4172_v46 = vld [vmem:[%s3945_s12 + $0x58] sm:$0x3]  ;;  %v4184_v63 = vld [vmem:[%s3945_s12 + $0x70] sm:$0x3] }
 0x10d   : > { %v4130_v8 = vpop.permute.xlu1 %992  ;;  %v4132_v24 = vpop.permute.xlu0 %988  ;;  %v1620_v29 = vrot.slane %v4172_v46, 1  ;;  %v1625_v32 = vrot.slane %v4184_v63, 1 }
 0x10e   : > { %6521 = vst [vmem:[#allocation61_spill] sm:$0xff] %v4130_v8  ;;  %6522 = vst [vmem:[#allocation62_spill] sm:$0xff] %v4132_v24  ;;  %1503 = vperm.xlu1 %3354, %v4122_v0   ;;  %1498 = vperm.xlu0 %3353, %v4125_v2  }
 0x111   : > { %v4148_v8 = vpop.permute.xlu1 %1000  ;;  %v4150_v24 = vpop.permute.xlu0 %996 }
 0x112   : > { %6523 = vst [vmem:[#allocation63_spill] sm:$0xff] %v4148_v8  ;;  %6524 = vst [vmem:[#allocation64_spill] sm:$0xff] %v4150_v24  ;;  %1513 = vperm.xlu1 %3354, %v4139_v47   ;;  %1508 = vperm.xlu0 %3353, %v4142_v53  }
 0x115   : > { %v4162_v8 = vpop.permute.xlu1 %1161  ;;  %v4164_v24 = vpop.permute.xlu0 %1157 }
 0x116   : > { %6525 = vst [vmem:[#allocation65_spill] sm:$0xff] %v4162_v8  ;;  %6526 = vst [vmem:[#allocation66_spill] sm:$0xff] %v4164_v24  ;;  %1689 = vperm.xlu1 %3354, %v1606_v62   ;;  %1685 = vperm.xlu0 %3353, %v1604_v5   ;;  %v1618_v24 = vrot.slane %v3990_v54, 1  ;;  %v1617_v5 = vrot.slane %v3993_v13, 1  ;;  %v1616_v62 = vsel %vm792_vm1, %v1613_v56, %v1615_v18  ;;  %v4196_v56 = vld [vmem:[%s3945_s12 + $0x88] sm:$0x3] }
 0x118   : > { %v1619_v18 = vsel %vm792_vm1, %v1617_v5, %v1618_v24  ;;  %v4208_v5 = vld [vmem:[%s3945_s12 + $0xa0] sm:$0x3] }
 0x119   : > { %v4174_v1 = vpop.permute.xlu1 %1169  ;;  %v4176_v8 = vpop.permute.xlu0 %1165 }
 0x11a   : > { %6527 = vst [vmem:[#allocation67_spill] sm:$0xff] %v4174_v1  ;;  %6528 = vst [vmem:[#allocation68_spill] sm:$0xff] %v4176_v8  ;;  %1697 = vperm.xlu1 %3354, %v1611_v60   ;;  %1693 = vperm.xlu0 %3353, %v1609_v39   ;;  %v1623_v8 = vrot.slane %v4002_v31, 1  ;;  %v1622_v60 = vrot.slane %v4005_v25, 1  ;;  %v1621_v39 = vsel %vm792_vm1, %v1618_v24, %v1620_v29  ;;  %v1630_v24 = vrot.slane %v4196_v56, 1 }
 0x11c   : > { %v1624_v29 = vsel %vm792_vm1, %v1622_v60, %v1623_v8  ;;  %v4220_v60 = vld [vmem:[%s3945_s12 + $0xb8] sm:$0x3] }
 0x11d   : > { %v4186_v26 = vpop.permute.xlu1 %1177  ;;  %v4188_v1 = vpop.permute.xlu0 %1173 }
 0x11e   : > { %6529 = vst [vmem:[#allocation69_spill] sm:$0xff] %v4186_v26  ;;  %6530 = vst [vmem:[#allocation70_spill] sm:$0xff] %v4188_v1  ;;  %1705 = vperm.xlu1 %3354, %v1616_v62   ;;  %1701 = vperm.xlu0 %3353, %v1614_v40   ;;  %v1628_v1 = vrot.slane %v4014_v36, 1  ;;  %v1627_v62 = vrot.slane %v4017_v41, 1  ;;  %v1626_v40 = vsel %vm792_vm1, %v1623_v8, %v1625_v32  ;;  %v1635_v8 = vrot.slane %v4208_v5, 1 }
 0x120   : > { %v1629_v32 = vsel %vm792_vm1, %v1627_v62, %v1628_v1  ;;  %v4232_v62 = vld [vmem:[%s3945_s12 + $0xd0] sm:$0x3] }
 0x121   : > { %v4198_v14 = vpop.permute.xlu1 %1185  ;;  %v4200_v26 = vpop.permute.xlu0 %1181 }
 0x122   : > { %6531 = vst [vmem:[#allocation71_spill] sm:$0xff] %v4198_v14  ;;  %6532 = vst [vmem:[#allocation72_spill] sm:$0xff] %v4200_v26  ;;  %1713 = vperm.xlu1 %3354, %v1621_v39   ;;  %1709 = vperm.xlu0 %3353, %v1619_v18   ;;  %v1633_v26 = vrot.slane %v4026_v6, 1  ;;  %v1632_v39 = vrot.slane %v4029_v28, 1  ;;  %v1631_v18 = vsel %vm792_vm1, %v1628_v1, %v1630_v24  ;;  %v1640_v1 = vrot.slane %v4220_v60, 1 }
 0x124   : > { %v1634_v24 = vsel %vm792_vm1, %v1632_v39, %v1633_v26  ;;  %v4244_v39 = vld [vmem:[%s3945_s12 + $0xe8] sm:$0x3] }
 0x125   : > { %v4210_v52 = vpop.permute.xlu1 %1193  ;;  %v4212_v14 = vpop.permute.xlu0 %1189 }
 0x126   : > { %6533 = vst [vmem:[#allocation73_spill] sm:$0xff] %v4210_v52  ;;  %6534 = vst [vmem:[#allocation74_spill] sm:$0xff] %v4212_v14  ;;  %1721 = vperm.xlu1 %3354, %v1626_v40   ;;  %1717 = vperm.xlu0 %3353, %v1624_v29   ;;  %v1638_v14 = vrot.slane %v4038_v7, 1  ;;  %v1637_v40 = vrot.slane %v4041_v30, 1  ;;  %v1636_v29 = vsel %vm792_vm1, %v1633_v26, %v1635_v8  ;;  %v1645_v26 = vrot.slane %v4232_v62, 1 }
 0x128   : > { %v1639_v8 = vsel %vm792_vm1, %v1637_v40, %v1638_v14  ;;  %v4256_v40 = vld [vmem:[%s3945_s12 + $0x100] sm:$0x3] }
 0x129   : > { %v4222_v61 = vpop.permute.xlu1 %1201  ;;  %v4224_v52 = vpop.permute.xlu0 %1197 }
 0x12a   : > { %6535 = vst [vmem:[#allocation75_spill] sm:$0xff] %v4222_v61  ;;  %6536 = vst [vmem:[#allocation76_spill] sm:$0xff] %v4224_v52  ;;  %1729 = vperm.xlu1 %3354, %v1631_v18   ;;  %1725 = vperm.xlu0 %3353, %v1629_v32   ;;  %v1643_v52 = vrot.slane %v4050_v45, 1  ;;  %v1642_v18 = vrot.slane %v4053_v34, 1  ;;  %v1641_v32 = vsel %vm792_vm1, %v1638_v14, %v1640_v1  ;;  %v1650_v14 = vrot.slane %v4244_v39, 1 }
 0x12c   : > { %v1644_v1 = vsel %vm792_vm1, %v1642_v18, %v1643_v52  ;;  %v4268_v18 = vld [vmem:[%s3945_s12 + $0x118] sm:$0x3] }
 0x12d   : > { %v4234_v37 = vpop.permute.xlu1 %1209  ;;  %v4236_v61 = vpop.permute.xlu0 %1205 }
 0x12e   : > { %6537 = vst [vmem:[#allocation77_spill] sm:$0xff] %v4234_v37  ;;  %6538 = vst [vmem:[#allocation78_spill] sm:$0xff] %v4236_v61  ;;  %1737 = vperm.xlu1 %3354, %v1636_v29   ;;  %1733 = vperm.xlu0 %3353, %v1634_v24   ;;  %v1648_v61 = vrot.slane %v4062_v19, 1  ;;  %v1647_v29 = vrot.slane %v4065_v38, 1  ;;  %v1646_v24 = vsel %vm792_vm1, %v1643_v52, %v1645_v26  ;;  %v1655_v52 = vrot.slane %v4256_v40, 1 }
 0x130   : > { %v1649_v26 = vsel %vm792_vm1, %v1647_v29, %v1648_v61  ;;  %v4280_v29 = vld [vmem:[%s3945_s12 + $0x130] sm:$0x3] }
 0x131   : > { %v4246_v55 = vpop.permute.xlu1 %1217  ;;  %v4248_v37 = vpop.permute.xlu0 %1213 }
 0x132   : > { %6539 = vst [vmem:[#allocation79_spill] sm:$0xff] %v4246_v55  ;;  %6540 = vst [vmem:[#allocation80_spill] sm:$0xff] %v4248_v37  ;;  %1745 = vperm.xlu1 %3354, %v1641_v32   ;;  %1741 = vperm.xlu0 %3353, %v1639_v8   ;;  %v1653_v37 = vrot.slane %v4074_v20, 1  ;;  %v1652_v32 = vrot.slane %v4077_v27, 1  ;;  %v1651_v8 = vsel %vm792_vm1, %v1648_v61, %v1650_v14  ;;  %v1660_v61 = vrot.slane %v4268_v18, 1 }
 0x134   : > { %v1654_v14 = vsel %vm792_vm1, %v1652_v32, %v1653_v37  ;;  %v4292_v32 = vld [vmem:[%s3945_s12 + $0x148] sm:$0x3] }
 0x135   : > { %v4258_v4 = vpop.permute.xlu1 %1225  ;;  %v4260_v55 = vpop.permute.xlu0 %1221 }
 0x136   : > { %6541 = vst [vmem:[#allocation81_spill] sm:$0xff] %v4258_v4  ;;  %6542 = vst [vmem:[#allocation82_spill] sm:$0xff] %v4260_v55  ;;  %1753 = vperm.xlu1 %3354, %v1646_v24   ;;  %1749 = vperm.xlu0 %3353, %v1644_v1   ;;  %v1658_v55 = vrot.slane %v4086_v3, 1  ;;  %v1657_v24 = vrot.slane %v4089_v35, 1  ;;  %v1656_v1 = vsel %vm792_vm1, %v1653_v37, %v1655_v52  ;;  %v1665_v37 = vrot.slane %v4280_v29, 1 }
 0x138   : > { %v1659_v52 = vsel %vm792_vm1, %v1657_v24, %v1658_v55  ;;  %v4304_v24 = vld [vmem:[%s3945_s12 + $0x160] sm:$0x3] }
 0x139   : > { %v4270_v50 = vpop.permute.xlu1 %1233  ;;  %v4272_v4 = vpop.permute.xlu0 %1229 }
 0x13a   : > { %6543 = vst [vmem:[#allocation83_spill] sm:$0xff] %v4270_v50  ;;  %6544 = vst [vmem:[#allocation84_spill] sm:$0xff] %v4272_v4  ;;  %1761 = vperm.xlu1 %3354, %v1651_v8   ;;  %1757 = vperm.xlu0 %3353, %v1649_v26   ;;  %v1663_v4 = vrot.slane %v4098_v16, 1  ;;  %v1662_v8 = vrot.slane %v4101_v59, 1  ;;  %v1661_v26 = vsel %vm792_vm1, %v1658_v55, %v1660_v61  ;;  %v1670_v55 = vrot.slane %v4292_v32, 1 }
 0x13c   : > { %v1664_v61 = vsel %vm792_vm1, %v1662_v8, %v1663_v4  ;;  %v4316_v8 = vld [vmem:[%s3945_s12 + $0x178] sm:$0x3] }
 0x13d   : > { %v4282_v49 = vpop.permute.xlu1 %1241  ;;  %v4284_v50 = vpop.permute.xlu0 %1237 }
 0x13e   : > { %6545 = vst [vmem:[#allocation85_spill] sm:$0xff] %v4282_v49  ;;  %6546 = vst [vmem:[#allocation86_spill] sm:$0xff] %v4284_v50  ;;  %1769 = vperm.xlu1 %3354, %v1656_v1   ;;  %1765 = vperm.xlu0 %3353, %v1654_v14   ;;  %v1668_v50 = vrot.slane %v4110_v48, 1  ;;  %v1667_v1 = vrot.slane %v4113_v12, 1  ;;  %v1666_v14 = vsel %vm792_vm1, %v1663_v4, %v1665_v37  ;;  %v1675_v4 = vrot.slane %v4304_v24, 1 }
 0x140   : > { %v1669_v37 = vsel %vm792_vm1, %v1667_v1, %v1668_v50 }
 0x141   : > { %v4294_v10 = vpop.permute.xlu1 %1249  ;;  %v4296_v49 = vpop.permute.xlu0 %1245 }
 0x142   : > { %6547 = vst [vmem:[#allocation87_spill] sm:$0xff] %v4294_v10  ;;  %6548 = vst [vmem:[#allocation88_spill] sm:$0xff] %v4296_v49  ;;  %1777 = vperm.xlu1 %3354, %v1661_v26   ;;  %1773 = vperm.xlu0 %3353, %v1659_v52   ;;  %v1673_v49 = vrot.slane %v4122_v0, 1  ;;  %v1672_v26 = vrot.slane %v4125_v2, 1  ;;  %v1671_v52 = vsel %vm792_vm1, %v1668_v50, %v1670_v55  ;;  %v1680_v50 = vrot.slane %v4316_v8, 1 }
 0x144   : > { %v1674_v55 = vsel %vm792_vm1, %v1672_v26, %v1673_v49  ;;  %v1888_v26 = vrot.slane %v3966_v42, 2  ;;  %v1892_v42 = vrot.slane %v3981_v11, 2 }
 0x145   : > { %v4306_v33 = vpop.permute.xlu1 %1257  ;;  %v4308_v10 = vpop.permute.xlu0 %1253 }
 0x146   : > { %6549 = vst [vmem:[#allocation89_spill] sm:$0xff] %v4306_v33  ;;  %6550 = vst [vmem:[#allocation90_spill] sm:$0xff] %v4308_v10  ;;  %1785 = vperm.xlu1 %3354, %v1666_v14   ;;  %1781 = vperm.xlu0 %3353, %v1664_v61   ;;  %v1678_v10 = vrot.slane %v4139_v47, 1  ;;  %v1677_v14 = vrot.slane %v4142_v53, 1  ;;  %v1676_v61 = vsel %vm792_vm1, %v1673_v49, %v1675_v4  ;;  %v1885_v4 = vrot.slane %v4128_v22, 2 }
 0x147   : > { %v1893_v22 = vrot.slane %v3978_v43, 2 }
 0x149   : > { %v4318_v23 = vpop.permute.xlu1 %1265  ;;  %v4320_v58 = vpop.permute.xlu0 %1261  ;;  %v1894_v11 = vsel %vm1073_vm0, %v1892_v42, %v1893_v22 }
 0x14a   : > { %6551 = vst [vmem:[#allocation91_spill] sm:$0xff] %v4318_v23  ;;  %6552 = vst [vmem:[#allocation92_spill] sm:$0xff] %v4320_v58  ;;  %1793 = vperm.xlu1 %3354, %v1671_v52   ;;  %1789 = vperm.xlu0 %3353, %v1669_v37   ;;  %v1883_v23 = vrot.slane %v3954_v44, 2  ;;  %v1882_v58 = vrot.slane %v3957_v51, 2  ;;  %v1681_v52 = vsel %vm792_vm1, %v1678_v10, %v1680_v50  ;;  %v1887_v44 = vrot.slane %v3969_v9, 2 }
 0x14b   : > { %v1679_v37 = vsel %vm792_vm1, %v1677_v14, %v1678_v10 }
 0x14c   : > { %v1884_v51 = vsel %vm1073_vm0, %v1882_v58, %v1883_v23  ;;  %v1889_v9 = vsel %vm1073_vm0, %v1887_v44, %v1888_v26 }
 0x14d   : > { %v4327_v1 = vpop.permute.xlu1 %1273  ;;  %v4329_v33 = vpop.permute.xlu0 %1269 }
 0x14e   : > { %6553 = vst [vmem:[#allocation93_spill] sm:$0xff] %v4327_v1  ;;  %6554 = vst [vmem:[#allocation94_spill] sm:$0xff] %v4329_v33  ;;  %1801 = vperm.xlu1 %3354, %v1676_v61   ;;  %1797 = vperm.xlu0 %3353, %v1674_v55   ;;  %v1886_v61 = vsel %vm1073_vm0, %v1883_v23, %v1885_v4  ;;  %v1890_v55 = vrot.slane %v4146_v57, 2  ;;  %v1898_v23 = vrot.slane %v3990_v54, 2  ;;  %v1897_v57 = vrot.slane %v3993_v13, 2 }
 0x14f   : > { %v1900_v4 = vrot.slane %v4172_v46, 2  ;;  %v1902_v54 = vrot.slane %v4005_v25, 2  ;;  %v1908_v46 = vrot.slane %v4014_v36, 2  ;;  %v1912_v36 = vrot.slane %v4029_v28, 2 }
 0x150   : > { %v1891_v14 = vsel %vm1073_vm0, %v1888_v26, %v1890_v55  ;;  %v1899_v13 = vsel %vm1073_vm0, %v1897_v57, %v1898_v23  ;;  %v1915_v57 = vrot.slane %v4208_v5, 2  ;;  %v1923_v5 = vrot.slane %v4050_v45, 2 }
 0x151   : > { %v4336_v21 = vpop.permute.xlu1 %1281  ;;  %v4338_v49 = vpop.permute.xlu0 %1277  ;;  %v1901_v44 = vsel %vm1073_vm0, %v1898_v23, %v1900_v4  ;;  %v1927_v45 = vrot.slane %v4065_v38, 2 }
 0x152   : > { %6555 = vst [vmem:[#allocation95_spill] sm:$0xff] %v4336_v21  ;;  %6556 = vst [vmem:[#allocation96_spill] sm:$0xff] %v4338_v49  ;;  %1809 = vperm.xlu1 %3354, %v1681_v52   ;;  %1805 = vperm.xlu0 %3353, %v1679_v37   ;;  %v1895_v52 = vrot.slane %v4160_v15, 2  ;;  %v1903_v15 = vrot.slane %v4002_v31, 2  ;;  %v1907_v31 = vrot.slane %v4017_v41, 2 }
 0x154   : > { %v1896_v43 = vsel %vm1073_vm0, %v1893_v22, %v1895_v52  ;;  %v1904_v25 = vsel %vm1073_vm0, %v1902_v54, %v1903_v15  ;;  %v1909_v41 = vsel %vm1073_vm0, %v1907_v31, %v1908_v46 }
 0x155   : > { %v4345_v50 = vpop.permute.xlu1 %1363  ;;  %v4347_v10 = vpop.permute.xlu0 %1358 }
 0x156   : > { %6557 = vst [vmem:[#allocation97_spill] sm:$0xff] %v4345_v50  ;;  %6558 = vst [vmem:[#allocation98_spill] sm:$0xff] %v4347_v10  ;;  %1969 = vperm.xlu1 %3354, %v1886_v61   ;;  %1965 = vperm.xlu0 %3353, %v1884_v51   ;;  %v1905_v51 = vrot.slane %v4184_v63, 2  ;;  %v1913_v63 = vrot.slane %v4026_v6, 2  ;;  %v1917_v6 = vrot.slane %v4041_v30, 2 }
 0x158   : > { %v1906_v42 = vsel %vm1073_vm0, %v1903_v15, %v1905_v51  ;;  %v1916_v4 = vsel %vm1073_vm0, %v1913_v63, %v1915_v57  ;;  %v1914_v28 = vsel %vm1073_vm0, %v1912_v36, %v1913_v63  ;;  %v1920_v15 = vrot.slane %v4220_v60, 2 }
 0x159   : > { %v4354_v37 = vpop.permute.xlu1 %1373  ;;  %v4356_v58 = vpop.permute.xlu0 %1368  ;;  %v1925_v51 = vrot.slane %v4232_v62, 2  ;;  %v1928_v60 = vrot.slane %v4062_v19, 2  ;;  %v1933_v62 = vrot.slane %v4074_v20, 2  ;;  %v1932_v19 = vrot.slane %v4077_v27, 2 }
 0x15a   : > { %6559 = vst [vmem:[#allocation99_spill] sm:$0xff] %v4354_v37  ;;  %6560 = vst [vmem:[#allocation100_spill] sm:$0xff] %v4356_v58  ;;  %1977 = vperm.xlu1 %3354, %v1891_v14   ;;  %1973 = vperm.xlu0 %3353, %v1889_v9   ;;  %v1910_v14 = vrot.slane %v4196_v56, 2  ;;  %v1918_v56 = vrot.slane %v4038_v7, 2  ;;  %v1922_v7 = vrot.slane %v4053_v34, 2  ;;  %v1937_v20 = vrot.slane %v4089_v35, 2 }
 0x15b   : > { %v1929_v38 = vsel %vm1073_vm0, %v1927_v45, %v1928_v60  ;;  %v1934_v27 = vsel %vm1073_vm0, %v1932_v19, %v1933_v62 }
 0x15c   : > { %v1911_v23 = vsel %vm1073_vm0, %v1908_v46, %v1910_v14  ;;  %v1919_v30 = vsel %vm1073_vm0, %v1917_v6, %v1918_v56  ;;  %v1924_v34 = vsel %vm1073_vm0, %v1922_v7, %v1923_v5  ;;  %v1940_v6 = vrot.slane %v4268_v18, 2 }
 0x15d   : > { %v4363_v61 = vpop.permute.xlu1 %1383  ;;  %v4365_v26 = vpop.permute.xlu0 %1378  ;;  %v1948_v18 = vrot.slane %v4110_v48, 2  ;;  %v1952_v48 = vrot.slane %v4125_v2, 2 }
 0x15e   : > { %6561 = vst [vmem:[#allocation101_spill] sm:$0xff] %v4363_v61  ;;  %6562 = vst [vmem:[#allocation102_spill] sm:$0xff] %v4365_v26  ;;  %1985 = vperm.xlu1 %3354, %v1896_v43   ;;  %1981 = vperm.xlu0 %3353, %v1894_v11  }
 0x161   : > { %v4372_v55 = vpop.permute.xlu1 %1393  ;;  %v4374_v22 = vpop.permute.xlu0 %1388 }
 0x162   : > { %6563 = vst [vmem:[#allocation103_spill] sm:$0xff] %v4372_v55  ;;  %6564 = vst [vmem:[#allocation104_spill] sm:$0xff] %v4374_v22  ;;  %1993 = vperm.xlu1 %3354, %v1901_v44   ;;  %1989 = vperm.xlu0 %3353, %v1899_v13   ;;  %v1921_v13 = vsel %vm1073_vm0, %v1918_v56, %v1920_v15 }
 0x165   : > { %v4381_v9 = vpop.permute.xlu1 %1403  ;;  %v4383_v52 = vpop.permute.xlu0 %1398 }
 0x166   : > { %6565 = vst [vmem:[#allocation105_spill] sm:$0xff] %v4381_v9  ;;  %6566 = vst [vmem:[#allocation106_spill] sm:$0xff] %v4383_v52  ;;  %2001 = vperm.xlu1 %3354, %v1906_v42   ;;  %1997 = vperm.xlu0 %3353, %v1904_v25   ;;  %v1926_v42 = vsel %vm1073_vm0, %v1923_v5, %v1925_v51  ;;  %v1930_v25 = vrot.slane %v4244_v39, 2  ;;  %v1938_v39 = vrot.slane %v4086_v3, 2  ;;  %v1942_v3 = vrot.slane %v4101_v59, 2 }
 0x167   : > { %v1945_v5 = vrot.slane %v4280_v29, 2  ;;  %v1950_v51 = vrot.slane %v4292_v32, 2  ;;  %v1953_v29 = vrot.slane %v4122_v0, 2  ;;  %v1957_v0 = vrot.slane %v4142_v53, 2 }
 0x168   : > { %v1931_v36 = vsel %vm1073_vm0, %v1928_v60, %v1930_v25  ;;  %v1941_v15 = vsel %vm1073_vm0, %v1938_v39, %v1940_v6  ;;  %v1939_v35 = vsel %vm1073_vm0, %v1937_v20, %v1938_v39  ;;  %v4488_v39 = vld [vmem:[%s4481_s15 + $0x8] sm:$0xff]  ;;  %v4491_v20 = vld [vmem:[%s4481_s15] sm:$0xff] }
 0x169   : > { %v4390_v43 = vpop.permute.xlu1 %1413  ;;  %v4392_v11 = vpop.permute.xlu0 %1408  ;;  %v1954_v2 = vsel %vm1073_vm0, %v1952_v48, %v1953_v29  ;;  %v4500_v6 = vld [vmem:[%s4481_s15 + $0x20] sm:$0xff]  ;;  %v4536_v48 = vld [vmem:[%s4481_s15 + $0x68] sm:$0xff] }
 0x16a   : > { %6567 = vst [vmem:[#allocation107_spill] sm:$0xff] %v4390_v43  ;;  %6568 = vst [vmem:[#allocation108_spill] sm:$0xff] %v4392_v11  ;;  %2009 = vperm.xlu1 %3354, %v1911_v23   ;;  %2005 = vperm.xlu0 %3353, %v1909_v41   ;;  %v1935_v23 = vrot.slane %v4256_v40, 2  ;;  %v1943_v40 = vrot.slane %v4098_v16, 2  ;;  %v1947_v16 = vrot.slane %v4113_v12, 2 }
 0x16c   : > { %v1936_v56 = vsel %vm1073_vm0, %v1933_v62, %v1935_v23  ;;  %v1944_v59 = vsel %vm1073_vm0, %v1942_v3, %v1943_v40  ;;  %v1949_v12 = vsel %vm1073_vm0, %v1947_v16, %v1948_v18  ;;  %v1958_v62 = vrot.slane %v4139_v47, 2 }
 0x16d   : > { %v4399_v54 = vpop.permute.xlu1 %1423  ;;  %v4401_v44 = vpop.permute.xlu0 %1418 }
 0x16e   : > { %6569 = vst [vmem:[#allocation109_spill] sm:$0xff] %v4399_v54  ;;  %6570 = vst [vmem:[#allocation110_spill] sm:$0xff] %v4401_v44  ;;  %2017 = vperm.xlu1 %3354, %v1916_v4   ;;  %2013 = vperm.xlu0 %3353, %v1914_v28   ;;  %v1959_v47 = vsel %vm1073_vm0, %v1957_v0, %v1958_v62  ;;  %v4551_v0 = vld [vmem:[%s4481_s15 + $0x78] sm:$0xff] }
 0x171   : > { %v4408_v46 = vpop.permute.xlu1 %1433  ;;  %v4410_v31 = vpop.permute.xlu0 %1428 }
 0x172   : > { %6571 = vst [vmem:[#allocation111_spill] sm:$0xff] %v4408_v46  ;;  %6572 = vst [vmem:[#allocation112_spill] sm:$0xff] %v4410_v31  ;;  %2025 = vperm.xlu1 %3354, %v1921_v13   ;;  %2021 = vperm.xlu0 %3353, %v1919_v30   ;;  %v1946_v30 = vsel %vm1073_vm0, %v1943_v40, %v1945_v5  ;;  %v4503_v40 = vld [vmem:[%s4481_s15 + $0x18] sm:$0xff]  ;;  %v4515_v5 = vld [vmem:[%s4481_s15 + $0x30] sm:$0xff]  ;;  %v2416_v31 = vrot.slane %v4500_v6, 1 }
 0x173   : > { %v2415_v46 = vrot.slane %v4503_v40, 1  ;;  %v2420_v55 = vrot.slane %v4515_v5, 1 }
 0x175   : > { %v4417_v14 = vpop.permute.xlu1 %1443  ;;  %v4419_v63 = vpop.permute.xlu0 %1438 }
 0x176   : > { %6573 = vst [vmem:[#allocation113_spill] sm:$0xff] %v4417_v14  ;;  %6574 = vst [vmem:[#allocation114_spill] sm:$0xff] %v4419_v63  ;;  %2033 = vperm.xlu1 %3354, %v1926_v42   ;;  %2029 = vperm.xlu0 %3353, %v1924_v34   ;;  %v1951_v42 = vsel %vm1073_vm0, %v1948_v18, %v1950_v51  ;;  %v1955_v34 = vrot.slane %v4304_v24, 2  ;;  %v4680_v14 = vld [vmem:[%s4481_s15 + $0x28] sm:$0x3] }
 0x177   : > { %v2418_v11 = vrot.slane %v4680_v14, 1 }
 0x178   : > { %v1956_v19 = vsel %vm1073_vm0, %v1953_v29, %v1955_v34 }
 0x179   : > { %v4426_v41 = vpop.permute.xlu1 %1453  ;;  %v4428_v57 = vpop.permute.xlu0 %1448  ;;  %v2419_v26 = vsel %vm792_vm1, %v2416_v31, %v2418_v11 }
 0x17a   : > { %6575 = vst [vmem:[#allocation115_spill] sm:$0xff] %v4426_v41  ;;  %6576 = vst [vmem:[#allocation116_spill] sm:$0xff] %v4428_v57  ;;  %2041 = vperm.xlu1 %3354, %v1931_v36   ;;  %2037 = vperm.xlu0 %3353, %v1929_v38   ;;  %v1960_v36 = vrot.slane %v4316_v8, 2  ;;  %v4673_v57 = vld [vmem:[%s4481_s15 + $0x170] sm:$0xff]  ;;  %v4676_v41 = vld [vmem:[%s4481_s15 + $0x168] sm:$0xff] }
 0x17b   : > { %6629 = vst [vmem:[#allocation169_spill] sm:$0xff] %v4673_v57  ;;  %6630 = vst [vmem:[#allocation170_spill] sm:$0xff] %v4676_v41 }
 0x17c   : > { %v1961_v23 = vsel %vm1073_vm0, %v1958_v62, %v1960_v36  ;;  %v4548_v62 = vld [vmem:[%s4481_s15 + $0x80] sm:$0xff]  ;;  %v4560_v36 = vld [vmem:[%s4481_s15 + $0x98] sm:$0xff] }
 0x17d   : > { %v4435_v4 = vpop.permute.xlu1 %1463  ;;  %v4437_v28 = vpop.permute.xlu0 %1458 }
 0x17e   : > { %6577 = vst [vmem:[#allocation117_spill] sm:$0xff] %v4435_v4  ;;  %6578 = vst [vmem:[#allocation118_spill] sm:$0xff] %v4437_v28  ;;  %2049 = vperm.xlu1 %3354, %v1936_v56   ;;  %2045 = vperm.xlu0 %3353, %v1934_v27  }
 0x181   : > { %v4444_v7 = vpop.permute.xlu1 %1473  ;;  %v4446_v13 = vpop.permute.xlu0 %1468 }
 0x182   : > { %6579 = vst [vmem:[#allocation119_spill] sm:$0xff] %v4444_v7  ;;  %6580 = vst [vmem:[#allocation120_spill] sm:$0xff] %v4446_v13  ;;  %2057 = vperm.xlu1 %3354, %v1941_v15   ;;  %2053 = vperm.xlu0 %3353, %v1939_v35   ;;  %v4512_v35 = vld [vmem:[%s4481_s15 + $0x38] sm:$0xff]  ;;  %v4662_v7 = vld [vmem:[%s4481_s15 + $0x10] sm:$0x3] }
 0x183   : > { %v2413_v63 = vrot.slane %v4662_v7, 1  ;;  %v2421_v9 = vrot.slane %v4512_v35, 1 }
 0x185   : > { %v4453_v60 = vpop.permute.xlu1 %1483  ;;  %v4455_v45 = vpop.permute.xlu0 %1478  ;;  %v2422_v11 = vsel %vm792_vm1, %v2420_v55, %v2421_v9 }
 0x186   : > { %6581 = vst [vmem:[#allocation121_spill] sm:$0xff] %v4453_v60  ;;  %6582 = vst [vmem:[#allocation122_spill] sm:$0xff] %v4455_v45  ;;  %2065 = vperm.xlu1 %3354, %v1946_v30   ;;  %2061 = vperm.xlu0 %3353, %v1944_v59   ;;  %v4524_v30 = vld [vmem:[%s4481_s15 + $0x50] sm:$0xff]  ;;  %v4527_v59 = vld [vmem:[%s4481_s15 + $0x48] sm:$0xff] }
 0x189   : > { %v4462_v25 = vpop.permute.xlu1 %1493  ;;  %v4464_v32 = vpop.permute.xlu0 %1488 }
 0x18a   : > { %6583 = vst [vmem:[#allocation123_spill] sm:$0xff] %v4462_v25  ;;  %6584 = vst [vmem:[#allocation124_spill] sm:$0xff] %v4464_v32  ;;  %2073 = vperm.xlu1 %3354, %v1951_v42   ;;  %2069 = vperm.xlu0 %3353, %v1949_v12   ;;  %v4539_v42 = vld [vmem:[%s4481_s15 + $0x60] sm:$0xff] }
 0x18d   : > { %v4471_v38 = vpop.permute.xlu1 %1503  ;;  %v4473_v24 = vpop.permute.xlu0 %1498 }
 0x18e   : > { %6585 = vst [vmem:[#allocation125_spill] sm:$0xff] %v4471_v38  ;;  %6586 = vst [vmem:[#allocation126_spill] sm:$0xff] %v4473_v24  ;;  %2081 = vperm.xlu1 %3354, %v1956_v19   ;;  %2077 = vperm.xlu0 %3353, %v1954_v2  }
 0x191   : > { %v4483_v53 = vpop.permute.xlu1 %1513  ;;  %v4485_v8 = vpop.permute.xlu0 %1508 }
 0x192   : > { %6587 = vst [vmem:[#allocation127_spill] sm:$0xff] %v4483_v53  ;;  %6588 = vst [vmem:[#allocation128_spill] sm:$0xff] %v4485_v8  ;;  %2089 = vperm.xlu1 %3354, %v1961_v23   ;;  %2085 = vperm.xlu0 %3353, %v1959_v47   ;;  %v4563_v23 = vld [vmem:[%s4481_s15 + $0x90] sm:$0xff]  ;;  %v6665_v53 = vld [vmem:[#allocation27_spill] sm:$0xff] }
 0x195   : > { %v4493_v56 = vpop.permute.xlu1 %1689  ;;  %v4495_v27 = vpop.permute.xlu0 %1685 }
 0x196   : > { %6589 = vst [vmem:[#allocation129_spill] sm:$0xff] %v4493_v56  ;;  %6590 = vst [vmem:[#allocation130_spill] sm:$0xff] %v4495_v27  ;;  %2171 = vperm.xlu1 %3354, %v4488_v39   ;;  %2166 = vperm.xlu0 %3353, %v4491_v20  }
 0x199   : > { %v4505_v3 = vpop.permute.xlu1 %1697  ;;  %v4507_v15 = vpop.permute.xlu0 %1693 }
 0x19a   : > { %6591 = vst [vmem:[#allocation131_spill] sm:$0xff] %v4505_v3  ;;  %6592 = vst [vmem:[#allocation132_spill] sm:$0xff] %v4507_v15  ;;  %2181 = vperm.xlu1 %3354, %v4500_v6   ;;  %2176 = vperm.xlu0 %3353, %v4503_v40  }
 0x19d   : > { %v4517_v18 = vpop.permute.xlu1 %1705  ;;  %v4519_v16 = vpop.permute.xlu0 %1701 }
 0x19e   : > { %6593 = vst [vmem:[#allocation133_spill] sm:$0xff] %v4517_v18  ;;  %6594 = vst [vmem:[#allocation134_spill] sm:$0xff] %v4519_v16  ;;  %2191 = vperm.xlu1 %3354, %v4512_v35   ;;  %2186 = vperm.xlu0 %3353, %v4515_v5  }
 0x1a1   : > { %v4529_v51 = vpop.permute.xlu1 %1713  ;;  %v4531_v29 = vpop.permute.xlu0 %1709 }
 0x1a2   : > { %6595 = vst [vmem:[#allocation135_spill] sm:$0xff] %v4529_v51  ;;  %6596 = vst [vmem:[#allocation136_spill] sm:$0xff] %v4531_v29  ;;  %2201 = vperm.xlu1 %3354, %v4524_v30   ;;  %2196 = vperm.xlu0 %3353, %v4527_v59   ;;  %v4694_v29 = vld [vmem:[%s4481_s15 + $0x40] sm:$0x3] }
 0x1a5   : > { %v4541_v12 = vpop.permute.xlu1 %1721  ;;  %v4543_v34 = vpop.permute.xlu0 %1717 }
 0x1a6   : > { %6597 = vst [vmem:[#allocation137_spill] sm:$0xff] %v4541_v12  ;;  %6598 = vst [vmem:[#allocation138_spill] sm:$0xff] %v4543_v34  ;;  %2211 = vperm.xlu1 %3354, %v4536_v48   ;;  %2206 = vperm.xlu0 %3353, %v4539_v42   ;;  %v4575_v12 = vld [vmem:[%s4481_s15 + $0xa8] sm:$0xff] }
 0x1a9   : > { %v4553_v19 = vpop.permute.xlu1 %1729  ;;  %v4555_v2 = vpop.permute.xlu0 %1725 }
 0x1aa   : > { %6599 = vst [vmem:[#allocation139_spill] sm:$0xff] %v4553_v19  ;;  %6600 = vst [vmem:[#allocation140_spill] sm:$0xff] %v4555_v2  ;;  %2221 = vperm.xlu1 %3354, %v4548_v62   ;;  %2216 = vperm.xlu0 %3353, %v4551_v0   ;;  %v4572_v19 = vld [vmem:[%s4481_s15 + $0xb0] sm:$0xff] }
 0x1ad   : > { %v4565_v47 = vpop.permute.xlu1 %1737  ;;  %v4567_v34 = vpop.permute.xlu0 %1733 }
 0x1ae   : > { %6601 = vst [vmem:[#allocation141_spill] sm:$0xff] %v4565_v47  ;;  %6602 = vst [vmem:[#allocation142_spill] sm:$0xff] %v4567_v34  ;;  %2231 = vperm.xlu1 %3354, %v4560_v36   ;;  %2226 = vperm.xlu0 %3353, %v4563_v23   ;;  %v4584_v34 = vld [vmem:[%s4481_s15 + $0xc8] sm:$0xff]  ;;  %v4587_v47 = vld [vmem:[%s4481_s15 + $0xc0] sm:$0xff] }
 0x1b1   : > { %v4577_v51 = vpop.permute.xlu1 %1745  ;;  %v4579_v16 = vpop.permute.xlu0 %1741 }
 0x1b2   : > { %6603 = vst [vmem:[#allocation143_spill] sm:$0xff] %v4577_v51  ;;  %6604 = vst [vmem:[#allocation144_spill] sm:$0xff] %v4579_v16  ;;  %2241 = vperm.xlu1 %3354, %v4572_v19   ;;  %2236 = vperm.xlu0 %3353, %v4575_v12   ;;  %v4596_v51 = vld [vmem:[%s4481_s15 + $0xe0] sm:$0xff]  ;;  %v4599_v16 = vld [vmem:[%s4481_s15 + $0xd8] sm:$0xff] }
 0x1b5   : > { %v4589_v18 = vpop.permute.xlu1 %1753  ;;  %v4591_v3 = vpop.permute.xlu0 %1749 }
 0x1b6   : > { %6605 = vst [vmem:[#allocation145_spill] sm:$0xff] %v4589_v18  ;;  %6606 = vst [vmem:[#allocation146_spill] sm:$0xff] %v4591_v3  ;;  %2251 = vperm.xlu1 %3354, %v4584_v34   ;;  %2246 = vperm.xlu0 %3353, %v4587_v47   ;;  %v4608_v3 = vld [vmem:[%s4481_s15 + $0xf8] sm:$0xff]  ;;  %v4611_v18 = vld [vmem:[%s4481_s15 + $0xf0] sm:$0xff] }
 0x1b7   : > { %6609 = vst [vmem:[#allocation149_spill] sm:$0xff] %v4608_v3  ;;  %6610 = vst [vmem:[#allocation150_spill] sm:$0xff] %v4611_v18 }
 0x1b9   : > { %v4601_v27 = vpop.permute.xlu1 %1761  ;;  %v4603_v56 = vpop.permute.xlu0 %1757 }
 0x1ba   : > { %6607 = vst [vmem:[#allocation147_spill] sm:$0xff] %v4601_v27  ;;  %6608 = vst [vmem:[#allocation148_spill] sm:$0xff] %v4603_v56  ;;  %2261 = vperm.xlu1 %3354, %v4596_v51   ;;  %2256 = vperm.xlu0 %3353, %v4599_v16   ;;  %v4620_v56 = vld [vmem:[%s4481_s15 + $0x110] sm:$0xff]  ;;  %v4623_v27 = vld [vmem:[%s4481_s15 + $0x108] sm:$0xff] }
 0x1bb   : > { %6613 = vst [vmem:[#allocation153_spill] sm:$0xff] %v4620_v56  ;;  %6614 = vst [vmem:[#allocation154_spill] sm:$0xff] %v4623_v27 }
 0x1bd   : > { %v4613_v24 = vpop.permute.xlu1 %1769  ;;  %v4615_v38 = vpop.permute.xlu0 %1765 }
 0x1be   : > { %6611 = vst [vmem:[#allocation151_spill] sm:$0xff] %v4613_v24  ;;  %6612 = vst [vmem:[#allocation152_spill] sm:$0xff] %v4615_v38  ;;  %2271 = vperm.xlu1 %3354, %v4608_v3   ;;  %2266 = vperm.xlu0 %3353, %v4611_v18   ;;  %v4632_v38 = vld [vmem:[%s4481_s15 + $0x128] sm:$0xff]  ;;  %v4635_v24 = vld [vmem:[%s4481_s15 + $0x120] sm:$0xff] }
 0x1bf   : > { %6617 = vst [vmem:[#allocation157_spill] sm:$0xff] %v4632_v38  ;;  %6618 = vst [vmem:[#allocation158_spill] sm:$0xff] %v4635_v24 }
 0x1c1   : > { %v4625_v32 = vpop.permute.xlu1 %1777  ;;  %v4627_v25 = vpop.permute.xlu0 %1773 }
 0x1c2   : > { %6615 = vst [vmem:[#allocation155_spill] sm:$0xff] %v4625_v32  ;;  %6616 = vst [vmem:[#allocation156_spill] sm:$0xff] %v4627_v25  ;;  %2281 = vperm.xlu1 %3354, %v4620_v56   ;;  %2276 = vperm.xlu0 %3353, %v4623_v27   ;;  %v4644_v25 = vld [vmem:[%s4481_s15 + $0x140] sm:$0xff]  ;;  %v4647_v32 = vld [vmem:[%s4481_s15 + $0x138] sm:$0xff] }
 0x1c3   : > { %6621 = vst [vmem:[#allocation161_spill] sm:$0xff] %v4644_v25  ;;  %6622 = vst [vmem:[#allocation162_spill] sm:$0xff] %v4647_v32 }
 0x1c5   : > { %v4637_v45 = vpop.permute.xlu1 %1785  ;;  %v4639_v60 = vpop.permute.xlu0 %1781 }
 0x1c6   : > { %6619 = vst [vmem:[#allocation159_spill] sm:$0xff] %v4637_v45  ;;  %6620 = vst [vmem:[#allocation160_spill] sm:$0xff] %v4639_v60  ;;  %2291 = vperm.xlu1 %3354, %v4632_v38   ;;  %2286 = vperm.xlu0 %3353, %v4635_v24   ;;  %v4656_v60 = vld [vmem:[%s4481_s15 + $0x158] sm:$0xff]  ;;  %v4659_v45 = vld [vmem:[%s4481_s15 + $0x150] sm:$0xff] }
 0x1c7   : > { %6625 = vst [vmem:[#allocation165_spill] sm:$0xff] %v4656_v60  ;;  %6626 = vst [vmem:[#allocation166_spill] sm:$0xff] %v4659_v45 }
 0x1c9   : > { %v4649_v13 = vpop.permute.xlu1 %1793  ;;  %v4651_v2 = vpop.permute.xlu0 %1789 }
 0x1ca   : > { %6623 = vst [vmem:[#allocation163_spill] sm:$0xff] %v4649_v13  ;;  %6624 = vst [vmem:[#allocation164_spill] sm:$0xff] %v4651_v2  ;;  %2301 = vperm.xlu1 %3354, %v4644_v25   ;;  %2296 = vperm.xlu0 %3353, %v4647_v32   ;;  %v2411_v2 = vrot.slane %v4488_v39, 1  ;;  %v2410_v13 = vrot.slane %v4491_v20, 1 }
 0x1cc   : > { %v2414_v44 = vsel %vm792_vm1, %v2411_v2, %v2413_v63  ;;  %v2412_v54 = vsel %vm792_vm1, %v2410_v13, %v2411_v2  ;;  %v2417_v63 = vsel %vm792_vm1, %v2415_v46, %v2416_v31  ;;  %v2423_v13 = vrot.slane %v4694_v29, 1  ;;  %v4706_v2 = vld [vmem:[%s4481_s15 + $0x58] sm:$0x3]  ;;  %v4718_v31 = vld [vmem:[%s4481_s15 + $0x70] sm:$0x3] }
 0x1cd   : > { %v4664_v28 = vpop.permute.xlu1 %1801  ;;  %v4666_v4 = vpop.permute.xlu0 %1797  ;;  %v2428_v46 = vrot.slane %v4706_v2, 1  ;;  %v2433_v55 = vrot.slane %v4718_v31, 1 }
 0x1ce   : > { %6627 = vst [vmem:[#allocation167_spill] sm:$0xff] %v4664_v28  ;;  %6628 = vst [vmem:[#allocation168_spill] sm:$0xff] %v4666_v4  ;;  %2311 = vperm.xlu1 %3354, %v4656_v60   ;;  %2306 = vperm.xlu0 %3353, %v4659_v45  }
 0x1d1   : > { %v4682_v28 = vpop.permute.xlu1 %1809  ;;  %v4684_v4 = vpop.permute.xlu0 %1805 }
 0x1d2   : > { %6631 = vst [vmem:[#allocation171_spill] sm:$0xff] %v4682_v28  ;;  %6632 = vst [vmem:[#allocation172_spill] sm:$0xff] %v4684_v4  ;;  %2321 = vperm.xlu1 %3354, %v4673_v57   ;;  %2316 = vperm.xlu0 %3353, %v4676_v41  }
 0x1d5   : > { %v4696_v43 = vpop.permute.xlu1 %1969  ;;  %v4698_v52 = vpop.permute.xlu0 %1965 }
 0x1d6   : > { %6633 = vst [vmem:[#allocation173_spill] sm:$0xff] %v4696_v43  ;;  %6634 = vst [vmem:[#allocation174_spill] sm:$0xff] %v4698_v52  ;;  %2497 = vperm.xlu1 %3354, %v2414_v44   ;;  %2493 = vperm.xlu0 %3353, %v2412_v54   ;;  %v2426_v52 = vrot.slane %v4524_v30, 1  ;;  %v2425_v54 = vrot.slane %v4527_v59, 1  ;;  %v2424_v44 = vsel %vm792_vm1, %v2421_v9, %v2423_v13  ;;  %v4730_v9 = vld [vmem:[%s4481_s15 + $0x88] sm:$0x3] }
 0x1d8   : > { %v2427_v13 = vsel %vm792_vm1, %v2425_v54, %v2426_v52  ;;  %v4742_v54 = vld [vmem:[%s4481_s15 + $0xa0] sm:$0x3] }
 0x1d9   : > { %v4708_v61 = vpop.permute.xlu1 %1977  ;;  %v4710_v43 = vpop.permute.xlu0 %1973 }
 0x1da   : > { %6635 = vst [vmem:[#allocation175_spill] sm:$0xff] %v4708_v61  ;;  %6636 = vst [vmem:[#allocation176_spill] sm:$0xff] %v4710_v43  ;;  %2505 = vperm.xlu1 %3354, %v2419_v26   ;;  %2501 = vperm.xlu0 %3353, %v2417_v63   ;;  %v2431_v43 = vrot.slane %v4536_v48, 1  ;;  %v2430_v26 = vrot.slane %v4539_v42, 1  ;;  %v2429_v63 = vsel %vm792_vm1, %v2426_v52, %v2428_v46  ;;  %v2438_v52 = vrot.slane %v4730_v9, 1 }
 0x1dc   : > { %v2432_v46 = vsel %vm792_vm1, %v2430_v26, %v2431_v43  ;;  %v4754_v26 = vld [vmem:[%s4481_s15 + $0xb8] sm:$0x3] }
 0x1dd   : > { %v4720_v22 = vpop.permute.xlu1 %1985  ;;  %v4722_v61 = vpop.permute.xlu0 %1981 }
 0x1de   : > { %6637 = vst [vmem:[#allocation177_spill] sm:$0xff] %v4720_v22  ;;  %6638 = vst [vmem:[#allocation178_spill] sm:$0xff] %v4722_v61  ;;  %2513 = vperm.xlu1 %3354, %v2424_v44   ;;  %2509 = vperm.xlu0 %3353, %v2422_v11   ;;  %v2436_v61 = vrot.slane %v4548_v62, 1  ;;  %v2435_v44 = vrot.slane %v4551_v0, 1  ;;  %v2434_v11 = vsel %vm792_vm1, %v2431_v43, %v2433_v55  ;;  %v2443_v43 = vrot.slane %v4742_v54, 1 }
 0x1e0   : > { %v2437_v55 = vsel %vm792_vm1, %v2435_v44, %v2436_v61  ;;  %v4766_v44 = vld [vmem:[%s4481_s15 + $0xd0] sm:$0x3] }
 0x1e1   : > { %v4732_v37 = vpop.permute.xlu1 %1993  ;;  %v4734_v22 = vpop.permute.xlu0 %1989 }
 0x1e2   : > { %6639 = vst [vmem:[#allocation179_spill] sm:$0xff] %v4732_v37  ;;  %6640 = vst [vmem:[#allocation180_spill] sm:$0xff] %v4734_v22  ;;  %2521 = vperm.xlu1 %3354, %v2429_v63   ;;  %2517 = vperm.xlu0 %3353, %v2427_v13   ;;  %v2441_v22 = vrot.slane %v4560_v36, 1  ;;  %v2440_v63 = vrot.slane %v4563_v23, 1  ;;  %v2439_v13 = vsel %vm792_vm1, %v2436_v61, %v2438_v52  ;;  %v2448_v61 = vrot.slane %v4754_v26, 1 }
 0x1e4   : > { %v2442_v52 = vsel %vm792_vm1, %v2440_v63, %v2441_v22  ;;  %v4778_v63 = vld [vmem:[%s4481_s15 + $0xe8] sm:$0x3] }
 0x1e5   : > { %v4744_v10 = vpop.permute.xlu1 %2001  ;;  %v4746_v37 = vpop.permute.xlu0 %1997 }
 0x1e6   : > { %6641 = vst [vmem:[#allocation181_spill] sm:$0xff] %v4744_v10  ;;  %6642 = vst [vmem:[#allocation182_spill] sm:$0xff] %v4746_v37  ;;  %2529 = vperm.xlu1 %3354, %v2434_v11   ;;  %2525 = vperm.xlu0 %3353, %v2432_v46   ;;  %v2446_v37 = vrot.slane %v4572_v19, 1  ;;  %v2445_v11 = vrot.slane %v4575_v12, 1  ;;  %v2444_v46 = vsel %vm792_vm1, %v2441_v22, %v2443_v43  ;;  %v2453_v22 = vrot.slane %v4766_v44, 1 }
 0x1e8   : > { %v2447_v43 = vsel %vm792_vm1, %v2445_v11, %v2446_v37  ;;  %v4790_v11 = vld [vmem:[%s4481_s15 + $0x100] sm:$0x3] }
 0x1e9   : > { %v4756_v50 = vpop.permute.xlu1 %2009  ;;  %v4758_v10 = vpop.permute.xlu0 %2005  ;;  %6649 = vst [vmem:[#allocation189_spill] sm:$0xff] %v4790_v11 }
 0x1ea   : > { %6643 = vst [vmem:[#allocation183_spill] sm:$0xff] %v4756_v50  ;;  %6644 = vst [vmem:[#allocation184_spill] sm:$0xff] %v4758_v10  ;;  %2537 = vperm.xlu1 %3354, %v2439_v13   ;;  %2533 = vperm.xlu0 %3353, %v2437_v55   ;;  %v2451_v10 = vrot.slane %v4584_v34, 1  ;;  %v2450_v13 = vrot.slane %v4587_v47, 1  ;;  %v2449_v55 = vsel %vm792_vm1, %v2446_v37, %v2448_v61  ;;  %v2458_v37 = vrot.slane %v4778_v63, 1 }
 0x1ec   : > { %v2452_v61 = vsel %vm792_vm1, %v2450_v13, %v2451_v10  ;;  %v4802_v13 = vld [vmem:[%s4481_s15 + $0x118] sm:$0x3] }
 0x1ed   : > { %v4768_v33 = vpop.permute.xlu1 %2017  ;;  %v4770_v50 = vpop.permute.xlu0 %2013  ;;  %6652 = vst [vmem:[#allocation192_spill] sm:$0xff] %v4802_v13 }
 0x1ee   : > { %6645 = vst [vmem:[#allocation185_spill] sm:$0xff] %v4768_v33  ;;  %6646 = vst [vmem:[#allocation186_spill] sm:$0xff] %v4770_v50  ;;  %2545 = vperm.xlu1 %3354, %v2444_v46   ;;  %2541 = vperm.xlu0 %3353, %v2442_v52   ;;  %v2456_v50 = vrot.slane %v4596_v51, 1  ;;  %v2455_v46 = vrot.slane %v4599_v16, 1  ;;  %v2454_v52 = vsel %vm792_vm1, %v2451_v10, %v2453_v22  ;;  %v2463_v10 = vrot.slane %v4790_v11, 1 }
 0x1f0   : > { %v2457_v22 = vsel %vm792_vm1, %v2455_v46, %v2456_v50  ;;  %v4814_v46 = vld [vmem:[%s4481_s15 + $0x130] sm:$0x3] }
 0x1f1   : > { %v4780_v15 = vpop.permute.xlu1 %2025  ;;  %v4782_v33 = vpop.permute.xlu0 %2021  ;;  %6655 = vst [vmem:[#allocation195_spill] sm:$0xff] %v4814_v46 }
 0x1f2   : > { %6647 = vst [vmem:[#allocation187_spill] sm:$0xff] %v4780_v15  ;;  %6648 = vst [vmem:[#allocation188_spill] sm:$0xff] %v4782_v33  ;;  %2553 = vperm.xlu1 %3354, %v2449_v55   ;;  %2549 = vperm.xlu0 %3353, %v2447_v43   ;;  %v2461_v33 = vrot.slane %v4608_v3, 1  ;;  %v2460_v55 = vrot.slane %v4611_v18, 1  ;;  %v2459_v43 = vsel %vm792_vm1, %v2456_v50, %v2458_v37  ;;  %v2468_v50 = vrot.slane %v4802_v13, 1  ;;  %v6691_v13 = vld [vmem:[#allocation11_spill] sm:$0xff] }
 0x1f3   : > { %v6708_v3 = vld [vmem:[#allocation25_spill] sm:$0xff] }
 0x1f4   : > { %v2462_v37 = vsel %vm792_vm1, %v2460_v55, %v2461_v33  ;;  %v4826_v55 = vld [vmem:[%s4481_s15 + $0x148] sm:$0x3] }
 0x1f5   : > { %v4792_v1 = vpop.permute.xlu1 %2033  ;;  %v4794_v15 = vpop.permute.xlu0 %2029  ;;  %6658 = vst [vmem:[#allocation198_spill] sm:$0xff] %v4826_v55 }
 0x1f6   : > { %6650 = vst [vmem:[#allocation190_spill] sm:$0xff] %v4792_v1  ;;  %6651 = vst [vmem:[#allocation191_spill] sm:$0xff] %v4794_v15  ;;  %2561 = vperm.xlu1 %3354, %v2454_v52   ;;  %2557 = vperm.xlu0 %3353, %v2452_v61   ;;  %v2466_v15 = vrot.slane %v4620_v56, 1  ;;  %v2465_v52 = vrot.slane %v4623_v27, 1  ;;  %v2464_v61 = vsel %vm792_vm1, %v2461_v33, %v2463_v10  ;;  %v2473_v33 = vrot.slane %v4814_v46, 1  ;;  %v6684_v46 = vld [vmem:[#allocation12_spill] sm:$0xff] }
 0x1f7   : > { %v6699_v56 = vld [vmem:[#allocation20_spill] sm:$0xff] }
 0x1f8   : > { %v2467_v10 = vsel %vm792_vm1, %v2465_v52, %v2466_v15  ;;  %v4838_v52 = vld [vmem:[%s4481_s15 + $0x160] sm:$0x3] }
 0x1f9   : > { %v4804_v58 = vpop.permute.xlu1 %2041  ;;  %v4806_v1 = vpop.permute.xlu0 %2037  ;;  %6661 = vst [vmem:[#allocation201_spill] sm:$0xff] %v4838_v52 }
 0x1fa   : > { %6653 = vst [vmem:[#allocation193_spill] sm:$0xff] %v4804_v58  ;;  %6654 = vst [vmem:[#allocation194_spill] sm:$0xff] %v4806_v1  ;;  %2569 = vperm.xlu1 %3354, %v2459_v43   ;;  %2565 = vperm.xlu0 %3353, %v2457_v22   ;;  %v2471_v1 = vrot.slane %v4632_v38, 1  ;;  %v2470_v43 = vrot.slane %v4635_v24, 1  ;;  %v2469_v22 = vsel %vm792_vm1, %v2466_v15, %v2468_v50  ;;  %v2478_v15 = vrot.slane %v4826_v55, 1 }
 0x1fc   : > { %v2472_v50 = vsel %vm792_vm1, %v2470_v43, %v2471_v1 }
 0x1fd   : > { %v4816_v4 = vpop.permute.xlu1 %2049  ;;  %v4818_v58 = vpop.permute.xlu0 %2045 }
 0x1fe   : > { %6656 = vst [vmem:[#allocation196_spill] sm:$0xff] %v4816_v4  ;;  %6657 = vst [vmem:[#allocation197_spill] sm:$0xff] %v4818_v58  ;;  %2577 = vperm.xlu1 %3354, %v2464_v61   ;;  %2573 = vperm.xlu0 %3353, %v2462_v37   ;;  %v2476_v58 = vrot.slane %v4644_v25, 1  ;;  %v2475_v61 = vrot.slane %v4647_v32, 1  ;;  %v2474_v37 = vsel %vm792_vm1, %v2471_v1, %v2473_v33  ;;  %v2480_v33 = vrot.slane %v4659_v45, 1  ;;  %v6676_v32 = vld [vmem:[#allocation5_spill] sm:$0xff] }
 0x200   : > { %v2479_v1 = vsel %vm792_vm1, %v2476_v58, %v2478_v15  ;;  %v2477_v43 = vsel %vm792_vm1, %v2475_v61, %v2476_v58  ;;  %v6668_v58 = vld [vmem:[#allocation28_spill] sm:$0xff]  ;;  %v6669_v15 = vld [vmem:[#allocation29_spill] sm:$0xff] }
 0x201   : > { %v4828_v28 = vpop.permute.xlu1 %2057  ;;  %v4830_v4 = vpop.permute.xlu0 %2053 }
 0x202   : > { %6659 = vst [vmem:[#allocation199_spill] sm:$0xff] %v4828_v28  ;;  %6660 = vst [vmem:[#allocation200_spill] sm:$0xff] %v4830_v4  ;;  %2585 = vperm.xlu1 %3354, %v2469_v22   ;;  %2581 = vperm.xlu0 %3353, %v2467_v10   ;;  %v4847_v22 = vld [vmem:[%s6389_s3] ss:$0 sm:$0xff]  ;;  %v2481_v10 = vrot.slane %v4656_v60, 1  ;;  %v2483_v4 = vrot.slane %v4838_v52, 1 }
 0x203   : > { %v712_v49 = vmul.f32 %v4847_v22, %v6665_v53  ;;  %v715_v61 = vmul.f32 %v4847_v22, %v6668_v58  ;;  %v713_v52 = vmul.f32 %v4847_v22, %v6669_v15  ;;  %v2485_v53 = vrot.slane %v4676_v41, 1  ;;  %v6670_v60 = vld [vmem:[#allocation30_spill] sm:$0xff] }
 0x204   : > { %v717_v55 = vmul.f32 %v4847_v22, %v6670_v60  ;;  %v6674_v60 = vld [vmem:[#allocation2_spill] sm:$0xff]  ;;  %v727_v24 = vmul.f32 %v4847_v22, %v6684_v46  ;;  %v736_v11 = vmul.f32 %v4847_v22, %v6699_v56 }
 0x205   : > { %v4840_v8 = vpop.permute.xlu1 %2065  ;;  %v4842_v28 = vpop.permute.xlu0 %2061 }
 0x206   : > { %6662 = vst [vmem:[#allocation202_spill] sm:$0xff] %v4840_v8  ;;  %6663 = vst [vmem:[#allocation203_spill] sm:$0xff] %v4842_v28  ;;  %2593 = vperm.xlu1 %3354, %v2474_v37   ;;  %2589 = vperm.xlu0 %3353, %v2472_v50   ;;  %v4855_v8 = vld [vmem:[%s4481_s15 + $0x178] sm:$0x3]  ;;  %v714_v28 = vmul.f32 %v4847_v22, %v3851_v17  ;;  %v4868_v50 = vld [vmem:[%s6390_s4] ss:$0 sm:$0xff] }
 0x207   : > { %6664 = vst [vmem:[#allocation204_spill] sm:$0xff] %v4855_v8  ;;  %v2486_v17 = vrot.slane %v4673_v57, 1  ;;  %v2488_v45 = vrot.slane %v4855_v8, 1  ;;  %v4885_v15 = vadd.f32 %v4868_v50, %v712_v49  ;;  %v6671_v57 = vld [vmem:[#allocation31_spill] sm:$0xff]  ;;  %v2690_v49 = vrot.slane %v4491_v20, 2  ;;  %s3303_s15 = sshll.u32 %s3370_s24, 5 }
 0x208   : > { %v4882_v58 = vadd.f32 %v4868_v50, %v714_v28  ;;  %v719_v28 = vmul.f32 %v4847_v22, %v6674_v60  ;;  %v721_v60 = vmul.f32 %v4847_v22, %v6676_v32  ;;  %p6096_p5 = scmp.lt.s32.totalorder %s3303_s15, 63 }
 0x209   : > { %v4861_v21 = vpop.permute.xlu1 %2073  ;;  %v4863_v37 = vpop.permute.xlu0 %2069 }
 0x20a   : > { %6666 = vst [vmem:[#allocation27_spill] sm:$0xff] %v4861_v21  ;;  %6667 = vst [vmem:[#allocation205_spill] sm:$0xff] %v4863_v37  ;;  %2601 = vperm.xlu1 %3354, %v2479_v1   ;;  %2597 = vperm.xlu0 %3353, %v2477_v43   ;;  %v2484_v21 = vsel %vm792_vm1, %v2481_v10, %v2483_v4  ;;  %v2482_v37 = vsel %vm792_vm1, %v2480_v33, %v2481_v10  ;;  %v2691_v33 = vrot.slane %v4488_v39, 2  ;;  %v6677_v39 = vld [vmem:[#allocation3_spill] sm:$0xff]  ;;  %s6974_s15 = smov (!%p6096_p5, %s3303_s15), 63 }
 0x20b   : > { %v716_v1 = vmul.f32 %v4847_v22, %v6671_v57  ;;  %v4894_v4 = vadd.f32 %v4868_v50, %v715_v61  ;;  %v4897_v10 = vadd.f32 %v4868_v50, %v713_v52  ;;  %v2489_v57 = vsel %vm792_vm1, %v2486_v17, %v2488_v45  ;;  %v6675_v52 = vld [vmem:[#allocation32_spill] sm:$0xff]  ;;  %v6678_v45 = vld [vmem:[#allocation7_spill] sm:$0xff]  ;;  %s3304_s24 = sshll.u32 %s6974_s15, 3 }
 0x20c   : > { %v4907_v61 = vadd.f32 %v4868_v50, %v717_v55  ;;  %v718_v8 = vmul.f32 %v4847_v22, %v6675_v52  ;;  %v6680_v55 = vld [vmem:[#allocation9_spill] sm:$0xff]  ;;  %v4929_v32 = vadd.f32 %v4868_v50, %v719_v28  ;;  %s6181_s29 = scalar_lea.vmem %s6393_s7, %s3304_s24 }
 0x20d   : > { %v4889_v43 = vpop.permute.xlu1 %2081  ;;  %v4891_v41 = vpop.permute.xlu0 %2077  ;;  %v4916_v20 = vadd.f32 %v4868_v50, %v716_v1 }
 0x20e   : > { %6672 = vst [vmem:[#allocation28_spill] sm:$0xff] %v4889_v43  ;;  %6673 = vst [vmem:[#allocation29_spill] sm:$0xff] %v4891_v41  ;;  %2609 = vperm.xlu1 %3354, %v2484_v21   ;;  %2605 = vperm.xlu0 %3353, %v2482_v37   ;;  %v2487_v43 = vsel %vm792_vm1, %v2485_v53, %v2486_v17  ;;  %v2693_v41 = vrot.slane %v4662_v7, 2  ;;  %v720_v21 = vmul.f32 %v4847_v22, %v6677_v39  ;;  %v6679_v17 = vld [vmem:[#allocation4_spill] sm:$0xff]  ;;  %v6683_v39 = vld [vmem:[#allocation6_spill] sm:$0xff] }
 0x20f   : > { %v723_v37 = vmul.f32 %v4847_v22, %v6678_v45  ;;  %v722_v7 = vmul.f32 %v4847_v22, %v6679_v17  ;;  %v725_v53 = vmul.f32 %v4847_v22, %v6680_v55  ;;  %v724_v1 = vmul.f32 %v4847_v22, %v6683_v39 }
 0x210   : > { %v2696_v45 = vrot.slane %v4500_v6, 2  ;;  %v2695_v17 = vrot.slane %v4503_v40, 2  ;;  %v2694_v55 = vsel %vm1073_vm0, %v2691_v33, %v2693_v41  ;;  %v4941_v28 = vadd.f32 %v4868_v50, %v718_v8  ;;  %v6685_v6 = vld [vmem:[#allocation8_spill] sm:$0xff]  ;;  %v6686_v8 = vld [vmem:[#allocation13_spill] sm:$0xff] }
 0x211   : > { %v4924_v25 = vpop.permute.xlu1 %2089  ;;  %v4926_v52 = vpop.permute.xlu0 %2085  ;;  %v4944_v39 = vadd.f32 %v4868_v50, %v721_v60  ;;  %v4947_v46 = vadd.f32 %v4868_v50, %v720_v21  ;;  %v4952_v40 = vadd.f32 %v4868_v50, %v723_v37  ;;  %v4955_v41 = vadd.f32 %v4868_v50, %v722_v7  ;;  %v6689_v37 = vld [vmem:[#allocation10_spill] sm:$0xff] }
 0x212   : > { %6681 = vst [vmem:[#allocation30_spill] sm:$0xff] %v4924_v25  ;;  %6682 = vst [vmem:[#allocation31_spill] sm:$0xff] %v4926_v52  ;;  %2617 = vperm.xlu1 %3354, %v2489_v57   ;;  %2613 = vperm.xlu0 %3353, %v2487_v43   ;;  %v2692_v25 = vsel %vm1073_vm0, %v2690_v49, %v2691_v33  ;;  %v2698_v52 = vrot.slane %v4680_v14, 2  ;;  %v726_v43 = vmul.f32 %v4847_v22, %v6685_v6 }
 0x213   : > { %v4958_v14 = vadd.f32 %v4868_v50, %v725_v53  ;;  %v729_v33 = vmul.f32 %v4847_v22, %v6686_v8  ;;  %v4967_v60 = vadd.f32 %v4868_v50, %v724_v1  ;;  %v4970_v21 = vadd.f32 %v4868_v50, %v727_v24  ;;  %v6690_v24 = vld [vmem:[#allocation14_spill] sm:$0xff] }
 0x214   : > { %v728_v7 = vmul.f32 %v4847_v22, %v6689_v37  ;;  %v2701_v6 = vrot.slane %v4512_v35, 2  ;;  %v2700_v53 = vrot.slane %v4515_v5, 2  ;;  %v2699_v8 = vsel %vm1073_vm0, %v2696_v45, %v2698_v52  ;;  %v6692_v35 = vld [vmem:[#allocation16_spill] sm:$0xff]  ;;  %v6693_v52 = vld [vmem:[#allocation15_spill] sm:$0xff] }
 0x215   : > { %v4962_v49 = vpop.permute.xlu1 %2171  ;;  %v4964_v57 = vpop.permute.xlu0 %2166  ;;  %v4980_v1 = vadd.f32 %v4868_v50, %v726_v43  ;;  %v731_v38 = vmul.f32 %v4847_v22, %v6690_v24  ;;  %v730_v37 = vmul.f32 %v4847_v22, %v6691_v13  ;;  %v4989_v5 = vadd.f32 %v4868_v50, %v729_v33 }
 0x216   : > { %6687 = vst [vmem:[#allocation2_spill] sm:$0xff] %v4962_v49  ;;  %6688 = vst [vmem:[#allocation32_spill] sm:$0xff] %v4964_v57  ;;  %2777 = vperm.xlu1 %3354, %v2694_v55   ;;  %2773 = vperm.xlu0 %3353, %v2692_v25   ;;  %v2697_v49 = vsel %vm1073_vm0, %v2695_v17, %v2696_v45  ;;  %v2703_v57 = vrot.slane %v4694_v29, 2  ;;  %v733_v25 = vmul.f32 %v4847_v22, %v6692_v35  ;;  %v6694_v17 = vld [vmem:[#allocation17_spill] sm:$0xff]  ;;  %v6695_v55 = vld [vmem:[#allocation18_spill] sm:$0xff] }
 0x217   : > { %v732_v45 = vmul.f32 %v4847_v22, %v6693_v52  ;;  %v735_v29 = vmul.f32 %v4847_v22, %v6694_v17  ;;  %v734_v43 = vmul.f32 %v4847_v22, %v6695_v55  ;;  %v5002_v13 = vadd.f32 %v4868_v50, %v728_v7  ;;  %v6698_v35 = vld [vmem:[#allocation19_spill] sm:$0xff] }
 0x218   : > { %v737_v33 = vmul.f32 %v4847_v22, %v6698_v35  ;;  %v2706_v52 = vrot.slane %v4524_v30, 2  ;;  %v2705_v17 = vrot.slane %v4527_v59, 2  ;;  %v2704_v55 = vsel %vm1073_vm0, %v2701_v6, %v2703_v57  ;;  %v6700_v30 = vld [vmem:[#allocation21_spill] sm:$0xff] }
 0x219   : > { %v4997_v27 = vpop.permute.xlu1 %2181  ;;  %v4999_v24 = vpop.permute.xlu0 %2176  ;;  %v5014_v7 = vadd.f32 %v4868_v50, %v731_v38  ;;  %v5017_v35 = vadd.f32 %v4868_v50, %v730_v37  ;;  %v5020_v56 = vadd.f32 %v4868_v50, %v733_v25  ;;  %v5025_v59 = vadd.f32 %v4868_v50, %v732_v45  ;;  %v6701_v38 = vld [vmem:[#allocation22_spill] sm:$0xff]  ;;  %v6705_v45 = vld [vmem:[#allocation23_spill] sm:$0xff] }
 0x21a   : > { %6696 = vst [vmem:[#allocation5_spill] sm:$0xff] %v4997_v27  ;;  %6697 = vst [vmem:[#allocation3_spill] sm:$0xff] %v4999_v24  ;;  %2785 = vperm.xlu1 %3354, %v2699_v8   ;;  %2781 = vperm.xlu0 %3353, %v2697_v49   ;;  %v2702_v27 = vsel %vm1073_vm0, %v2700_v53, %v2701_v6  ;;  %v2708_v24 = vrot.slane %v4706_v2, 2  ;;  %v739_v49 = vmul.f32 %v4847_v22, %v6700_v30 }
 0x21b   : > { %v5028_v57 = vadd.f32 %v4868_v50, %v735_v29  ;;  %v5031_v2 = vadd.f32 %v4868_v50, %v734_v43  ;;  %v738_v6 = vmul.f32 %v4847_v22, %v6701_v38  ;;  %v5040_v37 = vadd.f32 %v4868_v50, %v737_v33  ;;  %v5050_v43 = vld [vmem:[%s6389_s3 + $0x1] ss:$0 sm:$0xff] }
 0x21c   : > { %v5043_v25 = vadd.f32 %v4868_v50, %v736_v11  ;;  %v741_v29 = vmul.f32 %v4847_v22, %v6705_v45  ;;  %v2711_v30 = vrot.slane %v4536_v48, 2  ;;  %v2710_v38 = vrot.slane %v4539_v42, 2  ;;  %v6707_v45 = vld [vmem:[#allocation24_spill] sm:$0xff]  ;;  %v6709_v48 = vld [vmem:[#allocation33_spill] sm:$0xff] }
 0x21d   : > { %v5035_v53 = vpop.permute.xlu1 %2191  ;;  %v5037_v8 = vpop.permute.xlu0 %2186  ;;  %v2709_v33 = vsel %vm1073_vm0, %v2706_v52, %v2708_v24  ;;  %v2713_v11 = vrot.slane %v4718_v31, 2  ;;  %v740_v18 = vmul.f32 %v4847_v22, %v6707_v45  ;;  %v5067_v42 = vadd.f32 %v4868_v50, %v738_v6  ;;  %v6711_v24 = vld [vmem:[#allocation26_spill] sm:$0xff] }
 0x21e   : > { %6702 = vst [vmem:[#allocation7_spill] sm:$0xff] %v5035_v53  ;;  %6703 = vst [vmem:[#allocation4_spill] sm:$0xff] %v5037_v8  ;;  %2793 = vperm.xlu1 %3354, %v2704_v55   ;;  %2789 = vperm.xlu0 %3353, %v2702_v27   ;;  %v2707_v8 = vsel %vm1073_vm0, %v2705_v17, %v2706_v52  ;;  %v5058_v53 = vadd.f32 %v4868_v50, %v739_v49  ;;  %v6712_v17 = vld [vmem:[#allocation34_spill] sm:$0xff]  ;;  %v6713_v55 = vld [vmem:[#allocation35_spill] sm:$0xff] }
 0x21f   : > { %6704 = vst [vmem:[#allocation9_spill] sm:$0xff] %v5043_v25  ;;  %v743_v25 = vmul.f32 %v4847_v22, %v6708_v3  ;;  %v742_v27 = vmul.f32 %v4847_v22, %v6709_v48  ;;  %6710 = vst [vmem:[#allocation12_spill] sm:$0xff] %v5067_v42  ;;  %v1010_v52 = vmul.f32 %v5050_v43, %v6711_v24  ;;  %v6716_v22 = vld [vmem:[#allocation36_spill] sm:$0xff]  ;;  %v6717_v48 = vld [vmem:[#allocation37_spill] sm:$0xff]  ;;  %v2716_v24 = vrot.slane %v4548_v62, 2 }
 0x220   : > { %6706 = vst [vmem:[#allocation6_spill] sm:$0xff] %v5058_v53  ;;  %v1009_v31 = vmul.f32 %v5050_v43, %v6712_v17  ;;  %v1012_v49 = vmul.f32 %v5050_v43, %v6713_v55  ;;  %v5080_v3 = vadd.f32 %v4868_v50, %v741_v29  ;;  %v1011_v6 = vmul.f32 %v5050_v43, %v6716_v22  ;;  %v6718_v62 = vld [vmem:[#allocation38_spill] sm:$0xff] }
 0x221   : > { %v5075_v53 = vpop.permute.xlu1 %2201  ;;  %v5077_v45 = vpop.permute.xlu0 %2196  ;;  %v1014_v42 = vmul.f32 %v5050_v43, %v6717_v48  ;;  %v2715_v17 = vrot.slane %v4551_v0, 2  ;;  %v2714_v55 = vsel %vm1073_vm0, %v2711_v30, %v2713_v11  ;;  %v5092_v29 = vadd.f32 %v4868_v50, %v740_v18  ;;  %v6719_v18 = vld [vmem:[#allocation39_spill] sm:$0xff] }
 0x222   : > { %6714 = vst [vmem:[#allocation8_spill] sm:$0xff] %v5075_v53  ;;  %6715 = vst [vmem:[#allocation13_spill] sm:$0xff] %v5077_v45  ;;  %2801 = vperm.xlu1 %3354, %v2709_v33   ;;  %2797 = vperm.xlu0 %3353, %v2707_v8   ;;  %v2712_v53 = vsel %vm1073_vm0, %v2710_v38, %v2711_v30  ;;  %v2718_v45 = vrot.slane %v4730_v9, 2  ;;  %v5095_v22 = vadd.f32 %v4868_v50, %v743_v25 }
 0x223   : > { %v5098_v48 = vadd.f32 %v4868_v50, %v742_v27  ;;  %v1013_v8 = vmul.f32 %v5050_v43, %v6718_v62  ;;  %v5103_v0 = vadd.f32 %v1010_v52, %v4897_v10  ;;  %v5106_v33 = vadd.f32 %v1009_v31, %v4885_v15  ;;  %v6722_v10 = vld [vmem:[#allocation40_spill] sm:$0xff] }
 0x224   : > { %v5109_v9 = vadd.f32 %v1012_v49, %v4894_v4  ;;  %v1016_v30 = vmul.f32 %v5050_v43, %v6719_v18  ;;  %v5118_v50 = vadd.f32 %v1011_v6, %v4882_v58  ;;  %v5121_v11 = vadd.f32 %v1014_v42, %v4907_v61  ;;  %v6723_v61 = vld [vmem:[#allocation41_spill] sm:$0xff]  ;;  %v6724_v6 = vld [vmem:[#allocation42_spill] sm:$0xff] }
 0x225   : > { %v5113_v25 = vpop.permute.xlu1 %2211  ;;  %v5115_v38 = vpop.permute.xlu0 %2206  ;;  %v1015_v15 = vmul.f32 %v5050_v43, %v6722_v10  ;;  %v2721_v27 = vrot.slane %v4560_v36, 2  ;;  %v2720_v4 = vrot.slane %v4563_v23, 2  ;;  %v2719_v52 = vsel %vm1073_vm0, %v2716_v24, %v2718_v45  ;;  %v6725_v36 = vld [vmem:[#allocation43_spill] sm:$0xff]  ;;  %v6726_v45 = vld [vmem:[#allocation44_spill] sm:$0xff] }
 0x226   : > { %6720 = vst [vmem:[#allocation10_spill] sm:$0xff] %v5113_v25  ;;  %6721 = vst [vmem:[#allocation14_spill] sm:$0xff] %v5115_v38  ;;  %2809 = vperm.xlu1 %3354, %v2714_v55   ;;  %2805 = vperm.xlu0 %3353, %v2712_v53   ;;  %v2717_v31 = vsel %vm1073_vm0, %v2715_v17, %v2716_v24  ;;  %v2723_v49 = vrot.slane %v4742_v54, 2  ;;  %v5131_v58 = vadd.f32 %v1013_v8, %v4916_v20  ;;  %v6727_v17 = vld [vmem:[#allocation45_spill] sm:$0xff]  ;;  %v6728_v20 = vld [vmem:[#allocation46_spill] sm:$0xff] }
 0x227   : > { %v1018_v42 = vmul.f32 %v5050_v43, %v6723_v61  ;;  %v1017_v62 = vmul.f32 %v5050_v43, %v6724_v6  ;;  %v1020_v53 = vmul.f32 %v5050_v43, %v6725_v36  ;;  %v5140_v23 = vadd.f32 %v1016_v30, %v4929_v32  ;;  %v6730_v61 = vld [vmem:[#allocation47_spill] sm:$0xff]  ;;  %v6731_v30 = vld [vmem:[#allocation48_spill] sm:$0xff] }
 0x228   : > { %v1019_v24 = vmul.f32 %v5050_v43, %v6726_v45  ;;  %v1022_v54 = vmul.f32 %v5050_v43, %v6727_v17  ;;  %v1021_v55 = vmul.f32 %v5050_v43, %v6728_v20  ;;  %v5153_v10 = vadd.f32 %v1015_v15, %v4941_v28 }
 0x229   : > { %v5148_v8 = vpop.permute.xlu1 %2221  ;;  %v5150_v18 = vpop.permute.xlu0 %2216  ;;  %v1024_v32 = vmul.f32 %v5050_v43, %v6730_v61  ;;  %v1023_v6 = vmul.f32 %v5050_v43, %v6731_v30  ;;  %v2726_v36 = vrot.slane %v4572_v19, 2  ;;  %v2725_v45 = vrot.slane %v4575_v12, 2  ;;  %v6732_v19 = vld [vmem:[#allocation49_spill] sm:$0xff] }
 0x22a   : > { %6729 = vst [vmem:[#allocation11_spill] sm:$0xff] %v5148_v8  ;;  %2817 = vperm.xlu1 %3354, %v2719_v52   ;;  %2813 = vperm.xlu0 %3353, %v2717_v31   ;;  %v2724_v17 = vsel %vm1073_vm0, %v2721_v27, %v2723_v49  ;;  %v2722_v20 = vsel %vm1073_vm0, %v2720_v4, %v2721_v27  ;;  %v2728_v8 = vrot.slane %v4754_v26, 2 }
 0x22b   : > { %v5165_v28 = vadd.f32 %v1018_v42, %v4944_v39  ;;  %v5168_v15 = vadd.f32 %v1017_v62, %v4947_v46  ;;  %v5171_v61 = vadd.f32 %v1020_v53, %v4952_v40  ;;  %v1026_v52 = vmul.f32 %v5050_v43, %v6732_v19  ;;  %v6733_v39 = vld [vmem:[#allocation50_spill] sm:$0xff] }
 0x22c   : > { %v5176_v12 = vadd.f32 %v1019_v24, %v4955_v41  ;;  %v5179_v31 = vadd.f32 %v1022_v54, %v4958_v14  ;;  %v5182_v26 = vadd.f32 %v1021_v55, %v4967_v60  ;;  %v1025_v27 = vmul.f32 %v5050_v43, %v6733_v39  ;;  %v6736_v41 = vld [vmem:[#allocation51_spill] sm:$0xff]  ;;  %v6738_v55 = vld [vmem:[#allocation53_spill] sm:$0xff] }
 0x22d   : > { %v5186_v46 = vpop.permute.xlu1 %2231  ;;  %v5188_v4 = vpop.permute.xlu0 %2226  ;;  %v5191_v40 = vadd.f32 %v1024_v32, %v4970_v21  ;;  %v5194_v49 = vadd.f32 %v1023_v6, %v4980_v1  ;;  %v1028_v14 = vmul.f32 %v5050_v43, %v6736_v41  ;;  %v2731_v42 = vrot.slane %v4584_v34, 2  ;;  %v6737_v1 = vld [vmem:[#allocation52_spill] sm:$0xff]  ;;  %v6739_v34 = vld [vmem:[#allocation54_spill] sm:$0xff]  ;;  %v6745_v39 = vld [vmem:[#allocation59_spill] sm:$0xff] }
 0x22e   : > { %6734 = vst [vmem:[#allocation16_spill] sm:$0xff] %v5186_v46  ;;  %6735 = vst [vmem:[#allocation15_spill] sm:$0xff] %v5188_v4  ;;  %2825 = vperm.xlu1 %3354, %v2724_v17   ;;  %2821 = vperm.xlu0 %3353, %v2722_v20   ;;  %v2730_v60 = vrot.slane %v4587_v47, 2  ;;  %v2729_v62 = vsel %vm1073_vm0, %v2726_v36, %v2728_v8  ;;  %v2727_v53 = vsel %vm1073_vm0, %v2725_v45, %v2726_v36  ;;  %v6740_v8 = vld [vmem:[#allocation55_spill] sm:$0xff]  ;;  %v6741_v36 = vld [vmem:[#allocation56_spill] sm:$0xff] }
 0x22f   : > { %v2733_v24 = vrot.slane %v4766_v44, 2  ;;  %v5204_v21 = vadd.f32 %v1026_v52, %v4989_v5  ;;  %v1027_v54 = vmul.f32 %v5050_v43, %v6737_v1  ;;  %v1030_v32 = vmul.f32 %v5050_v43, %v6738_v55  ;;  %v6742_v5 = vld [vmem:[#allocation57_spill] sm:$0xff]  ;;  %v6744_v52 = vld [vmem:[#allocation58_spill] sm:$0xff] }
 0x230   : > { %v1029_v30 = vmul.f32 %v5050_v43, %v6739_v34  ;;  %v5213_v47 = vadd.f32 %v1025_v27, %v5002_v13  ;;  %v1032_v6 = vmul.f32 %v5050_v43, %v6740_v8  ;;  %v1031_v44 = vmul.f32 %v5050_v43, %v6741_v36 }
 0x231   : > { %v1034_v45 = vmul.f32 %v5050_v43, %v6742_v5  ;;  %v5221_v17 = vpop.permute.xlu1 %2241  ;;  %v5223_v20 = vpop.permute.xlu0 %2236  ;;  %v5226_v19 = vadd.f32 %v1028_v14, %v5014_v7  ;;  %v1033_v13 = vmul.f32 %v5050_v43, %v6744_v52  ;;  %v1036_v27 = vmul.f32 %v5050_v43, %v6745_v39  ;;  %v6755_v39 = vld [vmem:[#allocation189_spill] sm:$0xff] }
 0x232   : > { %6743 = vst [vmem:[#allocation17_spill] sm:$0xff] %v5221_v17  ;;  %v2736_v41 = vrot.slane %v4596_v51, 2  ;;  %2833 = vperm.xlu1 %3354, %v2729_v62   ;;  %2829 = vperm.xlu0 %3353, %v2727_v53   ;;  %v2735_v1 = vrot.slane %v4599_v16, 2  ;;  %v2734_v55 = vsel %vm1073_vm0, %v2731_v42, %v2733_v24  ;;  %v2732_v34 = vsel %vm1073_vm0, %v2730_v60, %v2731_v42  ;;  %v6746_v51 = vld [vmem:[#allocation60_spill] sm:$0xff] }
 0x233   : > { %v2738_v8 = vrot.slane %v4778_v63, 2  ;;  %v5238_v7 = vadd.f32 %v1027_v54, %v5017_v35  ;;  %v5241_v14 = vadd.f32 %v1030_v32, %v5020_v56  ;;  %v5244_v36 = vadd.f32 %v1029_v30, %v5025_v59  ;;  %v6747_v35 = vld [vmem:[#allocation61_spill] sm:$0xff]  ;;  %v5262_v56 = vld [vmem:[%s6389_s3 + $0x2] ss:$0 sm:$0xff]  ;;  %v6768_v17 = vld [vmem:[#allocation192_spill] sm:$0xff] }
 0x234   : > { %v1035_v62 = vmul.f32 %v5050_v43, %v6746_v51  ;;  %v5249_v16 = vadd.f32 %v1032_v6, %v5028_v57  ;;  %v5252_v53 = vadd.f32 %v1031_v44, %v5031_v2  ;;  %v5255_v63 = vadd.f32 %v1034_v45, %v5040_v37  ;;  %v6750_v57 = vld [vmem:[#allocation9_spill] sm:$0xff]  ;;  %v6751_v2 = vld [vmem:[#allocation6_spill] sm:$0xff] }
 0x235   : > { %v1038_v42 = vmul.f32 %v5050_v43, %v6747_v35  ;;  %v5264_v59 = vpop.permute.xlu1 %2251  ;;  %v5266_v60 = vpop.permute.xlu0 %2246  ;;  %v5269_v24 = vadd.f32 %v1033_v13, %v6750_v57  ;;  %v5272_v54 = vadd.f32 %v1036_v27, %v6751_v2  ;;  %v6752_v37 = vld [vmem:[#allocation62_spill] sm:$0xff]  ;;  %v6753_v30 = vld [vmem:[#allocation149_spill] sm:$0xff]  ;;  %v2739_v45 = vsel %vm1073_vm0, %v2736_v41, %v2738_v8  ;;  %v6756_v13 = vld [vmem:[#allocation12_spill] sm:$0xff] }
 0x236   : > { %6748 = vst [vmem:[#allocation18_spill] sm:$0xff] %v5264_v59  ;;  %6749 = vst [vmem:[#allocation19_spill] sm:$0xff] %v5266_v60  ;;  %v1037_v32 = vmul.f32 %v5050_v43, %v6752_v37  ;;  %v2741_v6 = vrot.slane %v6753_v30, 2  ;;  %2841 = vperm.xlu1 %3354, %v2734_v55   ;;  %2837 = vperm.xlu0 %3353, %v2732_v34   ;;  %v6754_v44 = vld [vmem:[#allocation150_spill] sm:$0xff]  ;;  %v2737_v52 = vsel %vm1073_vm0, %v2735_v1, %v2736_v41  ;;  %v6757_v27 = vld [vmem:[#allocation63_spill] sm:$0xff] }
 0x237   : > { %v2740_v5 = vrot.slane %v6754_v44, 2  ;;  %v2743_v51 = vrot.slane %v6755_v39, 2  ;;  %v5282_v35 = vadd.f32 %v1035_v62, %v6756_v13  ;;  %v1040_v57 = vmul.f32 %v5050_v43, %v6757_v27  ;;  %v6758_v2 = vld [vmem:[#allocation64_spill] sm:$0xff]  ;;  %v6759_v30 = vld [vmem:[#allocation65_spill] sm:$0xff]  ;;  %v6760_v8 = vld [vmem:[#allocation66_spill] sm:$0xff] }
 0x238   : > { %v1039_v37 = vmul.f32 %v5050_v43, %v6758_v2  ;;  %v1291_v55 = vmul.f32 %v5262_v56, %v6759_v30  ;;  %v5291_v34 = vadd.f32 %v1038_v42, %v5080_v3  ;;  %v1290_v41 = vmul.f32 %v5262_v56, %v6760_v8  ;;  %v6761_v1 = vld [vmem:[#allocation67_spill] sm:$0xff]  ;;  %v6762_v62 = vld [vmem:[#allocation68_spill] sm:$0xff]  ;;  %v6764_v2 = vld [vmem:[#allocation69_spill] sm:$0xff] }
 0x239   : > { %v1293_v44 = vmul.f32 %v5262_v56, %v6761_v1  ;;  %v1292_v39 = vmul.f32 %v5262_v56, %v6762_v62  ;;  %v5299_v13 = vpop.permute.xlu1 %2261  ;;  %v5301_v27 = vpop.permute.xlu0 %2256  ;;  %v5304_v43 = vadd.f32 %v1037_v32, %v5092_v29  ;;  %v1295_v3 = vmul.f32 %v5262_v56, %v6764_v2  ;;  %v6765_v42 = vld [vmem:[#allocation70_spill] sm:$0xff]  ;;  %v6766_v8 = vld [vmem:[#allocation153_spill] sm:$0xff] }
 0x23a   : > { %6763 = vst [vmem:[#allocation20_spill] sm:$0xff] %v5299_v13  ;;  %v1294_v30 = vmul.f32 %v5262_v56, %v6765_v42  ;;  %v2746_v60 = vrot.slane %v6766_v8, 2  ;;  %2849 = vperm.xlu1 %3354, %v2739_v45   ;;  %2845 = vperm.xlu0 %3353, %v2737_v52   ;;  %v6767_v1 = vld [vmem:[#allocation154_spill] sm:$0xff]  ;;  %v2744_v62 = vsel %vm1073_vm0, %v2741_v6, %v2743_v51  ;;  %v2748_v4 = vrot.slane %v6768_v17, 2  ;;  %v6769_v42 = vld [vmem:[#allocation71_spill] sm:$0xff] }
 0x23b   : > { %v2745_v59 = vrot.slane %v6767_v1, 2  ;;  %v2742_v13 = vsel %vm1073_vm0, %v2740_v5, %v2741_v6  ;;  %v5316_v29 = vadd.f32 %v1040_v57, %v5095_v22  ;;  %v5319_v32 = vadd.f32 %v1039_v37, %v5098_v48  ;;  %v6770_v22 = vld [vmem:[#allocation72_spill] sm:$0xff]  ;;  %v6774_v37 = vld [vmem:[#allocation157_spill] sm:$0xff]  ;;  %v6776_v8 = vld [vmem:[#allocation195_spill] sm:$0xff] }
 0x23c   : > { %v5322_v2 = vadd.f32 %v1291_v55, %v5103_v0  ;;  %v1297_v45 = vmul.f32 %v5262_v56, %v6769_v42  ;;  %v5327_v52 = vadd.f32 %v1290_v41, %v5106_v33  ;;  %v5330_v51 = vadd.f32 %v1293_v44, %v5109_v9  ;;  %v6773_v33 = vld [vmem:[#allocation73_spill] sm:$0xff] }
 0x23d   : > { %v5333_v17 = vadd.f32 %v1292_v39, %v5118_v50  ;;  %v1296_v6 = vmul.f32 %v5262_v56, %v6770_v22  ;;  %v5337_v48 = vpop.permute.xlu1 %2271  ;;  %v5339_v5 = vpop.permute.xlu0 %2266  ;;  %v5342_v0 = vadd.f32 %v1295_v3, %v5121_v11  ;;  %v5345_v57 = vadd.f32 %v1294_v30, %v5131_v58  ;;  %v6775_v50 = vld [vmem:[#allocation158_spill] sm:$0xff]  ;;  %v6778_v30 = vld [vmem:[#allocation75_spill] sm:$0xff]  ;;  %v6779_v22 = vld [vmem:[#allocation76_spill] sm:$0xff] }
 0x23e   : > { %6771 = vst [vmem:[#allocation21_spill] sm:$0xff] %v5337_v48  ;;  %6772 = vst [vmem:[#allocation22_spill] sm:$0xff] %v5339_v5  ;;  %v1299_v9 = vmul.f32 %v5262_v56, %v6773_v33  ;;  %v2751_v55 = vrot.slane %v6774_v37, 2  ;;  %2857 = vperm.xlu1 %3354, %v2744_v62   ;;  %2853 = vperm.xlu0 %3353, %v2742_v13   ;;  %v2750_v41 = vrot.slane %v6775_v50, 2  ;;  %v2753_v1 = vrot.slane %v6776_v8, 2  ;;  %v6777_v58 = vld [vmem:[#allocation74_spill] sm:$0xff] }
 0x23f   : > { %v2749_v44 = vsel %vm1073_vm0, %v2746_v60, %v2748_v4  ;;  %v2747_v39 = vsel %vm1073_vm0, %v2745_v59, %v2746_v60  ;;  %v5355_v11 = vadd.f32 %v1297_v45, %v5140_v23  ;;  %v1298_v3 = vmul.f32 %v5262_v56, %v6777_v58  ;;  %v6780_v4 = vld [vmem:[#allocation77_spill] sm:$0xff]  ;;  %v6781_v60 = vld [vmem:[#allocation78_spill] sm:$0xff]  ;;  %v6782_v23 = vld [vmem:[#allocation79_spill] sm:$0xff] }
 0x240   : > { %v1301_v42 = vmul.f32 %v5262_v56, %v6778_v30  ;;  %v1300_v13 = vmul.f32 %v5262_v56, %v6779_v22  ;;  %v5364_v62 = vadd.f32 %v1296_v6, %v5153_v10  ;;  %v1303_v59 = vmul.f32 %v5262_v56, %v6780_v4  ;;  %v6785_v58 = vld [vmem:[#allocation80_spill] sm:$0xff]  ;;  %v6786_v6 = vld [vmem:[#allocation81_spill] sm:$0xff]  ;;  %v6789_v48 = vld [vmem:[#allocation198_spill] sm:$0xff] }
 0x241   : > { %v1302_v33 = vmul.f32 %v5262_v56, %v6781_v60  ;;  %v1305_v45 = vmul.f32 %v5262_v56, %v6782_v23  ;;  %v5372_v37 = vpop.permute.xlu1 %2281  ;;  %v5374_v50 = vpop.permute.xlu0 %2276  ;;  %v5377_v8 = vadd.f32 %v1299_v9, %v5165_v28  ;;  %v1304_v10 = vmul.f32 %v5262_v56, %v6785_v58  ;;  %v6787_v22 = vld [vmem:[#allocation161_spill] sm:$0xff]  ;;  %v6788_v60 = vld [vmem:[#allocation162_spill] sm:$0xff] }
 0x242   : > { %6783 = vst [vmem:[#allocation23_spill] sm:$0xff] %v5372_v37  ;;  %6784 = vst [vmem:[#allocation24_spill] sm:$0xff] %v5374_v50  ;;  %v1307_v30 = vmul.f32 %v5262_v56, %v6786_v6  ;;  %v2756_v4 = vrot.slane %v6787_v22, 2  ;;  %2865 = vperm.xlu1 %3354, %v2749_v44   ;;  %2861 = vperm.xlu0 %3353, %v2747_v39   ;;  %v2755_v5 = vrot.slane %v6788_v60, 2  ;;  %v2758_v46 = vrot.slane %v6789_v48, 2  ;;  %v6790_v6 = vld [vmem:[#allocation82_spill] sm:$0xff] }
 0x243   : > { %v2754_v23 = vsel %vm1073_vm0, %v2751_v55, %v2753_v1  ;;  %v2752_v37 = vsel %vm1073_vm0, %v2750_v41, %v2751_v55  ;;  %v5389_v28 = vadd.f32 %v1298_v3, %v5168_v15  ;;  %v5392_v9 = vadd.f32 %v1301_v42, %v5171_v61  ;;  %v6791_v15 = vld [vmem:[#allocation83_spill] sm:$0xff]  ;;  %v6795_v42 = vld [vmem:[#allocation165_spill] sm:$0xff] }
 0x244   : > { %v5395_v58 = vadd.f32 %v1300_v13, %v5176_v12  ;;  %v1306_v44 = vmul.f32 %v5262_v56, %v6790_v6  ;;  %v5400_v39 = vadd.f32 %v1303_v59, %v5179_v31  ;;  %v5403_v1 = vadd.f32 %v1302_v33, %v5182_v26  ;;  %v6794_v31 = vld [vmem:[#allocation95_spill] sm:$0xff]  ;;  %v6797_v22 = vld [vmem:[#allocation201_spill] sm:$0xff] }
 0x245   : > { %v5406_v48 = vadd.f32 %v1305_v45, %v5191_v40  ;;  %v1309_v55 = vmul.f32 %v5262_v56, %v6791_v15  ;;  %v5410_v61 = vpop.permute.xlu1 %2291  ;;  %v5412_v41 = vpop.permute.xlu0 %2286  ;;  %v5415_v12 = vadd.f32 %v1304_v10, %v5194_v49  ;;  %v5418_v3 = vadd.f32 %v1307_v30, %v5204_v21  ;;  %v6796_v40 = vld [vmem:[#allocation166_spill] sm:$0xff]  ;;  %v6798_v21 = vld [vmem:[#allocation84_spill] sm:$0xff]  ;;  %v6799_v30 = vld [vmem:[#allocation85_spill] sm:$0xff] }
 0x246   : > { %6792 = vst [vmem:[#allocation25_spill] sm:$0xff] %v5410_v61  ;;  %6793 = vst [vmem:[#allocation33_spill] sm:$0xff] %v5412_v41  ;;  %v1321_v26 = vmul.f32 %v5262_v56, %v6794_v31  ;;  %v2761_v13 = vrot.slane %v6795_v42, 2  ;;  %2873 = vperm.xlu1 %3354, %v2754_v23   ;;  %2869 = vperm.xlu0 %3353, %v2752_v37   ;;  %v2760_v59 = vrot.slane %v6796_v40, 2  ;;  %v2763_v60 = vrot.slane %v6797_v22, 2  ;;  %v6800_v15 = vld [vmem:[#allocation96_spill] sm:$0xff] }
 0x247   : > { %v2759_v33 = vsel %vm1073_vm0, %v2756_v4, %v2758_v46  ;;  %v2757_v45 = vsel %vm1073_vm0, %v2755_v5, %v2756_v4  ;;  %v5428_v49 = vadd.f32 %v1306_v44, %v5213_v47  ;;  %v1308_v10 = vmul.f32 %v5262_v56, %v6798_v21  ;;  %v5439_v46 = vld [vmem:[%s6389_s3 + $0x3] ss:$0 sm:$0xff]  ;;  %v6802_v23 = vld [vmem:[#allocation87_spill] sm:$0xff] }
 0x248   : > { %v1311_v6 = vmul.f32 %v5262_v56, %v6799_v30  ;;  %v1320_v37 = vmul.f32 %v5262_v56, %v6800_v15  ;;  %v5442_v5 = vadd.f32 %v1309_v55, %v5226_v19  ;;  %v6801_v4 = vld [vmem:[#allocation86_spill] sm:$0xff]  ;;  %v1313_v44 = vmul.f32 %v5262_v56, %v6802_v23  ;;  %v6803_v31 = vld [vmem:[#allocation127_spill] sm:$0xff]  ;;  %v6806_v30 = vld [vmem:[#allocation128_spill] sm:$0xff] }
 0x249   : > { %v1310_v47 = vmul.f32 %v5262_v56, %v6801_v4  ;;  %v1553_v42 = vmul.f32 %v5439_v46, %v6803_v31  ;;  %v5450_v40 = vpop.permute.xlu1 %2301  ;;  %v5452_v22 = vpop.permute.xlu0 %2296  ;;  %v1353_v21 = vadd.f32 %v1321_v26, %v5316_v29  ;;  %v1552_v15 = vmul.f32 %v5439_v46, %v6806_v30  ;;  %v5460_v19 = vld [vmem:[%s6389_s3 + $0x4] ss:$0 sm:$0xff]  ;;  %v6807_v55 = vld [vmem:[#allocation169_spill] sm:$0xff]  ;;  %v6809_v31 = vld [vmem:[#allocation171_spill] sm:$0xff] }
 0x24a   : > { %6804 = vst [vmem:[#allocation26_spill] sm:$0xff] %v5450_v40  ;;  %6805 = vst [vmem:[#allocation34_spill] sm:$0xff] %v5452_v22  ;;  %v2766_v4 = vrot.slane %v6807_v55, 2  ;;  %v6808_v23 = vld [vmem:[#allocation170_spill] sm:$0xff]  ;;  %2881 = vperm.xlu1 %3354, %v2759_v33   ;;  %2877 = vperm.xlu0 %3353, %v2757_v45   ;;  %v1849_v40 = vmul.f32 %v5460_v19, %v6809_v31  ;;  %v2764_v61 = vsel %vm1073_vm0, %v2761_v13, %v2763_v60  ;;  %v6810_v26 = vld [vmem:[#allocation204_spill] sm:$0xff] }
 0x24b   : > { %v2765_v41 = vrot.slane %v6808_v23, 2  ;;  %v2762_v29 = vsel %vm1073_vm0, %v2760_v59, %v2761_v13  ;;  %v2768_v30 = vrot.slane %v6810_v26, 2  ;;  %v5470_v38 = vadd.f32 %v1308_v10, %v5238_v7  ;;  %v6811_v23 = vld [vmem:[#allocation172_spill] sm:$0xff]  ;;  %v5481_v45 = vld [vmem:[%s6389_s3 + $0x5] ss:$0 sm:$0xff]  ;;  %v6816_v26 = vld [vmem:[#allocation31_spill] sm:$0xff] }
 0x24c   : > { %v5473_v25 = vadd.f32 %v1311_v6, %v5241_v14  ;;  %v1352_v55 = vadd.f32 %v1320_v37, %v5319_v32  ;;  %v1848_v33 = vmul.f32 %v5460_v19, %v6811_v23  ;;  %v5484_v13 = vadd.f32 %v1310_v47, %v5244_v36  ;;  %v6812_v59 = vld [vmem:[#allocation88_spill] sm:$0xff]  ;;  %v6813_v10 = vld [vmem:[#allocation30_spill] sm:$0xff]  ;;  %v6817_v36 = vld [vmem:[#allocation89_spill] sm:$0xff] }
 0x24d   : > { %v1312_v7 = vmul.f32 %v5262_v56, %v6812_v59  ;;  %v1585_v60 = vadd.f32 %v1553_v42, %v1353_v21  ;;  %v2129_v14 = vmul.f32 %v5481_v45, %v6813_v10  ;;  %v5490_v6 = vpop.permute.xlu1 %2311  ;;  %v5492_v32 = vpop.permute.xlu0 %2306  ;;  %v5495_v37 = vadd.f32 %v1313_v44, %v5249_v16  ;;  %v6818_v10 = vld [vmem:[#allocation90_spill] sm:$0xff]  ;;  %v6820_v44 = vld [vmem:[#allocation100_spill] sm:$0xff]  ;;  %v6827_v22 = vld [vmem:[#allocation99_spill] sm:$0xff] }
 0x24e   : > { %6814 = vst [vmem:[#allocation35_spill] sm:$0xff] %v5490_v6  ;;  %6815 = vst [vmem:[#allocation36_spill] sm:$0xff] %v5492_v32  ;;  %v1584_v31 = vadd.f32 %v1552_v15, %v1352_v55  ;;  %v2128_v23 = vmul.f32 %v5481_v45, %v6816_v26  ;;  %2889 = vperm.xlu1 %3354, %v2764_v61   ;;  %2885 = vperm.xlu0 %3353, %v2762_v29   ;;  %v6819_v6 = vld [vmem:[#allocation91_spill] sm:$0xff]  ;;  %v6821_v61 = vld [vmem:[#allocation92_spill] sm:$0xff] }
 0x24f   : > { %v1315_v47 = vmul.f32 %v5262_v56, %v6817_v36  ;;  %v1881_v42 = vadd.f32 %v1849_v40, %v1585_v60  ;;  %v2769_v21 = vsel %vm1073_vm0, %v2766_v4, %v2768_v30  ;;  %v2767_v59 = vsel %vm1073_vm0, %v2765_v41, %v2766_v4  ;;  %v6822_v26 = vld [vmem:[#allocation93_spill] sm:$0xff]  ;;  %v6823_v60 = vld [vmem:[#allocation132_spill] sm:$0xff]  ;;  %v5518_v4 = vld [vmem:[%s6389_s3 + $0x6] ss:$0 sm:$0xff] }
 0x250   : > { %v1314_v32 = vmul.f32 %v5262_v56, %v6818_v10  ;;  %v1317_v16 = vmul.f32 %v5262_v56, %v6819_v6  ;;  %v1524_v15 = vmul.f32 %v5439_v46, %v6820_v44  ;;  %v1880_v55 = vadd.f32 %v1848_v33, %v1584_v31  ;;  %v6824_v44 = vld [vmem:[#allocation94_spill] sm:$0xff] }
 0x251   : > { %v1316_v29 = vmul.f32 %v5262_v56, %v6821_v61  ;;  %v1319_v40 = vmul.f32 %v5262_v56, %v6822_v26  ;;  %v1820_v30 = vmul.f32 %v5460_v19, %v6823_v60  ;;  %v2161_v41 = vadd.f32 %v2129_v14, %v1881_v42  ;;  %v2322_v6 = vpop.permute.xlu1 %2321  ;;  %v2317_v36 = vpop.permute.xlu0 %2316  ;;  %v6825_v26 = vld [vmem:[#allocation97_spill] sm:$0xff]  ;;  %v6826_v42 = vld [vmem:[#allocation98_spill] sm:$0xff] }
 0x252   : > { %v2160_v10 = vadd.f32 %v2128_v23, %v1880_v55  ;;  %v2361_v33 = vmul.f32 %v5518_v4, %v2322_v6  ;;  %v2360_v31 = vmul.f32 %v5518_v4, %v2317_v36  ;;  %2897 = vperm.xlu1 %3354, %v2769_v21   ;;  %2893 = vperm.xlu0 %3353, %v2767_v59   ;;  %v6828_v55 = vld [vmem:[#allocation176_spill] sm:$0xff] }
 0x253   : > { %v1318_v61 = vmul.f32 %v5262_v56, %v6824_v44  ;;  %v1523_v14 = vmul.f32 %v5439_v46, %v6825_v26  ;;  %v1522_v60 = vmul.f32 %v5439_v46, %v6826_v42  ;;  %v1525_v50 = vmul.f32 %v5439_v46, %v6827_v22  ;;  %v6831_v26 = vld [vmem:[#allocation104_spill] sm:$0xff] }
 0x254   : > { %v1556_v23 = vadd.f32 %v1524_v15, %v5333_v17  ;;  %v2100_v6 = vmul.f32 %v5481_v45, %v6828_v55  ;;  %v5533_v36 = vadd.f32 %v2361_v33, %v2161_v41  ;;  %v5535_v21 = vadd.f32 %v2360_v31, %v2160_v10  ;;  %v6839_v55 = vld [vmem:[#allocation136_spill] sm:$0xff] }
 0x255   : > { %v5538_v56 = vadd.f32 %v1312_v7, %v5252_v53  ;;  %v5541_v59 = vadd.f32 %v1315_v47, %v5255_v63  ;;  %v5544_v44 = vadd.f32 %v1314_v32, %v5269_v24  ;;  %v1528_v22 = vmul.f32 %v5439_v46, %v6831_v26  ;;  %v5548_v17 = vpop.permute.xlu1 %2497  ;;  %v5550_v15 = vpop.permute.xlu0 %2493  ;;  %v6832_v7 = vld [vmem:[#allocation3_spill] sm:$0xff] }
 0x256   : > { %6829 = vst [vmem:[#allocation37_spill] sm:$0xff] %v5533_v36  ;;  %6830 = vst [vmem:[#allocation38_spill] sm:$0xff] %v5535_v21  ;;  %v5553_v41 = vadd.f32 %v1317_v16, %v5272_v54  ;;  %v5556_v10 = vadd.f32 %v1316_v29, %v5282_v35  ;;  %v1852_v53 = vadd.f32 %v1820_v30, %v1556_v23  ;;  %v6833_v35 = vld [vmem:[#allocation101_spill] sm:$0xff]  ;;  %v6834_v29 = vld [vmem:[#allocation102_spill] sm:$0xff] }
 0x257   : > { %v2332_v63 = vmul.f32 %v5518_v4, %v6832_v7  ;;  %v5561_v24 = vadd.f32 %v1319_v40, %v5291_v34  ;;  %v5564_v32 = vadd.f32 %v1318_v61, %v5304_v43  ;;  %v5567_v47 = vadd.f32 %v1523_v14, %v5322_v2  ;;  %v6835_v40 = vld [vmem:[#allocation103_spill] sm:$0xff]  ;;  %v6836_v2 = vld [vmem:[#allocation105_spill] sm:$0xff]  ;;  %v6844_v36 = vld [vmem:[#allocation112_spill] sm:$0xff] }
 0x258   : > { %v5570_v33 = vadd.f32 %v1522_v60, %v5327_v52  ;;  %v5573_v54 = vadd.f32 %v1525_v50, %v5330_v51  ;;  %v1527_v16 = vmul.f32 %v5439_v46, %v6833_v35  ;;  %v1526_v30 = vmul.f32 %v5439_v46, %v6834_v29  ;;  %v6837_v52 = vld [vmem:[#allocation106_spill] sm:$0xff]  ;;  %v6838_v60 = vld [vmem:[#allocation107_spill] sm:$0xff]  ;;  %v6841_v7 = vld [vmem:[#allocation109_spill] sm:$0xff] }
 0x259   : > { %v2132_v34 = vadd.f32 %v2100_v6, %v1852_v53  ;;  %v1529_v43 = vmul.f32 %v5439_v46, %v6835_v40  ;;  %v1560_v31 = vadd.f32 %v1528_v22, %v5364_v62  ;;  %v1531_v61 = vmul.f32 %v5439_v46, %v6836_v2  ;;  %v5589_v51 = vld [vmem:[%s6389_s3 + $0x7] ss:$0 sm:$0xff]  ;;  %v5591_v50 = vpop.permute.xlu1 %2505  ;;  %v2502_v42 = vpop.permute.xlu0 %2501  ;;  %v6840_v22 = vld [vmem:[#allocation108_spill] sm:$0xff]  ;;  %v6843_v2 = vld [vmem:[#allocation111_spill] sm:$0xff] }
 0x25a   : > { %v1530_v14 = vmul.f32 %v5439_v46, %v6837_v52  ;;  %v1533_v23 = vmul.f32 %v5439_v46, %v6838_v60  ;;  %v1824_v62 = vmul.f32 %v5460_v19, %v6839_v55  ;;  %v2628_v26 = vmul.f32 %v5589_v51, %v2502_v42  ;;  %v6842_v29 = vld [vmem:[#allocation110_spill] sm:$0xff]  ;;  %v6845_v21 = vld [vmem:[#allocation113_spill] sm:$0xff] }
 0x25b   : > { %v2364_v6 = vadd.f32 %v2332_v63, %v2132_v34  ;;  %v1532_v53 = vmul.f32 %v5439_v46, %v6840_v22  ;;  %v1535_v35 = vmul.f32 %v5439_v46, %v6841_v7  ;;  %v1534_v40 = vmul.f32 %v5439_v46, %v6842_v29  ;;  %v6846_v34 = vld [vmem:[#allocation180_spill] sm:$0xff] }
 0x25c   : > { %v1537_v52 = vmul.f32 %v5439_v46, %v6843_v2  ;;  %v1536_v60 = vmul.f32 %v5439_v46, %v6844_v36  ;;  %v1539_v63 = vmul.f32 %v5439_v46, %v6845_v21  ;;  %v2104_v42 = vmul.f32 %v5481_v45, %v6846_v34 }
 0x25d   : > { %v5612_v55 = vadd.f32 %v2628_v26, %v2364_v6  ;;  %v5615_v22 = vadd.f32 %v1527_v16, %v5342_v0  ;;  %v5618_v7 = vadd.f32 %v1526_v30, %v5345_v57  ;;  %v5621_v29 = vadd.f32 %v1529_v43, %v5355_v11  ;;  %v5626_v36 = vpop.permute.xlu1 %2513  ;;  %v5628_v21 = vpop.permute.xlu0 %2509  ;;  %v6849_v16 = vld [vmem:[#allocation13_spill] sm:$0xff]  ;;  %v6854_v26 = vld [vmem:[#allocation118_spill] sm:$0xff] }
 0x25e   : > { %v5624_v2 = vadd.f32 %v1531_v61, %v5377_v8  ;;  %6848 = vst [vmem:[#allocation40_spill] sm:$0xff] %v5628_v21  ;;  %v5631_v34 = vadd.f32 %v1530_v14, %v5389_v28  ;;  %v5634_v6 = vadd.f32 %v1533_v23, %v5392_v9  ;;  %v1856_v0 = vadd.f32 %v1824_v62, %v1560_v31  ;;  %v6850_v31 = vld [vmem:[#allocation114_spill] sm:$0xff]  ;;  %v6852_v23 = vld [vmem:[#allocation116_spill] sm:$0xff]  ;;  %v6853_v62 = vld [vmem:[#allocation117_spill] sm:$0xff] }
 0x25f   : > { %6847 = vst [vmem:[#allocation39_spill] sm:$0xff] %v5612_v55  ;;  %v2336_v57 = vmul.f32 %v5518_v4, %v6849_v16  ;;  %v1564_v11 = vadd.f32 %v1532_v53, %v5395_v58  ;;  %v5640_v30 = vadd.f32 %v1535_v35, %v5400_v39  ;;  %v5643_v8 = vadd.f32 %v1534_v40, %v5403_v1  ;;  %v6851_v58 = vld [vmem:[#allocation115_spill] sm:$0xff]  ;;  %v6863_v21 = vld [vmem:[#allocation125_spill] sm:$0xff] }
 0x260   : > { %v5646_v43 = vadd.f32 %v1537_v52, %v5406_v48  ;;  %v5649_v28 = vadd.f32 %v1536_v60, %v5415_v12  ;;  %v5652_v9 = vadd.f32 %v1539_v63, %v5418_v3  ;;  %v1538_v61 = vmul.f32 %v5439_v46, %v6850_v31  ;;  %v6856_v35 = vld [vmem:[#allocation119_spill] sm:$0xff]  ;;  %v6857_v52 = vld [vmem:[#allocation140_spill] sm:$0xff]  ;;  %v6859_v31 = vld [vmem:[#allocation121_spill] sm:$0xff] }
 0x261   : > { %v2136_v14 = vadd.f32 %v2104_v42, %v1856_v0  ;;  %v1541_v39 = vmul.f32 %v5439_v46, %v6851_v58  ;;  %v1540_v1 = vmul.f32 %v5439_v46, %v6852_v23  ;;  %v1543_v48 = vmul.f32 %v5439_v46, %v6853_v62  ;;  %v5664_v53 = vpop.permute.xlu1 %2521  ;;  %v2518_v3 = vpop.permute.xlu0 %2517  ;;  %v6858_v0 = vld [vmem:[#allocation120_spill] sm:$0xff]  ;;  %v6860_v23 = vld [vmem:[#allocation122_spill] sm:$0xff] }
 0x262   : > { %v1542_v12 = vmul.f32 %v5439_v46, %v6854_v26  ;;  %6855 = vst [vmem:[#allocation41_spill] sm:$0xff] %v5664_v53  ;;  %v1545_v40 = vmul.f32 %v5439_v46, %v6856_v35  ;;  %v1828_v60 = vmul.f32 %v5460_v19, %v6857_v52  ;;  %v2632_v42 = vmul.f32 %v5589_v51, %v2518_v3  ;;  %v6861_v26 = vld [vmem:[#allocation123_spill] sm:$0xff]  ;;  %v6862_v53 = vld [vmem:[#allocation124_spill] sm:$0xff] }
 0x263   : > { %v2368_v63 = vadd.f32 %v2336_v57, %v2136_v14  ;;  %v1544_v16 = vmul.f32 %v5439_v46, %v6858_v0  ;;  %v1547_v58 = vmul.f32 %v5439_v46, %v6859_v31  ;;  %v1546_v62 = vmul.f32 %v5439_v46, %v6860_v23  ;;  %v6864_v14 = vld [vmem:[#allocation184_spill] sm:$0xff] }
 0x264   : > { %v1549_v55 = vmul.f32 %v5439_v46, %v6861_v26  ;;  %v1548_v35 = vmul.f32 %v5439_v46, %v6862_v53  ;;  %v1551_v57 = vmul.f32 %v5439_v46, %v6863_v21  ;;  %v2108_v3 = vmul.f32 %v5481_v45, %v6864_v14 }
 0x265   : > { %v5685_v52 = vadd.f32 %v2632_v42, %v2368_v63  ;;  %v5688_v0 = vadd.f32 %v1538_v61, %v5428_v49  ;;  %v5691_v31 = vadd.f32 %v1541_v39, %v5442_v5  ;;  %v5694_v23 = vadd.f32 %v1540_v1, %v5470_v38  ;;  %v5699_v53 = vpop.permute.xlu1 %2529  ;;  %v5701_v21 = vpop.permute.xlu0 %2525  ;;  %v6867_v1 = vld [vmem:[#allocation129_spill] sm:$0xff] }
 0x266   : > { %v5697_v26 = vadd.f32 %v1543_v48, %v5473_v25  ;;  %v5704_v14 = vadd.f32 %v1542_v12, %v5484_v13  ;;  %v5707_v63 = vadd.f32 %v1545_v40, %v5495_v37  ;;  %v1860_v49 = vadd.f32 %v1828_v60, %v1564_v11  ;;  %v6866_v11 = vld [vmem:[#allocation126_spill] sm:$0xff]  ;;  %v6869_v12 = vld [vmem:[#allocation131_spill] sm:$0xff] }
 0x267   : > { %6865 = vst [vmem:[#allocation42_spill] sm:$0xff] %v5685_v52  ;;  %v2340_v5 = vmul.f32 %v5518_v4, %v5150_v18  ;;  %v5712_v38 = vadd.f32 %v1544_v16, %v5538_v56  ;;  %v5715_v25 = vadd.f32 %v1547_v58, %v5541_v59  ;;  %v5718_v61 = vadd.f32 %v1546_v62, %v5544_v44  ;;  %v6868_v48 = vld [vmem:[#allocation130_spill] sm:$0xff] }
 0x268   : > { %v5721_v39 = vadd.f32 %v1549_v55, %v5553_v41  ;;  %v5724_v13 = vadd.f32 %v1548_v35, %v5556_v10  ;;  %v5727_v37 = vadd.f32 %v1551_v57, %v5561_v24  ;;  %v1550_v18 = vmul.f32 %v5439_v46, %v6866_v11  ;;  %v6870_v55 = vld [vmem:[#allocation133_spill] sm:$0xff]  ;;  %v6871_v60 = vld [vmem:[#allocation134_spill] sm:$0xff]  ;;  %v6872_v46 = vld [vmem:[#allocation144_spill] sm:$0xff] }
 0x269   : > { %v2140_v56 = vadd.f32 %v2108_v3, %v1860_v49  ;;  %v1819_v59 = vmul.f32 %v5460_v19, %v6867_v1  ;;  %v1818_v44 = vmul.f32 %v5460_v19, %v6868_v48  ;;  %v1821_v41 = vmul.f32 %v5460_v19, %v6869_v12  ;;  %v5739_v40 = vpop.permute.xlu1 %2537  ;;  %v2534_v24 = vpop.permute.xlu0 %2533  ;;  %v6873_v35 = vld [vmem:[#allocation135_spill] sm:$0xff]  ;;  %v6874_v3 = vld [vmem:[#allocation137_spill] sm:$0xff]  ;;  %v6875_v11 = vld [vmem:[#allocation138_spill] sm:$0xff] }
 0x26a   : > { %v1823_v10 = vmul.f32 %v5460_v19, %v6870_v55  ;;  %v1822_v42 = vmul.f32 %v5460_v19, %v6871_v60  ;;  %v1832_v16 = vmul.f32 %v5460_v19, %v6872_v46  ;;  %v2636_v62 = vmul.f32 %v5589_v51, %v2534_v24  ;;  %v6876_v48 = vld [vmem:[#allocation139_spill] sm:$0xff]  ;;  %v6877_v55 = vld [vmem:[#allocation141_spill] sm:$0xff]  ;;  %v6878_v52 = vld [vmem:[#allocation142_spill] sm:$0xff] }
 0x26b   : > { %v2372_v58 = vadd.f32 %v2340_v5, %v2140_v56  ;;  %v1825_v57 = vmul.f32 %v5460_v19, %v6873_v35  ;;  %v1827_v49 = vmul.f32 %v5460_v19, %v6874_v3  ;;  %v1826_v1 = vmul.f32 %v5460_v19, %v6875_v11  ;;  %v6879_v56 = vld [vmem:[#allocation188_spill] sm:$0xff] }
 0x26c   : > { %v1829_v12 = vmul.f32 %v5460_v19, %v6876_v48  ;;  %v1831_v60 = vmul.f32 %v5460_v19, %v6877_v55  ;;  %v1830_v5 = vmul.f32 %v5460_v19, %v6878_v52  ;;  %v2112_v24 = vmul.f32 %v5481_v45, %v6879_v56 }
 0x26d   : > { %v5760_v46 = vadd.f32 %v2636_v62, %v2372_v58  ;;  %v5763_v35 = vadd.f32 %v1550_v18, %v5564_v32  ;;  %v5766_v3 = vadd.f32 %v1819_v59, %v5567_v47  ;;  %v5769_v11 = vadd.f32 %v1818_v44, %v5570_v33  ;;  %v5774_v55 = vpop.permute.xlu1 %2545  ;;  %v5776_v52 = vpop.permute.xlu0 %2541  ;;  %v6881_v59 = vld [vmem:[#allocation143_spill] sm:$0xff]  ;;  %v6882_v44 = vld [vmem:[#allocation145_spill] sm:$0xff] }
 0x26e   : > { %v5772_v48 = vadd.f32 %v1821_v41, %v5573_v54  ;;  %v5779_v56 = vadd.f32 %v1823_v10, %v5615_v22  ;;  %v5782_v58 = vadd.f32 %v1822_v42, %v5618_v7  ;;  %v1864_v32 = vadd.f32 %v1832_v16, %v5649_v28  ;;  %v6883_v41 = vld [vmem:[#allocation146_spill] sm:$0xff]  ;;  %v6884_v10 = vld [vmem:[#allocation147_spill] sm:$0xff]  ;;  %v6885_v42 = vld [vmem:[#allocation148_spill] sm:$0xff] }
 0x26f   : > { %6880 = vst [vmem:[#allocation43_spill] sm:$0xff] %v5760_v46  ;;  %v2344_v47 = vmul.f32 %v5518_v4, %v5223_v20  ;;  %v5788_v33 = vadd.f32 %v1825_v57, %v5621_v29  ;;  %v5791_v54 = vadd.f32 %v1827_v49, %v5624_v2  ;;  %v5794_v18 = vadd.f32 %v1826_v1, %v5631_v34  ;;  %v6887_v62 = vld [vmem:[#allocation151_spill] sm:$0xff]  ;;  %v6888_v49 = vld [vmem:[#allocation152_spill] sm:$0xff] }
 0x270   : > { %v5797_v22 = vadd.f32 %v1829_v12, %v5634_v6  ;;  %v5800_v7 = vadd.f32 %v1831_v60, %v5640_v30  ;;  %v5803_v28 = vadd.f32 %v1830_v5, %v5643_v8  ;;  %v1833_v20 = vmul.f32 %v5460_v19, %v6881_v59  ;;  %v6889_v5 = vld [vmem:[#allocation155_spill] sm:$0xff] }
 0x271   : > { %v2144_v29 = vadd.f32 %v2112_v24, %v1864_v32  ;;  %v1835_v2 = vmul.f32 %v5460_v19, %v6882_v44  ;;  %v1834_v34 = vmul.f32 %v5460_v19, %v6883_v41  ;;  %v1837_v6 = vmul.f32 %v5460_v19, %v6884_v10  ;;  %v5815_v16 = vpop.permute.xlu1 %2553  ;;  %v2550_v8 = vpop.permute.xlu0 %2549  ;;  %v6890_v32 = vld [vmem:[#allocation156_spill] sm:$0xff]  ;;  %v6891_v44 = vld [vmem:[#allocation159_spill] sm:$0xff] }
 0x272   : > { %v1836_v30 = vmul.f32 %v5460_v19, %v6885_v42  ;;  %6886 = vst [vmem:[#allocation44_spill] sm:$0xff] %v5815_v16  ;;  %v1839_v57 = vmul.f32 %v5460_v19, %v6887_v62  ;;  %v1838_v1 = vmul.f32 %v5460_v19, %v6888_v49  ;;  %v2640_v60 = vmul.f32 %v5589_v51, %v2550_v8  ;;  %v6892_v10 = vld [vmem:[#allocation160_spill] sm:$0xff]  ;;  %v6893_v46 = vld [vmem:[#allocation163_spill] sm:$0xff] }
 0x273   : > { %v2376_v12 = vadd.f32 %v2344_v47, %v2144_v29  ;;  %v1841_v24 = vmul.f32 %v5460_v19, %v6889_v5  ;;  %v1840_v59 = vmul.f32 %v5460_v19, %v6890_v32  ;;  %v1843_v41 = vmul.f32 %v5460_v19, %v6891_v44  ;;  %v6894_v16 = vld [vmem:[#allocation164_spill] sm:$0xff]  ;;  %v6895_v29 = vld [vmem:[#allocation194_spill] sm:$0xff] }
 0x274   : > { %v1842_v42 = vmul.f32 %v5460_v19, %v6892_v10  ;;  %v1845_v62 = vmul.f32 %v5460_v19, %v6893_v46  ;;  %v1844_v47 = vmul.f32 %v5460_v19, %v6894_v16  ;;  %v2116_v8 = vmul.f32 %v5481_v45, %v6895_v29 }
 0x275   : > { %v5836_v49 = vadd.f32 %v2640_v60, %v2376_v12  ;;  %v5839_v5 = vadd.f32 %v1833_v20, %v5646_v43  ;;  %v5842_v32 = vadd.f32 %v1835_v2, %v5652_v9  ;;  %v5845_v44 = vadd.f32 %v1834_v34, %v5688_v0  ;;  %v5850_v46 = vpop.permute.xlu1 %2561  ;;  %v5852_v16 = vpop.permute.xlu0 %2557  ;;  %v6904_v60 = vld [vmem:[#allocation177_spill] sm:$0xff] }
 0x276   : > { %v5848_v10 = vadd.f32 %v1837_v6, %v5691_v31  ;;  %6897 = vst [vmem:[#allocation46_spill] sm:$0xff] %v5852_v16  ;;  %v1868_v29 = vadd.f32 %v1836_v30, %v5694_v23  ;;  %v5856_v12 = vadd.f32 %v1839_v57, %v5697_v26  ;;  %v5859_v43 = vadd.f32 %v1838_v1, %v5704_v14  ;;  %v6898_v14 = vld [vmem:[#allocation167_spill] sm:$0xff]  ;;  %v6901_v30 = vld [vmem:[#allocation174_spill] sm:$0xff] }
 0x277   : > { %6896 = vst [vmem:[#allocation45_spill] sm:$0xff] %v5836_v49  ;;  %v2348_v9 = vmul.f32 %v5518_v4, %v5301_v27  ;;  %v5864_v0 = vadd.f32 %v1841_v24, %v5707_v63  ;;  %v1872_v31 = vadd.f32 %v1840_v59, %v5712_v38  ;;  %v5868_v20 = vadd.f32 %v1843_v41, %v5715_v25  ;;  %v6899_v63 = vld [vmem:[#allocation168_spill] sm:$0xff]  ;;  %v6900_v38 = vld [vmem:[#allocation173_spill] sm:$0xff]  ;;  %v6902_v57 = vld [vmem:[#allocation175_spill] sm:$0xff] }
 0x278   : > { %v5871_v2 = vadd.f32 %v1842_v42, %v5718_v61  ;;  %v5874_v23 = vadd.f32 %v1845_v62, %v5721_v39  ;;  %v5877_v26 = vadd.f32 %v1844_v47, %v5724_v13  ;;  %v1847_v27 = vmul.f32 %v5460_v19, %v6898_v14  ;;  %v6905_v59 = vld [vmem:[#allocation178_spill] sm:$0xff]  ;;  %v6906_v62 = vld [vmem:[#allocation179_spill] sm:$0xff] }
 0x279   : > { %v2148_v34 = vadd.f32 %v2116_v8, %v1868_v29  ;;  %v1846_v6 = vmul.f32 %v5460_v19, %v6899_v63  ;;  %v2099_v25 = vmul.f32 %v5481_v45, %v6900_v38  ;;  %v2098_v61 = vmul.f32 %v5481_v45, %v6901_v30  ;;  %v5889_v1 = vpop.permute.xlu1 %2569  ;;  %v2566_v13 = vpop.permute.xlu0 %2565  ;;  %v6907_v8 = vld [vmem:[#allocation181_spill] sm:$0xff]  ;;  %v6908_v14 = vld [vmem:[#allocation182_spill] sm:$0xff]  ;;  %v6909_v38 = vld [vmem:[#allocation183_spill] sm:$0xff] }
 0x27a   : > { %v2101_v39 = vmul.f32 %v5481_v45, %v6902_v57  ;;  %6903 = vst [vmem:[#allocation47_spill] sm:$0xff] %v5889_v1  ;;  %v2103_v24 = vmul.f32 %v5481_v45, %v6904_v60  ;;  %v2102_v41 = vmul.f32 %v5481_v45, %v6905_v59  ;;  %v2644_v19 = vmul.f32 %v5589_v51, %v2566_v13  ;;  %v6910_v57 = vld [vmem:[#allocation185_spill] sm:$0xff]  ;;  %v6911_v49 = vld [vmem:[#allocation186_spill] sm:$0xff] }
 0x27b   : > { %v2380_v42 = vadd.f32 %v2348_v9, %v2148_v34  ;;  %v2105_v47 = vmul.f32 %v5481_v45, %v6906_v62  ;;  %v2107_v29 = vmul.f32 %v5481_v45, %v6907_v8  ;;  %v2106_v63 = vmul.f32 %v5481_v45, %v6908_v14  ;;  %v6912_v34 = vld [vmem:[#allocation200_spill] sm:$0xff] }
 0x27c   : > { %v2109_v30 = vmul.f32 %v5481_v45, %v6909_v38  ;;  %v2111_v60 = vmul.f32 %v5481_v45, %v6910_v57  ;;  %v2110_v9 = vmul.f32 %v5481_v45, %v6911_v49  ;;  %v2120_v13 = vmul.f32 %v5481_v45, %v6912_v34  ;;  %v6923_v34 = vld [vmem:[#allocation202_spill] sm:$0xff] }
 0x27d   : > { %v5910_v59 = vadd.f32 %v2644_v19, %v2380_v42  ;;  %v1879_v62 = vadd.f32 %v1847_v27, %v5727_v37  ;;  %v1878_v8 = vadd.f32 %v1846_v6, %v5763_v35  ;;  %v2131_v14 = vadd.f32 %v2099_v25, %v5766_v3  ;;  %v5916_v38 = vpop.permute.xlu1 %2577  ;;  %v5918_v16 = vpop.permute.xlu0 %2573  ;;  %v6914_v19 = vld [vmem:[#allocation24_spill] sm:$0xff]  ;;  %v6915_v27 = vld [vmem:[#allocation187_spill] sm:$0xff]  ;;  %v6916_v25 = vld [vmem:[#allocation190_spill] sm:$0xff] }
 0x27e   : > { %v2130_v1 = vadd.f32 %v2098_v61, %v5769_v11  ;;  %v2133_v57 = vadd.f32 %v2101_v39, %v5772_v48  ;;  %v5922_v49 = vadd.f32 %v2103_v24, %v5779_v56  ;;  %v5925_v42 = vadd.f32 %v2102_v41, %v5782_v58  ;;  %v6917_v61 = vld [vmem:[#allocation191_spill] sm:$0xff]  ;;  %v6918_v39 = vld [vmem:[#allocation193_spill] sm:$0xff]  ;;  %v6919_v41 = vld [vmem:[#allocation196_spill] sm:$0xff] }
 0x27f   : > { %6913 = vst [vmem:[#allocation48_spill] sm:$0xff] %v5910_v59  ;;  %v2352_v37 = vmul.f32 %v5518_v4, %v6914_v19  ;;  %v5930_v35 = vadd.f32 %v2105_v47, %v5788_v33  ;;  %v5933_v3 = vadd.f32 %v2107_v29, %v5791_v54  ;;  %v5936_v11 = vadd.f32 %v2106_v63, %v5794_v18  ;;  %v6921_v29 = vld [vmem:[#allocation197_spill] sm:$0xff]  ;;  %v6922_v63 = vld [vmem:[#allocation199_spill] sm:$0xff] }
 0x280   : > { %v2113_v48 = vmul.f32 %v5481_v45, %v6915_v27  ;;  %v5941_v56 = vadd.f32 %v2109_v30, %v5797_v22  ;;  %v5944_v58 = vadd.f32 %v2111_v60, %v5800_v7  ;;  %v5947_v6 = vadd.f32 %v2110_v9, %v5803_v28  ;;  %v6924_v19 = vld [vmem:[#allocation203_spill] sm:$0xff] }
 0x281   : > { %v2152_v33 = vadd.f32 %v2120_v13, %v1872_v31  ;;  %v2115_v54 = vmul.f32 %v5481_v45, %v6916_v25  ;;  %v2114_v18 = vmul.f32 %v5481_v45, %v6917_v61  ;;  %v2117_v24 = vmul.f32 %v5481_v45, %v6918_v39  ;;  %v5957_v47 = vpop.permute.xlu1 %2585  ;;  %v2582_v7 = vpop.permute.xlu0 %2581  ;;  %v6925_v25 = vld [vmem:[#allocation27_spill] sm:$0xff]  ;;  %v6926_v39 = vld [vmem:[#allocation205_spill] sm:$0xff] }
 0x282   : > { %v2119_v22 = vmul.f32 %v5481_v45, %v6919_v41  ;;  %6920 = vst [vmem:[#allocation49_spill] sm:$0xff] %v5957_v47  ;;  %v2118_v28 = vmul.f32 %v5481_v45, %v6921_v29  ;;  %v2121_v31 = vmul.f32 %v5481_v45, %v6922_v63  ;;  %v2648_v60 = vmul.f32 %v5589_v51, %v2582_v7  ;;  %v6927_v29 = vld [vmem:[#allocation28_spill] sm:$0xff] }
 0x283   : > { %v2384_v30 = vadd.f32 %v2352_v37, %v2152_v33  ;;  %v2145_v9 = vadd.f32 %v2113_v48, %v5839_v5  ;;  %v2123_v13 = vmul.f32 %v5481_v45, %v6923_v34  ;;  %v2122_v27 = vmul.f32 %v5481_v45, %v6924_v19  ;;  %v6928_v37 = vld [vmem:[#allocation29_spill] sm:$0xff]  ;;  %v6930_v19 = vld [vmem:[#allocation2_spill] sm:$0xff] }
 0x284   : > { %v2125_v61 = vmul.f32 %v5481_v45, %v6925_v25  ;;  %v2124_v41 = vmul.f32 %v5481_v45, %v6926_v39  ;;  %v2127_v63 = vmul.f32 %v5481_v45, %v6927_v29  ;;  %v2126_v33 = vmul.f32 %v5481_v45, %v6928_v37 }
 0x285   : > { %v5977_v7 = vadd.f32 %v2648_v60, %v2384_v30  ;;  %v2147_v5 = vadd.f32 %v2115_v54, %v5842_v32  ;;  %v2146_v48 = vadd.f32 %v2114_v18, %v5845_v44  ;;  %v2149_v34 = vadd.f32 %v2117_v24, %v5848_v10  ;;  %v5984_v59 = vpop.permute.xlu1 %2593  ;;  %v5986_v39 = vpop.permute.xlu0 %2589  ;;  %v6931_v30 = vld [vmem:[#allocation34_spill] sm:$0xff]  ;;  %v6932_v54 = vld [vmem:[#allocation32_spill] sm:$0xff]  ;;  %v6933_v24 = vld [vmem:[#allocation5_spill] sm:$0xff] }
 0x286   : > { %v2331_v25 = vmul.f32 %v5518_v4, %v6930_v19  ;;  %v2151_v29 = vadd.f32 %v2119_v22, %v5856_v12  ;;  %v2150_v47 = vadd.f32 %v2118_v28, %v5859_v43  ;;  %v2153_v45 = vadd.f32 %v2121_v31, %v5864_v0  ;;  %v6935_v31 = vld [vmem:[#allocation4_spill] sm:$0xff] }
 0x287   : > { %6929 = vst [vmem:[#allocation50_spill] sm:$0xff] %v5977_v7  ;;  %v2356_v32 = vmul.f32 %v5518_v4, %v6931_v30  ;;  %v2155_v44 = vadd.f32 %v2123_v13, %v5868_v20  ;;  %v5995_v10 = vadd.f32 %v2122_v27, %v5871_v2  ;;  %v2330_v18 = vmul.f32 %v5518_v4, %v6932_v54  ;;  %v6934_v20 = vld [vmem:[#allocation7_spill] sm:$0xff]  ;;  %v6936_v27 = vld [vmem:[#allocation8_spill] sm:$0xff]  ;;  %v6943_v7 = vld [vmem:[#allocation18_spill] sm:$0xff] }
 0x288   : > { %v2333_v60 = vmul.f32 %v5518_v4, %v6933_v24  ;;  %v2157_v12 = vadd.f32 %v2125_v61, %v5874_v23  ;;  %v2156_v43 = vadd.f32 %v2124_v41, %v5877_v26  ;;  %v6003_v22 = vadd.f32 %v2127_v63, %v1879_v62  ;;  %v6937_v61 = vld [vmem:[#allocation10_spill] sm:$0xff]  ;;  %v6940_v54 = vld [vmem:[#allocation16_spill] sm:$0xff] }
 0x289   : > { %v6005_v0 = vadd.f32 %v2126_v33, %v1878_v8  ;;  %v6007_v28 = vadd.f32 %v2331_v25, %v2131_v14  ;;  %v2335_v2 = vmul.f32 %v5518_v4, %v6934_v20  ;;  %v2334_v13 = vmul.f32 %v5518_v4, %v6935_v31  ;;  %v6015_v19 = vpop.permute.xlu1 %2601  ;;  %v2598_v23 = vpop.permute.xlu0 %2597  ;;  %v6938_v62 = vld [vmem:[#allocation14_spill] sm:$0xff]  ;;  %v6939_v25 = vld [vmem:[#allocation11_spill] sm:$0xff] }
 0x28a   : > { %v2337_v37 = vmul.f32 %v5518_v4, %v6936_v27  ;;  %v2339_v26 = vmul.f32 %v5518_v4, %v6937_v61  ;;  %v2338_v8 = vmul.f32 %v5518_v4, %v6938_v62  ;;  %v2388_v14 = vadd.f32 %v2356_v32, %v2156_v43  ;;  %v6941_v20 = vld [vmem:[#allocation15_spill] sm:$0xff]  ;;  %v6942_v27 = vld [vmem:[#allocation17_spill] sm:$0xff]  ;;  %v6945_v43 = vld [vmem:[#allocation20_spill] sm:$0xff] }
 0x28b   : > { %v2652_v41 = vmul.f32 %v5589_v51, %v2598_v23  ;;  %v2362_v63 = vadd.f32 %v2330_v18, %v2130_v1  ;;  %v2365_v33 = vadd.f32 %v2333_v60, %v2133_v57  ;;  %v2341_v30 = vmul.f32 %v5518_v4, %v6939_v25  ;;  %v6944_v18 = vld [vmem:[#allocation19_spill] sm:$0xff] }
 0x28c   : > { %v2343_v24 = vmul.f32 %v5518_v4, %v6940_v54  ;;  %v2342_v31 = vmul.f32 %v5518_v4, %v6941_v20  ;;  %v2345_v61 = vmul.f32 %v5518_v4, %v6942_v27  ;;  %v2347_v62 = vmul.f32 %v5518_v4, %v6943_v7 }
 0x28d   : > { %v6032_v32 = vadd.f32 %v2652_v41, %v2388_v14  ;;  %v2367_v1 = vadd.f32 %v2335_v2, %v5922_v49  ;;  %v2366_v57 = vadd.f32 %v2334_v13, %v5925_v42  ;;  %v2346_v60 = vmul.f32 %v5518_v4, %v6944_v18  ;;  %v6040_v25 = vpop.permute.xlu1 %2609  ;;  %v6042_v54 = vpop.permute.xlu0 %2605  ;;  %v6946_v49 = vld [vmem:[#allocation21_spill] sm:$0xff]  ;;  %v6947_v41 = vld [vmem:[#allocation22_spill] sm:$0xff]  ;;  %v6948_v18 = vld [vmem:[#allocation23_spill] sm:$0xff] }
 0x28e   : > { %v2349_v23 = vmul.f32 %v5518_v4, %v6945_v43  ;;  %v2369_v20 = vadd.f32 %v2337_v37, %v5930_v35  ;;  %v2371_v7 = vadd.f32 %v2339_v26, %v5933_v3  ;;  %v2370_v14 = vadd.f32 %v2338_v8, %v5936_v11  ;;  %v6949_v37 = vld [vmem:[#allocation25_spill] sm:$0xff] }
 0x28f   : > { %v2351_v42 = vmul.f32 %v5518_v4, %v6946_v49  ;;  %v6050_v2 = vadd.f32 %v2341_v30, %v5941_v56  ;;  %v6053_v13 = vadd.f32 %v2343_v24, %v5944_v58  ;;  %v2350_v27 = vmul.f32 %v5518_v4, %v6947_v41  ;;  %v6950_v8 = vld [vmem:[#allocation33_spill] sm:$0xff]  ;;  %v6951_v24 = vld [vmem:[#allocation26_spill] sm:$0xff]  ;;  %v6953_v41 = vld [vmem:[#allocation36_spill] sm:$0xff] }
 0x290   : > { %v2353_v43 = vmul.f32 %v5518_v4, %v6948_v18  ;;  %v6060_v35 = vadd.f32 %v2342_v31, %v5947_v6  ;;  %v6062_v3 = vadd.f32 %v2345_v61, %v2145_v9  ;;  %v6064_v11 = vadd.f32 %v2347_v62, %v2147_v5 }
 0x291   : > { %v2355_v56 = vmul.f32 %v5518_v4, %v6949_v37  ;;  %v6069_v58 = vadd.f32 %v2346_v60, %v2146_v48  ;;  %v6071_v26 = vadd.f32 %v2349_v23, %v2149_v34  ;;  %v2354_v30 = vmul.f32 %v5518_v4, %v6950_v8  ;;  %v6077_v31 = vpop.permute.xlu1 %2617  ;;  %v2614_v9 = vpop.permute.xlu0 %2613  ;;  %v6952_v23 = vld [vmem:[#allocation35_spill] sm:$0xff]  ;;  %v6957_v37 = vld [vmem:[#allocation41_spill] sm:$0xff] }
 0x292   : > { %v2357_v6 = vmul.f32 %v5518_v4, %v6951_v24  ;;  %v6079_v5 = vadd.f32 %v2351_v42, %v2151_v29  ;;  %v2627_v61 = vmul.f32 %v5589_v51, %v5548_v17  ;;  %v2626_v48 = vmul.f32 %v5589_v51, %v5550_v15  ;;  %v6103_v17 = vld [vmem:[%s6389_s3 + $0x8] ss:$0 sm:$0xff] }
 0x293   : > { %v2656_v34 = vmul.f32 %v5589_v51, %v2614_v9  ;;  %v6086_v62 = vadd.f32 %v2350_v27, %v2150_v47  ;;  %v6088_v60 = vadd.f32 %v2353_v43, %v2153_v45  ;;  %v2359_v49 = vmul.f32 %v5518_v4, %v6952_v23  ;;  %v6955_v45 = vld [vmem:[#allocation38_spill] sm:$0xff]  ;;  %v6956_v43 = vld [vmem:[#allocation40_spill] sm:$0xff] }
 0x294   : > { %v2358_v18 = vmul.f32 %v5518_v4, %v6953_v41  ;;  %v6105_v15 = vadd.f32 %v2355_v56, %v2155_v44  ;;  %v2629_v47 = vmul.f32 %v5589_v51, %v5591_v50  ;;  %v2631_v29 = vmul.f32 %v5589_v51, %v5626_v36 }
 0x295   : > { %v6112_v4 = vadd.f32 %v2656_v34, %v6955_v45  ;;  %v6115_v42 = vadd.f32 %v2354_v30, %v5995_v10  ;;  %v6117_v27 = vadd.f32 %v2357_v6, %v2157_v12  ;;  %v2630_v44 = vmul.f32 %v5589_v51, %v6956_v43  ;;  %v2778_v50 = vpop.permute.xlu1 %2777  ;;  %v2774_v8 = vpop.permute.xlu0 %2773  ;;  %v6167_v45 = vld [vmem:[%s6392_s6] ss:$0 sm:$0xff] }
 0x296   : > { %v2633_v56 = vmul.f32 %v5589_v51, %v6957_v37  ;;  %v2659_v36 = vadd.f32 %v2627_v61, %v6007_v28  ;;  %v2658_v24 = vadd.f32 %v2626_v48, %v2362_v63  ;;  %v2907_v9 = vmul.f32 %v6103_v17, %v2778_v50 }
 0x297   : > { %v2906_v34 = vmul.f32 %v6103_v17, %v2774_v8  ;;  %v6127_v10 = vadd.f32 %v2359_v49, %v6003_v22  ;;  %v6130_v12 = vadd.f32 %v2358_v18, %v6005_v0  ;;  %v2635_v30 = vmul.f32 %v5589_v51, %v5699_v53 }
 0x298   : > { %v2634_v6 = vmul.f32 %v5589_v51, %v5701_v21  ;;  %v2661_v28 = vadd.f32 %v2629_v47, %v2365_v33  ;;  %v2663_v63 = vadd.f32 %v2631_v29, %v2367_v1  ;;  %v2939_v61 = vadd.f32 %v2907_v9, %v2659_v36  ;;  %v6151_v21 = vld [vmem:[%s6391_s5] ss:$0 sm:$0xff]  ;;  %v6958_v47 = vld [vmem:[#allocation44_spill] sm:$0xff] }
 0x299   : > { %v2938_v48 = vadd.f32 %v2906_v34, %v2658_v24  ;;  %v2662_v22 = vadd.f32 %v2630_v44, %v2366_v57  ;;  %v6142_v23 = vadd.f32 %v2633_v56, %v2369_v20  ;;  %v2637_v0 = vmul.f32 %v5589_v51, %v5739_v40  ;;  %v2786_v49 = vpop.permute.xlu1 %2785  ;;  %v2782_v33 = vpop.permute.xlu0 %2781  ;;  %v6959_v56 = vld [vmem:[#allocation39_spill] sm:$0xff] }
 0x29a   : > { %v2639_v53 = vmul.f32 %v5589_v51, %v5774_v55  ;;  %vm2971_vm2 = vcmp.gt.f32.partialorder %v2939_v61, 0.0  ;;  %v3003_v1 = vmul.f32 0.01, %v2939_v61  ;;  %v6153_v57 = vadd.f32 %v2635_v30, %v2371_v7 }
 0x29b   : > { %vm2970_vm3 = vcmp.gt.f32.partialorder %v2938_v48, 0.0  ;;  %v3002_v41 = vmul.f32 0.01, %v2938_v48  ;;  %v6155_v20 = vadd.f32 %v2634_v6, %v2370_v14  ;;  %v2909_v40 = vmul.f32 %v6103_v17, %v2786_v49 }
 0x29c   : > { %v2908_v55 = vmul.f32 %v6103_v17, %v2782_v33  ;;  %v2638_v18 = vmul.f32 %v5589_v51, %v5776_v52  ;;  %v2641_v29 = vmul.f32 %v5589_v51, %v6958_v47  ;;  %v3035_v7 = vsel %vm2971_vm2, %v2939_v61, %v3003_v1 }
 0x29d   : > { %v3034_v43 = vsel %vm2970_vm3, %v2938_v48, %v3002_v41  ;;  %v3074_v14 = vmul.f32 %v6151_v21, %v3035_v7  ;;  %v2941_v37 = vadd.f32 %v2909_v40, %v2661_v28  ;;  %v2794_v8 = vpop.permute.xlu1 %2793  ;;  %v2790_v36 = vpop.permute.xlu0 %2789  ;;  %v6173_v52 = vadd.f32 %v2637_v0, %v6050_v2 }
 0x29e   : > { %v3073_v44 = vmul.f32 %v6151_v21, %v3034_v43  ;;  %v2940_v50 = vadd.f32 %v2908_v55, %v6959_v56  ;;  %v6176_v24 = vadd.f32 %v2639_v53, %v6053_v13  ;;  %v2911_v9 = vmul.f32 %v6103_v17, %v2794_v8  ;;  %v6960_v55 = vld [vmem:[#allocation46_spill] sm:$0xff] }
 0x29f   : > { %v2910_v34 = vmul.f32 %v6103_v17, %v2790_v36  ;;  %v3113_v30 = vadd.f32 %v6167_v45, %v3074_v14  ;;  %vm2973_vm4 = vcmp.gt.f32.partialorder %v2941_v37, 0.0  ;;  %v3005_v2 = vmul.f32 0.01, %v2941_v37  ;;  %v6961_v8 = vld [vmem:[#allocation42_spill] sm:$0xff] }
 0x2a0   : > { %v3112_v6 = vadd.f32 %v6167_v45, %v3073_v44  ;;  %vm2972_vm5 = vcmp.gt.f32.partialorder %v2940_v50, 0.0  ;;  %v3004_v13 = vmul.f32 0.01, %v2940_v50  ;;  %v2943_v28 = vadd.f32 %v2911_v9, %v2663_v63 }
 0x2a1   : > { %v2942_v61 = vadd.f32 %v2910_v34, %v2662_v22  ;;  %v6188_v48 = vadd.f32 %v2638_v18, %v6060_v35  ;;  %v6191_v0 = vadd.f32 %v2641_v29, %v6062_v3  ;;  %v2643_v53 = vmul.f32 %v5589_v51, %v5850_v46  ;;  %3145 = vst [vmem:[%s6181_s29 + $0x8] sm:$0xff] %v3113_v30  ;;  %v2802_v33 = vpop.permute.xlu1 %2801  ;;  %v2798_v1 = vpop.permute.xlu0 %2797 }
 0x2a2   : > { %3144 = vst [vmem:[%s6181_s29] sm:$0xff] %v3112_v6  ;;  %v3037_v49 = vsel %vm2973_vm4, %v2941_v37, %v3005_v2  ;;  %v3036_v40 = vsel %vm2972_vm5, %v2940_v50, %v3004_v13  ;;  %vm2975_vm6 = vcmp.gt.f32.partialorder %v2943_v28, 0.0  ;;  %v3007_v63 = vmul.f32 0.01, %v2943_v28 }
 0x2a3   : > { %v3076_v41 = vmul.f32 %v6151_v21, %v3037_v49  ;;  %v3075_v35 = vmul.f32 %v6151_v21, %v3036_v40  ;;  %vm2974_vm7 = vcmp.gt.f32.partialorder %v2942_v61, 0.0  ;;  %v3006_v22 = vmul.f32 0.01, %v2942_v61  ;;  %v6962_v49 = vld [vmem:[#allocation47_spill] sm:$0xff] }
 0x2a4   : > { %v2913_v3 = vmul.f32 %v6103_v17, %v2802_v33  ;;  %v2642_v46 = vmul.f32 %v5589_v51, %v6960_v55  ;;  %v3039_v47 = vsel %vm2975_vm6, %v2943_v28, %v3007_v63  ;;  %v2912_v29 = vmul.f32 %v6103_v17, %v2798_v1 }
 0x2a5   : > { %v3115_v18 = vadd.f32 %v6167_v45, %v3076_v41  ;;  %v3114_v7 = vadd.f32 %v6167_v45, %v3075_v35  ;;  %v3078_v43 = vmul.f32 %v6151_v21, %v3039_v47  ;;  %v3038_v14 = vsel %vm2974_vm7, %v2942_v61, %v3006_v22  ;;  %v2810_v37 = vpop.permute.xlu1 %2809  ;;  %v2806_v56 = vpop.permute.xlu0 %2805 }
 0x2a6   : > { %v2945_v44 = vadd.f32 %v2913_v3, %v6142_v23  ;;  %v3077_v50 = vmul.f32 %v6151_v21, %v3038_v14  ;;  %v2944_v36 = vadd.f32 %v2912_v29, %v6961_v8  ;;  %v2915_v9 = vmul.f32 %v6103_v17, %v2810_v37 }
 0x2a7   : > { %3147 = vst [vmem:[%s6181_s29 + $0x18] sm:$0xff] %v3115_v18  ;;  %v2914_v34 = vmul.f32 %v6103_v17, %v2806_v56  ;;  %v6213_v30 = vadd.f32 %v2643_v53, %v6064_v11  ;;  %3146 = vst [vmem:[%s6181_s29 + $0x10] sm:$0xff] %v3114_v7  ;;  %v3117_v6 = vadd.f32 %v6167_v45, %v3078_v43 }
 0x2a8   : > { %vm2977_vm8 = vcmp.gt.f32.partialorder %v2945_v44, 0.0  ;;  %v3009_v23 = vmul.f32 0.01, %v2945_v44  ;;  %v3116_v2 = vadd.f32 %v6167_v45, %v3077_v50  ;;  %vm2976_vm9 = vcmp.gt.f32.partialorder %v2944_v36, 0.0 }
 0x2a9   : > { %v3008_v13 = vmul.f32 0.01, %v2944_v36  ;;  %v2947_v28 = vadd.f32 %v2915_v9, %v6153_v57  ;;  %v6220_v61 = vadd.f32 %v2642_v46, %v6069_v58  ;;  %v2645_v33 = vmul.f32 %v5589_v51, %v6962_v49  ;;  %3149 = vst [vmem:[%s6181_s29 + $0x28] sm:$0xff] %v3117_v6  ;;  %v2818_v1 = vpop.permute.xlu1 %2817  ;;  %v2814_v41 = vpop.permute.xlu0 %2813 }
 0x2aa   : > { %v3041_v11 = vsel %vm2977_vm8, %v2945_v44, %v3009_v23  ;;  %v2946_v53 = vadd.f32 %v2914_v34, %v6155_v20  ;;  %3148 = vst [vmem:[%s6181_s29 + $0x20] sm:$0xff] %v3116_v2  ;;  %v2917_v22 = vmul.f32 %v6103_v17, %v2818_v1  ;;  %v2647_v3 = vmul.f32 %v5589_v51, %v5916_v38  ;;  %v6963_v38 = vld [vmem:[#allocation43_spill] sm:$0xff] }
 0x2ab   : > { %v3080_v40 = vmul.f32 %v6151_v21, %v3041_v11  ;;  %v3040_v63 = vsel %vm2976_vm9, %v2944_v36, %v3008_v13  ;;  %vm2979_vm10 = vcmp.gt.f32.partialorder %v2947_v28, 0.0  ;;  %v3011_v35 = vmul.f32 0.01, %v2947_v28 }
 0x2ac   : > { %v3079_v57 = vmul.f32 %v6151_v21, %v3040_v63  ;;  %vm2978_vm11 = vcmp.gt.f32.partialorder %v2946_v53, 0.0  ;;  %v3010_v58 = vmul.f32 0.01, %v2946_v53  ;;  %v2916_v46 = vmul.f32 %v6103_v17, %v2814_v41 }
 0x2ad   : > { %v3119_v20 = vadd.f32 %v6167_v45, %v3080_v40  ;;  %v3043_v55 = vsel %vm2979_vm10, %v2947_v28, %v3011_v35  ;;  %v2949_v7 = vadd.f32 %v2917_v22, %v6173_v52  ;;  %v2826_v43 = vpop.permute.xlu1 %2825  ;;  %v2822_v14 = vpop.permute.xlu0 %2821  ;;  %v6243_v8 = vadd.f32 %v2645_v33, %v6071_v26 }
 0x2ae   : > { %v3118_v18 = vadd.f32 %v6167_v45, %v3079_v57  ;;  %v3082_v47 = vmul.f32 %v6151_v21, %v3043_v55  ;;  %v3042_v29 = vsel %vm2978_vm11, %v2946_v53, %v3010_v58  ;;  %v2948_v37 = vadd.f32 %v2916_v46, %v6963_v38  ;;  %v6965_v46 = vld [vmem:[#allocation45_spill] sm:$0xff] }
 0x2af   : > { %3151 = vst [vmem:[%s6181_s29 + $0x38] sm:$0xff] %v3119_v20  ;;  %v3081_v44 = vmul.f32 %v6151_v21, %v3042_v29  ;;  %v2919_v56 = vmul.f32 %v6103_v17, %v2826_v43  ;;  %v2918_v50 = vmul.f32 %v6103_v17, %v2822_v14  ;;  %vm2981_vm12 = vcmp.gt.f32.partialorder %v2949_v7, 0.0 }
 0x2b0   : > { %3150 = vst [vmem:[%s6181_s29 + $0x30] sm:$0xff] %v3118_v18  ;;  %v3121_v36 = vadd.f32 %v6167_v45, %v3082_v47  ;;  %v3013_v52 = vmul.f32 0.01, %v2949_v7  ;;  %vm2980_vm13 = vcmp.gt.f32.partialorder %v2948_v37, 0.0  ;;  %v3012_v34 = vmul.f32 0.01, %v2948_v37 }
 0x2b1   : > { %v3120_v9 = vadd.f32 %v6167_v45, %v3081_v44  ;;  %v2951_v6 = vadd.f32 %v2919_v56, %v6176_v24  ;;  %v6250_v23 = vadd.f32 %v2647_v3, %v6079_v5  ;;  %v2646_v2 = vmul.f32 %v5589_v51, %v5918_v16  ;;  %v2834_v28 = vpop.permute.xlu1 %2833  ;;  %v2830_v49 = vpop.permute.xlu0 %2829  ;;  %v6964_v16 = vld [vmem:[#allocation49_spill] sm:$0xff] }
 0x2b2   : > { %3153 = vst [vmem:[%s6181_s29 + $0x48] sm:$0xff] %v3121_v36  ;;  %v3045_v26 = vsel %vm2981_vm12, %v2949_v7, %v3013_v52  ;;  %v2950_v13 = vadd.f32 %v2918_v50, %v6188_v48  ;;  %v3044_v11 = vsel %vm2980_vm13, %v2948_v37, %v3012_v34  ;;  %v2921_v1 = vmul.f32 %v6103_v17, %v2834_v28 }
 0x2b3   : > { %3152 = vst [vmem:[%s6181_s29 + $0x40] sm:$0xff] %v3120_v9  ;;  %v3084_v33 = vmul.f32 %v6151_v21, %v3045_v26  ;;  %vm2983_vm14 = vcmp.gt.f32.partialorder %v2951_v6, 0.0  ;;  %v3015_v53 = vmul.f32 0.01, %v2951_v6  ;;  %v3083_v24 = vmul.f32 %v6151_v21, %v3044_v11 }
 0x2b4   : > { %vm2982_vm15 = vcmp.gt.f32.partialorder %v2950_v13, 0.0  ;;  %v3014_v5 = vmul.f32 0.01, %v2950_v13  ;;  %v2649_v41 = vmul.f32 %v5589_v51, %v6964_v16  ;;  %v2920_v63 = vmul.f32 %v6103_v17, %v2830_v49 }
 0x2b5   : > { %v3123_v48 = vadd.f32 %v6167_v45, %v3084_v33  ;;  %v3047_v40 = vsel %vm2983_vm14, %v2951_v6, %v3015_v53  ;;  %v3122_v35 = vadd.f32 %v6167_v45, %v3083_v24  ;;  %v2953_v22 = vadd.f32 %v2921_v1, %v6191_v0  ;;  %v2842_v3 = vpop.permute.xlu1 %2841  ;;  %v2838_v20 = vpop.permute.xlu0 %2837 }
 0x2b6   : > { %v3086_v57 = vmul.f32 %v6151_v21, %v3047_v40  ;;  %v3046_v58 = vsel %vm2982_vm15, %v2950_v13, %v3014_v5  ;;  %v2952_v18 = vadd.f32 %v2920_v63, %v6965_v46  ;;  %v2923_v47 = vmul.f32 %v6103_v17, %v2842_v3 }
 0x2b7   : > { %3155 = vst [vmem:[%s6181_s29 + $0x58] sm:$0xff] %v3123_v48  ;;  %v3085_v55 = vmul.f32 %v6151_v21, %v3046_v58  ;;  %v2922_v29 = vmul.f32 %v6103_v17, %v2838_v20  ;;  %v2678_v7 = vadd.f32 %v2646_v2, %v6086_v62  ;;  %3154 = vst [vmem:[%s6181_s29 + $0x50] sm:$0xff] %v3122_v35  ;;  %vm2985_vm0 = vcmp.gt.f32.partialorder %v2953_v22, 0.0 }
 0x2b8   : > { %v3125_v43 = vadd.f32 %v6167_v45, %v3086_v57  ;;  %v3017_v0 = vmul.f32 0.01, %v2953_v22  ;;  %vm2984_vm1 = vcmp.gt.f32.partialorder %v2952_v18, 0.0  ;;  %v3016_v44 = vmul.f32 0.01, %v2952_v18 }
 0x2b9   : > { %v3124_v14 = vadd.f32 %v6167_v45, %v3085_v55  ;;  %v2955_v38 = vadd.f32 %v2923_v47, %v6213_v30  ;;  %v6278_v37 = vadd.f32 %v2649_v41, %v6088_v60  ;;  %v2651_v56 = vmul.f32 %v5589_v51, %v5984_v59  ;;  %v2850_v36 = vpop.permute.xlu1 %2849  ;;  %v2846_v52 = vpop.permute.xlu0 %2845 }
 0x2ba   : > { %3157 = vst [vmem:[%s6181_s29 + $0x68] sm:$0xff] %v3125_v43  ;;  %v3049_v62 = vsel %vm2985_vm0, %v2953_v22, %v3017_v0  ;;  %v2954_v50 = vadd.f32 %v2922_v29, %v6220_v61  ;;  %v3048_v34 = vsel %vm2984_vm1, %v2952_v18, %v3016_v44  ;;  %v2925_v2 = vmul.f32 %v6103_v17, %v2850_v36 }
 0x2bb   : > { %3156 = vst [vmem:[%s6181_s29 + $0x60] sm:$0xff] %v3124_v14  ;;  %v3088_v9 = vmul.f32 %v6151_v21, %v3049_v62  ;;  %vm2987_vm2 = vcmp.gt.f32.partialorder %v2955_v38, 0.0  ;;  %v3019_v6 = vmul.f32 0.01, %v2955_v38  ;;  %v3087_v30 = vmul.f32 %v6151_v21, %v3048_v34 }
 0x2bc   : > { %vm2986_vm3 = vcmp.gt.f32.partialorder %v2954_v50, 0.0  ;;  %v3018_v60 = vmul.f32 0.01, %v2954_v50  ;;  %v2650_v59 = vmul.f32 %v5589_v51, %v5986_v39  ;;  %v2924_v13 = vmul.f32 %v6103_v17, %v2846_v52  ;;  %v6966_v39 = vld [vmem:[#allocation48_spill] sm:$0xff]  ;;  %v6967_v52 = vld [vmem:[#allocation50_spill] sm:$0xff] }
 0x2bd   : > { %v3127_v61 = vadd.f32 %v6167_v45, %v3088_v9  ;;  %v3051_v26 = vsel %vm2987_vm2, %v2955_v38, %v3019_v6  ;;  %v3126_v28 = vadd.f32 %v6167_v45, %v3087_v30  ;;  %v2957_v11 = vadd.f32 %v2925_v2, %v6243_v8  ;;  %v2858_v53 = vpop.permute.xlu1 %2857  ;;  %v2854_v24 = vpop.permute.xlu0 %2853 }
 0x2be   : > { %v3090_v49 = vmul.f32 %v6151_v21, %v3051_v26  ;;  %v3050_v33 = vsel %vm2986_vm3, %v2954_v50, %v3018_v60  ;;  %v2956_v1 = vadd.f32 %v2924_v13, %v6966_v39  ;;  %v2927_v16 = vmul.f32 %v6103_v17, %v2858_v53 }
 0x2bf   : > { %3159 = vst [vmem:[%s6181_s29 + $0x78] sm:$0xff] %v3127_v61  ;;  %v3089_v5 = vmul.f32 %v6151_v21, %v3050_v33  ;;  %v2926_v41 = vmul.f32 %v6103_v17, %v2854_v24  ;;  %v2683_v48 = vadd.f32 %v2651_v56, %v6105_v15  ;;  %3158 = vst [vmem:[%s6181_s29 + $0x70] sm:$0xff] %v3126_v28  ;;  %vm2989_vm4 = vcmp.gt.f32.partialorder %v2957_v11, 0.0  ;;  %v3355_v61 = vld [vmem:[%s6389_s3 + $0x7] ss:$0 sm:$0xff] }
 0x2c0   : > { %v3129_v40 = vadd.f32 %v6167_v45, %v3090_v49  ;;  %v3021_v8 = vmul.f32 0.01, %v2957_v11  ;;  %vm2988_vm5 = vcmp.gt.f32.partialorder %v2956_v1, 0.0  ;;  %v3020_v35 = vmul.f32 0.01, %v2956_v1 }
 0x2c1   : > { %v3128_v63 = vadd.f32 %v6167_v45, %v3089_v5  ;;  %v2959_v57 = vadd.f32 %v2927_v16, %v6250_v23  ;;  %v2682_v58 = vadd.f32 %v2650_v59, %v6115_v42  ;;  %v2653_v22 = vmul.f32 %v5589_v51, %v6015_v19  ;;  %v2866_v20 = vpop.permute.xlu1 %2865  ;;  %v2862_v55 = vpop.permute.xlu0 %2861 }
 0x2c2   : > { %3161 = vst [vmem:[%s6181_s29 + $0x88] sm:$0xff] %v3129_v40  ;;  %v3053_v3 = vsel %vm2989_vm4, %v2957_v11, %v3021_v8  ;;  %v2958_v15 = vadd.f32 %v2926_v41, %v2678_v7  ;;  %v3052_v18 = vsel %vm2988_vm5, %v2956_v1, %v3020_v35  ;;  %v2929_v42 = vmul.f32 %v6103_v17, %v2866_v20 }
 0x2c3   : > { %3160 = vst [vmem:[%s6181_s29 + $0x80] sm:$0xff] %v3128_v63  ;;  %v3092_v46 = vmul.f32 %v6151_v21, %v3053_v3  ;;  %vm2991_vm6 = vcmp.gt.f32.partialorder %v2959_v57, 0.0  ;;  %v3023_v47 = vmul.f32 0.01, %v2959_v57  ;;  %v3091_v29 = vmul.f32 %v6151_v21, %v3052_v18 }
 0x2c4   : > { %vm2990_vm7 = vcmp.gt.f32.partialorder %v2958_v15, 0.0  ;;  %v3022_v23 = vmul.f32 0.01, %v2958_v15  ;;  %v2655_v19 = vmul.f32 %v5589_v51, %v6040_v25  ;;  %v2928_v0 = vmul.f32 %v6103_v17, %v2862_v55 }
 0x2c5   : > { %v3131_v7 = vadd.f32 %v6167_v45, %v3092_v46  ;;  %v3055_v43 = vsel %vm2991_vm6, %v2959_v57, %v3023_v47  ;;  %v3130_v14 = vadd.f32 %v6167_v45, %v3091_v29  ;;  %v2961_v56 = vadd.f32 %v2929_v42, %v6278_v37  ;;  %v2874_v62 = vpop.permute.xlu1 %2873  ;;  %v2870_v50 = vpop.permute.xlu0 %2869  ;;  %v6968_v47 = vld [vmem:[#allocation37_spill] sm:$0xff] }
 0x2c6   : > { %v3094_v44 = vmul.f32 %v6151_v21, %v3055_v43  ;;  %v3054_v38 = vsel %vm2990_vm7, %v2958_v15, %v3022_v23  ;;  %v2960_v51 = vadd.f32 %v2928_v0, %v6967_v52  ;;  %v2931_v25 = vmul.f32 %v6103_v17, %v2874_v62 }
 0x2c7   : > { %3163 = vst [vmem:[%s6181_s29 + $0x98] sm:$0xff] %v3131_v7  ;;  %v3093_v36 = vmul.f32 %v6151_v21, %v3054_v38  ;;  %v2930_v9 = vmul.f32 %v6103_v17, %v2870_v50  ;;  %v2685_v34 = vadd.f32 %v2653_v22, %v6117_v27  ;;  %3162 = vst [vmem:[%s6181_s29 + $0x90] sm:$0xff] %v3130_v14  ;;  %vm2993_vm8 = vcmp.gt.f32.partialorder %v2961_v56, 0.0 }
 0x2c8   : > { %v3133_v6 = vadd.f32 %v6167_v45, %v3094_v44  ;;  %v3025_v37 = vmul.f32 0.01, %v2961_v56  ;;  %vm2992_vm9 = vcmp.gt.f32.partialorder %v2960_v51, 0.0  ;;  %v3024_v60 = vmul.f32 0.01, %v2960_v51 }
 0x2c9   : > { %v3132_v30 = vadd.f32 %v6167_v45, %v3093_v36  ;;  %v2963_v2 = vadd.f32 %v2931_v25, %v2683_v48  ;;  %v2687_v59 = vadd.f32 %v2655_v19, %v6127_v10  ;;  %v2654_v26 = vmul.f32 %v3355_v61, %v6042_v54  ;;  %v2882_v28 = vpop.permute.xlu1 %2881  ;;  %v2878_v49 = vpop.permute.xlu0 %2877 }
 0x2ca   : > { %3165 = vst [vmem:[%s6181_s29 + $0xa8] sm:$0xff] %v3133_v6  ;;  %v3057_v27 = vsel %vm2993_vm8, %v2961_v56, %v3025_v37  ;;  %v2962_v13 = vadd.f32 %v2930_v9, %v2682_v58  ;;  %v3056_v11 = vsel %vm2992_vm9, %v2960_v51, %v3024_v60  ;;  %v2933_v5 = vmul.f32 %v6103_v17, %v2882_v28 }
 0x2cb   : > { %3164 = vst [vmem:[%s6181_s29 + $0xa0] sm:$0xff] %v3132_v30  ;;  %v3096_v33 = vmul.f32 %v6151_v21, %v3057_v27  ;;  %vm2995_vm10 = vcmp.gt.f32.partialorder %v2963_v2, 0.0  ;;  %v3027_v53 = vmul.f32 0.01, %v2963_v2  ;;  %v3095_v10 = vmul.f32 %v6151_v21, %v3056_v11 }
 0x2cc   : > { %vm2994_vm11 = vcmp.gt.f32.partialorder %v2962_v13, 0.0  ;;  %v3026_v24 = vmul.f32 0.01, %v2962_v13  ;;  %v2657_v54 = vmul.f32 %v3355_v61, %v6077_v31  ;;  %v2932_v16 = vmul.f32 %v6103_v17, %v2878_v49 }
 0x2cd   : > { %v3135_v39 = vadd.f32 %v6167_v45, %v3096_v33  ;;  %v3059_v1 = vsel %vm2995_vm10, %v2963_v2, %v3027_v53  ;;  %v3134_v41 = vadd.f32 %v6167_v45, %v3095_v10  ;;  %v2965_v8 = vadd.f32 %v2933_v5, %v2685_v34  ;;  %v2890_v63 = vpop.permute.xlu1 %2889  ;;  %v2886_v35 = vpop.permute.xlu0 %2885 }
 0x2ce   : > { %v3098_v48 = vmul.f32 %v6151_v21, %v3059_v1  ;;  %v3058_v40 = vsel %vm2994_vm11, %v2962_v13, %v3026_v24  ;;  %v2964_v31 = vadd.f32 %v2932_v16, %v6032_v32  ;;  %v2935_v58 = vmul.f32 %v6103_v17, %v2890_v63 }
 0x2cf   : > { %3167 = vst [vmem:[%s6181_s29 + $0xb8] sm:$0xff] %v3135_v39  ;;  %v3097_v57 = vmul.f32 %v6151_v21, %v3058_v40  ;;  %v2934_v22 = vmul.f32 %v6103_v17, %v2886_v35  ;;  %v2686_v3 = vadd.f32 %v2654_v26, %v6130_v12  ;;  %3166 = vst [vmem:[%s6181_s29 + $0xb0] sm:$0xff] %v3134_v41  ;;  %vm2997_vm12 = vcmp.gt.f32.partialorder %v2965_v8, 0.0 }
 0x2d0   : > { %v3137_v15 = vadd.f32 %v6167_v45, %v3098_v48  ;;  %v3029_v20 = vmul.f32 0.01, %v2965_v8  ;;  %vm2996_vm13 = vcmp.gt.f32.partialorder %v2964_v31, 0.0  ;;  %v3028_v46 = vmul.f32 0.01, %v2964_v31 }
 0x2d1   : > { %v3136_v55 = vadd.f32 %v6167_v45, %v3097_v57  ;;  %v2967_v18 = vadd.f32 %v2935_v58, %v2687_v59  ;;  %v2689_v29 = vadd.f32 %v2657_v54, %v6968_v47  ;;  %v2966_v23 = vadd.f32 %v2934_v22, %v2686_v3  ;;  %v2898_v42 = vpop.permute.xlu1 %2897  ;;  %v2894_v19 = vpop.permute.xlu0 %2893 }
 0x2d2   : > { %3169 = vst [vmem:[%s6181_s29 + $0xc8] sm:$0xff] %v3137_v15  ;;  %v3061_v32 = vsel %vm2997_vm12, %v2965_v8, %v3029_v20  ;;  %v3060_v7 = vsel %vm2996_vm13, %v2964_v31, %v3028_v46  ;;  %v2937_v44 = vmul.f32 %v6103_v17, %v2898_v42  ;;  %v2936_v62 = vmul.f32 %v6103_v17, %v2894_v19 }
 0x2d3   : > { %3168 = vst [vmem:[%s6181_s29 + $0xc0] sm:$0xff] %v3136_v55  ;;  %v3100_v12 = vmul.f32 %v6151_v21, %v3061_v32  ;;  %vm2999_vm14 = vcmp.gt.f32.partialorder %v2967_v18, 0.0  ;;  %v3031_v43 = vmul.f32 0.01, %v2967_v18  ;;  %v3099_v0 = vmul.f32 %v6151_v21, %v3060_v7 }
 0x2d4   : > { %vm2998_vm15 = vcmp.gt.f32.partialorder %v2966_v23, 0.0  ;;  %v3030_v14 = vmul.f32 0.01, %v2966_v23  ;;  %v2969_v51 = vadd.f32 %v2937_v44, %v2689_v29  ;;  %v2968_v9 = vadd.f32 %v2936_v62, %v6112_v4 }
 0x2d5   : > { %v3139_v38 = vadd.f32 %v6167_v45, %v3100_v12  ;;  %v3063_v56 = vsel %vm2999_vm14, %v2967_v18, %v3031_v43  ;;  %v3138_v50 = vadd.f32 %v6167_v45, %v3099_v0 }
 0x2d6   : > { %v3102_v36 = vmul.f32 %v6151_v21, %v3063_v56  ;;  %v3062_v52 = vsel %vm2998_vm15, %v2966_v23, %v3030_v14  ;;  %vm3001_vm0 = vcmp.gt.f32.partialorder %v2969_v51, 0.0  ;;  %v3033_v6 = vmul.f32 0.01, %v2969_v51 }
 0x2d7   : > { %3171 = vst [vmem:[%s6181_s29 + $0xd8] sm:$0xff] %v3139_v38  ;;  %v3101_v25 = vmul.f32 %v6151_v21, %v3062_v52  ;;  %3170 = vst [vmem:[%s6181_s29 + $0xd0] sm:$0xff] %v3138_v50  ;;  %vm3000_vm1 = vcmp.gt.f32.partialorder %v2968_v9, 0.0  ;;  %v3032_v37 = vmul.f32 0.01, %v2968_v9 }
 0x2d8   : > { %v3141_v34 = vadd.f32 %v6167_v45, %v3102_v36  ;;  %v3065_v30 = vsel %vm3001_vm0, %v2969_v51, %v3033_v6 }
 0x2d9   : > { %v3140_v17 = vadd.f32 %v6167_v45, %v3101_v25  ;;  %v3104_v60 = vmul.f32 %v6151_v21, %v3065_v30  ;;  %v3064_v2 = vsel %vm3000_vm1, %v2968_v9, %v3032_v37 }
 0x2da   : > { %3173 = vst [vmem:[%s6181_s29 + $0xe8] sm:$0xff] %v3141_v34  ;;  %v3103_v59 = vmul.f32 %v6151_v21, %v3064_v2 }
 0x2db   : > { %3172 = vst [vmem:[%s6181_s29 + $0xe0] sm:$0xff] %v3140_v17  ;;  %v3143_v4 = vadd.f32 %v6167_v45, %v3104_v60 }
 0x2dc   : > { %v3142_v61 = vadd.f32 %v6167_v45, %v3103_v59 }
 0x2dd   : > { %3175 = vst [vmem:[%s6181_s29 + $0xf8] sm:$0xff] %v3143_v4 }
 0x2de   : > { %3174 = vst [vmem:[%s6181_s29 + $0xf0] sm:$0xff] %v3142_v61 }
 0x2df PF: > { %s17_s26 = sadd.s32 1, %s3378_s26   ;;  %s6969_s24 = smov %s3374_s25 }
 0x2e0   : > { %p14_p6 = scmp.ge.s32.totalorder %s17_s26, 4   ;;  %s6970_s25 = smov %s6972_s27 }
 0x2e2   :  { %16 = sbr.rel (!%p14_p6) target bundleno = 2 (0x2), region = 92 }

// kernel: conv_block_forward.2
= control target key start
LH: loop header
LB: loop body
LE: loop exit
PB: predicated region body
PF: predicated region fallthrough
CT: control target
= control target key end

     0   :  { %s3348_s18 = smov 0   ;;  %s3350_s19 = smov 0   ;;  %s6239_s0 = inlined_call_operand.vmem [shape: f32[2,16,18,1], index: 0, kind: input, shape index: {}]   ;;  %s6240_s1 = inlined_call_operand.vmem [shape: f32[2,16,18,1], index: 1, kind: input, shape index: {}]   ;;  %s6241_s2 = inlined_call_operand.vmem [shape: f32[2,16,18,1], index: 2, kind: input, shape index: {}]   ;;  %s6242_s3 = inlined_call_operand.vmem [shape: f32[9,1,128], index: 3, kind: input, shape index: {}]   ;;  %s6243_s4 = inlined_call_operand.vmem [shape: f32[1,128], index: 4, kind: input, shape index: {}]   ;;  %s6244_s5 = inlined_call_operand.vmem [shape: f32[2,2,128], index: 5, kind: output, shape index: {}]  }
   0x1   :  { %s3352_s20 = smov 0  }
   0x2 LB: > { %s27_s21 = sadd.s32 1, %s3311_s19  ;;  %p3237_p0 = scmp.ge.s32.totalorder %s3315_s20, 1  ;;  %s3315_s20 = sphi %s3352_s20, %s15_s20   ;;  %s3311_s19 = sphi %s3350_s19, %s6835_s19   ;;  %s3307_s18 = sphi %s3348_s18, %s6834_s18  }
   0x3   : > { %p29_p1 = scmp.ge.s32.totalorder %s27_s21, 2  ;;  %p245_p2 = scmp.lt.s32.totalorder %s3315_s20, 3 }
   0x5   : > { %s6837_s21 = smov (%p29_p1, %s27_s21), 0  ;;  %p246_p3 = pnand %p3237_p0, %p245_p2 }
   0x7   : > { %249 = sbr.rel (%p246_p3) target bundleno = 749 (0x2ed), region = 40 }
   0xe   : > { %p299_p4 = scmp.lt.s32.totalorder %s3307_s18, 1  ;;  %v3317_v0 = vmov 0   ;;  %vm1016_vm0 = vcmask 1045504   ;;  %vm735_vm1 = vcmask 1046528  }
   0xf   : > { %3289 = vset.pattern.permute.xlu1 %v3317_v0  ;;  %3288 = vset.pattern.permute.xlu0 %v3317_v0 }
  0x10   : > { %s6839_s18 = smov (!%p299_p4, %s3307_s18), 1 }
  0x11   : > { %s3369_s22 = smul.u32 384, %s6839_s18  ;;  %s3241_s10 = sshll.u32 %s6839_s18, 1 }
  0x12   : > { %s335_s13 = scalar_lea.vmem %s6244_s5, %s3241_s10 }
  0x13   : > { %s3375_s25 = scalar_lea.vmem %s6239_s0, %s3369_s22  ;;  %s3871_s28 = scalar_lea.vmem %s6240_s1, %s3369_s22 }
  0x14   : > { %v3378_v1 = vld [vmem:[%s3375_s25 + $0x18] sm:$0xff]  ;;  %v3381_v2 = vld [vmem:[%s3375_s25] sm:$0xff]  ;;  %v3389_v4 = vld [vmem:[%s3375_s25 + $0x8] sm:$0xff]  ;;  %s4407_s6 = scalar_lea.vmem %s6241_s2, %s3369_s22 }
  0x15   : > { %501 = vperm.xlu1 %3289, %v3378_v1   ;;  %491 = vperm.xlu0 %3288, %v3381_v2   ;;  %v3386_v3 = vld [vmem:[%s3375_s25 + $0x20] sm:$0xff]  ;;  %v3394_v5 = vld [vmem:[%s3375_s25 + $0x38] sm:$0xff]  ;;  %v3397_v6 = vld [vmem:[%s3375_s25 + $0x30] sm:$0xff]  ;;  %v1022_v15 = vrot.slane %v3378_v1, 2  ;;  %v1017_v16 = vrot.slane %v3381_v2, 2  ;;  %v1018_v18 = vrot.slane %v3389_v4, 2 }
  0x16   : > { %v3402_v7 = vld [vmem:[%s3375_s25 + $0x50] sm:$0xff]  ;;  %v3405_v8 = vld [vmem:[%s3375_s25 + $0x48] sm:$0xff]  ;;  %v3413_v10 = vld [vmem:[%s3375_s25 + $0x60] sm:$0xff]  ;;  %v1023_v17 = vrot.slane %v3386_v3, 2  ;;  %v1028_v19 = vrot.slane %v3394_v5, 2  ;;  %v1027_v20 = vrot.slane %v3397_v6, 2 }
  0x17   : > { %v3410_v9 = vld [vmem:[%s3375_s25 + $0x68] sm:$0xff]  ;;  %v3418_v11 = vld [vmem:[%s3375_s25 + $0x80] sm:$0xff]  ;;  %v3421_v12 = vld [vmem:[%s3375_s25 + $0x78] sm:$0xff]  ;;  %v1033_v21 = vrot.slane %v3402_v7, 2  ;;  %v1032_v22 = vrot.slane %v3405_v8, 2  ;;  %v1037_v24 = vrot.slane %v3413_v10, 2  ;;  %v3478_v43 = vsel %vm1016_vm0, %v1017_v16, %v1018_v18 }
  0x18   : > { %v3426_v13 = vld [vmem:[%s3375_s25 + $0x98] sm:$0xff]  ;;  %v3429_v14 = vld [vmem:[%s3375_s25 + $0x90] sm:$0xff]  ;;  %v1038_v23 = vrot.slane %v3410_v9, 2  ;;  %v1043_v25 = vrot.slane %v3418_v11, 2  ;;  %v1042_v27 = vrot.slane %v3421_v12, 2  ;;  %v3452_v31 = vld [vmem:[%s3375_s25 + $0xa8] sm:$0xff]  ;;  %v3491_v48 = vsel %vm1016_vm0, %v1022_v15, %v1023_v17 }
  0x19   : > { %506 = vperm.xlu1 %3289, %v3386_v3   ;;  %496 = vperm.xlu0 %3288, %v3389_v4   ;;  %v3445_v26 = vld [vmem:[%s3375_s25 + $0xb0] sm:$0xff]  ;;  %v1048_v28 = vrot.slane %v3426_v13, 2  ;;  %v1047_v29 = vrot.slane %v3429_v14, 2  ;;  %v3455_v32 = vld [vmem:[%s3375_s25 + $0xc8] sm:$0xff]  ;;  %v1052_v33 = vrot.slane %v3452_v31, 2  ;;  %v3460_v35 = vld [vmem:[%s3375_s25 + $0xc0] sm:$0xff]  ;;  %v3501_v52 = vsel %vm1016_vm0, %v1027_v20, %v1028_v19 }
  0x1a   : > { %v1053_v30 = vrot.slane %v3445_v26, 2  ;;  %v1058_v34 = vrot.slane %v3455_v32, 2  ;;  %v3463_v36 = vld [vmem:[%s3375_s25 + $0xe0] sm:$0xff]  ;;  %v3466_v37 = vld [vmem:[%s3375_s25 + $0x10] sm:$0x3]  ;;  %v1057_v38 = vrot.slane %v3460_v35, 2  ;;  %v3511_v56 = vsel %vm1016_vm0, %v1032_v22, %v1033_v21 }
  0x1b   : > { %v1063_v39 = vrot.slane %v3463_v36, 2  ;;  %v3471_v40 = vld [vmem:[%s3375_s25 + $0xd8] sm:$0xff]  ;;  %v3474_v41 = vld [vmem:[%s3375_s25 + $0x28] sm:$0x3]  ;;  %v1020_v42 = vrot.slane %v3466_v37, 2  ;;  %6268 = vst [vmem:[#allocation2_spill] sm:$0xff] %v3501_v52  ;;  %v3515_v58 = vsel %vm1016_vm0, %v1037_v24, %v1038_v23  ;;  %v3531_v0 = vsel %vm1016_vm0, %v1042_v27, %v1043_v25 }
  0x1c   : > { %v1062_v44 = vrot.slane %v3471_v40, 2  ;;  %v3484_v45 = vld [vmem:[%s3375_s25 + $0x40] sm:$0x3]  ;;  %v3487_v46 = vld [vmem:[%s3375_s25 + $0x58] sm:$0x3]  ;;  %v1025_v47 = vrot.slane %v3474_v41, 2  ;;  %v3553_v22 = vsel %vm1016_vm0, %v1052_v33, %v1053_v30 }
  0x1d   : > { %516 = vperm.xlu1 %3289, %v3394_v5   ;;  %511 = vperm.xlu0 %3288, %v3397_v6   ;;  %v3494_v49 = vld [vmem:[%s3375_s25 + $0x70] sm:$0x3]  ;;  %v3497_v50 = vsel %vm1016_vm0, %v1018_v18, %v1020_v42  ;;  %v1030_v51 = vrot.slane %v3484_v45, 2  ;;  %v1035_v53 = vrot.slane %v3487_v46, 2  ;;  %v3505_v54 = vld [vmem:[%s3375_s25 + $0x88] sm:$0x3]  ;;  %v3543_v18 = vsel %vm1016_vm0, %v1047_v29, %v1048_v28 }
  0x1e   : > { %v3508_v55 = vsel %vm1016_vm0, %v1023_v17, %v1025_v47  ;;  %6269 = vst [vmem:[#allocation3_spill] sm:$0xff] %v3511_v56  ;;  %v1040_v57 = vrot.slane %v3494_v49, 2  ;;  %6270 = vst [vmem:[#allocation4_spill] sm:$0xff] %v3515_v58  ;;  %v3518_v59 = vld [vmem:[%s3375_s25 + $0xa0] sm:$0x3]  ;;  %v1045_v63 = vrot.slane %v3505_v54, 2 }
  0x1f   : > { %v3521_v60 = vld [vmem:[%s3375_s25 + $0xb8] sm:$0x3]  ;;  %v3524_v61 = vsel %vm1016_vm0, %v1028_v19, %v1030_v51  ;;  %v3527_v62 = vsel %vm1016_vm0, %v1033_v21, %v1035_v53  ;;  %6272 = vst [vmem:[#allocation6_spill] sm:$0xff] %v3531_v0  ;;  %v3536_v15 = vld [vmem:[%s3375_s25 + $0xd0] sm:$0x3]  ;;  %v1050_v17 = vrot.slane %v3518_v59, 2  ;;  %v3578_v53 = vsel %vm1016_vm0, %v1062_v44, %v1063_v39 }
  0x20   : > { %6271 = vst [vmem:[#allocation5_spill] sm:$0xff] %v3527_v62  ;;  %v3539_v16 = vsel %vm1016_vm0, %v1038_v23, %v1040_v57  ;;  %6274 = vst [vmem:[#allocation8_spill] sm:$0xff] %v3543_v18  ;;  %v1055_v19 = vrot.slane %v3521_v60, 2  ;;  %v3547_v20 = vld [vmem:[%s3375_s25 + $0xe8] sm:$0x3]  ;;  %v3550_v21 = vsel %vm1016_vm0, %v1043_v25, %v1045_v63  ;;  %v1060_v24 = vrot.slane %v3536_v15, 2 }
  0x21   : > { %526 = vperm.xlu1 %3289, %v3402_v7   ;;  %521 = vperm.xlu0 %3288, %v3405_v8   ;;  %6273 = vst [vmem:[#allocation7_spill] sm:$0xff] %v3539_v16  ;;  %6275 = vst [vmem:[#allocation9_spill] sm:$0xff] %v3550_v21  ;;  %v3557_v23 = vsel %vm1016_vm0, %v1057_v38, %v1058_v34  ;;  %v3560_v27 = vld [vmem:[%s3375_s25 + $0xf8] sm:$0xff]  ;;  %v3563_v29 = vld [vmem:[%s3375_s25 + $0xf0] sm:$0xff]  ;;  %v3566_v42 = vsel %vm1016_vm0, %v1048_v28, %v1050_v17  ;;  %v1065_v33 = vrot.slane %v3547_v20, 2 }
  0x22   : > { %6276 = vst [vmem:[#allocation10_spill] sm:$0xff] %v3553_v22  ;;  %6277 = vst [vmem:[#allocation11_spill] sm:$0xff] %v3557_v23  ;;  %v3569_v25 = vsel %vm1016_vm0, %v1053_v30, %v1055_v19  ;;  %v1068_v47 = vrot.slane %v3560_v27, 2  ;;  %v1067_v51 = vrot.slane %v3563_v29, 2  ;;  %v3575_v38 = vsel %vm1016_vm0, %v1058_v34, %v1060_v24  ;;  %v3583_v28 = vld [vmem:[%s3375_s25 + $0x100] sm:$0x3] }
  0x23   : > { %6278 = vst [vmem:[#allocation12_spill] sm:$0xff] %v3566_v42  ;;  %6279 = vst [vmem:[#allocation13_spill] sm:$0xff] %v3569_v25  ;;  %v3586_v30 = vsel %vm1016_vm0, %v1063_v39, %v1065_v33  ;;  %v1070_v57 = vrot.slane %v3583_v28, 2  ;;  %v3590_v63 = vld [vmem:[%s3375_s25 + $0x110] sm:$0xff]  ;;  %v3593_v34 = vld [vmem:[%s3375_s25 + $0x108] sm:$0xff]  ;;  %v737_v56 = vrot.slane %v3389_v4, 1 }
  0x24   : > { %6280 = vst [vmem:[#allocation14_spill] sm:$0xff] %v3575_v38  ;;  %6281 = vst [vmem:[#allocation15_spill] sm:$0xff] %v3578_v53  ;;  %v1073_v44 = vrot.slane %v3590_v63, 2  ;;  %v1072_v17 = vrot.slane %v3593_v34, 2  ;;  %v3601_v24 = vsel %vm1016_vm0, %v1067_v51, %v1068_v47  ;;  %v3606_v39 = vld [vmem:[%s3375_s25 + $0x118] sm:$0x3] }
  0x25   : > { %536 = vperm.xlu1 %3289, %v3410_v9   ;;  %531 = vperm.xlu0 %3288, %v3413_v10   ;;  %6282 = vst [vmem:[#allocation16_spill] sm:$0xff] %v3586_v30  ;;  %v3598_v19 = vsel %vm1016_vm0, %v1068_v47, %v1070_v57  ;;  %6284 = vst [vmem:[#allocation18_spill] sm:$0xff] %v3601_v24  ;;  %v1075_v33 = vrot.slane %v3606_v39, 2  ;;  %v3610_v53 = vld [vmem:[%s3375_s25 + $0x128] sm:$0xff]  ;;  %v3613_v30 = vld [vmem:[%s3375_s25 + $0x120] sm:$0xff]  ;;  %v739_v62 = vrot.slane %v3466_v37, 1 }
  0x26   : > { %6283 = vst [vmem:[#allocation17_spill] sm:$0xff] %v3598_v19  ;;  %v1078_v57 = vrot.slane %v3610_v53, 2  ;;  %v1077_v19 = vrot.slane %v3613_v30, 2  ;;  %v3621_v51 = vsel %vm1016_vm0, %v1072_v17, %v1073_v44  ;;  %v3626_v24 = vld [vmem:[%s3375_s25 + $0x130] sm:$0x3]  ;;  %v3630_v38 = vld [vmem:[%s3375_s25 + $0x140] sm:$0xff] }
  0x27   : > { %v3618_v47 = vsel %vm1016_vm0, %v1073_v44, %v1075_v33  ;;  %6286 = vst [vmem:[#allocation20_spill] sm:$0xff] %v3621_v51  ;;  %v1080_v23 = vrot.slane %v3626_v24, 2  ;;  %v3633_v22 = vld [vmem:[%s3375_s25 + $0x138] sm:$0xff]  ;;  %v1083_v33 = vrot.slane %v3630_v38, 2  ;;  %v3646_v51 = vld [vmem:[%s3375_s25 + $0x148] sm:$0x3]  ;;  %v740_v4 = vsel %vm735_vm1, %v737_v56, %v739_v62 }
  0x28   : > { %6285 = vst [vmem:[#allocation19_spill] sm:$0xff] %v3618_v47  ;;  %v1082_v47 = vrot.slane %v3633_v22, 2  ;;  %v3641_v17 = vsel %vm1016_vm0, %v1077_v19, %v1078_v57  ;;  %v1085_v25 = vrot.slane %v3646_v51, 2  ;;  %v3650_v18 = vld [vmem:[%s3375_s25 + $0x158] sm:$0xff]  ;;  %v3653_v42 = vld [vmem:[%s3375_s25 + $0x150] sm:$0xff]  ;;  %v3673_v58 = vld [vmem:[%s3375_s25 + $0x168] sm:$0xff] }
  0x29   : > { %546 = vperm.xlu1 %3289, %v3418_v11   ;;  %541 = vperm.xlu0 %3288, %v3421_v12   ;;  %v3638_v44 = vsel %vm1016_vm0, %v1078_v57, %v1080_v23  ;;  %6288 = vst [vmem:[#allocation22_spill] sm:$0xff] %v3641_v17  ;;  %v1088_v23 = vrot.slane %v3650_v18, 2  ;;  %v3666_v17 = vld [vmem:[%s3375_s25 + $0x160] sm:$0x3]  ;;  %v3670_v21 = vld [vmem:[%s3375_s25 + $0x170] sm:$0xff]  ;;  %v754_v62 = vrot.slane %v3487_v46, 1 }
  0x2a   : > { %6287 = vst [vmem:[#allocation21_spill] sm:$0xff] %v3638_v44  ;;  %v1087_v44 = vrot.slane %v3653_v42, 2  ;;  %v3658_v19 = vsel %vm1016_vm0, %v1083_v33, %v1085_v25  ;;  %v3661_v57 = vsel %vm1016_vm0, %v1082_v47, %v1083_v33  ;;  %v1090_v0 = vrot.slane %v3666_v17, 2  ;;  %v3686_v33 = vld [vmem:[%s3375_s25 + $0x178] sm:$0x3] }
  0x2b   : > { %6289 = vst [vmem:[#allocation23_spill] sm:$0xff] %v3658_v19  ;;  %6290 = vst [vmem:[#allocation24_spill] sm:$0xff] %v3661_v57  ;;  %v1093_v16 = vrot.slane %v3670_v21, 2  ;;  %v1092_v25 = vrot.slane %v3673_v58, 2  ;;  %v736_v57 = vrot.slane %v3381_v2, 1  ;;  %v1095_v52 = vrot.slane %v3686_v33, 2 }
  0x2c   : > { %v3678_v19 = vsel %vm1016_vm0, %v1088_v23, %v1090_v0  ;;  %v3681_v47 = vsel %vm1016_vm0, %v1087_v44, %v1088_v23  ;;  %v741_v23 = vrot.slane %v3378_v1, 1  ;;  %v742_v2 = vrot.slane %v3386_v3, 1 }
  0x2d   : > { %556 = vperm.xlu1 %3289, %v3426_v13   ;;  %551 = vperm.xlu0 %3288, %v3429_v14   ;;  %6291 = vst [vmem:[#allocation25_spill] sm:$0xff] %v3681_v47  ;;  %v3693_v0 = vsel %vm1016_vm0, %v1093_v16, %v1095_v52  ;;  %v3696_v44 = vsel %vm1016_vm0, %v1092_v25, %v1093_v16  ;;  %v744_v47 = vrot.slane %v3474_v41, 1  ;;  %v747_v52 = vrot.slane %v3394_v5, 1 }
  0x2e   : > { %6292 = vst [vmem:[#allocation26_spill] sm:$0xff] %v3696_v44  ;;  %v738_v37 = vsel %vm735_vm1, %v736_v57, %v737_v56  ;;  %v746_v16 = vrot.slane %v3397_v6, 1  ;;  %v743_v25 = vsel %vm735_vm1, %v741_v23, %v742_v2  ;;  %v749_v44 = vrot.slane %v3484_v45, 1 }
  0x2f   : > { %v745_v1 = vsel %vm735_vm1, %v742_v2, %v744_v47  ;;  %v752_v3 = vrot.slane %v3402_v7, 1  ;;  %v751_v56 = vrot.slane %v3405_v8, 1  ;;  %v757_v6 = vrot.slane %v3410_v9, 1 }
  0x30   : > { %v750_v41 = vsel %vm735_vm1, %v747_v52, %v749_v44  ;;  %v748_v5 = vsel %vm735_vm1, %v746_v16, %v747_v52  ;;  %v756_v57 = vrot.slane %v3413_v10, 1  ;;  %v759_v47 = vrot.slane %v3494_v49, 1 }
  0x31   : > { %566 = vperm.xlu1 %3289, %v3445_v26   ;;  %561 = vperm.xlu0 %3288, %v3452_v31   ;;  %v755_v45 = vsel %vm735_vm1, %v752_v3, %v754_v62  ;;  %v753_v7 = vsel %vm735_vm1, %v751_v56, %v752_v3  ;;  %v762_v8 = vrot.slane %v3418_v11, 1  ;;  %v761_v44 = vrot.slane %v3421_v12, 1 }
  0x32   : > { %v760_v46 = vsel %vm735_vm1, %v757_v6, %v759_v47  ;;  %v758_v9 = vsel %vm735_vm1, %v756_v57, %v757_v6  ;;  %v764_v23 = vrot.slane %v3505_v54, 1  ;;  %v767_v10 = vrot.slane %v3426_v13, 1 }
  0x33   : > { %v766_v2 = vrot.slane %v3429_v14, 1  ;;  %v763_v11 = vsel %vm735_vm1, %v761_v44, %v762_v8  ;;  %v772_v12 = vrot.slane %v3445_v26, 1  ;;  %v774_v52 = vrot.slane %v3521_v60, 1 }
  0x34   : > { %v765_v49 = vsel %vm735_vm1, %v762_v8, %v764_v23  ;;  %v777_v14 = vrot.slane %v3455_v32, 1  ;;  %v776_v16 = vrot.slane %v3460_v35, 1  ;;  %v784_v3 = vrot.slane %v3547_v20, 1 }
  0x35   : > { %576 = vperm.xlu1 %3289, %v3455_v32   ;;  %571 = vperm.xlu0 %3288, %v3460_v35   ;;  %v768_v13 = vsel %vm735_vm1, %v766_v2, %v767_v10  ;;  %v787_v35 = vrot.slane %v3560_v27, 1  ;;  %v786_v56 = vrot.slane %v3563_v29, 1  ;;  %v794_v62 = vrot.slane %v3606_v39, 1  ;;  %v6298_v2 = vld [vmem:[#allocation2_spill] sm:$0xff] }
  0x36   : > { %v778_v32 = vsel %vm735_vm1, %v776_v16, %v777_v14  ;;  %v796_v6 = vrot.slane %v3613_v30, 1  ;;  %v799_v57 = vrot.slane %v3626_v24, 1  ;;  %v806_v47 = vrot.slane %v3653_v42, 1  ;;  %v6313_v16 = vld [vmem:[#allocation12_spill] sm:$0xff] }
  0x37   : > { %v809_v8 = vrot.slane %v3666_v17, 1  ;;  %v811_v44 = vrot.slane %v3673_v58, 1 }
  0x39   : > { %586 = vperm.xlu1 %3289, %v3463_v36   ;;  %581 = vperm.xlu0 %3288, %v3471_v40  }
  0x3d   : > { %596 = vperm.xlu1 %3289, %v3560_v27   ;;  %591 = vperm.xlu0 %3288, %v3563_v29   ;;  %v788_v27 = vsel %vm735_vm1, %v786_v56, %v787_v35  ;;  %v797_v29 = vrot.slane %v3610_v53, 1 }
  0x3f   : > { %v800_v39 = vsel %vm735_vm1, %v797_v29, %v799_v57 }
  0x41   : > { %606 = vperm.xlu1 %3289, %v3590_v63   ;;  %601 = vperm.xlu0 %3288, %v3593_v34  }
  0x45   : > { %616 = vperm.xlu1 %3289, %v3610_v53   ;;  %611 = vperm.xlu0 %3288, %v3613_v30   ;;  %v798_v53 = vsel %vm735_vm1, %v796_v6, %v797_v29  ;;  %v807_v30 = vrot.slane %v3650_v18, 1  ;;  %v6333_v6 = vld [vmem:[#allocation19_spill] sm:$0xff] }
  0x49   : > { %626 = vperm.xlu1 %3289, %v3630_v38   ;;  %621 = vperm.xlu0 %3288, %v3633_v22  }
  0x4d   : > { %636 = vperm.xlu1 %3289, %v3650_v18   ;;  %631 = vperm.xlu0 %3288, %v3653_v42   ;;  %v808_v18 = vsel %vm735_vm1, %v806_v47, %v807_v30 }
  0x51   : > { %646 = vperm.xlu1 %3289, %v3670_v21   ;;  %641 = vperm.xlu0 %3288, %v3673_v58  }
  0x55   : > { %823 = vperm.xlu1 %3289, %v740_v4   ;;  %819 = vperm.xlu0 %3288, %v738_v37   ;;  %v769_v4 = vrot.slane %v3518_v59, 1  ;;  %v771_v37 = vrot.slane %v3452_v31, 1  ;;  %v775_v59 = vsel %vm735_vm1, %v772_v12, %v774_v52  ;;  %v782_v31 = vrot.slane %v3463_v36, 1 }
  0x57   : > { %v770_v54 = vsel %vm735_vm1, %v767_v10, %v769_v4  ;;  %v773_v26 = vsel %vm735_vm1, %v771_v37, %v772_v12  ;;  %v6306_v12 = vld [vmem:[#allocation4_spill] sm:$0xff] }
  0x59   : > { %831 = vperm.xlu1 %3289, %v745_v1   ;;  %827 = vperm.xlu0 %3288, %v743_v25   ;;  %v779_v1 = vrot.slane %v3536_v15, 1  ;;  %v781_v25 = vrot.slane %v3471_v40, 1  ;;  %v785_v15 = vsel %vm735_vm1, %v782_v31, %v784_v3  ;;  %v792_v40 = vrot.slane %v3590_v63, 1  ;;  %v6321_v3 = vld [vmem:[#allocation14_spill] sm:$0xff] }
  0x5b   : > { %v780_v60 = vsel %vm735_vm1, %v777_v14, %v779_v1  ;;  %v783_v36 = vsel %vm735_vm1, %v781_v25, %v782_v31  ;;  %v6317_v31 = vld [vmem:[#allocation13_spill] sm:$0xff]  ;;  %v6318_v25 = vld [vmem:[#allocation10_spill] sm:$0xff] }
  0x5d   : > { %839 = vperm.xlu1 %3289, %v750_v41   ;;  %835 = vperm.xlu0 %3288, %v748_v5   ;;  %v789_v41 = vrot.slane %v3583_v28, 1  ;;  %v791_v5 = vrot.slane %v3593_v34, 1  ;;  %v795_v28 = vsel %vm735_vm1, %v792_v40, %v794_v62  ;;  %v802_v34 = vrot.slane %v3630_v38, 1 }
  0x5f   : > { %v790_v20 = vsel %vm735_vm1, %v787_v35, %v789_v41  ;;  %v793_v63 = vsel %vm735_vm1, %v791_v5, %v792_v40  ;;  %v6322_v35 = vld [vmem:[#allocation11_spill] sm:$0xff] }
  0x60   : > { %v6326_v41 = vld [vmem:[#allocation15_spill] sm:$0xff] }
  0x61   : > { %847 = vperm.xlu1 %3289, %v755_v45   ;;  %843 = vperm.xlu0 %3288, %v753_v7   ;;  %v801_v45 = vrot.slane %v3633_v22, 1  ;;  %v804_v7 = vrot.slane %v3646_v51, 1  ;;  %v812_v22 = vrot.slane %v3670_v21, 1  ;;  %v810_v51 = vsel %vm735_vm1, %v807_v30, %v809_v8  ;;  %v6342_v30 = vld [vmem:[#allocation24_spill] sm:$0xff] }
  0x63   : > { %v805_v24 = vsel %vm735_vm1, %v802_v34, %v804_v7  ;;  %v803_v38 = vsel %vm735_vm1, %v801_v45, %v802_v34  ;;  %v6337_v34 = vld [vmem:[#allocation21_spill] sm:$0xff]  ;;  %v6338_v45 = vld [vmem:[#allocation22_spill] sm:$0xff]  ;;  %v6341_v7 = vld [vmem:[#allocation23_spill] sm:$0xff] }
  0x65   : > { %855 = vperm.xlu1 %3289, %v760_v46   ;;  %851 = vperm.xlu0 %3288, %v758_v9   ;;  %v814_v46 = vrot.slane %v3686_v33, 1  ;;  %v813_v9 = vsel %vm735_vm1, %v811_v44, %v812_v22  ;;  %v3880_v44 = vld [vmem:[%s3871_s28 + $0x8] sm:$0xff] }
  0x67   : > { %v815_v42 = vsel %vm735_vm1, %v812_v22, %v814_v46 }
  0x69   : > { %863 = vperm.xlu1 %3289, %v765_v49   ;;  %859 = vperm.xlu0 %3288, %v763_v11   ;;  %v6302_v11 = vld [vmem:[#allocation3_spill] sm:$0xff] }
  0x6d   : > { %871 = vperm.xlu1 %3289, %v770_v54   ;;  %867 = vperm.xlu0 %3288, %v768_v13   ;;  %v6309_v54 = vld [vmem:[#allocation9_spill] sm:$0xff]  ;;  %v6310_v13 = vld [vmem:[#allocation6_spill] sm:$0xff] }
  0x71   : > { %879 = vperm.xlu1 %3289, %v775_v59   ;;  %875 = vperm.xlu0 %3288, %v773_v26   ;;  %v6314_v59 = vld [vmem:[#allocation8_spill] sm:$0xff] }
  0x75   : > { %887 = vperm.xlu1 %3289, %v780_v60   ;;  %883 = vperm.xlu0 %3288, %v778_v32  }
  0x79   : > { %895 = vperm.xlu1 %3289, %v785_v15   ;;  %891 = vperm.xlu0 %3288, %v783_v36   ;;  %v6325_v36 = vld [vmem:[#allocation16_spill] sm:$0xff] }
  0x7d   : > { %903 = vperm.xlu1 %3289, %v790_v20   ;;  %899 = vperm.xlu0 %3288, %v788_v27   ;;  %v6329_v20 = vld [vmem:[#allocation17_spill] sm:$0xff]  ;;  %v6330_v27 = vld [vmem:[#allocation18_spill] sm:$0xff] }
  0x81   : > { %911 = vperm.xlu1 %3289, %v795_v28   ;;  %907 = vperm.xlu0 %3288, %v793_v63   ;;  %v6334_v28 = vld [vmem:[#allocation20_spill] sm:$0xff] }
  0x85   : > { %919 = vperm.xlu1 %3289, %v800_v39   ;;  %915 = vperm.xlu0 %3288, %v798_v53  }
  0x89   : > { %927 = vperm.xlu1 %3289, %v805_v24   ;;  %923 = vperm.xlu0 %3288, %v803_v38   ;;  %v6345_v38 = vld [vmem:[#allocation25_spill] sm:$0xff] }
  0x8d   : > { %935 = vperm.xlu1 %3289, %v810_v51   ;;  %931 = vperm.xlu0 %3288, %v808_v18   ;;  %v3883_v51 = vld [vmem:[%s3871_s28] sm:$0xff] }
  0x91   : > { %943 = vperm.xlu1 %3289, %v815_v42   ;;  %939 = vperm.xlu0 %3288, %v813_v9   ;;  %v3892_v42 = vld [vmem:[%s3871_s28 + $0x20] sm:$0xff]  ;;  %v3895_v9 = vld [vmem:[%s3871_s28 + $0x18] sm:$0xff] }
  0x94   : > { %v3777_v17 = vpop.permute.xlu1 %501  ;;  %v3779_v21 = vpop.permute.xlu0 %491 }
  0x95   : > { %6293 = vst [vmem:[#allocation27_spill] sm:$0xff] %v3779_v21  ;;  %1104 = vperm.xlu1 %3289, %v3497_v50   ;;  %1100 = vperm.xlu0 %3288, %v3478_v43   ;;  %v6301_v43 = vld [vmem:[#allocation5_spill] sm:$0xff] }
  0x98   : > { %v3783_v58 = vpop.permute.xlu1 %506  ;;  %v3785_v23 = vpop.permute.xlu0 %496 }
  0x99   : > { %6294 = vst [vmem:[#allocation28_spill] sm:$0xff] %v3783_v58  ;;  %6295 = vst [vmem:[#allocation29_spill] sm:$0xff] %v3785_v23  ;;  %1112 = vperm.xlu1 %3289, %v3508_v55   ;;  %1108 = vperm.xlu0 %3288, %v3491_v48   ;;  %v6305_v48 = vld [vmem:[#allocation7_spill] sm:$0xff] }
  0x9c   : > { %v3789_v33 = vpop.permute.xlu1 %516  ;;  %v3791_v10 = vpop.permute.xlu0 %511 }
  0x9d   : > { %6296 = vst [vmem:[#allocation30_spill] sm:$0xff] %v3789_v33  ;;  %6297 = vst [vmem:[#allocation31_spill] sm:$0xff] %v3791_v10  ;;  %1120 = vperm.xlu1 %3289, %v3524_v61   ;;  %1116 = vperm.xlu0 %3288, %v6298_v2  }
  0xa0   : > { %v3795_v49 = vpop.permute.xlu1 %526  ;;  %v3797_v50 = vpop.permute.xlu0 %521 }
  0xa1   : > { %6299 = vst [vmem:[#allocation2_spill] sm:$0xff] %v3795_v49  ;;  %6300 = vst [vmem:[#allocation32_spill] sm:$0xff] %v3797_v50  ;;  %1128 = vperm.xlu1 %3289, %v6301_v43   ;;  %1124 = vperm.xlu0 %3288, %v6302_v11   ;;  %v3904_v43 = vld [vmem:[%s3871_s28 + $0x38] sm:$0xff]  ;;  %v3907_v11 = vld [vmem:[%s3871_s28 + $0x30] sm:$0xff] }
  0xa4   : > { %v3801_v4 = vpop.permute.xlu1 %536  ;;  %v3803_v55 = vpop.permute.xlu0 %531 }
  0xa5   : > { %6303 = vst [vmem:[#allocation5_spill] sm:$0xff] %v3801_v4  ;;  %6304 = vst [vmem:[#allocation3_spill] sm:$0xff] %v3803_v55  ;;  %1136 = vperm.xlu1 %3289, %v6305_v48   ;;  %1132 = vperm.xlu0 %3288, %v6306_v12  }
  0xa8   : > { %v3807_v37 = vpop.permute.xlu1 %546  ;;  %v3809_v61 = vpop.permute.xlu0 %541 }
  0xa9   : > { %6307 = vst [vmem:[#allocation7_spill] sm:$0xff] %v3807_v37  ;;  %6308 = vst [vmem:[#allocation4_spill] sm:$0xff] %v3809_v61  ;;  %1144 = vperm.xlu1 %3289, %v6309_v54   ;;  %1140 = vperm.xlu0 %3288, %v6310_v13   ;;  %v3916_v54 = vld [vmem:[%s3871_s28 + $0x50] sm:$0xff]  ;;  %v3919_v13 = vld [vmem:[%s3871_s28 + $0x48] sm:$0xff] }
  0xac   : > { %v3813_v52 = vpop.permute.xlu1 %556  ;;  %v3815_v14 = vpop.permute.xlu0 %551 }
  0xad   : > { %6311 = vst [vmem:[#allocation9_spill] sm:$0xff] %v3813_v52  ;;  %6312 = vst [vmem:[#allocation6_spill] sm:$0xff] %v3815_v14  ;;  %1152 = vperm.xlu1 %3289, %v6313_v16   ;;  %1148 = vperm.xlu0 %3288, %v6314_v59  }
  0xb0   : > { %v3819_v26 = vpop.permute.xlu1 %566  ;;  %v3821_v1 = vpop.permute.xlu0 %561 }
  0xb1   : > { %6315 = vst [vmem:[#allocation12_spill] sm:$0xff] %v3819_v26  ;;  %6316 = vst [vmem:[#allocation8_spill] sm:$0xff] %v3821_v1  ;;  %1160 = vperm.xlu1 %3289, %v6317_v31   ;;  %1156 = vperm.xlu0 %3288, %v6318_v25   ;;  %v3928_v31 = vld [vmem:[%s3871_s28 + $0x68] sm:$0xff]  ;;  %v3931_v25 = vld [vmem:[%s3871_s28 + $0x60] sm:$0xff] }
  0xb4   : > { %v3825_v60 = vpop.permute.xlu1 %576  ;;  %v3827_v32 = vpop.permute.xlu0 %571 }
  0xb5   : > { %6319 = vst [vmem:[#allocation13_spill] sm:$0xff] %v3825_v60  ;;  %6320 = vst [vmem:[#allocation10_spill] sm:$0xff] %v3827_v32  ;;  %1168 = vperm.xlu1 %3289, %v6321_v3   ;;  %1164 = vperm.xlu0 %3288, %v6322_v35   ;;  %v1555_v32 = vrot.slane %v3907_v11, 1 }
  0xb8   : > { %v3831_v56 = vpop.permute.xlu1 %586  ;;  %v3833_v15 = vpop.permute.xlu0 %581 }
  0xb9   : > { %6323 = vst [vmem:[#allocation14_spill] sm:$0xff] %v3831_v56  ;;  %6324 = vst [vmem:[#allocation11_spill] sm:$0xff] %v3833_v15  ;;  %1176 = vperm.xlu1 %3289, %v6325_v36   ;;  %1172 = vperm.xlu0 %3288, %v6326_v41   ;;  %v3940_v36 = vld [vmem:[%s3871_s28 + $0x80] sm:$0xff]  ;;  %v3943_v41 = vld [vmem:[%s3871_s28 + $0x78] sm:$0xff]  ;;  %v1556_v56 = vrot.slane %v3904_v43, 1 }
  0xba   : > { %v4086_v15 = vld [vmem:[%s3871_s28 + $0x40] sm:$0x3] }
  0xbc   : > { %v3837_v40 = vpop.permute.xlu1 %596  ;;  %v3839_v5 = vpop.permute.xlu0 %591 }
  0xbd   : > { %6327 = vst [vmem:[#allocation16_spill] sm:$0xff] %v3837_v40  ;;  %6328 = vst [vmem:[#allocation15_spill] sm:$0xff] %v3839_v5  ;;  %1184 = vperm.xlu1 %3289, %v6329_v20   ;;  %1180 = vperm.xlu0 %3288, %v6330_v27  }
  0xc0   : > { %v3843_v62 = vpop.permute.xlu1 %606  ;;  %v3845_v29 = vpop.permute.xlu0 %601 }
  0xc1   : > { %6331 = vst [vmem:[#allocation17_spill] sm:$0xff] %v3843_v62  ;;  %6332 = vst [vmem:[#allocation18_spill] sm:$0xff] %v3845_v29  ;;  %1192 = vperm.xlu1 %3289, %v6333_v6   ;;  %1188 = vperm.xlu0 %3288, %v6334_v28   ;;  %v3952_v6 = vld [vmem:[%s3871_s28 + $0x98] sm:$0xff]  ;;  %v3955_v28 = vld [vmem:[%s3871_s28 + $0x90] sm:$0xff]  ;;  %v1550_v29 = vrot.slane %v3895_v9, 1 }
  0xc4   : > { %v3849_v63 = vpop.permute.xlu1 %616  ;;  %v3851_v57 = vpop.permute.xlu0 %611 }
  0xc5   : > { %6335 = vst [vmem:[#allocation19_spill] sm:$0xff] %v3849_v63  ;;  %6336 = vst [vmem:[#allocation20_spill] sm:$0xff] %v3851_v57  ;;  %1200 = vperm.xlu1 %3289, %v6337_v34   ;;  %1196 = vperm.xlu0 %3288, %v6338_v45   ;;  %v4072_v57 = vld [vmem:[%s3871_s28 + $0x28] sm:$0x3]  ;;  %v1551_v63 = vrot.slane %v3892_v42, 1 }
  0xc6   : > { %v1553_v40 = vrot.slane %v4072_v57, 1 }
  0xc8   : > { %v3855_v39 = vpop.permute.xlu1 %626  ;;  %v3857_v53 = vpop.permute.xlu0 %621  ;;  %v1554_v60 = vsel %vm735_vm1, %v1551_v63, %v1553_v40  ;;  %v1557_v40 = vsel %vm735_vm1, %v1555_v32, %v1556_v56 }
  0xc9   : > { %6339 = vst [vmem:[#allocation21_spill] sm:$0xff] %v3855_v39  ;;  %6340 = vst [vmem:[#allocation22_spill] sm:$0xff] %v3857_v53  ;;  %1208 = vperm.xlu1 %3289, %v6341_v7   ;;  %1204 = vperm.xlu0 %3288, %v6342_v30   ;;  %v3964_v7 = vld [vmem:[%s3871_s28 + $0xb0] sm:$0xff]  ;;  %v3967_v30 = vld [vmem:[%s3871_s28 + $0xa8] sm:$0xff] }
  0xca   : > { %v4068_v53 = vld [vmem:[%s3871_s28 + $0x168] sm:$0xff] }
  0xcc   : > { %v3861_v47 = vpop.permute.xlu1 %636  ;;  %v3863_v24 = vpop.permute.xlu0 %631 }
  0xcd   : > { %6343 = vst [vmem:[#allocation23_spill] sm:$0xff] %v3861_v47  ;;  %6344 = vst [vmem:[#allocation24_spill] sm:$0xff] %v3863_v24  ;;  %1216 = vperm.xlu1 %3289, %v3678_v19   ;;  %1212 = vperm.xlu0 %3288, %v6345_v38   ;;  %v6348_v19 = vld [vmem:[#allocation26_spill] sm:$0xff]  ;;  %v4065_v47 = vld [vmem:[%s3871_s28 + $0x170] sm:$0xff] }
  0xd0   : > { %v3873_v8 = vpop.permute.xlu1 %646  ;;  %v3875_v22 = vpop.permute.xlu0 %641 }
  0xd1   : > { %6346 = vst [vmem:[#allocation25_spill] sm:$0xff] %v3873_v8  ;;  %6347 = vst [vmem:[#allocation33_spill] sm:$0xff] %v3875_v22  ;;  %1224 = vperm.xlu1 %3289, %v3693_v0   ;;  %1220 = vperm.xlu0 %3288, %v6348_v19   ;;  %v4054_v22 = vld [vmem:[%s3871_s28 + $0x10] sm:$0x3] }
  0xd2   : > { %v1548_v39 = vrot.slane %v4054_v22, 1 }
  0xd4   : > { %v3885_v18 = vpop.permute.xlu1 %823  ;;  %v3887_v46 = vpop.permute.xlu0 %819 }
  0xd5   : > { %6349 = vst [vmem:[#allocation26_spill] sm:$0xff] %v3885_v18  ;;  %6350 = vst [vmem:[#allocation34_spill] sm:$0xff] %v3887_v46  ;;  %1306 = vperm.xlu1 %3289, %v3880_v44   ;;  %1301 = vperm.xlu0 %3288, %v3883_v51  }
  0xd8   : > { %v3897_v0 = vpop.permute.xlu1 %831  ;;  %v3899_v2 = vpop.permute.xlu0 %827 }
  0xd9   : > { %6351 = vst [vmem:[#allocation35_spill] sm:$0xff] %v3897_v0  ;;  %6352 = vst [vmem:[#allocation36_spill] sm:$0xff] %v3899_v2  ;;  %1316 = vperm.xlu1 %3289, %v3892_v42   ;;  %1311 = vperm.xlu0 %3288, %v3895_v9  }
  0xdc   : > { %v3909_v48 = vpop.permute.xlu1 %839  ;;  %v3911_v12 = vpop.permute.xlu0 %835 }
  0xdd   : > { %6353 = vst [vmem:[#allocation37_spill] sm:$0xff] %v3909_v48  ;;  %6354 = vst [vmem:[#allocation38_spill] sm:$0xff] %v3911_v12  ;;  %1326 = vperm.xlu1 %3289, %v3904_v43   ;;  %1321 = vperm.xlu0 %3288, %v3907_v11  }
  0xe0   : > { %v3921_v16 = vpop.permute.xlu1 %847  ;;  %v3923_v59 = vpop.permute.xlu0 %843 }
  0xe1   : > { %6355 = vst [vmem:[#allocation39_spill] sm:$0xff] %v3921_v16  ;;  %6356 = vst [vmem:[#allocation40_spill] sm:$0xff] %v3923_v59  ;;  %1336 = vperm.xlu1 %3289, %v3916_v54   ;;  %1331 = vperm.xlu0 %3288, %v3919_v13  }
  0xe4   : > { %v3933_v3 = vpop.permute.xlu1 %855  ;;  %v3935_v35 = vpop.permute.xlu0 %851 }
  0xe5   : > { %6357 = vst [vmem:[#allocation41_spill] sm:$0xff] %v3933_v3  ;;  %6358 = vst [vmem:[#allocation42_spill] sm:$0xff] %v3935_v35  ;;  %1346 = vperm.xlu1 %3289, %v3928_v31   ;;  %1341 = vperm.xlu0 %3288, %v3931_v25  }
  0xe8   : > { %v3945_v20 = vpop.permute.xlu1 %863  ;;  %v3947_v27 = vpop.permute.xlu0 %859 }
  0xe9   : > { %6359 = vst [vmem:[#allocation43_spill] sm:$0xff] %v3945_v20  ;;  %6360 = vst [vmem:[#allocation44_spill] sm:$0xff] %v3947_v27  ;;  %1356 = vperm.xlu1 %3289, %v3940_v36   ;;  %1351 = vperm.xlu0 %3288, %v3943_v41  }
  0xec   : > { %v3957_v34 = vpop.permute.xlu1 %871  ;;  %v3959_v45 = vpop.permute.xlu0 %867 }
  0xed   : > { %6361 = vst [vmem:[#allocation45_spill] sm:$0xff] %v3957_v34  ;;  %6362 = vst [vmem:[#allocation46_spill] sm:$0xff] %v3959_v45  ;;  %1366 = vperm.xlu1 %3289, %v3952_v6   ;;  %1361 = vperm.xlu0 %3288, %v3955_v28   ;;  %v3976_v45 = vld [vmem:[%s3871_s28 + $0xc8] sm:$0xff]  ;;  %v3979_v34 = vld [vmem:[%s3871_s28 + $0xc0] sm:$0xff] }
  0xf0   : > { %v3969_v38 = vpop.permute.xlu1 %879  ;;  %v3971_v19 = vpop.permute.xlu0 %875 }
  0xf1   : > { %6363 = vst [vmem:[#allocation47_spill] sm:$0xff] %v3969_v38  ;;  %6364 = vst [vmem:[#allocation48_spill] sm:$0xff] %v3971_v19  ;;  %1376 = vperm.xlu1 %3289, %v3964_v7   ;;  %1371 = vperm.xlu0 %3288, %v3967_v30   ;;  %v3988_v19 = vld [vmem:[%s3871_s28 + $0xe0] sm:$0xff]  ;;  %v3991_v38 = vld [vmem:[%s3871_s28 + $0xd8] sm:$0xff] }
  0xf4   : > { %v3981_v27 = vpop.permute.xlu1 %887  ;;  %v3983_v20 = vpop.permute.xlu0 %883 }
  0xf5   : > { %6365 = vst [vmem:[#allocation49_spill] sm:$0xff] %v3981_v27  ;;  %6366 = vst [vmem:[#allocation50_spill] sm:$0xff] %v3983_v20  ;;  %1386 = vperm.xlu1 %3289, %v3976_v45   ;;  %1381 = vperm.xlu0 %3288, %v3979_v34   ;;  %v4000_v20 = vld [vmem:[%s3871_s28 + $0xf8] sm:$0xff]  ;;  %v4003_v27 = vld [vmem:[%s3871_s28 + $0xf0] sm:$0xff] }
  0xf8   : > { %v3993_v35 = vpop.permute.xlu1 %895  ;;  %v3995_v3 = vpop.permute.xlu0 %891 }
  0xf9   : > { %6367 = vst [vmem:[#allocation51_spill] sm:$0xff] %v3993_v35  ;;  %6368 = vst [vmem:[#allocation52_spill] sm:$0xff] %v3995_v3  ;;  %1396 = vperm.xlu1 %3289, %v3988_v19   ;;  %1391 = vperm.xlu0 %3288, %v3991_v38   ;;  %v4012_v3 = vld [vmem:[%s3871_s28 + $0x110] sm:$0xff]  ;;  %v4015_v35 = vld [vmem:[%s3871_s28 + $0x108] sm:$0xff] }
  0xfc   : > { %v4005_v59 = vpop.permute.xlu1 %903  ;;  %v4007_v16 = vpop.permute.xlu0 %899 }
  0xfd   : > { %6369 = vst [vmem:[#allocation53_spill] sm:$0xff] %v4005_v59  ;;  %6370 = vst [vmem:[#allocation54_spill] sm:$0xff] %v4007_v16  ;;  %1406 = vperm.xlu1 %3289, %v4000_v20   ;;  %1401 = vperm.xlu0 %3288, %v4003_v27   ;;  %v4024_v16 = vld [vmem:[%s3871_s28 + $0x128] sm:$0xff]  ;;  %v4027_v59 = vld [vmem:[%s3871_s28 + $0x120] sm:$0xff] }
 0x100   : > { %v4017_v12 = vpop.permute.xlu1 %911  ;;  %v4019_v48 = vpop.permute.xlu0 %907 }
 0x101   : > { %6371 = vst [vmem:[#allocation55_spill] sm:$0xff] %v4017_v12  ;;  %6372 = vst [vmem:[#allocation56_spill] sm:$0xff] %v4019_v48  ;;  %1416 = vperm.xlu1 %3289, %v4012_v3   ;;  %1411 = vperm.xlu0 %3288, %v4015_v35   ;;  %v4036_v48 = vld [vmem:[%s3871_s28 + $0x140] sm:$0xff]  ;;  %v4039_v12 = vld [vmem:[%s3871_s28 + $0x138] sm:$0xff] }
 0x104   : > { %v4029_v2 = vpop.permute.xlu1 %919  ;;  %v4031_v0 = vpop.permute.xlu0 %915 }
 0x105   : > { %6373 = vst [vmem:[#allocation57_spill] sm:$0xff] %v4029_v2  ;;  %6374 = vst [vmem:[#allocation58_spill] sm:$0xff] %v4031_v0  ;;  %1426 = vperm.xlu1 %3289, %v4024_v16   ;;  %1421 = vperm.xlu0 %3288, %v4027_v59   ;;  %v4048_v0 = vld [vmem:[%s3871_s28 + $0x158] sm:$0xff]  ;;  %v4051_v2 = vld [vmem:[%s3871_s28 + $0x150] sm:$0xff] }
 0x108   : > { %v4041_v46 = vpop.permute.xlu1 %927  ;;  %v4043_v18 = vpop.permute.xlu0 %923 }
 0x109   : > { %6375 = vst [vmem:[#allocation59_spill] sm:$0xff] %v4041_v46  ;;  %6376 = vst [vmem:[#allocation60_spill] sm:$0xff] %v4043_v18  ;;  %1436 = vperm.xlu1 %3289, %v4036_v48   ;;  %1431 = vperm.xlu0 %3288, %v4039_v12   ;;  %v1546_v18 = vrot.slane %v3880_v44, 1  ;;  %v1545_v46 = vrot.slane %v3883_v51, 1 }
 0x10b   : > { %v1549_v62 = vsel %vm735_vm1, %v1546_v18, %v1548_v39  ;;  %v1547_v5 = vsel %vm735_vm1, %v1545_v46, %v1546_v18  ;;  %v1552_v39 = vsel %vm735_vm1, %v1550_v29, %v1551_v63  ;;  %v1558_v18 = vrot.slane %v4086_v15, 1  ;;  %v4098_v46 = vld [vmem:[%s3871_s28 + $0x58] sm:$0x3]  ;;  %v4110_v63 = vld [vmem:[%s3871_s28 + $0x70] sm:$0x3] }
 0x10c   : > { %v4056_v8 = vpop.permute.xlu1 %935  ;;  %v4058_v24 = vpop.permute.xlu0 %931  ;;  %v1563_v29 = vrot.slane %v4098_v46, 1  ;;  %v1568_v32 = vrot.slane %v4110_v63, 1 }
 0x10d   : > { %6377 = vst [vmem:[#allocation61_spill] sm:$0xff] %v4056_v8  ;;  %6378 = vst [vmem:[#allocation62_spill] sm:$0xff] %v4058_v24  ;;  %1446 = vperm.xlu1 %3289, %v4048_v0   ;;  %1441 = vperm.xlu0 %3288, %v4051_v2  }
 0x110   : > { %v4074_v8 = vpop.permute.xlu1 %943  ;;  %v4076_v24 = vpop.permute.xlu0 %939 }
 0x111   : > { %6379 = vst [vmem:[#allocation63_spill] sm:$0xff] %v4074_v8  ;;  %6380 = vst [vmem:[#allocation64_spill] sm:$0xff] %v4076_v24  ;;  %1456 = vperm.xlu1 %3289, %v4065_v47   ;;  %1451 = vperm.xlu0 %3288, %v4068_v53  }
 0x114   : > { %v4088_v8 = vpop.permute.xlu1 %1104  ;;  %v4090_v24 = vpop.permute.xlu0 %1100 }
 0x115   : > { %6381 = vst [vmem:[#allocation65_spill] sm:$0xff] %v4088_v8  ;;  %6382 = vst [vmem:[#allocation66_spill] sm:$0xff] %v4090_v24  ;;  %1632 = vperm.xlu1 %3289, %v1549_v62   ;;  %1628 = vperm.xlu0 %3288, %v1547_v5   ;;  %v1561_v24 = vrot.slane %v3916_v54, 1  ;;  %v1560_v5 = vrot.slane %v3919_v13, 1  ;;  %v1559_v62 = vsel %vm735_vm1, %v1556_v56, %v1558_v18  ;;  %v4122_v56 = vld [vmem:[%s3871_s28 + $0x88] sm:$0x3] }
 0x117   : > { %v1562_v18 = vsel %vm735_vm1, %v1560_v5, %v1561_v24  ;;  %v4134_v5 = vld [vmem:[%s3871_s28 + $0xa0] sm:$0x3] }
 0x118   : > { %v4100_v1 = vpop.permute.xlu1 %1112  ;;  %v4102_v8 = vpop.permute.xlu0 %1108 }
 0x119   : > { %6383 = vst [vmem:[#allocation67_spill] sm:$0xff] %v4100_v1  ;;  %6384 = vst [vmem:[#allocation68_spill] sm:$0xff] %v4102_v8  ;;  %1640 = vperm.xlu1 %3289, %v1554_v60   ;;  %1636 = vperm.xlu0 %3288, %v1552_v39   ;;  %v1566_v8 = vrot.slane %v3928_v31, 1  ;;  %v1565_v60 = vrot.slane %v3931_v25, 1  ;;  %v1564_v39 = vsel %vm735_vm1, %v1561_v24, %v1563_v29  ;;  %v1573_v24 = vrot.slane %v4122_v56, 1 }
 0x11b   : > { %v1567_v29 = vsel %vm735_vm1, %v1565_v60, %v1566_v8  ;;  %v4146_v60 = vld [vmem:[%s3871_s28 + $0xb8] sm:$0x3] }
 0x11c   : > { %v4112_v26 = vpop.permute.xlu1 %1120  ;;  %v4114_v1 = vpop.permute.xlu0 %1116 }
 0x11d   : > { %6385 = vst [vmem:[#allocation69_spill] sm:$0xff] %v4112_v26  ;;  %6386 = vst [vmem:[#allocation70_spill] sm:$0xff] %v4114_v1  ;;  %1648 = vperm.xlu1 %3289, %v1559_v62   ;;  %1644 = vperm.xlu0 %3288, %v1557_v40   ;;  %v1571_v1 = vrot.slane %v3940_v36, 1  ;;  %v1570_v62 = vrot.slane %v3943_v41, 1  ;;  %v1569_v40 = vsel %vm735_vm1, %v1566_v8, %v1568_v32  ;;  %v1578_v8 = vrot.slane %v4134_v5, 1 }
 0x11f   : > { %v1572_v32 = vsel %vm735_vm1, %v1570_v62, %v1571_v1  ;;  %v4158_v62 = vld [vmem:[%s3871_s28 + $0xd0] sm:$0x3] }
 0x120   : > { %v4124_v14 = vpop.permute.xlu1 %1128  ;;  %v4126_v26 = vpop.permute.xlu0 %1124 }
 0x121   : > { %6387 = vst [vmem:[#allocation71_spill] sm:$0xff] %v4124_v14  ;;  %6388 = vst [vmem:[#allocation72_spill] sm:$0xff] %v4126_v26  ;;  %1656 = vperm.xlu1 %3289, %v1564_v39   ;;  %1652 = vperm.xlu0 %3288, %v1562_v18   ;;  %v1576_v26 = vrot.slane %v3952_v6, 1  ;;  %v1575_v39 = vrot.slane %v3955_v28, 1  ;;  %v1574_v18 = vsel %vm735_vm1, %v1571_v1, %v1573_v24  ;;  %v1583_v1 = vrot.slane %v4146_v60, 1 }
 0x123   : > { %v1577_v24 = vsel %vm735_vm1, %v1575_v39, %v1576_v26  ;;  %v4170_v39 = vld [vmem:[%s3871_s28 + $0xe8] sm:$0x3] }
 0x124   : > { %v4136_v52 = vpop.permute.xlu1 %1136  ;;  %v4138_v14 = vpop.permute.xlu0 %1132 }
 0x125   : > { %6389 = vst [vmem:[#allocation73_spill] sm:$0xff] %v4136_v52  ;;  %6390 = vst [vmem:[#allocation74_spill] sm:$0xff] %v4138_v14  ;;  %1664 = vperm.xlu1 %3289, %v1569_v40   ;;  %1660 = vperm.xlu0 %3288, %v1567_v29   ;;  %v1581_v14 = vrot.slane %v3964_v7, 1  ;;  %v1580_v40 = vrot.slane %v3967_v30, 1  ;;  %v1579_v29 = vsel %vm735_vm1, %v1576_v26, %v1578_v8  ;;  %v1588_v26 = vrot.slane %v4158_v62, 1 }
 0x127   : > { %v1582_v8 = vsel %vm735_vm1, %v1580_v40, %v1581_v14  ;;  %v4182_v40 = vld [vmem:[%s3871_s28 + $0x100] sm:$0x3] }
 0x128   : > { %v4148_v61 = vpop.permute.xlu1 %1144  ;;  %v4150_v52 = vpop.permute.xlu0 %1140 }
 0x129   : > { %6391 = vst [vmem:[#allocation75_spill] sm:$0xff] %v4148_v61  ;;  %6392 = vst [vmem:[#allocation76_spill] sm:$0xff] %v4150_v52  ;;  %1672 = vperm.xlu1 %3289, %v1574_v18   ;;  %1668 = vperm.xlu0 %3288, %v1572_v32   ;;  %v1586_v52 = vrot.slane %v3976_v45, 1  ;;  %v1585_v18 = vrot.slane %v3979_v34, 1  ;;  %v1584_v32 = vsel %vm735_vm1, %v1581_v14, %v1583_v1  ;;  %v1593_v14 = vrot.slane %v4170_v39, 1 }
 0x12b   : > { %v1587_v1 = vsel %vm735_vm1, %v1585_v18, %v1586_v52  ;;  %v4194_v18 = vld [vmem:[%s3871_s28 + $0x118] sm:$0x3] }
 0x12c   : > { %v4160_v37 = vpop.permute.xlu1 %1152  ;;  %v4162_v61 = vpop.permute.xlu0 %1148 }
 0x12d   : > { %6393 = vst [vmem:[#allocation77_spill] sm:$0xff] %v4160_v37  ;;  %6394 = vst [vmem:[#allocation78_spill] sm:$0xff] %v4162_v61  ;;  %1680 = vperm.xlu1 %3289, %v1579_v29   ;;  %1676 = vperm.xlu0 %3288, %v1577_v24   ;;  %v1591_v61 = vrot.slane %v3988_v19, 1  ;;  %v1590_v29 = vrot.slane %v3991_v38, 1  ;;  %v1589_v24 = vsel %vm735_vm1, %v1586_v52, %v1588_v26  ;;  %v1598_v52 = vrot.slane %v4182_v40, 1 }
 0x12f   : > { %v1592_v26 = vsel %vm735_vm1, %v1590_v29, %v1591_v61  ;;  %v4206_v29 = vld [vmem:[%s3871_s28 + $0x130] sm:$0x3] }
 0x130   : > { %v4172_v55 = vpop.permute.xlu1 %1160  ;;  %v4174_v37 = vpop.permute.xlu0 %1156 }
 0x131   : > { %6395 = vst [vmem:[#allocation79_spill] sm:$0xff] %v4172_v55  ;;  %6396 = vst [vmem:[#allocation80_spill] sm:$0xff] %v4174_v37  ;;  %1688 = vperm.xlu1 %3289, %v1584_v32   ;;  %1684 = vperm.xlu0 %3288, %v1582_v8   ;;  %v1596_v37 = vrot.slane %v4000_v20, 1  ;;  %v1595_v32 = vrot.slane %v4003_v27, 1  ;;  %v1594_v8 = vsel %vm735_vm1, %v1591_v61, %v1593_v14  ;;  %v1603_v61 = vrot.slane %v4194_v18, 1 }
 0x133   : > { %v1597_v14 = vsel %vm735_vm1, %v1595_v32, %v1596_v37  ;;  %v4218_v32 = vld [vmem:[%s3871_s28 + $0x148] sm:$0x3] }
 0x134   : > { %v4184_v4 = vpop.permute.xlu1 %1168  ;;  %v4186_v55 = vpop.permute.xlu0 %1164 }
 0x135   : > { %6397 = vst [vmem:[#allocation81_spill] sm:$0xff] %v4184_v4  ;;  %6398 = vst [vmem:[#allocation82_spill] sm:$0xff] %v4186_v55  ;;  %1696 = vperm.xlu1 %3289, %v1589_v24   ;;  %1692 = vperm.xlu0 %3288, %v1587_v1   ;;  %v1601_v55 = vrot.slane %v4012_v3, 1  ;;  %v1600_v24 = vrot.slane %v4015_v35, 1  ;;  %v1599_v1 = vsel %vm735_vm1, %v1596_v37, %v1598_v52  ;;  %v1608_v37 = vrot.slane %v4206_v29, 1 }
 0x137   : > { %v1602_v52 = vsel %vm735_vm1, %v1600_v24, %v1601_v55  ;;  %v4230_v24 = vld [vmem:[%s3871_s28 + $0x160] sm:$0x3] }
 0x138   : > { %v4196_v50 = vpop.permute.xlu1 %1176  ;;  %v4198_v4 = vpop.permute.xlu0 %1172 }
 0x139   : > { %6399 = vst [vmem:[#allocation83_spill] sm:$0xff] %v4196_v50  ;;  %6400 = vst [vmem:[#allocation84_spill] sm:$0xff] %v4198_v4  ;;  %1704 = vperm.xlu1 %3289, %v1594_v8   ;;  %1700 = vperm.xlu0 %3288, %v1592_v26   ;;  %v1606_v4 = vrot.slane %v4024_v16, 1  ;;  %v1605_v8 = vrot.slane %v4027_v59, 1  ;;  %v1604_v26 = vsel %vm735_vm1, %v1601_v55, %v1603_v61  ;;  %v1613_v55 = vrot.slane %v4218_v32, 1 }
 0x13b   : > { %v1607_v61 = vsel %vm735_vm1, %v1605_v8, %v1606_v4  ;;  %v4242_v8 = vld [vmem:[%s3871_s28 + $0x178] sm:$0x3] }
 0x13c   : > { %v4208_v49 = vpop.permute.xlu1 %1184  ;;  %v4210_v50 = vpop.permute.xlu0 %1180 }
 0x13d   : > { %6401 = vst [vmem:[#allocation85_spill] sm:$0xff] %v4208_v49  ;;  %6402 = vst [vmem:[#allocation86_spill] sm:$0xff] %v4210_v50  ;;  %1712 = vperm.xlu1 %3289, %v1599_v1   ;;  %1708 = vperm.xlu0 %3288, %v1597_v14   ;;  %v1611_v50 = vrot.slane %v4036_v48, 1  ;;  %v1610_v1 = vrot.slane %v4039_v12, 1  ;;  %v1609_v14 = vsel %vm735_vm1, %v1606_v4, %v1608_v37  ;;  %v1618_v4 = vrot.slane %v4230_v24, 1 }
 0x13f   : > { %v1612_v37 = vsel %vm735_vm1, %v1610_v1, %v1611_v50 }
 0x140   : > { %v4220_v10 = vpop.permute.xlu1 %1192  ;;  %v4222_v49 = vpop.permute.xlu0 %1188 }
 0x141   : > { %6403 = vst [vmem:[#allocation87_spill] sm:$0xff] %v4220_v10  ;;  %6404 = vst [vmem:[#allocation88_spill] sm:$0xff] %v4222_v49  ;;  %1720 = vperm.xlu1 %3289, %v1604_v26   ;;  %1716 = vperm.xlu0 %3288, %v1602_v52   ;;  %v1616_v49 = vrot.slane %v4048_v0, 1  ;;  %v1615_v26 = vrot.slane %v4051_v2, 1  ;;  %v1614_v52 = vsel %vm735_vm1, %v1611_v50, %v1613_v55  ;;  %v1623_v50 = vrot.slane %v4242_v8, 1 }
 0x143   : > { %v1617_v55 = vsel %vm735_vm1, %v1615_v26, %v1616_v49  ;;  %v1831_v26 = vrot.slane %v3892_v42, 2  ;;  %v1835_v42 = vrot.slane %v3907_v11, 2 }
 0x144   : > { %v4232_v33 = vpop.permute.xlu1 %1200  ;;  %v4234_v10 = vpop.permute.xlu0 %1196 }
 0x145   : > { %6405 = vst [vmem:[#allocation89_spill] sm:$0xff] %v4232_v33  ;;  %6406 = vst [vmem:[#allocation90_spill] sm:$0xff] %v4234_v10  ;;  %1728 = vperm.xlu1 %3289, %v1609_v14   ;;  %1724 = vperm.xlu0 %3288, %v1607_v61   ;;  %v1621_v10 = vrot.slane %v4065_v47, 1  ;;  %v1620_v14 = vrot.slane %v4068_v53, 1  ;;  %v1619_v61 = vsel %vm735_vm1, %v1616_v49, %v1618_v4  ;;  %v1828_v4 = vrot.slane %v4054_v22, 2 }
 0x146   : > { %v1836_v22 = vrot.slane %v3904_v43, 2 }
 0x148   : > { %v4244_v23 = vpop.permute.xlu1 %1208  ;;  %v4246_v58 = vpop.permute.xlu0 %1204  ;;  %v1837_v11 = vsel %vm1016_vm0, %v1835_v42, %v1836_v22 }
 0x149   : > { %6407 = vst [vmem:[#allocation91_spill] sm:$0xff] %v4244_v23  ;;  %6408 = vst [vmem:[#allocation92_spill] sm:$0xff] %v4246_v58  ;;  %1736 = vperm.xlu1 %3289, %v1614_v52   ;;  %1732 = vperm.xlu0 %3288, %v1612_v37   ;;  %v1826_v23 = vrot.slane %v3880_v44, 2  ;;  %v1825_v58 = vrot.slane %v3883_v51, 2  ;;  %v1624_v52 = vsel %vm735_vm1, %v1621_v10, %v1623_v50  ;;  %v1830_v44 = vrot.slane %v3895_v9, 2 }
 0x14a   : > { %v1622_v37 = vsel %vm735_vm1, %v1620_v14, %v1621_v10 }
 0x14b   : > { %v1827_v51 = vsel %vm1016_vm0, %v1825_v58, %v1826_v23  ;;  %v1832_v9 = vsel %vm1016_vm0, %v1830_v44, %v1831_v26 }
 0x14c   : > { %v4253_v1 = vpop.permute.xlu1 %1216  ;;  %v4255_v33 = vpop.permute.xlu0 %1212 }
 0x14d   : > { %6409 = vst [vmem:[#allocation93_spill] sm:$0xff] %v4253_v1  ;;  %6410 = vst [vmem:[#allocation94_spill] sm:$0xff] %v4255_v33  ;;  %1744 = vperm.xlu1 %3289, %v1619_v61   ;;  %1740 = vperm.xlu0 %3288, %v1617_v55   ;;  %v1829_v61 = vsel %vm1016_vm0, %v1826_v23, %v1828_v4  ;;  %v1833_v55 = vrot.slane %v4072_v57, 2  ;;  %v1841_v23 = vrot.slane %v3916_v54, 2  ;;  %v1840_v57 = vrot.slane %v3919_v13, 2  ;;  %v6519_v33 = vld [vmem:[#allocation31_spill] sm:$0xff] }
 0x14e   : > { %v1843_v4 = vrot.slane %v4098_v46, 2  ;;  %v1845_v54 = vrot.slane %v3931_v25, 2  ;;  %v1851_v46 = vrot.slane %v3940_v36, 2  ;;  %v1855_v36 = vrot.slane %v3955_v28, 2  ;;  %v4762_v1 = vld [vmem:[%s4407_s6 + $0x130] sm:$0x3] }
 0x14f   : > { %v1834_v14 = vsel %vm1016_vm0, %v1831_v26, %v1833_v55  ;;  %v1842_v13 = vsel %vm1016_vm0, %v1840_v57, %v1841_v23  ;;  %v1858_v57 = vrot.slane %v4134_v5, 2  ;;  %v1866_v5 = vrot.slane %v3976_v45, 2 }
 0x150   : > { %v4262_v21 = vpop.permute.xlu1 %1224  ;;  %v4264_v49 = vpop.permute.xlu0 %1220  ;;  %v1844_v44 = vsel %vm1016_vm0, %v1841_v23, %v1843_v4  ;;  %v1870_v45 = vrot.slane %v3991_v38, 2 }
 0x151   : > { %6411 = vst [vmem:[#allocation95_spill] sm:$0xff] %v4262_v21  ;;  %6412 = vst [vmem:[#allocation96_spill] sm:$0xff] %v4264_v49  ;;  %1752 = vperm.xlu1 %3289, %v1624_v52   ;;  %1748 = vperm.xlu0 %3288, %v1622_v37   ;;  %v1838_v52 = vrot.slane %v4086_v15, 2  ;;  %v1846_v15 = vrot.slane %v3928_v31, 2  ;;  %v1850_v31 = vrot.slane %v3943_v41, 2 }
 0x153   : > { %v1839_v43 = vsel %vm1016_vm0, %v1836_v22, %v1838_v52  ;;  %v1847_v25 = vsel %vm1016_vm0, %v1845_v54, %v1846_v15  ;;  %v1852_v41 = vsel %vm1016_vm0, %v1850_v31, %v1851_v46 }
 0x154   : > { %v4271_v50 = vpop.permute.xlu1 %1306  ;;  %v4273_v10 = vpop.permute.xlu0 %1301 }
 0x155   : > { %6413 = vst [vmem:[#allocation97_spill] sm:$0xff] %v4271_v50  ;;  %6414 = vst [vmem:[#allocation98_spill] sm:$0xff] %v4273_v10  ;;  %1912 = vperm.xlu1 %3289, %v1829_v61   ;;  %1908 = vperm.xlu0 %3288, %v1827_v51   ;;  %v1848_v51 = vrot.slane %v4110_v63, 2  ;;  %v1856_v63 = vrot.slane %v3952_v6, 2  ;;  %v1860_v6 = vrot.slane %v3967_v30, 2 }
 0x157   : > { %v1849_v42 = vsel %vm1016_vm0, %v1846_v15, %v1848_v51  ;;  %v1859_v4 = vsel %vm1016_vm0, %v1856_v63, %v1858_v57  ;;  %v1857_v28 = vsel %vm1016_vm0, %v1855_v36, %v1856_v63  ;;  %v1863_v15 = vrot.slane %v4146_v60, 2 }
 0x158   : > { %v4280_v37 = vpop.permute.xlu1 %1316  ;;  %v4282_v58 = vpop.permute.xlu0 %1311  ;;  %v1868_v51 = vrot.slane %v4158_v62, 2  ;;  %v1871_v60 = vrot.slane %v3988_v19, 2  ;;  %v1876_v62 = vrot.slane %v4000_v20, 2  ;;  %v1875_v19 = vrot.slane %v4003_v27, 2 }
 0x159   : > { %6415 = vst [vmem:[#allocation99_spill] sm:$0xff] %v4280_v37  ;;  %6416 = vst [vmem:[#allocation100_spill] sm:$0xff] %v4282_v58  ;;  %1920 = vperm.xlu1 %3289, %v1834_v14   ;;  %1916 = vperm.xlu0 %3288, %v1832_v9   ;;  %v1853_v14 = vrot.slane %v4122_v56, 2  ;;  %v1861_v56 = vrot.slane %v3964_v7, 2  ;;  %v1865_v7 = vrot.slane %v3979_v34, 2  ;;  %v1880_v20 = vrot.slane %v4015_v35, 2 }
 0x15a   : > { %v1872_v38 = vsel %vm1016_vm0, %v1870_v45, %v1871_v60  ;;  %v1877_v27 = vsel %vm1016_vm0, %v1875_v19, %v1876_v62 }
 0x15b   : > { %v1854_v23 = vsel %vm1016_vm0, %v1851_v46, %v1853_v14  ;;  %v1862_v30 = vsel %vm1016_vm0, %v1860_v6, %v1861_v56  ;;  %v1867_v34 = vsel %vm1016_vm0, %v1865_v7, %v1866_v5  ;;  %v1883_v6 = vrot.slane %v4194_v18, 2 }
 0x15c   : > { %v4289_v61 = vpop.permute.xlu1 %1326  ;;  %v4291_v26 = vpop.permute.xlu0 %1321  ;;  %v1891_v18 = vrot.slane %v4036_v48, 2  ;;  %v1895_v48 = vrot.slane %v4051_v2, 2 }
 0x15d   : > { %6417 = vst [vmem:[#allocation101_spill] sm:$0xff] %v4289_v61  ;;  %6418 = vst [vmem:[#allocation102_spill] sm:$0xff] %v4291_v26  ;;  %1928 = vperm.xlu1 %3289, %v1839_v43   ;;  %1924 = vperm.xlu0 %3288, %v1837_v11  }
 0x160   : > { %v4298_v55 = vpop.permute.xlu1 %1336  ;;  %v4300_v22 = vpop.permute.xlu0 %1331 }
 0x161   : > { %6419 = vst [vmem:[#allocation103_spill] sm:$0xff] %v4298_v55  ;;  %6420 = vst [vmem:[#allocation104_spill] sm:$0xff] %v4300_v22  ;;  %1936 = vperm.xlu1 %3289, %v1844_v44   ;;  %1932 = vperm.xlu0 %3288, %v1842_v13   ;;  %v1864_v13 = vsel %vm1016_vm0, %v1861_v56, %v1863_v15 }
 0x164   : > { %v4307_v9 = vpop.permute.xlu1 %1346  ;;  %v4309_v52 = vpop.permute.xlu0 %1341 }
 0x165   : > { %6421 = vst [vmem:[#allocation105_spill] sm:$0xff] %v4307_v9  ;;  %6422 = vst [vmem:[#allocation106_spill] sm:$0xff] %v4309_v52  ;;  %1944 = vperm.xlu1 %3289, %v1849_v42   ;;  %1940 = vperm.xlu0 %3288, %v1847_v25   ;;  %v1869_v42 = vsel %vm1016_vm0, %v1866_v5, %v1868_v51  ;;  %v1873_v25 = vrot.slane %v4170_v39, 2  ;;  %v1881_v39 = vrot.slane %v4012_v3, 2  ;;  %v1885_v3 = vrot.slane %v4027_v59, 2 }
 0x166   : > { %v1888_v5 = vrot.slane %v4206_v29, 2  ;;  %v1893_v51 = vrot.slane %v4218_v32, 2  ;;  %v1896_v29 = vrot.slane %v4048_v0, 2  ;;  %v1900_v0 = vrot.slane %v4068_v53, 2 }
 0x167   : > { %v1874_v36 = vsel %vm1016_vm0, %v1871_v60, %v1873_v25  ;;  %v1884_v15 = vsel %vm1016_vm0, %v1881_v39, %v1883_v6  ;;  %v1882_v35 = vsel %vm1016_vm0, %v1880_v20, %v1881_v39  ;;  %v4414_v39 = vld [vmem:[%s4407_s6 + $0x8] sm:$0xff]  ;;  %v4417_v20 = vld [vmem:[%s4407_s6] sm:$0xff] }
 0x168   : > { %v4316_v43 = vpop.permute.xlu1 %1356  ;;  %v4318_v11 = vpop.permute.xlu0 %1351  ;;  %v1897_v2 = vsel %vm1016_vm0, %v1895_v48, %v1896_v29  ;;  %v4426_v6 = vld [vmem:[%s4407_s6 + $0x20] sm:$0xff]  ;;  %v4462_v48 = vld [vmem:[%s4407_s6 + $0x68] sm:$0xff] }
 0x169   : > { %6423 = vst [vmem:[#allocation107_spill] sm:$0xff] %v4316_v43  ;;  %6424 = vst [vmem:[#allocation108_spill] sm:$0xff] %v4318_v11  ;;  %1952 = vperm.xlu1 %3289, %v1854_v23   ;;  %1948 = vperm.xlu0 %3288, %v1852_v41   ;;  %v1878_v23 = vrot.slane %v4182_v40, 2  ;;  %v1886_v40 = vrot.slane %v4024_v16, 2  ;;  %v1890_v16 = vrot.slane %v4039_v12, 2 }
 0x16b   : > { %v1879_v56 = vsel %vm1016_vm0, %v1876_v62, %v1878_v23  ;;  %v1887_v59 = vsel %vm1016_vm0, %v1885_v3, %v1886_v40  ;;  %v1892_v12 = vsel %vm1016_vm0, %v1890_v16, %v1891_v18  ;;  %v1901_v62 = vrot.slane %v4065_v47, 2 }
 0x16c   : > { %v4325_v54 = vpop.permute.xlu1 %1366  ;;  %v4327_v44 = vpop.permute.xlu0 %1361 }
 0x16d   : > { %6425 = vst [vmem:[#allocation109_spill] sm:$0xff] %v4325_v54  ;;  %6426 = vst [vmem:[#allocation110_spill] sm:$0xff] %v4327_v44  ;;  %1960 = vperm.xlu1 %3289, %v1859_v4   ;;  %1956 = vperm.xlu0 %3288, %v1857_v28   ;;  %v1902_v47 = vsel %vm1016_vm0, %v1900_v0, %v1901_v62  ;;  %v4477_v0 = vld [vmem:[%s4407_s6 + $0x78] sm:$0xff]  ;;  %v4620_v54 = vld [vmem:[%s4407_s6 + $0x40] sm:$0x3] }
 0x170   : > { %v4334_v46 = vpop.permute.xlu1 %1376  ;;  %v4336_v31 = vpop.permute.xlu0 %1371 }
 0x171   : > { %6427 = vst [vmem:[#allocation111_spill] sm:$0xff] %v4334_v46  ;;  %6428 = vst [vmem:[#allocation112_spill] sm:$0xff] %v4336_v31  ;;  %1968 = vperm.xlu1 %3289, %v1864_v13   ;;  %1964 = vperm.xlu0 %3288, %v1862_v30   ;;  %v1889_v30 = vsel %vm1016_vm0, %v1886_v40, %v1888_v5  ;;  %v4429_v40 = vld [vmem:[%s4407_s6 + $0x18] sm:$0xff]  ;;  %v4441_v5 = vld [vmem:[%s4407_s6 + $0x30] sm:$0xff] }
 0x172   : > { %v2358_v31 = vrot.slane %v4429_v40, 1 }
 0x174   : > { %v4343_v14 = vpop.permute.xlu1 %1386  ;;  %v4345_v63 = vpop.permute.xlu0 %1381 }
 0x175   : > { %6429 = vst [vmem:[#allocation113_spill] sm:$0xff] %v4343_v14  ;;  %6430 = vst [vmem:[#allocation114_spill] sm:$0xff] %v4345_v63  ;;  %1976 = vperm.xlu1 %3289, %v1869_v42   ;;  %1972 = vperm.xlu0 %3288, %v1867_v34   ;;  %v1894_v42 = vsel %vm1016_vm0, %v1891_v18, %v1893_v51  ;;  %v1898_v34 = vrot.slane %v4230_v24, 2  ;;  %v4606_v63 = vld [vmem:[%s4407_s6 + $0x28] sm:$0x3]  ;;  %v2359_v14 = vrot.slane %v4426_v6, 1 }
 0x176   : > { %v2361_v44 = vrot.slane %v4606_v63, 1 }
 0x177   : > { %v1899_v19 = vsel %vm1016_vm0, %v1896_v29, %v1898_v34 }
 0x178   : > { %v4352_v41 = vpop.permute.xlu1 %1396  ;;  %v4354_v57 = vpop.permute.xlu0 %1391  ;;  %v2362_v43 = vsel %vm735_vm1, %v2359_v14, %v2361_v44 }
 0x179   : > { %6431 = vst [vmem:[#allocation115_spill] sm:$0xff] %v4352_v41  ;;  %6432 = vst [vmem:[#allocation116_spill] sm:$0xff] %v4354_v57  ;;  %1984 = vperm.xlu1 %3289, %v1874_v36   ;;  %1980 = vperm.xlu0 %3288, %v1872_v38   ;;  %v1903_v36 = vrot.slane %v4242_v8, 2  ;;  %v4602_v57 = vld [vmem:[%s4407_s6 + $0x168] sm:$0xff] }
 0x17a   : > { %6488 = vst [vmem:[#allocation172_spill] sm:$0xff] %v4602_v57 }
 0x17b   : > { %v1904_v23 = vsel %vm1016_vm0, %v1901_v62, %v1903_v36  ;;  %v4474_v62 = vld [vmem:[%s4407_s6 + $0x80] sm:$0xff]  ;;  %v4486_v36 = vld [vmem:[%s4407_s6 + $0x98] sm:$0xff] }
 0x17c   : > { %v4361_v4 = vpop.permute.xlu1 %1406  ;;  %v4363_v28 = vpop.permute.xlu0 %1401 }
 0x17d   : > { %6433 = vst [vmem:[#allocation117_spill] sm:$0xff] %v4361_v4  ;;  %6434 = vst [vmem:[#allocation118_spill] sm:$0xff] %v4363_v28  ;;  %1992 = vperm.xlu1 %3289, %v1879_v56   ;;  %1988 = vperm.xlu0 %3288, %v1877_v27   ;;  %v4599_v4 = vld [vmem:[%s4407_s6 + $0x170] sm:$0xff] }
 0x17e   : > { %6487 = vst [vmem:[#allocation171_spill] sm:$0xff] %v4599_v4 }
 0x180   : > { %v4370_v7 = vpop.permute.xlu1 %1416  ;;  %v4372_v13 = vpop.permute.xlu0 %1411 }
 0x181   : > { %6435 = vst [vmem:[#allocation119_spill] sm:$0xff] %v4370_v7  ;;  %6436 = vst [vmem:[#allocation120_spill] sm:$0xff] %v4372_v13  ;;  %2000 = vperm.xlu1 %3289, %v1884_v15   ;;  %1996 = vperm.xlu0 %3288, %v1882_v35   ;;  %v4438_v35 = vld [vmem:[%s4407_s6 + $0x38] sm:$0xff]  ;;  %v4588_v13 = vld [vmem:[%s4407_s6 + $0x10] sm:$0x3] }
 0x182   : > { %v2356_v41 = vrot.slane %v4588_v13, 1  ;;  %v2364_v11 = vrot.slane %v4438_v35, 1 }
 0x184   : > { %v4379_v60 = vpop.permute.xlu1 %1426  ;;  %v4381_v45 = vpop.permute.xlu0 %1421 }
 0x185   : > { %6437 = vst [vmem:[#allocation121_spill] sm:$0xff] %v4379_v60  ;;  %6438 = vst [vmem:[#allocation122_spill] sm:$0xff] %v4381_v45  ;;  %2008 = vperm.xlu1 %3289, %v1889_v30   ;;  %2004 = vperm.xlu0 %3288, %v1887_v59   ;;  %v4450_v30 = vld [vmem:[%s4407_s6 + $0x50] sm:$0xff]  ;;  %v4453_v59 = vld [vmem:[%s4407_s6 + $0x48] sm:$0xff] }
 0x188   : > { %v4388_v25 = vpop.permute.xlu1 %1436  ;;  %v4390_v32 = vpop.permute.xlu0 %1431 }
 0x189   : > { %6439 = vst [vmem:[#allocation123_spill] sm:$0xff] %v4388_v25  ;;  %6440 = vst [vmem:[#allocation124_spill] sm:$0xff] %v4390_v32  ;;  %2016 = vperm.xlu1 %3289, %v1894_v42   ;;  %2012 = vperm.xlu0 %3288, %v1892_v12   ;;  %v4465_v42 = vld [vmem:[%s4407_s6 + $0x60] sm:$0xff] }
 0x18c   : > { %v4397_v38 = vpop.permute.xlu1 %1446  ;;  %v4399_v24 = vpop.permute.xlu0 %1441 }
 0x18d   : > { %6441 = vst [vmem:[#allocation125_spill] sm:$0xff] %v4397_v38  ;;  %6442 = vst [vmem:[#allocation126_spill] sm:$0xff] %v4399_v24  ;;  %2024 = vperm.xlu1 %3289, %v1899_v19   ;;  %2020 = vperm.xlu0 %3288, %v1897_v2  }
 0x190   : > { %v4409_v53 = vpop.permute.xlu1 %1456  ;;  %v4411_v8 = vpop.permute.xlu0 %1451 }
 0x191   : > { %6443 = vst [vmem:[#allocation127_spill] sm:$0xff] %v4409_v53  ;;  %6444 = vst [vmem:[#allocation128_spill] sm:$0xff] %v4411_v8  ;;  %2032 = vperm.xlu1 %3289, %v1904_v23   ;;  %2028 = vperm.xlu0 %3288, %v1902_v47   ;;  %v4489_v23 = vld [vmem:[%s4407_s6 + $0x90] sm:$0xff]  ;;  %v2363_v8 = vrot.slane %v4441_v5, 1 }
 0x193   : > { %v2365_v44 = vsel %vm735_vm1, %v2363_v8, %v2364_v11  ;;  %v4656_v8 = vld [vmem:[%s4407_s6 + $0x88] sm:$0x3] }
 0x194   : > { %v4419_v56 = vpop.permute.xlu1 %1632  ;;  %v4421_v27 = vpop.permute.xlu0 %1628 }
 0x195   : > { %6445 = vst [vmem:[#allocation129_spill] sm:$0xff] %v4419_v56  ;;  %6446 = vst [vmem:[#allocation130_spill] sm:$0xff] %v4421_v27  ;;  %2114 = vperm.xlu1 %3289, %v4414_v39   ;;  %2109 = vperm.xlu0 %3288, %v4417_v20  }
 0x198   : > { %v4431_v3 = vpop.permute.xlu1 %1640  ;;  %v4433_v15 = vpop.permute.xlu0 %1636 }
 0x199   : > { %6447 = vst [vmem:[#allocation131_spill] sm:$0xff] %v4431_v3  ;;  %6448 = vst [vmem:[#allocation132_spill] sm:$0xff] %v4433_v15  ;;  %2124 = vperm.xlu1 %3289, %v4426_v6   ;;  %2119 = vperm.xlu0 %3288, %v4429_v40  }
 0x19c   : > { %v4443_v18 = vpop.permute.xlu1 %1648  ;;  %v4445_v16 = vpop.permute.xlu0 %1644 }
 0x19d   : > { %6449 = vst [vmem:[#allocation133_spill] sm:$0xff] %v4443_v18  ;;  %6450 = vst [vmem:[#allocation134_spill] sm:$0xff] %v4445_v16  ;;  %2134 = vperm.xlu1 %3289, %v4438_v35   ;;  %2129 = vperm.xlu0 %3288, %v4441_v5  }
 0x1a0   : > { %v4455_v51 = vpop.permute.xlu1 %1656  ;;  %v4457_v29 = vpop.permute.xlu0 %1652 }
 0x1a1   : > { %6451 = vst [vmem:[#allocation135_spill] sm:$0xff] %v4455_v51  ;;  %6452 = vst [vmem:[#allocation136_spill] sm:$0xff] %v4457_v29  ;;  %2144 = vperm.xlu1 %3289, %v4450_v30   ;;  %2139 = vperm.xlu0 %3288, %v4453_v59  }
 0x1a4   : > { %v4467_v12 = vpop.permute.xlu1 %1664  ;;  %v4469_v34 = vpop.permute.xlu0 %1660 }
 0x1a5   : > { %6453 = vst [vmem:[#allocation137_spill] sm:$0xff] %v4467_v12  ;;  %6454 = vst [vmem:[#allocation138_spill] sm:$0xff] %v4469_v34  ;;  %2154 = vperm.xlu1 %3289, %v4462_v48   ;;  %2149 = vperm.xlu0 %3288, %v4465_v42  }
 0x1a8   : > { %v4479_v19 = vpop.permute.xlu1 %1672  ;;  %v4481_v2 = vpop.permute.xlu0 %1668 }
 0x1a9   : > { %6455 = vst [vmem:[#allocation139_spill] sm:$0xff] %v4479_v19  ;;  %6456 = vst [vmem:[#allocation140_spill] sm:$0xff] %v4481_v2  ;;  %2164 = vperm.xlu1 %3289, %v4474_v62   ;;  %2159 = vperm.xlu0 %3288, %v4477_v0   ;;  %v4498_v2 = vld [vmem:[%s4407_s6 + $0xb0] sm:$0xff]  ;;  %v4501_v19 = vld [vmem:[%s4407_s6 + $0xa8] sm:$0xff] }
 0x1ac   : > { %v4491_v47 = vpop.permute.xlu1 %1680  ;;  %v4493_v34 = vpop.permute.xlu0 %1676 }
 0x1ad   : > { %6457 = vst [vmem:[#allocation141_spill] sm:$0xff] %v4491_v47  ;;  %6458 = vst [vmem:[#allocation142_spill] sm:$0xff] %v4493_v34  ;;  %2174 = vperm.xlu1 %3289, %v4486_v36   ;;  %2169 = vperm.xlu0 %3288, %v4489_v23   ;;  %v4510_v34 = vld [vmem:[%s4407_s6 + $0xc8] sm:$0xff]  ;;  %v4513_v47 = vld [vmem:[%s4407_s6 + $0xc0] sm:$0xff] }
 0x1b0   : > { %v4503_v12 = vpop.permute.xlu1 %1688  ;;  %v4505_v29 = vpop.permute.xlu0 %1684 }
 0x1b1   : > { %6459 = vst [vmem:[#allocation143_spill] sm:$0xff] %v4503_v12  ;;  %6460 = vst [vmem:[#allocation144_spill] sm:$0xff] %v4505_v29  ;;  %2184 = vperm.xlu1 %3289, %v4498_v2   ;;  %2179 = vperm.xlu0 %3288, %v4501_v19   ;;  %v4522_v29 = vld [vmem:[%s4407_s6 + $0xe0] sm:$0xff]  ;;  %v4525_v12 = vld [vmem:[%s4407_s6 + $0xd8] sm:$0xff] }
 0x1b2   : > { %6463 = vst [vmem:[#allocation147_spill] sm:$0xff] %v4522_v29  ;;  %6464 = vst [vmem:[#allocation148_spill] sm:$0xff] %v4525_v12 }
 0x1b4   : > { %v4515_v51 = vpop.permute.xlu1 %1696  ;;  %v4517_v16 = vpop.permute.xlu0 %1692 }
 0x1b5   : > { %6461 = vst [vmem:[#allocation145_spill] sm:$0xff] %v4515_v51  ;;  %6462 = vst [vmem:[#allocation146_spill] sm:$0xff] %v4517_v16  ;;  %2194 = vperm.xlu1 %3289, %v4510_v34   ;;  %2189 = vperm.xlu0 %3288, %v4513_v47   ;;  %v4534_v16 = vld [vmem:[%s4407_s6 + $0xf8] sm:$0xff]  ;;  %v4537_v51 = vld [vmem:[%s4407_s6 + $0xf0] sm:$0xff] }
 0x1b6   : > { %6467 = vst [vmem:[#allocation151_spill] sm:$0xff] %v4534_v16  ;;  %6468 = vst [vmem:[#allocation152_spill] sm:$0xff] %v4537_v51 }
 0x1b8   : > { %v4527_v18 = vpop.permute.xlu1 %1704  ;;  %v4529_v15 = vpop.permute.xlu0 %1700 }
 0x1b9   : > { %6465 = vst [vmem:[#allocation149_spill] sm:$0xff] %v4527_v18  ;;  %6466 = vst [vmem:[#allocation150_spill] sm:$0xff] %v4529_v15  ;;  %2204 = vperm.xlu1 %3289, %v4522_v29   ;;  %2199 = vperm.xlu0 %3288, %v4525_v12   ;;  %v4546_v15 = vld [vmem:[%s4407_s6 + $0x110] sm:$0xff]  ;;  %v4549_v18 = vld [vmem:[%s4407_s6 + $0x108] sm:$0xff] }
 0x1ba   : > { %6471 = vst [vmem:[#allocation155_spill] sm:$0xff] %v4546_v15  ;;  %6472 = vst [vmem:[#allocation156_spill] sm:$0xff] %v4549_v18 }
 0x1bc   : > { %v4539_v3 = vpop.permute.xlu1 %1712  ;;  %v4541_v56 = vpop.permute.xlu0 %1708 }
 0x1bd   : > { %6469 = vst [vmem:[#allocation153_spill] sm:$0xff] %v4539_v3  ;;  %6470 = vst [vmem:[#allocation154_spill] sm:$0xff] %v4541_v56  ;;  %2214 = vperm.xlu1 %3289, %v4534_v16   ;;  %2209 = vperm.xlu0 %3288, %v4537_v51   ;;  %v4558_v56 = vld [vmem:[%s4407_s6 + $0x128] sm:$0xff]  ;;  %v4561_v3 = vld [vmem:[%s4407_s6 + $0x120] sm:$0xff] }
 0x1be   : > { %6475 = vst [vmem:[#allocation159_spill] sm:$0xff] %v4558_v56  ;;  %6476 = vst [vmem:[#allocation160_spill] sm:$0xff] %v4561_v3 }
 0x1c0   : > { %v4551_v24 = vpop.permute.xlu1 %1720  ;;  %v4553_v38 = vpop.permute.xlu0 %1716 }
 0x1c1   : > { %6473 = vst [vmem:[#allocation157_spill] sm:$0xff] %v4551_v24  ;;  %6474 = vst [vmem:[#allocation158_spill] sm:$0xff] %v4553_v38  ;;  %2224 = vperm.xlu1 %3289, %v4546_v15   ;;  %2219 = vperm.xlu0 %3288, %v4549_v18   ;;  %v4570_v38 = vld [vmem:[%s4407_s6 + $0x140] sm:$0xff]  ;;  %v4573_v24 = vld [vmem:[%s4407_s6 + $0x138] sm:$0xff] }
 0x1c2   : > { %6479 = vst [vmem:[#allocation163_spill] sm:$0xff] %v4570_v38  ;;  %6480 = vst [vmem:[#allocation164_spill] sm:$0xff] %v4573_v24 }
 0x1c4   : > { %v4563_v32 = vpop.permute.xlu1 %1728  ;;  %v4565_v25 = vpop.permute.xlu0 %1724 }
 0x1c5   : > { %6477 = vst [vmem:[#allocation161_spill] sm:$0xff] %v4563_v32  ;;  %6478 = vst [vmem:[#allocation162_spill] sm:$0xff] %v4565_v25  ;;  %2234 = vperm.xlu1 %3289, %v4558_v56   ;;  %2229 = vperm.xlu0 %3288, %v4561_v3   ;;  %v4582_v25 = vld [vmem:[%s4407_s6 + $0x158] sm:$0xff]  ;;  %v4585_v32 = vld [vmem:[%s4407_s6 + $0x150] sm:$0xff] }
 0x1c6   : > { %6483 = vst [vmem:[#allocation167_spill] sm:$0xff] %v4582_v25  ;;  %6484 = vst [vmem:[#allocation168_spill] sm:$0xff] %v4585_v32 }
 0x1c8   : > { %v4575_v45 = vpop.permute.xlu1 %1736  ;;  %v4577_v60 = vpop.permute.xlu0 %1732 }
 0x1c9   : > { %6481 = vst [vmem:[#allocation165_spill] sm:$0xff] %v4575_v45  ;;  %6482 = vst [vmem:[#allocation166_spill] sm:$0xff] %v4577_v60  ;;  %2244 = vperm.xlu1 %3289, %v4570_v38   ;;  %2239 = vperm.xlu0 %3288, %v4573_v24   ;;  %v2354_v60 = vrot.slane %v4414_v39, 1  ;;  %v2353_v45 = vrot.slane %v4417_v20, 1 }
 0x1cb   : > { %v2357_v27 = vsel %vm735_vm1, %v2354_v60, %v2356_v41  ;;  %v2355_v46 = vsel %vm735_vm1, %v2353_v45, %v2354_v60  ;;  %v2360_v41 = vsel %vm735_vm1, %v2358_v31, %v2359_v14  ;;  %v2366_v60 = vrot.slane %v4620_v54, 1  ;;  %v4632_v45 = vld [vmem:[%s4407_s6 + $0x58] sm:$0x3]  ;;  %v4644_v14 = vld [vmem:[%s4407_s6 + $0x70] sm:$0x3] }
 0x1cc   : > { %v4590_v7 = vpop.permute.xlu1 %1744  ;;  %v4592_v28 = vpop.permute.xlu0 %1740  ;;  %v2371_v31 = vrot.slane %v4632_v45, 1 }
 0x1cd   : > { %6485 = vst [vmem:[#allocation169_spill] sm:$0xff] %v4590_v7  ;;  %6486 = vst [vmem:[#allocation170_spill] sm:$0xff] %v4592_v28  ;;  %2254 = vperm.xlu1 %3289, %v4582_v25   ;;  %2249 = vperm.xlu0 %3288, %v4585_v32  }
 0x1d0   : > { %v4608_v7 = vpop.permute.xlu1 %1752  ;;  %v4610_v28 = vpop.permute.xlu0 %1748 }
 0x1d1   : > { %6489 = vst [vmem:[#allocation173_spill] sm:$0xff] %v4608_v7  ;;  %6490 = vst [vmem:[#allocation174_spill] sm:$0xff] %v4610_v28  ;;  %2264 = vperm.xlu1 %3289, %v4599_v4   ;;  %2259 = vperm.xlu0 %3288, %v4602_v57   ;;  %v6513_v4 = vld [vmem:[#allocation27_spill] sm:$0xff] }
 0x1d4   : > { %v4622_v7 = vpop.permute.xlu1 %1912  ;;  %v4624_v28 = vpop.permute.xlu0 %1908 }
 0x1d5   : > { %6491 = vst [vmem:[#allocation175_spill] sm:$0xff] %v4622_v7  ;;  %6492 = vst [vmem:[#allocation176_spill] sm:$0xff] %v4624_v28  ;;  %2440 = vperm.xlu1 %3289, %v2357_v27   ;;  %2436 = vperm.xlu0 %3288, %v2355_v46   ;;  %v2369_v28 = vrot.slane %v4450_v30, 1  ;;  %v2368_v46 = vrot.slane %v4453_v59, 1  ;;  %v2367_v27 = vsel %vm735_vm1, %v2364_v11, %v2366_v60  ;;  %v2376_v11 = vrot.slane %v4644_v14, 1 }
 0x1d7   : > { %v2370_v60 = vsel %vm735_vm1, %v2368_v46, %v2369_v28  ;;  %v4668_v46 = vld [vmem:[%s4407_s6 + $0xa0] sm:$0x3] }
 0x1d8   : > { %v4634_v53 = vpop.permute.xlu1 %1920  ;;  %v4636_v7 = vpop.permute.xlu0 %1916 }
 0x1d9   : > { %6493 = vst [vmem:[#allocation177_spill] sm:$0xff] %v4634_v53  ;;  %6494 = vst [vmem:[#allocation178_spill] sm:$0xff] %v4636_v7  ;;  %2448 = vperm.xlu1 %3289, %v2362_v43   ;;  %2444 = vperm.xlu0 %3288, %v2360_v41   ;;  %v2374_v7 = vrot.slane %v4462_v48, 1  ;;  %v2373_v43 = vrot.slane %v4465_v42, 1  ;;  %v2372_v41 = vsel %vm735_vm1, %v2369_v28, %v2371_v31  ;;  %v2381_v28 = vrot.slane %v4656_v8, 1 }
 0x1db   : > { %v2375_v31 = vsel %vm735_vm1, %v2373_v43, %v2374_v7  ;;  %v4680_v43 = vld [vmem:[%s4407_s6 + $0xb8] sm:$0x3] }
 0x1dc   : > { %v4646_v52 = vpop.permute.xlu1 %1928  ;;  %v4648_v53 = vpop.permute.xlu0 %1924 }
 0x1dd   : > { %6495 = vst [vmem:[#allocation179_spill] sm:$0xff] %v4646_v52  ;;  %6496 = vst [vmem:[#allocation180_spill] sm:$0xff] %v4648_v53  ;;  %2456 = vperm.xlu1 %3289, %v2367_v27   ;;  %2452 = vperm.xlu0 %3288, %v2365_v44   ;;  %v2379_v53 = vrot.slane %v4474_v62, 1  ;;  %v2378_v27 = vrot.slane %v4477_v0, 1  ;;  %v2377_v44 = vsel %vm735_vm1, %v2374_v7, %v2376_v11  ;;  %v2386_v7 = vrot.slane %v4668_v46, 1 }
 0x1df   : > { %v2380_v11 = vsel %vm735_vm1, %v2378_v27, %v2379_v53  ;;  %v4692_v27 = vld [vmem:[%s4407_s6 + $0xd0] sm:$0x3] }
 0x1e0   : > { %v4658_v9 = vpop.permute.xlu1 %1936  ;;  %v4660_v52 = vpop.permute.xlu0 %1932  ;;  %6503 = vst [vmem:[#allocation187_spill] sm:$0xff] %v4692_v27 }
 0x1e1   : > { %6497 = vst [vmem:[#allocation181_spill] sm:$0xff] %v4658_v9  ;;  %6498 = vst [vmem:[#allocation182_spill] sm:$0xff] %v4660_v52  ;;  %2464 = vperm.xlu1 %3289, %v2372_v41   ;;  %2460 = vperm.xlu0 %3288, %v2370_v60   ;;  %v2384_v52 = vrot.slane %v4486_v36, 1  ;;  %v2383_v41 = vrot.slane %v4489_v23, 1  ;;  %v2382_v60 = vsel %vm735_vm1, %v2379_v53, %v2381_v28  ;;  %v2391_v53 = vrot.slane %v4680_v43, 1 }
 0x1e3   : > { %v2385_v28 = vsel %vm735_vm1, %v2383_v41, %v2384_v52  ;;  %v4704_v41 = vld [vmem:[%s4407_s6 + $0xe8] sm:$0x3] }
 0x1e4   : > { %v4670_v22 = vpop.permute.xlu1 %1944  ;;  %v4672_v9 = vpop.permute.xlu0 %1940  ;;  %6506 = vst [vmem:[#allocation190_spill] sm:$0xff] %v4704_v41 }
 0x1e5   : > { %6499 = vst [vmem:[#allocation183_spill] sm:$0xff] %v4670_v22  ;;  %6500 = vst [vmem:[#allocation184_spill] sm:$0xff] %v4672_v9  ;;  %2472 = vperm.xlu1 %3289, %v2377_v44   ;;  %2468 = vperm.xlu0 %3288, %v2375_v31   ;;  %v2389_v9 = vrot.slane %v4498_v2, 1  ;;  %v2388_v44 = vrot.slane %v4501_v19, 1  ;;  %v2387_v31 = vsel %vm735_vm1, %v2384_v52, %v2386_v7  ;;  %v2396_v52 = vrot.slane %v4692_v27, 1 }
 0x1e7   : > { %v2390_v7 = vsel %vm735_vm1, %v2388_v44, %v2389_v9  ;;  %v4716_v44 = vld [vmem:[%s4407_s6 + $0x100] sm:$0x3] }
 0x1e8   : > { %v4682_v55 = vpop.permute.xlu1 %1952  ;;  %v4684_v22 = vpop.permute.xlu0 %1948  ;;  %6509 = vst [vmem:[#allocation193_spill] sm:$0xff] %v4716_v44 }
 0x1e9   : > { %6501 = vst [vmem:[#allocation185_spill] sm:$0xff] %v4682_v55  ;;  %6502 = vst [vmem:[#allocation186_spill] sm:$0xff] %v4684_v22  ;;  %2480 = vperm.xlu1 %3289, %v2382_v60   ;;  %2476 = vperm.xlu0 %3288, %v2380_v11   ;;  %v2394_v22 = vrot.slane %v4510_v34, 1  ;;  %v2393_v60 = vrot.slane %v4513_v47, 1  ;;  %v2392_v11 = vsel %vm735_vm1, %v2389_v9, %v2391_v53  ;;  %v2401_v9 = vrot.slane %v4704_v41, 1 }
 0x1eb   : > { %v2395_v53 = vsel %vm735_vm1, %v2393_v60, %v2394_v22 }
 0x1ec   : > { %v4694_v26 = vpop.permute.xlu1 %1960  ;;  %v4696_v55 = vpop.permute.xlu0 %1956 }
 0x1ed   : > { %6504 = vst [vmem:[#allocation188_spill] sm:$0xff] %v4694_v26  ;;  %6505 = vst [vmem:[#allocation189_spill] sm:$0xff] %v4696_v55  ;;  %2488 = vperm.xlu1 %3289, %v2387_v31   ;;  %2484 = vperm.xlu0 %3288, %v2385_v28   ;;  %v2399_v55 = vrot.slane %v4522_v29, 1  ;;  %v2398_v31 = vrot.slane %v4525_v12, 1  ;;  %v2397_v28 = vsel %vm735_vm1, %v2394_v22, %v2396_v52  ;;  %v2403_v52 = vrot.slane %v4537_v51, 1  ;;  %v6550_v29 = vld [vmem:[#allocation21_spill] sm:$0xff] }
 0x1ef   : > { %v2402_v22 = vsel %vm735_vm1, %v2399_v55, %v2401_v9  ;;  %v2400_v60 = vsel %vm735_vm1, %v2398_v31, %v2399_v55  ;;  %v6516_v55 = vld [vmem:[#allocation28_spill] sm:$0xff]  ;;  %v6517_v9 = vld [vmem:[#allocation29_spill] sm:$0xff] }
 0x1f0   : > { %v4706_v57 = vpop.permute.xlu1 %1968  ;;  %v4708_v26 = vpop.permute.xlu0 %1964  ;;  %6520 = vst [vmem:[#allocation28_spill] sm:$0xff] %v4762_v1 }
 0x1f1   : > { %6507 = vst [vmem:[#allocation191_spill] sm:$0xff] %v4706_v57  ;;  %6508 = vst [vmem:[#allocation192_spill] sm:$0xff] %v4708_v26  ;;  %2496 = vperm.xlu1 %3289, %v2392_v11   ;;  %2492 = vperm.xlu0 %3288, %v2390_v7   ;;  %v4725_v11 = vld [vmem:[%s6242_s3] ss:$0 sm:$0xff]  ;;  %v2404_v7 = vrot.slane %v4534_v16, 1  ;;  %v2406_v26 = vrot.slane %v4716_v44, 1 }
 0x1f2   : > { %v655_v58 = vmul.f32 %v4725_v11, %v6513_v4  ;;  %v658_v31 = vmul.f32 %v4725_v11, %v6516_v55  ;;  %v656_v10 = vmul.f32 %v4725_v11, %v6517_v9  ;;  %v2409_v4 = vrot.slane %v4546_v15, 1 }
 0x1f3   : > { %v2405_v49 = vsel %vm735_vm1, %v2403_v52, %v2404_v7  ;;  %v659_v55 = vmul.f32 %v4725_v11, %v6519_v33  ;;  %v2414_v52 = vrot.slane %v4558_v56, 1 }
 0x1f4   : > { %v4718_v61 = vpop.permute.xlu1 %1976  ;;  %v4720_v57 = vpop.permute.xlu0 %1972 }
 0x1f5   : > { %6510 = vst [vmem:[#allocation194_spill] sm:$0xff] %v4718_v61  ;;  %6511 = vst [vmem:[#allocation195_spill] sm:$0xff] %v4720_v57  ;;  %2504 = vperm.xlu1 %3289, %v2397_v28   ;;  %2500 = vperm.xlu0 %3288, %v2395_v53   ;;  %v4733_v61 = vld [vmem:[%s4407_s6 + $0x118] sm:$0x3]  ;;  %v657_v57 = vmul.f32 %v4725_v11, %v3777_v17  ;;  %v4746_v53 = vld [vmem:[%s6243_s4] ss:$0 sm:$0xff] }
 0x1f6   : > { %6512 = vst [vmem:[#allocation196_spill] sm:$0xff] %v4733_v61  ;;  %v6518_v17 = vld [vmem:[#allocation30_spill] sm:$0xff]  ;;  %v2411_v21 = vrot.slane %v4733_v61, 1  ;;  %v6525_v61 = vld [vmem:[#allocation5_spill] sm:$0xff] }
 0x1f7   : > { %v660_v50 = vmul.f32 %v4725_v11, %v6518_v17  ;;  %v4765_v9 = vadd.f32 %v4746_v53, %v657_v57  ;;  %v4768_v17 = vadd.f32 %v4746_v53, %v655_v58  ;;  %v2413_v58 = vrot.slane %v4561_v3, 1 }
 0x1f8   : > { %v4739_v37 = vpop.permute.xlu1 %1984  ;;  %v4741_v28 = vpop.permute.xlu0 %1980  ;;  %v2412_v57 = vsel %vm735_vm1, %v2409_v4, %v2411_v21  ;;  %v6527_v21 = vld [vmem:[#allocation7_spill] sm:$0xff] }
 0x1f9   : > { %6514 = vst [vmem:[#allocation27_spill] sm:$0xff] %v4739_v37  ;;  %6515 = vst [vmem:[#allocation197_spill] sm:$0xff] %v4741_v28  ;;  %2512 = vperm.xlu1 %3289, %v2402_v22   ;;  %2508 = vperm.xlu0 %3288, %v2400_v60   ;;  %v2408_v28 = vrot.slane %v4549_v18, 1  ;;  %v2407_v37 = vsel %vm735_vm1, %v2404_v7, %v2406_v26  ;;  %v4775_v26 = vadd.f32 %v4746_v53, %v658_v31 }
 0x1fa   : > { %v4778_v7 = vadd.f32 %v4746_v53, %v656_v10  ;;  %v4781_v33 = vadd.f32 %v4746_v53, %v660_v50  ;;  %v4789_v31 = vadd.f32 %v4746_v53, %v659_v55  ;;  %v6523_v10 = vld [vmem:[#allocation2_spill] sm:$0xff]  ;;  %v6524_v50 = vld [vmem:[#allocation32_spill] sm:$0xff]  ;;  %v6529_v55 = vld [vmem:[#allocation9_spill] sm:$0xff] }
 0x1fb   : > { %v662_v32 = vmul.f32 %v4725_v11, %v6523_v10  ;;  %v661_v25 = vmul.f32 %v4725_v11, %v6524_v50  ;;  %v668_v56 = vmul.f32 %v4725_v11, %v6529_v55  ;;  %v6532_v50 = vld [vmem:[#allocation6_spill] sm:$0xff]  ;;  %v2418_v55 = vrot.slane %v4573_v24, 1  ;;  %v6542_v24 = vld [vmem:[#allocation16_spill] sm:$0xff] }
 0x1fc   : > { %v4770_v22 = vpop.permute.xlu1 %1992  ;;  %v4772_v60 = vpop.permute.xlu0 %1988  ;;  %v667_v18 = vmul.f32 %v4725_v11, %v6532_v50 }
 0x1fd   : > { %6521 = vst [vmem:[#allocation29_spill] sm:$0xff] %v4770_v22  ;;  %6522 = vst [vmem:[#allocation30_spill] sm:$0xff] %v4772_v60  ;;  %2520 = vperm.xlu1 %3289, %v2407_v37   ;;  %2516 = vperm.xlu0 %3288, %v2405_v49   ;;  %v2410_v22 = vsel %vm735_vm1, %v2408_v28, %v2409_v4  ;;  %v2416_v60 = vrot.slane %v4762_v1, 1  ;;  %v664_v49 = vmul.f32 %v4725_v11, %v6525_v61  ;;  %v6526_v37 = vld [vmem:[#allocation3_spill] sm:$0xff]  ;;  %v6528_v4 = vld [vmem:[#allocation4_spill] sm:$0xff] }
 0x1fe   : > { %v663_v3 = vmul.f32 %v4725_v11, %v6526_v37  ;;  %v666_v28 = vmul.f32 %v4725_v11, %v6527_v21  ;;  %v665_v1 = vmul.f32 %v4725_v11, %v6528_v4  ;;  %v6533_v61 = vld [vmem:[#allocation12_spill] sm:$0xff]  ;;  %v2634_v37 = vrot.slane %v4414_v39, 2 }
 0x1ff   : > { %v670_v15 = vmul.f32 %v4725_v11, %v6533_v61  ;;  %v2633_v21 = vrot.slane %v4417_v20, 2  ;;  %v4820_v41 = vadd.f32 %v4746_v53, %v662_v32  ;;  %v4823_v50 = vadd.f32 %v4746_v53, %v661_v25  ;;  %v6534_v61 = vld [vmem:[#allocation8_spill] sm:$0xff]  ;;  %v6535_v20 = vld [vmem:[#allocation13_spill] sm:$0xff] }
 0x200   : > { %v4805_v44 = vpop.permute.xlu1 %2000  ;;  %v4807_v10 = vpop.permute.xlu0 %1996  ;;  %v669_v39 = vmul.f32 %v4725_v11, %v6534_v61  ;;  %v4833_v4 = vadd.f32 %v4746_v53, %v663_v3  ;;  %v4839_v32 = vadd.f32 %v4746_v53, %v665_v1  ;;  %v4849_v61 = vadd.f32 %v4746_v53, %v667_v18 }
 0x201   : > { %6530 = vst [vmem:[#allocation31_spill] sm:$0xff] %v4805_v44  ;;  %6531 = vst [vmem:[#allocation2_spill] sm:$0xff] %v4807_v10  ;;  %2528 = vperm.xlu1 %3289, %v2412_v57   ;;  %2524 = vperm.xlu0 %3288, %v2410_v22   ;;  %v2417_v44 = vsel %vm735_vm1, %v2414_v52, %v2416_v60  ;;  %v2415_v10 = vsel %vm735_vm1, %v2413_v58, %v2414_v52  ;;  %v2639_v3 = vrot.slane %v4426_v6, 2 }
 0x202   : > { %v672_v22 = vmul.f32 %v4725_v11, %v6535_v20  ;;  %v4830_v57 = vadd.f32 %v4746_v53, %v664_v49  ;;  %v4836_v60 = vadd.f32 %v4746_v53, %v666_v28  ;;  %v4846_v58 = vadd.f32 %v4746_v53, %v668_v56 }
 0x203   : > { %v4852_v49 = vadd.f32 %v4746_v53, %v670_v15  ;;  %v2638_v1 = vrot.slane %v4429_v40, 2  ;;  %v2635_v28 = vsel %vm1016_vm0, %v2633_v21, %v2634_v37  ;;  %v6538_v20 = vrot.slane %v4570_v38, 1 }
 0x204   : > { %v4841_v25 = vpop.permute.xlu1 %2008  ;;  %v4843_v52 = vpop.permute.xlu0 %2004  ;;  %v2636_v56 = vrot.slane %v4588_v13, 2  ;;  %v4862_v18 = vadd.f32 %v4746_v53, %v669_v39  ;;  %v4865_v15 = vadd.f32 %v4746_v53, %v672_v22  ;;  %v6544_v39 = vld [vmem:[#allocation17_spill] sm:$0xff] }
 0x205   : > { %6536 = vst [vmem:[#allocation32_spill] sm:$0xff] %v4841_v25  ;;  %6537 = vst [vmem:[#allocation5_spill] sm:$0xff] %v4843_v52  ;;  %2536 = vperm.xlu1 %3289, %v2417_v44   ;;  %2532 = vperm.xlu0 %3288, %v2415_v10   ;;  %v2420_v52 = vsel %vm735_vm1, %v2418_v55, %v6538_v20  ;;  %v6539_v25 = vld [vmem:[#allocation10_spill] sm:$0xff]  ;;  %v6541_v10 = vld [vmem:[#allocation11_spill] sm:$0xff]  ;;  %v676_v55 = vmul.f32 %v4725_v11, %v6542_v24  ;;  %v2644_v24 = vrot.slane %v4438_v35, 2 }
 0x206   : > { %v671_v6 = vmul.f32 %v4725_v11, %v6539_v25  ;;  %v6540_v44 = vld [vmem:[#allocation14_spill] sm:$0xff]  ;;  %v673_v21 = vmul.f32 %v4725_v11, %v6541_v10  ;;  %v6543_v20 = vld [vmem:[#allocation15_spill] sm:$0xff]  ;;  %v678_v38 = vmul.f32 %v4725_v11, %v6544_v39  ;;  %v6549_v10 = vld [vmem:[#allocation20_spill] sm:$0xff]  ;;  %v2640_v39 = vsel %vm1016_vm0, %v2638_v1, %v2639_v3 }
 0x207   : > { %v674_v40 = vmul.f32 %v4725_v11, %v6540_v44  ;;  %v675_v13 = vmul.f32 %v4725_v11, %v6543_v20  ;;  %v6547_v25 = vld [vmem:[#allocation18_spill] sm:$0xff]  ;;  %v6548_v44 = vld [vmem:[#allocation19_spill] sm:$0xff]  ;;  %v679_v12 = vmul.f32 %v4725_v11, %v6549_v10  ;;  %v2643_v20 = vrot.slane %v4441_v5, 2 }
 0x208   : > { %v4879_v22 = vpop.permute.xlu1 %2016  ;;  %v4881_v51 = vpop.permute.xlu0 %2012  ;;  %v677_v16 = vmul.f32 %v4725_v11, %v6547_v25  ;;  %v680_v27 = vmul.f32 %v4725_v11, %v6548_v44  ;;  %v4895_v25 = vadd.f32 %v4746_v53, %v671_v6  ;;  %v682_v10 = vmul.f32 %v4725_v11, %v6550_v29  ;;  %v6551_v35 = vld [vmem:[#allocation22_spill] sm:$0xff] }
 0x209   : > { %6545 = vst [vmem:[#allocation3_spill] sm:$0xff] %v4879_v22  ;;  %6546 = vst [vmem:[#allocation7_spill] sm:$0xff] %v4881_v51  ;;  %2716 = vperm.xlu1 %3289, %v2635_v28   ;;  %2540 = vperm.xlu0 %3288, %v2420_v52   ;;  %v2637_v22 = vsel %vm1016_vm0, %v2634_v37, %v2636_v56  ;;  %v2641_v51 = vrot.slane %v4606_v63, 2  ;;  %v4898_v44 = vadd.f32 %v4746_v53, %v674_v40 }
 0x20a   : > { %v681_v52 = vmul.f32 %v4725_v11, %v6551_v35  ;;  %v4905_v5 = vadd.f32 %v4746_v53, %v673_v21  ;;  %v4908_v1 = vadd.f32 %v4746_v53, %v676_v55  ;;  %v4911_v63 = vadd.f32 %v4746_v53, %v675_v13  ;;  %v4932_v21 = vld [vmem:[%s6242_s3 + $0x1] ss:$0 sm:$0xff] }
 0x20b   : > { %v4914_v37 = vadd.f32 %v4746_v53, %v678_v38  ;;  %v4921_v29 = vadd.f32 %v4746_v53, %v677_v16  ;;  %v4924_v6 = vadd.f32 %v4746_v53, %v680_v27  ;;  %v4927_v40 = vadd.f32 %v4746_v53, %v679_v12 }
 0x20c   : > { %v4916_v28 = vpop.permute.xlu1 %2024  ;;  %v4918_v56 = vpop.permute.xlu0 %2020  ;;  %v2649_v38 = vrot.slane %v4450_v30, 2  ;;  %v2648_v55 = vrot.slane %v4453_v59, 2  ;;  %v2645_v16 = vsel %vm1016_vm0, %v2643_v20, %v2644_v24  ;;  %v2642_v13 = vsel %vm1016_vm0, %v2639_v3, %v2641_v51  ;;  %v6560_v30 = vld [vmem:[#allocation24_spill] sm:$0xff]  ;;  %v6562_v20 = vld [vmem:[#allocation33_spill] sm:$0xff]  ;;  %v6563_v3 = vld [vmem:[#allocation26_spill] sm:$0xff] }
 0x20d   : > { %6552 = vst [vmem:[#allocation4_spill] sm:$0xff] %v4916_v28  ;;  %6553 = vst [vmem:[#allocation9_spill] sm:$0xff] %v4918_v56  ;;  %2724 = vperm.xlu1 %3289, %v2640_v39   ;;  %2720 = vperm.xlu0 %3288, %v2637_v22   ;;  %v2646_v27 = vrot.slane %v4620_v54, 2  ;;  %v4940_v12 = vadd.f32 %v4746_v53, %v682_v10  ;;  %v4943_v35 = vadd.f32 %v4746_v53, %v681_v52  ;;  %v6559_v28 = vld [vmem:[#allocation23_spill] sm:$0xff]  ;;  %v6561_v39 = vld [vmem:[#allocation25_spill] sm:$0xff] }
 0x20e   : > { %6554 = vst [vmem:[#allocation6_spill] sm:$0xff] %v4921_v29  ;;  %6555 = vst [vmem:[#allocation12_spill] sm:$0xff] %v4924_v6  ;;  %v684_v56 = vmul.f32 %v4725_v11, %v6559_v28  ;;  %v683_v22 = vmul.f32 %v4725_v11, %v6560_v30  ;;  %v686_v59 = vmul.f32 %v4725_v11, %v6561_v39  ;;  %v6564_v10 = vld [vmem:[#allocation34_spill] sm:$0xff]  ;;  %v6567_v28 = vld [vmem:[#allocation35_spill] sm:$0xff] }
 0x20f   : > { %6556 = vst [vmem:[#allocation8_spill] sm:$0xff] %v4927_v40  ;;  %6557 = vst [vmem:[#allocation13_spill] sm:$0xff] %v4940_v12  ;;  %v685_v51 = vmul.f32 %v4725_v11, %v6562_v20  ;;  %v953_v54 = vmul.f32 %v4932_v21, %v6563_v3  ;;  %v952_v12 = vmul.f32 %v4932_v21, %v6564_v10  ;;  %v6568_v30 = vld [vmem:[#allocation36_spill] sm:$0xff]  ;;  %v6569_v39 = vld [vmem:[#allocation37_spill] sm:$0xff]  ;;  %v2654_v11 = vrot.slane %v4462_v48, 2 }
 0x210   : > { %6558 = vst [vmem:[#allocation10_spill] sm:$0xff] %v4943_v35  ;;  %v4957_v52 = vpop.permute.xlu1 %2032  ;;  %v4959_v35 = vpop.permute.xlu0 %2028  ;;  %v955_v40 = vmul.f32 %v4932_v21, %v6567_v28  ;;  %v954_v6 = vmul.f32 %v4932_v21, %v6568_v30  ;;  %v957_v29 = vmul.f32 %v4932_v21, %v6569_v39  ;;  %v2653_v20 = vrot.slane %v4465_v42, 2  ;;  %v6571_v48 = vld [vmem:[#allocation39_spill] sm:$0xff] }
 0x211   : > { %6565 = vst [vmem:[#allocation14_spill] sm:$0xff] %v4957_v52  ;;  %6566 = vst [vmem:[#allocation11_spill] sm:$0xff] %v4959_v35  ;;  %2732 = vperm.xlu1 %3289, %v2645_v16   ;;  %2728 = vperm.xlu0 %3288, %v2642_v13   ;;  %v2650_v3 = vsel %vm1016_vm0, %v2648_v55, %v2649_v38  ;;  %v2647_v10 = vsel %vm1016_vm0, %v2644_v24, %v2646_v27  ;;  %v2651_v35 = vrot.slane %v4632_v45, 2  ;;  %v6570_v52 = vld [vmem:[#allocation38_spill] sm:$0xff] }
 0x212   : > { %v4973_v28 = vadd.f32 %v4746_v53, %v684_v56  ;;  %v4976_v30 = vadd.f32 %v4746_v53, %v683_v22  ;;  %v956_v39 = vmul.f32 %v4932_v21, %v6570_v52  ;;  %v959_v16 = vmul.f32 %v4932_v21, %v6571_v48 }
 0x213   : > { %v4983_v42 = vadd.f32 %v4746_v53, %v686_v59  ;;  %v4986_v55 = vadd.f32 %v4746_v53, %v685_v51  ;;  %v4989_v45 = vadd.f32 %v953_v54, %v4778_v7  ;;  %v4992_v24 = vadd.f32 %v952_v12, %v4768_v17  ;;  %v6575_v54 = vld [vmem:[#allocation43_spill] sm:$0xff] }
 0x214   : > { %v4994_v56 = vpop.permute.xlu1 %2114  ;;  %v4996_v13 = vpop.permute.xlu0 %2109  ;;  %v4999_v27 = vadd.f32 %v955_v40, %v4775_v26  ;;  %v5002_v22 = vadd.f32 %v954_v6, %v4765_v9  ;;  %v5005_v59 = vadd.f32 %v957_v29, %v4781_v33  ;;  %v2659_v53 = vrot.slane %v4474_v62, 2  ;;  %v6572_v33 = vld [vmem:[#allocation40_spill] sm:$0xff]  ;;  %v6573_v62 = vld [vmem:[#allocation41_spill] sm:$0xff]  ;;  %v6574_v40 = vld [vmem:[#allocation42_spill] sm:$0xff] }
 0x215   : > { %2740 = vperm.xlu1 %3289, %v2650_v3   ;;  %2736 = vperm.xlu0 %3288, %v2647_v10   ;;  %v2658_v17 = vrot.slane %v4477_v0, 2  ;;  %v2655_v7 = vsel %vm1016_vm0, %v2653_v20, %v2654_v11  ;;  %v2652_v12 = vsel %vm1016_vm0, %v2649_v38, %v2651_v35  ;;  %v2656_v51 = vrot.slane %v4644_v14, 2  ;;  %v6576_v35 = vld [vmem:[#allocation44_spill] sm:$0xff]  ;;  %v6580_v3 = vld [vmem:[#allocation46_spill] sm:$0xff] }
 0x216   : > { %v5013_v26 = vadd.f32 %v956_v39, %v4789_v31  ;;  %v5016_v9 = vadd.f32 %v959_v16, %v4820_v41  ;;  %v958_v29 = vmul.f32 %v4932_v21, %v6572_v33  ;;  %v961_v6 = vmul.f32 %v4932_v21, %v6573_v62  ;;  %v6577_v31 = vld [vmem:[#allocation45_spill] sm:$0xff]  ;;  %v6581_v39 = vld [vmem:[#allocation47_spill] sm:$0xff]  ;;  %v6582_v16 = vld [vmem:[#allocation48_spill] sm:$0xff] }
 0x217   : > { %v960_v0 = vmul.f32 %v4932_v21, %v6574_v40  ;;  %v963_v38 = vmul.f32 %v4932_v21, %v6575_v54  ;;  %v962_v14 = vmul.f32 %v4932_v21, %v6576_v35  ;;  %v965_v52 = vmul.f32 %v4932_v21, %v6577_v31 }
 0x218   : > { %v5030_v41 = vpop.permute.xlu1 %2124  ;;  %v5032_v20 = vpop.permute.xlu0 %2119  ;;  %v964_v10 = vmul.f32 %v4932_v21, %v6580_v3  ;;  %v967_v48 = vmul.f32 %v4932_v21, %v6581_v39  ;;  %v966_v33 = vmul.f32 %v4932_v21, %v6582_v16  ;;  %v2664_v62 = vrot.slane %v4486_v36, 2  ;;  %v6584_v36 = vld [vmem:[#allocation50_spill] sm:$0xff] }
 0x219   : > { %6578 = vst [vmem:[#allocation16_spill] sm:$0xff] %v5030_v41  ;;  %6579 = vst [vmem:[#allocation15_spill] sm:$0xff] %v5032_v20  ;;  %2748 = vperm.xlu1 %3289, %v2655_v7   ;;  %2744 = vperm.xlu0 %3288, %v2652_v12   ;;  %v2663_v40 = vrot.slane %v4489_v23, 2  ;;  %v2660_v54 = vsel %vm1016_vm0, %v2658_v17, %v2659_v53  ;;  %v2657_v35 = vsel %vm1016_vm0, %v2654_v11, %v2656_v51  ;;  %v6583_v20 = vld [vmem:[#allocation49_spill] sm:$0xff]  ;;  %v5356_v41 = vld [vmem:[%s4407_s6 + $0x160] sm:$0x3] }
 0x21a   : > { %v2661_v31 = vrot.slane %v4656_v8, 2  ;;  %v5046_v3 = vadd.f32 %v958_v29, %v4823_v50  ;;  %v5049_v39 = vadd.f32 %v961_v6, %v4830_v57  ;;  %v969_v16 = vmul.f32 %v4932_v21, %v6583_v20  ;;  %v6591_v20 = vld [vmem:[#allocation55_spill] sm:$0xff] }
 0x21b   : > { %v968_v7 = vmul.f32 %v4932_v21, %v6584_v36  ;;  %v5056_v23 = vadd.f32 %v960_v0, %v4833_v4  ;;  %v5059_v17 = vadd.f32 %v963_v38, %v4836_v60  ;;  %v5062_v8 = vadd.f32 %v962_v14, %v4839_v32  ;;  %v6589_v14 = vld [vmem:[#allocation53_spill] sm:$0xff] }
 0x21c   : > { %v5065_v50 = vadd.f32 %v965_v52, %v4846_v58  ;;  %v5067_v57 = vpop.permute.xlu1 %2134  ;;  %v5069_v11 = vpop.permute.xlu0 %2129  ;;  %v5072_v12 = vadd.f32 %v964_v10, %v4849_v61  ;;  %v5075_v51 = vadd.f32 %v967_v48, %v4852_v49  ;;  %v5078_v4 = vadd.f32 %v966_v33, %v4862_v18  ;;  %v6587_v18 = vld [vmem:[#allocation51_spill] sm:$0xff]  ;;  %v6590_v52 = vld [vmem:[#allocation54_spill] sm:$0xff]  ;;  %v6595_v33 = vld [vmem:[#allocation57_spill] sm:$0xff] }
 0x21d   : > { %6585 = vst [vmem:[#allocation17_spill] sm:$0xff] %v5067_v57  ;;  %6586 = vst [vmem:[#allocation18_spill] sm:$0xff] %v5069_v11  ;;  %v2669_v60 = vrot.slane %v4498_v2, 2  ;;  %2756 = vperm.xlu1 %3289, %v2660_v54   ;;  %2752 = vperm.xlu0 %3288, %v2657_v35   ;;  %v2668_v32 = vrot.slane %v4501_v19, 2  ;;  %v2665_v58 = vsel %vm1016_vm0, %v2663_v40, %v2664_v62  ;;  %v2666_v6 = vrot.slane %v4668_v46, 2  ;;  %v6588_v2 = vld [vmem:[#allocation52_spill] sm:$0xff] }
 0x21e   : > { %v2662_v29 = vsel %vm1016_vm0, %v2659_v53, %v2661_v31  ;;  %v5086_v61 = vadd.f32 %v969_v16, %v4865_v15  ;;  %v5089_v49 = vadd.f32 %v968_v7, %v4895_v25  ;;  %v971_v0 = vmul.f32 %v4932_v21, %v6587_v18  ;;  %v6592_v15 = vld [vmem:[#allocation56_spill] sm:$0xff]  ;;  %v6596_v54 = vld [vmem:[#allocation58_spill] sm:$0xff]  ;;  %v6597_v31 = vld [vmem:[#allocation59_spill] sm:$0xff] }
 0x21f   : > { %v970_v38 = vmul.f32 %v4932_v21, %v6588_v2  ;;  %v973_v19 = vmul.f32 %v4932_v21, %v6589_v14  ;;  %v972_v53 = vmul.f32 %v4932_v21, %v6590_v52  ;;  %v975_v46 = vmul.f32 %v4932_v21, %v6591_v20  ;;  %v6624_v11 = vld [vmem:[#allocation71_spill] sm:$0xff]  ;;  %v6665_v57 = vld [vmem:[#allocation92_spill] sm:$0xff] }
 0x220   : > { %v974_v10 = vmul.f32 %v4932_v21, %v6592_v15  ;;  %v5103_v25 = vpop.permute.xlu1 %2144  ;;  %v5105_v48 = vpop.permute.xlu0 %2139  ;;  %v977_v40 = vmul.f32 %v4932_v21, %v6595_v33  ;;  %v976_v35 = vmul.f32 %v4932_v21, %v6596_v54  ;;  %v979_v16 = vmul.f32 %v4932_v21, %v6597_v31  ;;  %v6598_v15 = vld [vmem:[#allocation60_spill] sm:$0xff] }
 0x221   : > { %6593 = vst [vmem:[#allocation19_spill] sm:$0xff] %v5103_v25  ;;  %6594 = vst [vmem:[#allocation20_spill] sm:$0xff] %v5105_v48  ;;  %v2674_v36 = vrot.slane %v4510_v34, 2  ;;  %2764 = vperm.xlu1 %3289, %v2665_v58   ;;  %2760 = vperm.xlu0 %3288, %v2662_v29   ;;  %v2673_v7 = vrot.slane %v4513_v47, 2  ;;  %v2670_v18 = vsel %vm1016_vm0, %v2668_v32, %v2669_v60  ;;  %v2671_v14 = vrot.slane %v4680_v43, 2  ;;  %v6599_v34 = vld [vmem:[#allocation61_spill] sm:$0xff] }
 0x222   : > { %v2667_v2 = vsel %vm1016_vm0, %v2664_v62, %v2666_v6  ;;  %v5119_v52 = vadd.f32 %v971_v0, %v4898_v44  ;;  %v5122_v20 = vadd.f32 %v970_v38, %v4905_v5  ;;  %v978_v33 = vmul.f32 %v4932_v21, %v6598_v15  ;;  %v6600_v44 = vld [vmem:[#allocation6_spill] sm:$0xff]  ;;  %v6603_v6 = vld [vmem:[#allocation12_spill] sm:$0xff] }
 0x223   : > { %v981_v58 = vmul.f32 %v4932_v21, %v6599_v34  ;;  %v5129_v47 = vadd.f32 %v973_v19, %v4908_v1  ;;  %v5132_v32 = vadd.f32 %v972_v53, %v4911_v63  ;;  %v5135_v43 = vadd.f32 %v975_v46, %v4914_v37  ;;  %v6604_v38 = vld [vmem:[#allocation8_spill] sm:$0xff]  ;;  %v6605_v1 = vld [vmem:[#allocation13_spill] sm:$0xff]  ;;  %v5156_v63 = vld [vmem:[%s6242_s3 + $0x2] ss:$0 sm:$0xff] }
 0x224   : > { %v5138_v62 = vadd.f32 %v974_v10, %v6600_v44  ;;  %v5140_v5 = vpop.permute.xlu1 %2154  ;;  %v5142_v29 = vpop.permute.xlu0 %2149  ;;  %v5145_v0 = vadd.f32 %v977_v40, %v6603_v6  ;;  %v5148_v54 = vadd.f32 %v976_v35, %v6604_v38  ;;  %v5151_v19 = vadd.f32 %v979_v16, %v6605_v1  ;;  %v6606_v37 = vld [vmem:[#allocation147_spill] sm:$0xff]  ;;  %v6607_v46 = vld [vmem:[#allocation148_spill] sm:$0xff]  ;;  %v6609_v34 = vld [vmem:[#allocation10_spill] sm:$0xff] }
 0x225   : > { %6601 = vst [vmem:[#allocation21_spill] sm:$0xff] %v5140_v5  ;;  %6602 = vst [vmem:[#allocation22_spill] sm:$0xff] %v5142_v29  ;;  %v2679_v53 = vrot.slane %v6606_v37, 2  ;;  %2772 = vperm.xlu1 %3289, %v2670_v18   ;;  %2768 = vperm.xlu0 %3288, %v2667_v2   ;;  %v2678_v10 = vrot.slane %v6607_v46, 2  ;;  %v2675_v40 = vsel %vm1016_vm0, %v2673_v7, %v2674_v36  ;;  %v6608_v35 = vld [vmem:[#allocation187_spill] sm:$0xff]  ;;  %v6610_v6 = vld [vmem:[#allocation62_spill] sm:$0xff] }
 0x226   : > { %v2672_v31 = vsel %vm1016_vm0, %v2669_v60, %v2671_v14  ;;  %v2676_v15 = vrot.slane %v6608_v35, 2  ;;  %v5164_v16 = vadd.f32 %v978_v33, %v6609_v34  ;;  %v5167_v44 = vadd.f32 %v981_v58, %v4973_v28  ;;  %v6611_v1 = vld [vmem:[#allocation63_spill] sm:$0xff]  ;;  %v6612_v2 = vld [vmem:[#allocation64_spill] sm:$0xff]  ;;  %v6613_v7 = vld [vmem:[#allocation65_spill] sm:$0xff] }
 0x227   : > { %v980_v38 = vmul.f32 %v4932_v21, %v6610_v6  ;;  %v983_v18 = vmul.f32 %v4932_v21, %v6611_v1  ;;  %v982_v37 = vmul.f32 %v4932_v21, %v6612_v2  ;;  %v1234_v60 = vmul.f32 %v5156_v63, %v6613_v7  ;;  %v6614_v14 = vld [vmem:[#allocation66_spill] sm:$0xff]  ;;  %v6615_v33 = vld [vmem:[#allocation67_spill] sm:$0xff]  ;;  %v6618_v34 = vld [vmem:[#allocation68_spill] sm:$0xff] }
 0x228   : > { %v1233_v46 = vmul.f32 %v5156_v63, %v6614_v14  ;;  %v1236_v35 = vmul.f32 %v5156_v63, %v6615_v33  ;;  %v5181_v28 = vpop.permute.xlu1 %2164  ;;  %v5183_v58 = vpop.permute.xlu0 %2159  ;;  %v1235_v6 = vmul.f32 %v5156_v63, %v6618_v34  ;;  %v6619_v1 = vld [vmem:[#allocation69_spill] sm:$0xff]  ;;  %v6620_v21 = vld [vmem:[#allocation70_spill] sm:$0xff]  ;;  %v6621_v7 = vld [vmem:[#allocation151_spill] sm:$0xff]  ;;  %v2680_v33 = vsel %vm1016_vm0, %v2678_v10, %v2679_v53 }
 0x229   : > { %6616 = vst [vmem:[#allocation23_spill] sm:$0xff] %v5181_v28  ;;  %6617 = vst [vmem:[#allocation24_spill] sm:$0xff] %v5183_v58  ;;  %v1238_v29 = vmul.f32 %v5156_v63, %v6619_v1  ;;  %v1237_v2 = vmul.f32 %v5156_v63, %v6620_v21  ;;  %v2684_v5 = vrot.slane %v6621_v7, 2  ;;  %2780 = vperm.xlu1 %3289, %v2675_v40   ;;  %2776 = vperm.xlu0 %3288, %v2672_v31   ;;  %v6622_v14 = vld [vmem:[#allocation152_spill] sm:$0xff]  ;;  %v6623_v58 = vld [vmem:[#allocation190_spill] sm:$0xff] }
 0x22a   : > { %v2683_v48 = vrot.slane %v6622_v14, 2  ;;  %v2677_v28 = vsel %vm1016_vm0, %v2674_v36, %v2676_v15  ;;  %v2681_v25 = vrot.slane %v6623_v58, 2  ;;  %v5197_v34 = vadd.f32 %v980_v38, %v4976_v30  ;;  %v6625_v7 = vld [vmem:[#allocation72_spill] sm:$0xff]  ;;  %v6632_v58 = vld [vmem:[#allocation74_spill] sm:$0xff] }
 0x22b   : > { %v5200_v1 = vadd.f32 %v983_v18, %v4983_v42  ;;  %v1240_v21 = vmul.f32 %v5156_v63, %v6624_v11  ;;  %v1239_v40 = vmul.f32 %v5156_v63, %v6625_v7  ;;  %v5207_v31 = vadd.f32 %v982_v37, %v4986_v55  ;;  %v6639_v7 = vld [vmem:[#allocation79_spill] sm:$0xff] }
 0x22c   : > { %v5210_v10 = vadd.f32 %v1234_v60, %v4989_v45  ;;  %v5213_v36 = vadd.f32 %v1233_v46, %v4992_v24  ;;  %v5216_v30 = vadd.f32 %v1236_v35, %v4999_v27  ;;  %v5218_v42 = vpop.permute.xlu1 %2174  ;;  %v5220_v15 = vpop.permute.xlu0 %2169  ;;  %v5223_v11 = vadd.f32 %v1235_v6, %v5002_v22  ;;  %v6628_v45 = vld [vmem:[#allocation155_spill] sm:$0xff]  ;;  %v6629_v24 = vld [vmem:[#allocation156_spill] sm:$0xff]  ;;  %v6630_v46 = vld [vmem:[#allocation193_spill] sm:$0xff] }
 0x22d   : > { %6626 = vst [vmem:[#allocation25_spill] sm:$0xff] %v5218_v42  ;;  %6627 = vst [vmem:[#allocation33_spill] sm:$0xff] %v5220_v15  ;;  %v5226_v38 = vadd.f32 %v1238_v29, %v5005_v59  ;;  %v5229_v55 = vadd.f32 %v1237_v2, %v5013_v26  ;;  %v2689_v18 = vrot.slane %v6628_v45, 2  ;;  %2788 = vperm.xlu1 %3289, %v2680_v33   ;;  %2784 = vperm.xlu0 %3288, %v2677_v28   ;;  %v6631_v26 = vld [vmem:[#allocation73_spill] sm:$0xff]  ;;  %v6633_v6 = vld [vmem:[#allocation75_spill] sm:$0xff] }
 0x22e   : > { %v2688_v27 = vrot.slane %v6629_v24, 2  ;;  %v2685_v37 = vsel %vm1016_vm0, %v2683_v48, %v2684_v5  ;;  %v2682_v60 = vsel %vm1016_vm0, %v2679_v53, %v2681_v25  ;;  %v2686_v35 = vrot.slane %v6630_v46, 2  ;;  %v6634_v48 = vld [vmem:[#allocation76_spill] sm:$0xff]  ;;  %v6635_v53 = vld [vmem:[#allocation77_spill] sm:$0xff]  ;;  %v6645_v42 = vld [vmem:[#allocation82_spill] sm:$0xff] }
 0x22f   : > { %v5237_v22 = vadd.f32 %v1240_v21, %v5016_v9  ;;  %v5240_v59 = vadd.f32 %v1239_v40, %v5046_v3  ;;  %v1242_v29 = vmul.f32 %v5156_v63, %v6631_v26  ;;  %v1241_v28 = vmul.f32 %v5156_v63, %v6632_v58  ;;  %v6636_v9 = vld [vmem:[#allocation78_spill] sm:$0xff]  ;;  %v6640_v45 = vld [vmem:[#allocation80_spill] sm:$0xff]  ;;  %v6641_v46 = vld [vmem:[#allocation81_spill] sm:$0xff] }
 0x230   : > { %v1244_v2 = vmul.f32 %v5156_v63, %v6633_v6  ;;  %v1243_v25 = vmul.f32 %v5156_v63, %v6634_v48  ;;  %v1246_v14 = vmul.f32 %v5156_v63, %v6635_v53  ;;  %v1245_v33 = vmul.f32 %v5156_v63, %v6636_v9  ;;  %v5254_v3 = vpop.permute.xlu1 %2184  ;;  %v5256_v21 = vpop.permute.xlu0 %2179  ;;  %v6642_v58 = vld [vmem:[#allocation159_spill] sm:$0xff]  ;;  %v6643_v48 = vld [vmem:[#allocation160_spill] sm:$0xff] }
 0x231   : > { %6637 = vst [vmem:[#allocation26_spill] sm:$0xff] %v5254_v3  ;;  %6638 = vst [vmem:[#allocation34_spill] sm:$0xff] %v5256_v21  ;;  %v1248_v40 = vmul.f32 %v5156_v63, %v6639_v7  ;;  %v1247_v24 = vmul.f32 %v5156_v63, %v6640_v45  ;;  %v1250_v26 = vmul.f32 %v5156_v63, %v6641_v46  ;;  %v2694_v6 = vrot.slane %v6642_v58, 2  ;;  %v6644_v21 = vld [vmem:[#allocation196_spill] sm:$0xff]  ;;  %v6646_v58 = vld [vmem:[#allocation83_spill] sm:$0xff] }
 0x232   : > { %2796 = vperm.xlu1 %3289, %v2685_v37   ;;  %2792 = vperm.xlu0 %3288, %v2682_v60   ;;  %v2693_v53 = vrot.slane %v6643_v48, 2  ;;  %v2690_v9 = vsel %vm1016_vm0, %v2688_v27, %v2689_v18  ;;  %v2687_v3 = vsel %vm1016_vm0, %v2684_v5, %v2686_v35  ;;  %v2691_v15 = vrot.slane %v6644_v21, 2  ;;  %v5280_v60 = vld [vmem:[%s4407_s6 + $0x148] sm:$0x3]  ;;  %v6652_v21 = vld [vmem:[#allocation86_spill] sm:$0xff] }
 0x233   : > { %v5270_v7 = vadd.f32 %v1242_v29, %v5049_v39  ;;  %v5273_v45 = vadd.f32 %v1241_v28, %v5056_v23  ;;  %v1249_v46 = vmul.f32 %v5156_v63, %v6645_v42  ;;  %v1252_v37 = vmul.f32 %v5156_v63, %v6646_v58  ;;  %v6659_v58 = vld [vmem:[#allocation91_spill] sm:$0xff] }
 0x234   : > { %v5283_v27 = vadd.f32 %v1244_v2, %v5059_v17  ;;  %v5286_v5 = vadd.f32 %v1243_v25, %v5062_v8  ;;  %v5289_v39 = vadd.f32 %v1246_v14, %v5065_v50  ;;  %v5292_v23 = vadd.f32 %v1245_v33, %v5072_v12  ;;  %v5294_v35 = vpop.permute.xlu1 %2194  ;;  %v5296_v42 = vpop.permute.xlu0 %2189  ;;  %v6649_v2 = vld [vmem:[#allocation28_spill] sm:$0xff]  ;;  %v6651_v33 = vld [vmem:[#allocation85_spill] sm:$0xff] }
 0x235   : > { %6647 = vst [vmem:[#allocation35_spill] sm:$0xff] %v5294_v35  ;;  %6648 = vst [vmem:[#allocation36_spill] sm:$0xff] %v5296_v42  ;;  %v5299_v29 = vadd.f32 %v1248_v40, %v5075_v51  ;;  %v5302_v28 = vadd.f32 %v1247_v24, %v5078_v4  ;;  %v5305_v17 = vadd.f32 %v1250_v26, %v5086_v61  ;;  %v2421_v12 = vrot.slane %v5280_v60, 1  ;;  %v6650_v4 = vld [vmem:[#allocation84_spill] sm:$0xff] }
 0x236   : > { %2804 = vperm.xlu1 %3289, %v2690_v9   ;;  %2800 = vperm.xlu0 %3288, %v2687_v3   ;;  %v2695_v8 = vsel %vm1016_vm0, %v2693_v53, %v2694_v6  ;;  %v2692_v50 = vsel %vm1016_vm0, %v2689_v18, %v2691_v15  ;;  %v2696_v25 = vrot.slane %v6649_v2, 2  ;;  %v5312_v14 = vadd.f32 %v1249_v46, %v5089_v49  ;;  %v6653_v15 = vld [vmem:[#allocation87_spill] sm:$0xff]  ;;  %v6654_v24 = vld [vmem:[#allocation88_spill] sm:$0xff]  ;;  %v6655_v49 = vld [vmem:[#allocation89_spill] sm:$0xff] }
 0x237   : > { %v5315_v51 = vadd.f32 %v1252_v37, %v5119_v52  ;;  %v1251_v61 = vmul.f32 %v5156_v63, %v6650_v4  ;;  %v1254_v3 = vmul.f32 %v5156_v63, %v6651_v33  ;;  %v1253_v40 = vmul.f32 %v5156_v63, %v6652_v21  ;;  %v6658_v9 = vld [vmem:[#allocation90_spill] sm:$0xff]  ;;  %v6660_v2 = vld [vmem:[#allocation163_spill] sm:$0xff]  ;;  %v6661_v33 = vld [vmem:[#allocation164_spill] sm:$0xff] }
 0x238   : > { %v1256_v18 = vmul.f32 %v5156_v63, %v6653_v15  ;;  %v1255_v26 = vmul.f32 %v5156_v63, %v6654_v24  ;;  %v1258_v48 = vmul.f32 %v5156_v63, %v6655_v49  ;;  %v5329_v52 = vpop.permute.xlu1 %2204  ;;  %v5331_v53 = vpop.permute.xlu0 %2199  ;;  %v1257_v46 = vmul.f32 %v5156_v63, %v6658_v9  ;;  %v6662_v15 = vld [vmem:[#allocation167_spill] sm:$0xff]  ;;  %v6663_v49 = vld [vmem:[#allocation168_spill] sm:$0xff] }
 0x239   : > { %6656 = vst [vmem:[#allocation37_spill] sm:$0xff] %v5329_v52  ;;  %6657 = vst [vmem:[#allocation38_spill] sm:$0xff] %v5331_v53  ;;  %v1260_v37 = vmul.f32 %v5156_v63, %v6659_v58  ;;  %v2699_v4 = vrot.slane %v6660_v2, 2  ;;  %v2698_v21 = vrot.slane %v6661_v33, 2  ;;  %v2424_v24 = vrot.slane %v6662_v15, 1 }
 0x23a   : > { %2812 = vperm.xlu1 %3289, %v2695_v8   ;;  %2808 = vperm.xlu0 %3288, %v2692_v50   ;;  %v2423_v42 = vrot.slane %v6663_v49, 1  ;;  %v6664_v52 = vrot.slane %v6660_v2, 1  ;;  %v2697_v35 = vsel %vm1016_vm0, %v2694_v6, %v2696_v25  ;;  %v5346_v9 = vadd.f32 %v1251_v61, %v5122_v20  ;;  %v6666_v50 = vld [vmem:[#allocation93_spill] sm:$0xff]  ;;  %v6667_v6 = vld [vmem:[#allocation94_spill] sm:$0xff] }
 0x23b   : > { %v5349_v58 = vadd.f32 %v1254_v3, %v5129_v47  ;;  %v1259_v8 = vmul.f32 %v5156_v63, %v6665_v57  ;;  %v1262_v33 = vmul.f32 %v5156_v63, %v6666_v50  ;;  %v5359_v2 = vadd.f32 %v1253_v40, %v5132_v32  ;;  %v6675_v50 = vld [vmem:[#allocation99_spill] sm:$0xff] }
 0x23c   : > { %v2422_v53 = vsel %vm735_vm1, %v6664_v52, %v2421_v12  ;;  %v5362_v12 = vadd.f32 %v1256_v18, %v5135_v43  ;;  %v5365_v20 = vadd.f32 %v1255_v26, %v5138_v62  ;;  %v1261_v47 = vmul.f32 %v5156_v63, %v6667_v6  ;;  %v5369_v25 = vpop.permute.xlu1 %2214  ;;  %v5371_v57 = vpop.permute.xlu0 %2209  ;;  %v5385_v43 = vld [vmem:[%s6242_s3 + $0x3] ss:$0 sm:$0xff]  ;;  %v6669_v26 = vld [vmem:[#allocation95_spill] sm:$0xff]  ;;  %v6670_v52 = vld [vmem:[#allocation96_spill] sm:$0xff] }
 0x23d   : > { %6668 = vst [vmem:[#allocation39_spill] sm:$0xff] %v5371_v57  ;;  %v5374_v61 = vadd.f32 %v1258_v48, %v5145_v0  ;;  %v5377_v3 = vadd.f32 %v1257_v46, %v5148_v54  ;;  %v5380_v32 = vadd.f32 %v1260_v37, %v5151_v19  ;;  %v2425_v62 = vsel %vm735_vm1, %v2423_v42, %v2424_v24  ;;  %v6677_v6 = vld [vmem:[#allocation171_spill] sm:$0xff] }
 0x23e   : > { %2544 = vperm.xlu1 %3289, %v2422_v53   ;;  %2816 = vperm.xlu0 %3288, %v2697_v35   ;;  %v2700_v40 = vsel %vm1016_vm0, %v2698_v21, %v2699_v4  ;;  %v2426_v0 = vrot.slane %v5356_v41, 1  ;;  %v2701_v18 = vrot.slane %v5280_v60, 2  ;;  %v5392_v54 = vadd.f32 %v1259_v8, %v5164_v16  ;;  %v6671_v53 = vld [vmem:[#allocation97_spill] sm:$0xff]  ;;  %v6674_v21 = vld [vmem:[#allocation98_spill] sm:$0xff] }
 0x23f   : > { %v5395_v19 = vadd.f32 %v1262_v33, %v5167_v44  ;;  %v1264_v48 = vmul.f32 %v5156_v63, %v6669_v26  ;;  %v1263_v35 = vmul.f32 %v5156_v63, %v6670_v52  ;;  %v5402_v42 = vadd.f32 %v1261_v47, %v5197_v34  ;;  %v6676_v34 = vld [vmem:[#allocation100_spill] sm:$0xff] }
 0x240   : > { %v1466_v46 = vmul.f32 %v5385_v43, %v6671_v53  ;;  %v2704_v60 = vrot.slane %v6662_v15, 2  ;;  %v2703_v16 = vrot.slane %v6663_v49, 2  ;;  %v5408_v37 = vpop.permute.xlu1 %2224  ;;  %v5410_v44 = vpop.permute.xlu0 %2219  ;;  %v1465_v8 = vmul.f32 %v5385_v43, %v6674_v21  ;;  %v6678_v15 = vld [vmem:[#allocation101_spill] sm:$0xff]  ;;  %v6679_v26 = vld [vmem:[#allocation172_spill] sm:$0xff] }
 0x241   : > { %6672 = vst [vmem:[#allocation40_spill] sm:$0xff] %v5408_v37  ;;  %6673 = vst [vmem:[#allocation41_spill] sm:$0xff] %v5410_v44  ;;  %v1468_v63 = vmul.f32 %v5385_v43, %v6675_v50  ;;  %v1467_v33 = vmul.f32 %v5385_v43, %v6676_v34  ;;  %v2429_v47 = vrot.slane %v6677_v6, 1  ;;  %v1470_v49 = vmul.f32 %v5385_v43, %v6678_v15  ;;  %v5425_v21 = vld [vmem:[%s4407_s6 + $0x178] sm:$0x3]  ;;  %v6680_v34 = vld [vmem:[#allocation102_spill] sm:$0xff] }
 0x242   : > { %2548 = vperm.xlu1 %3289, %v2425_v62   ;;  %2820 = vperm.xlu0 %3288, %v2700_v40   ;;  %v2428_v52 = vrot.slane %v6679_v26, 1  ;;  %v2427_v53 = vsel %vm735_vm1, %v2424_v24, %v2426_v0  ;;  %v2702_v44 = vsel %vm1016_vm0, %v2699_v4, %v2701_v18  ;;  %v1296_v50 = vadd.f32 %v1264_v48, %v5200_v1  ;;  %v6681_v62 = vld [vmem:[#allocation103_spill] sm:$0xff]  ;;  %v6682_v26 = vld [vmem:[#allocation104_spill] sm:$0xff]  ;;  %v6683_v0 = vld [vmem:[#allocation105_spill] sm:$0xff] }
 0x243   : > { %v1295_v37 = vadd.f32 %v1263_v35, %v5207_v31  ;;  %v1469_v57 = vmul.f32 %v5385_v43, %v6680_v34  ;;  %v1472_v40 = vmul.f32 %v5385_v43, %v6681_v62  ;;  %v5434_v15 = vadd.f32 %v1466_v46, %v5210_v10 }
 0x244   : > { %v1471_v24 = vmul.f32 %v5385_v43, %v6682_v26  ;;  %v1474_v4 = vmul.f32 %v5385_v43, %v6683_v0  ;;  %v2709_v18 = vrot.slane %v6677_v6, 2  ;;  %v5441_v1 = vpop.permute.xlu1 %2234  ;;  %v5443_v31 = vpop.permute.xlu0 %2229  ;;  %v1497_v48 = vadd.f32 %v1465_v8, %v5213_v36  ;;  %v6685_v8 = vld [vmem:[#allocation106_spill] sm:$0xff]  ;;  %v6692_v26 = vld [vmem:[#allocation109_spill] sm:$0xff] }
 0x245   : > { %6684 = vst [vmem:[#allocation42_spill] sm:$0xff] %v5443_v31  ;;  %v5447_v35 = vadd.f32 %v1468_v63, %v5216_v30  ;;  %v5450_v10 = vadd.f32 %v1467_v33, %v5223_v11  ;;  %v2431_v46 = vrot.slane %v5425_v21, 1  ;;  %v5454_v34 = vadd.f32 %v1470_v49, %v5226_v38  ;;  %v6686_v63 = vld [vmem:[#allocation127_spill] sm:$0xff] }
 0x246   : > { %2552 = vperm.xlu1 %3289, %v2427_v53   ;;  %2824 = vperm.xlu0 %3288, %v2702_v44   ;;  %v2430_v6 = vsel %vm735_vm1, %v2428_v52, %v2429_v47  ;;  %v2705_v62 = vsel %vm1016_vm0, %v2703_v16, %v2704_v60  ;;  %v2706_v36 = vrot.slane %v5356_v41, 2  ;;  %v5460_v30 = vadd.f32 %v1469_v57, %v5229_v55  ;;  %v6687_v16 = vld [vmem:[#allocation107_spill] sm:$0xff]  ;;  %v6688_v55 = vld [vmem:[#allocation128_spill] sm:$0xff] }
 0x247   : > { %v5463_v11 = vadd.f32 %v1472_v40, %v5237_v22  ;;  %v1473_v44 = vmul.f32 %v5385_v43, %v6685_v8  ;;  %v1496_v38 = vmul.f32 %v5385_v43, %v6686_v63  ;;  %v5470_v33 = vadd.f32 %v1471_v24, %v5240_v59  ;;  %v6691_v53 = vld [vmem:[#allocation108_spill] sm:$0xff]  ;;  %v3290_v24 = vld [vmem:[%s4407_s6 + $0x168] sm:$0xff]  ;;  %v6693_v8 = vld [vmem:[#allocation173_spill] sm:$0xff] }
 0x248   : > { %v5473_v49 = vadd.f32 %v1474_v4, %v5270_v7  ;;  %v1476_v41 = vmul.f32 %v5385_v43, %v6687_v16  ;;  %v1495_v57 = vmul.f32 %v5385_v43, %v6688_v55  ;;  %v5479_v22 = vpop.permute.xlu1 %2244  ;;  %v5481_v52 = vpop.permute.xlu0 %2239  ;;  %v1475_v40 = vmul.f32 %v5385_v43, %v6691_v53  ;;  %v5490_v7 = vld [vmem:[%s6242_s3 + $0x4] ss:$0 sm:$0xff] }
 0x249   : > { %6689 = vst [vmem:[#allocation43_spill] sm:$0xff] %v5479_v22  ;;  %6690 = vst [vmem:[#allocation44_spill] sm:$0xff] %v5481_v52  ;;  %v1478_v59 = vmul.f32 %v5385_v43, %v6692_v26  ;;  %v2708_v0 = vrot.slane %v3290_v24, 2  ;;  %v2432_v4 = vsel %vm735_vm1, %v2429_v47, %v2431_v46  ;;  %v1792_v63 = vmul.f32 %v5490_v7, %v6693_v8  ;;  %v6694_v16 = vld [vmem:[#allocation174_spill] sm:$0xff] }
 0x24a   : > { %2556 = vperm.xlu1 %3289, %v2430_v6   ;;  %2828 = vperm.xlu0 %3288, %v2705_v62   ;;  %v1791_v55 = vmul.f32 %v5490_v7, %v6694_v16  ;;  %v2707_v53 = vsel %vm1016_vm0, %v2704_v60, %v2706_v36  ;;  %v2711_v26 = vrot.slane %v5425_v21, 2  ;;  %v5501_v22 = vadd.f32 %v1473_v44, %v5273_v45  ;;  %v6695_v52 = vld [vmem:[#allocation110_spill] sm:$0xff]  ;;  %v6696_v6 = vld [vmem:[#allocation111_spill] sm:$0xff] }
 0x24b   : > { %v1477_v24 = vmul.f32 %v5385_v43, %v6695_v52  ;;  %v1480_v62 = vmul.f32 %v5385_v43, %v6696_v6  ;;  %v1528_v47 = vadd.f32 %v1496_v38, %v1296_v50  ;;  %v5510_v46 = vld [vmem:[%s6242_s3 + $0x5] ss:$0 sm:$0xff]  ;;  %v1527_v8 = vadd.f32 %v1495_v57, %v1295_v37  ;;  %v6699_v36 = vld [vmem:[#allocation11_spill] sm:$0xff] }
 0x24c   : > { %v6697_v16 = vld [vmem:[#allocation130_spill] sm:$0xff]  ;;  %v2071_v44 = vmul.f32 %v5510_v46, %v6699_v36  ;;  %v5518_v52 = vpop.permute.xlu1 %2254  ;;  %v5520_v31 = vpop.permute.xlu0 %2249  ;;  %v5523_v50 = vadd.f32 %v1476_v41, %v5283_v27  ;;  %v5526_v38 = vadd.f32 %v1475_v40, %v5286_v5  ;;  %v5529_v37 = vadd.f32 %v1478_v59, %v5289_v39  ;;  %v6702_v39 = vld [vmem:[#allocation112_spill] sm:$0xff]  ;;  %v6706_v36 = vld [vmem:[#allocation115_spill] sm:$0xff] }
 0x24d   : > { %v1761_v60 = vmul.f32 %v5490_v7, %v6697_v16  ;;  %v6698_v21 = vld [vmem:[#allocation14_spill] sm:$0xff]  ;;  %6700 = vst [vmem:[#allocation45_spill] sm:$0xff] %v5518_v52  ;;  %6701 = vst [vmem:[#allocation46_spill] sm:$0xff] %v5520_v31  ;;  %v1824_v57 = vadd.f32 %v1792_v63, %v1528_v47  ;;  %v1823_v6 = vadd.f32 %v1791_v55, %v1527_v8  ;;  %v6703_v59 = vld [vmem:[#allocation176_spill] sm:$0xff] }
 0x24e   : > { %v2072_v45 = vmul.f32 %v5510_v46, %v6698_v21  ;;  %2560 = vperm.xlu1 %3289, %v2432_v4   ;;  %2832 = vperm.xlu0 %3288, %v2707_v53   ;;  %v5534_v16 = vld [vmem:[%s6242_s3 + $0x6] ss:$0 sm:$0xff]  ;;  %v2712_v21 = vsel %vm1016_vm0, %v2709_v18, %v2711_v26  ;;  %v2710_v27 = vsel %vm1016_vm0, %v2708_v0, %v2709_v18  ;;  %v6704_v63 = vld [vmem:[#allocation113_spill] sm:$0xff] }
 0x24f   : > { %v5539_v41 = vadd.f32 %v1477_v24, %v5292_v23  ;;  %v5542_v5 = vadd.f32 %v1480_v62, %v5299_v29  ;;  %v1479_v40 = vmul.f32 %v5385_v43, %v6702_v39  ;;  %v2041_v4 = vmul.f32 %v5510_v46, %v6703_v59  ;;  %v6705_v24 = vld [vmem:[#allocation114_spill] sm:$0xff] }
 0x250   : > { %v1482_v55 = vmul.f32 %v5385_v43, %v6704_v63  ;;  %v1793_v53 = vadd.f32 %v1761_v60, %v1497_v48  ;;  %v2104_v47 = vadd.f32 %v2072_v45, %v1824_v57  ;;  %v2103_v26 = vadd.f32 %v2071_v44, %v1823_v6  ;;  %v2265_v8 = vpop.permute.xlu1 %2264  ;;  %v2260_v18 = vpop.permute.xlu0 %2259  ;;  %v6707_v48 = vld [vmem:[#allocation116_spill] sm:$0xff]  ;;  %v6708_v45 = vld [vmem:[#allocation117_spill] sm:$0xff]  ;;  %v6709_v57 = vld [vmem:[#allocation118_spill] sm:$0xff] }
 0x251   : > { %v2273_v23 = vmul.f32 %v5534_v16, %v4996_v13  ;;  %v2304_v29 = vmul.f32 %v5534_v16, %v2265_v8  ;;  %v2303_v0 = vmul.f32 %v5534_v16, %v2260_v18  ;;  %v1481_v62 = vmul.f32 %v5385_v43, %v6705_v24  ;;  %v5565_v13 = vld [vmem:[%s6242_s3 + $0x7] ss:$0 sm:$0xff]  ;;  %v6712_v18 = vld [vmem:[#allocation119_spill] sm:$0xff] }
 0x252   : > { %2840 = vperm.xlu1 %3289, %v2712_v21   ;;  %2836 = vperm.xlu0 %3288, %v2710_v27   ;;  %v1484_v39 = vmul.f32 %v5385_v43, %v6706_v36  ;;  %v1483_v60 = vmul.f32 %v5385_v43, %v6707_v48  ;;  %v1486_v44 = vmul.f32 %v5385_v43, %v6708_v45  ;;  %v6713_v36 = vld [vmem:[#allocation120_spill] sm:$0xff] }
 0x253   : > { %v1485_v6 = vmul.f32 %v5385_v43, %v6709_v57  ;;  %v2073_v21 = vadd.f32 %v2041_v4, %v1793_v53  ;;  %v5569_v27 = vadd.f32 %v2304_v29, %v2104_v47  ;;  %v5571_v59 = vadd.f32 %v2303_v0, %v2103_v26  ;;  %v6714_v4 = vld [vmem:[#allocation121_spill] sm:$0xff]  ;;  %v6715_v47 = vld [vmem:[#allocation122_spill] sm:$0xff]  ;;  %v6716_v0 = vld [vmem:[#allocation123_spill] sm:$0xff] }
 0x254   : > { %v5574_v63 = vadd.f32 %v1479_v40, %v5302_v28  ;;  %v5577_v8 = vadd.f32 %v1482_v55, %v5305_v17  ;;  %v1488_v24 = vmul.f32 %v5385_v43, %v6712_v18  ;;  %v1487_v48 = vmul.f32 %v5385_v43, %v6713_v36  ;;  %v5583_v45 = vpop.permute.xlu1 %2440  ;;  %v2437_v57 = vpop.permute.xlu0 %2436 }
 0x255   : > { %6710 = vst [vmem:[#allocation47_spill] sm:$0xff] %v5569_v27  ;;  %6711 = vst [vmem:[#allocation48_spill] sm:$0xff] %v5571_v59  ;;  %v1490_v53 = vmul.f32 %v5385_v43, %v6714_v4  ;;  %v1489_v26 = vmul.f32 %v5385_v43, %v6715_v47  ;;  %v2305_v28 = vadd.f32 %v2273_v23, %v2073_v21  ;;  %v6717_v23 = vld [vmem:[#allocation124_spill] sm:$0xff]  ;;  %v6734_v59 = vld [vmem:[#allocation142_spill] sm:$0xff] }
 0x256   : > { %v2569_v40 = vmul.f32 %v5565_v13, %v2437_v57  ;;  %v5591_v17 = vadd.f32 %v1481_v62, %v5312_v14  ;;  %v5594_v55 = vadd.f32 %v1484_v39, %v5315_v51  ;;  %v5597_v29 = vadd.f32 %v1483_v60, %v5346_v9  ;;  %v6719_v62 = vld [vmem:[#allocation125_spill] sm:$0xff]  ;;  %v6720_v60 = vld [vmem:[#allocation126_spill] sm:$0xff] }
 0x257   : > { %v1492_v18 = vmul.f32 %v5385_v43, %v6716_v0  ;;  %v5602_v36 = vadd.f32 %v1486_v44, %v5349_v58  ;;  %v5605_v4 = vadd.f32 %v1485_v6, %v5359_v2  ;;  %v1491_v21 = vmul.f32 %v5385_v43, %v6717_v23 }
 0x258   : > { %v5609_v14 = vadd.f32 %v2569_v40, %v2305_v28  ;;  %v5612_v51 = vadd.f32 %v1488_v24, %v5362_v12  ;;  %v5615_v9 = vadd.f32 %v1487_v48, %v5365_v20  ;;  %v1494_v39 = vmul.f32 %v5385_v43, %v6719_v62  ;;  %v5621_v44 = vpop.permute.xlu1 %2448  ;;  %v5623_v2 = vpop.permute.xlu0 %2444  ;;  %v6721_v12 = vld [vmem:[#allocation129_spill] sm:$0xff]  ;;  %v6722_v24 = vld [vmem:[#allocation131_spill] sm:$0xff]  ;;  %v6727_v62 = vld [vmem:[#allocation136_spill] sm:$0xff] }
 0x259   : > { %v1493_v58 = vmul.f32 %v5385_v43, %v6720_v60  ;;  %v5626_v6 = vadd.f32 %v1490_v53, %v5374_v61  ;;  %v5629_v57 = vadd.f32 %v1489_v26, %v5377_v3  ;;  %v1762_v20 = vmul.f32 %v5490_v7, %v6721_v12  ;;  %v6723_v43 = vld [vmem:[#allocation132_spill] sm:$0xff]  ;;  %v6724_v40 = vld [vmem:[#allocation133_spill] sm:$0xff]  ;;  %v6725_v61 = vld [vmem:[#allocation134_spill] sm:$0xff] }
 0x25a   : > { %6718 = vst [vmem:[#allocation49_spill] sm:$0xff] %v5609_v14  ;;  %v1764_v48 = vmul.f32 %v5490_v7, %v6722_v24  ;;  %v5636_v47 = vadd.f32 %v1492_v18, %v5380_v32  ;;  %v1763_v28 = vmul.f32 %v5490_v7, %v6723_v43  ;;  %v1766_v0 = vmul.f32 %v5490_v7, %v6724_v40  ;;  %v6726_v26 = vld [vmem:[#allocation135_spill] sm:$0xff]  ;;  %v6728_v32 = vld [vmem:[#allocation137_spill] sm:$0xff]  ;;  %v6730_v43 = vld [vmem:[#allocation138_spill] sm:$0xff] }
 0x25b   : > { %v1765_v53 = vmul.f32 %v5490_v7, %v6725_v61  ;;  %v5645_v3 = vadd.f32 %v1491_v21, %v5392_v54  ;;  %v1768_v23 = vmul.f32 %v5490_v7, %v6726_v26  ;;  %v1767_v60 = vmul.f32 %v5490_v7, %v6727_v62  ;;  %v6731_v61 = vld [vmem:[#allocation139_spill] sm:$0xff]  ;;  %v6749_v14 = vld [vmem:[#allocation166_spill] sm:$0xff] }
 0x25c   : > { %v1770_v18 = vmul.f32 %v5490_v7, %v6728_v32  ;;  %v5654_v12 = vadd.f32 %v1494_v39, %v5395_v19  ;;  %v1525_v24 = vadd.f32 %v1493_v58, %v5402_v42  ;;  %v1769_v40 = vmul.f32 %v5490_v7, %v6730_v43  ;;  %v5661_v21 = vpop.permute.xlu1 %2456  ;;  %v5663_v26 = vpop.permute.xlu0 %2452  ;;  %v6732_v32 = vld [vmem:[#allocation140_spill] sm:$0xff]  ;;  %v6733_v39 = vld [vmem:[#allocation141_spill] sm:$0xff] }
 0x25d   : > { %v1772_v54 = vmul.f32 %v5490_v7, %v6731_v61  ;;  %v1794_v62 = vadd.f32 %v1762_v20, %v5434_v15  ;;  %v1796_v27 = vadd.f32 %v1764_v48, %v5447_v35  ;;  %v1771_v19 = vmul.f32 %v5490_v7, %v6732_v32  ;;  %v6735_v48 = vld [vmem:[#allocation143_spill] sm:$0xff] }
 0x25e   : > { %6729 = vst [vmem:[#allocation50_spill] sm:$0xff] %v5654_v12  ;;  %v1774_v42 = vmul.f32 %v5490_v7, %v6733_v39  ;;  %v1795_v58 = vadd.f32 %v1763_v28, %v5450_v10  ;;  %v1798_v43 = vadd.f32 %v1766_v0, %v5454_v34  ;;  %v5674_v61 = vadd.f32 %v1765_v53, %v5460_v30  ;;  %v6736_v28 = vld [vmem:[#allocation144_spill] sm:$0xff]  ;;  %v6741_v39 = vld [vmem:[#allocation153_spill] sm:$0xff] }
 0x25f   : > { %v1773_v52 = vmul.f32 %v5490_v7, %v6734_v59  ;;  %v5679_v15 = vadd.f32 %v1768_v23, %v5463_v11  ;;  %v5682_v35 = vadd.f32 %v1767_v60, %v5470_v33  ;;  %v5685_v20 = vadd.f32 %v1770_v18, %v5473_v49  ;;  %v6737_v11 = vld [vmem:[#allocation145_spill] sm:$0xff] }
 0x260   : > { %v1776_v10 = vmul.f32 %v5490_v7, %v6735_v48  ;;  %v5690_v34 = vadd.f32 %v1769_v40, %v5501_v22  ;;  %v5693_v30 = vadd.f32 %v1772_v54, %v5523_v50  ;;  %v1775_v59 = vmul.f32 %v5490_v7, %v6736_v28  ;;  %v5699_v33 = vpop.permute.xlu1 %2464  ;;  %v5701_v53 = vpop.permute.xlu0 %2460  ;;  %v6738_v22 = vld [vmem:[#allocation146_spill] sm:$0xff]  ;;  %v6739_v60 = vld [vmem:[#allocation149_spill] sm:$0xff] }
 0x261   : > { %v1778_v0 = vmul.f32 %v5490_v7, %v6737_v11  ;;  %v5704_v49 = vadd.f32 %v1771_v19, %v5526_v38  ;;  %v5707_v23 = vadd.f32 %v1774_v42, %v5529_v37  ;;  %v1777_v50 = vmul.f32 %v5490_v7, %v6738_v22  ;;  %v6740_v54 = vld [vmem:[#allocation150_spill] sm:$0xff]  ;;  %v6743_v42 = vld [vmem:[#allocation157_spill] sm:$0xff] }
 0x262   : > { %v1780_v18 = vmul.f32 %v5490_v7, %v6739_v60  ;;  %v5714_v40 = vadd.f32 %v1773_v52, %v5539_v41  ;;  %v1779_v32 = vmul.f32 %v5490_v7, %v6740_v54  ;;  %v1782_v48 = vmul.f32 %v5490_v7, %v6741_v39  ;;  %v6742_v38 = vld [vmem:[#allocation154_spill] sm:$0xff]  ;;  %v6745_v52 = vld [vmem:[#allocation161_spill] sm:$0xff] }
 0x263   : > { %v1781_v19 = vmul.f32 %v5490_v7, %v6742_v38  ;;  %v5723_v37 = vadd.f32 %v1776_v10, %v5542_v5  ;;  %v1784_v28 = vmul.f32 %v5490_v7, %v6743_v42  ;;  %v6744_v11 = vld [vmem:[#allocation158_spill] sm:$0xff]  ;;  %v1786_v41 = vmul.f32 %v5490_v7, %v6745_v52  ;;  %v6747_v38 = vld [vmem:[#allocation165_spill] sm:$0xff] }
 0x264   : > { %v1783_v22 = vmul.f32 %v5490_v7, %v6744_v11  ;;  %v1807_v60 = vadd.f32 %v1775_v59, %v5574_v63  ;;  %v1810_v54 = vadd.f32 %v1778_v0, %v5577_v8  ;;  %v6746_v39 = vld [vmem:[#allocation162_spill] sm:$0xff]  ;;  %v1788_v5 = vmul.f32 %v5490_v7, %v6747_v38  ;;  %v5737_v10 = vpop.permute.xlu1 %2472  ;;  %v5739_v31 = vpop.permute.xlu0 %2468  ;;  %v6751_v38 = vld [vmem:[#allocation175_spill] sm:$0xff] }
 0x265   : > { %v1785_v12 = vmul.f32 %v5490_v7, %v6746_v39  ;;  %6748 = vst [vmem:[#allocation51_spill] sm:$0xff] %v5739_v31  ;;  %v1809_v42 = vadd.f32 %v1777_v50, %v5591_v17  ;;  %v1812_v11 = vadd.f32 %v1780_v18, %v5594_v55  ;;  %v1787_v52 = vmul.f32 %v5490_v7, %v6749_v14  ;;  %v6750_v63 = vld [vmem:[#allocation170_spill] sm:$0xff]  ;;  %v6752_v50 = vld [vmem:[#allocation177_spill] sm:$0xff] }
 0x266   : > { %v1789_v8 = vmul.f32 %v5490_v7, %v6750_v63  ;;  %v1811_v59 = vadd.f32 %v1779_v32, %v5597_v29  ;;  %v1814_v0 = vadd.f32 %v1782_v48, %v5602_v36  ;;  %v5750_v39 = vadd.f32 %v1781_v19, %v5605_v4  ;;  %v6753_v18 = vld [vmem:[#allocation178_spill] sm:$0xff] }
 0x267   : > { %v2042_v31 = vmul.f32 %v5510_v46, %v6751_v38  ;;  %v5755_v17 = vadd.f32 %v1784_v28, %v5612_v51  ;;  %v5758_v55 = vadd.f32 %v1783_v22, %v5615_v9  ;;  %v5761_v14 = vadd.f32 %v1786_v41, %v5626_v6  ;;  %v6754_v51 = vld [vmem:[#allocation179_spill] sm:$0xff]  ;;  %v6757_v28 = vld [vmem:[#allocation169_spill] sm:$0xff]  ;;  %v6761_v38 = vld [vmem:[#allocation182_spill] sm:$0xff] }
 0x268   : > { %v2044_v29 = vmul.f32 %v5510_v46, %v6752_v50  ;;  %v5766_v36 = vadd.f32 %v1785_v12, %v5629_v57  ;;  %v5769_v4 = vadd.f32 %v1788_v5, %v5636_v47  ;;  %v2043_v32 = vmul.f32 %v5510_v46, %v6753_v18  ;;  %v5775_v9 = vpop.permute.xlu1 %2480  ;;  %v5777_v19 = vpop.permute.xlu0 %2476  ;;  %v6759_v47 = vld [vmem:[#allocation180_spill] sm:$0xff]  ;;  %v6760_v5 = vld [vmem:[#allocation181_spill] sm:$0xff]  ;;  %v6762_v18 = vld [vmem:[#allocation183_spill] sm:$0xff] }
 0x269   : > { %v2046_v48 = vmul.f32 %v5510_v46, %v6754_v51  ;;  %6755 = vst [vmem:[#allocation52_spill] sm:$0xff] %v5775_v9  ;;  %6756 = vst [vmem:[#allocation53_spill] sm:$0xff] %v5777_v19  ;;  %v5780_v6 = vadd.f32 %v1787_v52, %v5645_v3  ;;  %v5784_v57 = vmul.f32 %v5490_v7, %v6757_v28  ;;  %v6763_v7 = vld [vmem:[#allocation184_spill] sm:$0xff]  ;;  %v6765_v28 = vld [vmem:[#allocation186_spill] sm:$0xff] }
 0x26a   : > { %v5786_v12 = vadd.f32 %v1789_v8, %v1525_v24  ;;  %v2045_v22 = vmul.f32 %v5510_v46, %v6759_v47  ;;  %v5790_v41 = vadd.f32 %v2042_v31, %v1794_v62  ;;  %v2048_v63 = vmul.f32 %v5510_v46, %v6760_v5  ;;  %v6764_v8 = vld [vmem:[#allocation185_spill] sm:$0xff]  ;;  %v6766_v5 = vld [vmem:[#allocation188_spill] sm:$0xff] }
 0x26b   : > { %6758 = vst [vmem:[#allocation54_spill] sm:$0xff] %v5784_v57  ;;  %v2047_v50 = vmul.f32 %v5510_v46, %v6761_v38  ;;  %v2050_v3 = vmul.f32 %v5510_v46, %v6762_v18  ;;  %v5798_v52 = vadd.f32 %v2044_v29, %v1796_v27  ;;  %v2049_v24 = vmul.f32 %v5510_v46, %v6763_v7  ;;  %v6767_v38 = vld [vmem:[#allocation189_spill] sm:$0xff]  ;;  %v6769_v7 = vld [vmem:[#allocation191_spill] sm:$0xff]  ;;  %v6770_v9 = vld [vmem:[#allocation192_spill] sm:$0xff] }
 0x26c   : > { %v2052_v51 = vmul.f32 %v5510_v46, %v6764_v8  ;;  %v2051_v31 = vmul.f32 %v5510_v46, %v6765_v28  ;;  %v2075_v62 = vadd.f32 %v2043_v32, %v1795_v58  ;;  %v2078_v47 = vadd.f32 %v2046_v48, %v1798_v43  ;;  %v5810_v18 = vpop.permute.xlu1 %2488  ;;  %v5812_v27 = vpop.permute.xlu0 %2484  ;;  %v6771_v58 = vld [vmem:[#allocation194_spill] sm:$0xff] }
 0x26d   : > { %v2054_v57 = vmul.f32 %v5510_v46, %v6766_v5  ;;  %v2053_v19 = vmul.f32 %v5510_v46, %v6767_v38  ;;  %6768 = vst [vmem:[#allocation55_spill] sm:$0xff] %v5812_v27  ;;  %v2077_v29 = vadd.f32 %v2045_v22, %v5674_v61  ;;  %v2056_v8 = vmul.f32 %v5510_v46, %v6769_v7  ;;  %v6772_v38 = vld [vmem:[#allocation195_spill] sm:$0xff] }
 0x26e   : > { %v2055_v28 = vmul.f32 %v5510_v46, %v6770_v9  ;;  %v2058_v43 = vmul.f32 %v5510_v46, %v6771_v58  ;;  %v2080_v32 = vadd.f32 %v2048_v63, %v5679_v15  ;;  %v2079_v48 = vadd.f32 %v2047_v50, %v5682_v35  ;;  %v6773_v7 = vld [vmem:[#allocation27_spill] sm:$0xff]  ;;  %v6774_v63 = vld [vmem:[#allocation197_spill] sm:$0xff] }
 0x26f   : > { %v5824_v5 = vadd.f32 %v2050_v3, %v5685_v20  ;;  %v2057_v27 = vmul.f32 %v5510_v46, %v6772_v38  ;;  %v5829_v61 = vadd.f32 %v2049_v24, %v5690_v34  ;;  %v5832_v22 = vadd.f32 %v2052_v51, %v5693_v30  ;;  %v6775_v34 = vld [vmem:[#allocation29_spill] sm:$0xff]  ;;  %v6780_v38 = vld [vmem:[#allocation2_spill] sm:$0xff] }
 0x270   : > { %v5835_v9 = vadd.f32 %v2051_v31, %v5704_v49  ;;  %v2060_v15 = vmul.f32 %v5510_v46, %v6773_v7  ;;  %v5840_v35 = vadd.f32 %v2054_v57, %v5707_v23  ;;  %v5843_v20 = vadd.f32 %v2053_v19, %v5714_v40  ;;  %v5849_v30 = vpop.permute.xlu1 %2496  ;;  %v5851_v24 = vpop.permute.xlu0 %2492  ;;  %v6778_v57 = vld [vmem:[#allocation30_spill] sm:$0xff]  ;;  %v6779_v31 = vld [vmem:[#allocation31_spill] sm:$0xff] }
 0x271   : > { %v2059_v50 = vmul.f32 %v5510_v46, %v6774_v63  ;;  %v2062_v3 = vmul.f32 %v5510_v46, %v6775_v34  ;;  %6776 = vst [vmem:[#allocation56_spill] sm:$0xff] %v5849_v30  ;;  %6777 = vst [vmem:[#allocation57_spill] sm:$0xff] %v5851_v24  ;;  %v5854_v49 = vadd.f32 %v2056_v8, %v5723_v37  ;;  %v6781_v63 = vld [vmem:[#allocation32_spill] sm:$0xff]  ;;  %v6783_v8 = vld [vmem:[#allocation3_spill] sm:$0xff] }
 0x272   : > { %v5856_v51 = vadd.f32 %v2055_v28, %v1807_v60  ;;  %v5858_v23 = vadd.f32 %v2058_v43, %v1810_v54  ;;  %v2061_v40 = vmul.f32 %v5510_v46, %v6778_v57  ;;  %v5862_v19 = vadd.f32 %v2057_v27, %v1809_v42  ;;  %v6782_v60 = vld [vmem:[#allocation5_spill] sm:$0xff]  ;;  %v6784_v43 = vld [vmem:[#allocation7_spill] sm:$0xff] }
 0x273   : > { %v2064_v58 = vmul.f32 %v5510_v46, %v6779_v31  ;;  %v2063_v7 = vmul.f32 %v5510_v46, %v6780_v38  ;;  %v2066_v34 = vmul.f32 %v5510_v46, %v6781_v63  ;;  %v5870_v37 = vadd.f32 %v2060_v15, %v1812_v11  ;;  %v6785_v31 = vld [vmem:[#allocation9_spill] sm:$0xff]  ;;  %v6788_v30 = vld [vmem:[#allocation15_spill] sm:$0xff] }
 0x274   : > { %v2065_v54 = vmul.f32 %v5510_v46, %v6782_v60  ;;  %v2068_v28 = vmul.f32 %v5510_v46, %v6783_v8  ;;  %v2067_v42 = vmul.f32 %v5510_v46, %v6784_v43  ;;  %v2091_v27 = vadd.f32 %v2059_v50, %v1811_v59  ;;  %v5882_v63 = vpop.permute.xlu1 %2504  ;;  %v5884_v11 = vpop.permute.xlu0 %2500  ;;  %v6787_v60 = vld [vmem:[#allocation16_spill] sm:$0xff]  ;;  %v6789_v59 = vld [vmem:[#allocation17_spill] sm:$0xff] }
 0x275   : > { %v2094_v57 = vadd.f32 %v2062_v3, %v1814_v0  ;;  %v2069_v24 = vmul.f32 %v5510_v46, %v6785_v31  ;;  %v2274_v38 = vmul.f32 %v5534_v16, %v4994_v56  ;;  %6786 = vst [vmem:[#allocation58_spill] sm:$0xff] %v5884_v11  ;;  %v2093_v15 = vadd.f32 %v2061_v40, %v5750_v39  ;;  %v6790_v31 = vld [vmem:[#allocation18_spill] sm:$0xff] }
 0x276   : > { %v2276_v8 = vmul.f32 %v5534_v16, %v6787_v60  ;;  %v2275_v43 = vmul.f32 %v5534_v16, %v6788_v30  ;;  %v2278_v0 = vmul.f32 %v5534_v16, %v6789_v59  ;;  %v2096_v50 = vadd.f32 %v2064_v58, %v5755_v17  ;;  %v6792_v60 = vld [vmem:[#allocation19_spill] sm:$0xff]  ;;  %v6793_v58 = vld [vmem:[#allocation4_spill] sm:$0xff] }
 0x277   : > { %v2095_v3 = vadd.f32 %v2063_v7, %v5758_v55  ;;  %v5896_v56 = vadd.f32 %v2066_v34, %v5761_v14  ;;  %v2277_v11 = vmul.f32 %v5534_v16, %v6790_v31  ;;  %v5901_v39 = vadd.f32 %v2065_v54, %v5766_v36  ;;  %v6796_v36 = vld [vmem:[#allocation20_spill] sm:$0xff]  ;;  %v6799_v59 = vld [vmem:[#allocation23_spill] sm:$0xff] }
 0x278   : > { %v5904_v40 = vadd.f32 %v2068_v28, %v5769_v4  ;;  %v5907_v30 = vadd.f32 %v2067_v42, %v5780_v6  ;;  %v2280_v17 = vmul.f32 %v5534_v16, %v6792_v60  ;;  %v5913_v55 = vmul.f32 %v5510_v46, %v6793_v58  ;;  %v5923_v34 = vpop.permute.xlu1 %2512  ;;  %v5925_v6 = vpop.permute.xlu0 %2508  ;;  %v6797_v42 = vld [vmem:[#allocation21_spill] sm:$0xff]  ;;  %v6800_v60 = vld [vmem:[#allocation24_spill] sm:$0xff] }
 0x279   : > { %v5916_v14 = vadd.f32 %v2069_v24, %v5786_v12  ;;  %v5919_v7 = vadd.f32 %v2274_v38, %v5790_v41  ;;  %v2279_v4 = vmul.f32 %v5534_v16, %v6796_v36  ;;  %v5928_v54 = vadd.f32 %v2276_v8, %v5798_v52  ;;  %v6798_v41 = vld [vmem:[#allocation22_spill] sm:$0xff]  ;;  %v6801_v8 = vld [vmem:[#allocation25_spill] sm:$0xff] }
 0x27a   : > { %6791 = vst [vmem:[#allocation59_spill] sm:$0xff] %v5904_v40  ;;  %6794 = vst [vmem:[#allocation60_spill] sm:$0xff] %v5913_v55  ;;  %v5930_v28 = vadd.f32 %v2275_v43, %v2075_v62  ;;  %v5932_v46 = vadd.f32 %v2278_v0, %v2078_v47  ;;  %v2282_v12 = vmul.f32 %v5534_v16, %v6797_v42  ;;  %v6802_v47 = vld [vmem:[#allocation33_spill] sm:$0xff]  ;;  %v6803_v0 = vld [vmem:[#allocation26_spill] sm:$0xff] }
 0x27b   : > { %6795 = vst [vmem:[#allocation61_spill] sm:$0xff] %v5916_v14  ;;  %v5936_v24 = vadd.f32 %v2277_v11, %v2077_v29  ;;  %v2281_v38 = vmul.f32 %v5534_v16, %v6798_v41  ;;  %v2284_v31 = vmul.f32 %v5534_v16, %v6799_v59  ;;  %v2283_v58 = vmul.f32 %v5534_v16, %v6800_v60  ;;  %v6804_v36 = vld [vmem:[#allocation34_spill] sm:$0xff]  ;;  %v6805_v41 = vld [vmem:[#allocation35_spill] sm:$0xff]  ;;  %v6806_v55 = vld [vmem:[#allocation36_spill] sm:$0xff] }
 0x27c   : > { %v2312_v52 = vadd.f32 %v2280_v17, %v2080_v32  ;;  %v2286_v62 = vmul.f32 %v5534_v16, %v6801_v8  ;;  %v2285_v43 = vmul.f32 %v5534_v16, %v6802_v47  ;;  %v2288_v29 = vmul.f32 %v5534_v16, %v6803_v0  ;;  %v5956_v32 = vpop.permute.xlu1 %2520  ;;  %v5958_v17 = vpop.permute.xlu0 %2516  ;;  %v6808_v47 = vld [vmem:[#allocation37_spill] sm:$0xff]  ;;  %v6809_v0 = vld [vmem:[#allocation38_spill] sm:$0xff]  ;;  %v6810_v40 = vld [vmem:[#allocation39_spill] sm:$0xff] }
 0x27d   : > { %v2311_v11 = vadd.f32 %v2279_v4, %v2079_v48  ;;  %v2287_v42 = vmul.f32 %v5534_v16, %v6804_v36  ;;  %v2290_v59 = vmul.f32 %v5534_v16, %v6805_v41  ;;  %v2289_v60 = vmul.f32 %v5534_v16, %v6806_v55  ;;  %6807 = vst [vmem:[#allocation6_spill] sm:$0xff] %v5958_v17 }
 0x27e   : > { %v2314_v8 = vadd.f32 %v2282_v12, %v5824_v5  ;;  %v2292_v14 = vmul.f32 %v5534_v16, %v6808_v47  ;;  %v2291_v48 = vmul.f32 %v5534_v16, %v6809_v0  ;;  %v2294_v4 = vmul.f32 %v5534_v16, %v5369_v25  ;;  %v6811_v0 = vld [vmem:[#allocation40_spill] sm:$0xff] }
 0x27f   : > { %v2313_v36 = vadd.f32 %v2281_v38, %v5829_v61  ;;  %v2316_v41 = vadd.f32 %v2284_v31, %v5832_v22  ;;  %v2315_v55 = vadd.f32 %v2283_v58, %v5835_v9  ;;  %v2293_v17 = vmul.f32 %v5534_v16, %v6810_v40  ;;  %v6812_v40 = vld [vmem:[#allocation41_spill] sm:$0xff] }
 0x280   : > { %v2318_v5 = vadd.f32 %v2286_v62, %v5840_v35  ;;  %v5974_v12 = vadd.f32 %v2285_v43, %v5843_v20  ;;  %v5977_v47 = vadd.f32 %v2288_v29, %v5854_v49  ;;  %v2296_v25 = vmul.f32 %v5534_v16, %v6811_v0  ;;  %v5992_v20 = vpop.permute.xlu1 %2528  ;;  %v5994_v38 = vpop.permute.xlu0 %2524  ;;  %v6814_v43 = vld [vmem:[#allocation44_spill] sm:$0xff] }
 0x281   : > { %v5982_v61 = vadd.f32 %v2287_v42, %v5856_v51  ;;  %v5985_v22 = vadd.f32 %v2290_v59, %v5858_v23  ;;  %v5988_v9 = vadd.f32 %v2289_v60, %v5862_v19  ;;  %v2295_v35 = vmul.f32 %v5534_v16, %v6812_v40  ;;  %v6813_v19 = vld [vmem:[#allocation42_spill] sm:$0xff] }
 0x282   : > { %v5997_v49 = vadd.f32 %v2292_v14, %v5870_v37  ;;  %v5999_v31 = vadd.f32 %v2291_v48, %v2091_v27  ;;  %v6001_v51 = vadd.f32 %v2294_v4, %v2094_v57  ;;  %v2298_v23 = vmul.f32 %v5534_v16, %v5441_v1 }
 0x283   : > { %v6005_v58 = vadd.f32 %v2293_v17, %v2093_v15  ;;  %v2297_v62 = vmul.f32 %v5534_v16, %v6813_v19  ;;  %v2299_v29 = vmul.f32 %v5534_v16, %v6814_v43  ;;  %v2570_v42 = vmul.f32 %v5565_v13, %v5583_v45 }
 0x284   : > { %v6013_v37 = vadd.f32 %v2296_v25, %v2096_v50  ;;  %v2572_v27 = vmul.f32 %v5565_v13, %v5621_v44  ;;  %v2571_v57 = vmul.f32 %v5565_v13, %v5623_v2  ;;  %v2574_v1 = vmul.f32 %v5565_v13, %v5661_v21  ;;  %v6029_v50 = vpop.permute.xlu1 %2536  ;;  %v6031_v44 = vpop.permute.xlu0 %2532 }
 0x285   : > { %v6021_v15 = vadd.f32 %v2295_v35, %v2095_v3  ;;  %v2573_v14 = vmul.f32 %v5565_v13, %v5663_v26  ;;  %v2576_v59 = vmul.f32 %v5565_v13, %v5699_v33  ;;  %v2575_v45 = vmul.f32 %v5565_v13, %v5701_v53  ;;  %v6815_v3 = vld [vmem:[#allocation51_spill] sm:$0xff]  ;;  %v6816_v26 = vld [vmem:[#allocation52_spill] sm:$0xff] }
 0x286   : > { %v6034_v2 = vadd.f32 %v2298_v23, %v5896_v56  ;;  %v2578_v21 = vmul.f32 %v5565_v13, %v5737_v10  ;;  %v2577_v60 = vmul.f32 %v5565_v13, %v6815_v3  ;;  %v2580_v17 = vmul.f32 %v5565_v13, %v6816_v26  ;;  %v6817_v53 = vld [vmem:[#allocation43_spill] sm:$0xff]  ;;  %v6824_v3 = vld [vmem:[#allocation6_spill] sm:$0xff] }
 0x287   : > { %v6043_v33 = vadd.f32 %v2297_v62, %v5901_v39  ;;  %v6047_v48 = vmul.f32 %v5534_v16, %v6817_v53  ;;  %v6050_v4 = vadd.f32 %v2299_v29, %v5907_v30  ;;  %v2602_v56 = vadd.f32 %v2570_v42, %v5919_v7  ;;  %v6056_v10 = vld [vmem:[%s6242_s3 + $0x8] ss:$0 sm:$0xff]  ;;  %v6818_v16 = vld [vmem:[#allocation53_spill] sm:$0xff] }
 0x288   : > { %v6059_v0 = vadd.f32 %v2572_v27, %v5928_v54  ;;  %v2603_v39 = vadd.f32 %v2571_v57, %v5930_v28  ;;  %v6063_v25 = vadd.f32 %v2574_v1, %v5932_v46  ;;  %v2579_v40 = vmul.f32 %v5565_v13, %v6818_v16  ;;  %v2717_v19 = vpop.permute.xlu1 %2716  ;;  %v6074_v54 = vpop.permute.xlu0 %2540  ;;  %v6819_v29 = vld [vmem:[#allocation55_spill] sm:$0xff]  ;;  %v6821_v42 = vld [vmem:[#allocation57_spill] sm:$0xff] }
 0x289   : > { %v2605_v30 = vadd.f32 %v2573_v14, %v5936_v24  ;;  %v6068_v35 = vadd.f32 %v2576_v59, %v2312_v52  ;;  %v6070_v7 = vadd.f32 %v2575_v45, %v2311_v11  ;;  %v2582_v23 = vmul.f32 %v5565_v13, %v5810_v18  ;;  %v6820_v52 = vld [vmem:[#allocation56_spill] sm:$0xff]  ;;  %v6823_v1 = vld [vmem:[#allocation49_spill] sm:$0xff] }
 0x28a   : > { %v6076_v62 = vadd.f32 %v2578_v21, %v2314_v8  ;;  %v6078_v28 = vadd.f32 %v2577_v60, %v2313_v36  ;;  %v6080_v46 = vadd.f32 %v2580_v17, %v2316_v41  ;;  %v2849_v43 = vmul.f32 %v6056_v10, %v2717_v19  ;;  %v6822_v36 = vld [vmem:[#allocation58_spill] sm:$0xff] }
 0x28b   : > { %v2581_v24 = vmul.f32 %v5565_v13, %v6819_v29  ;;  %v2584_v11 = vmul.f32 %v5565_v13, %v6820_v52  ;;  %v2583_v18 = vmul.f32 %v5565_v13, %v6821_v42  ;;  %v2586_v27 = vmul.f32 %v5565_v13, %v5882_v63 }
 0x28c   : > { %v6091_v8 = vadd.f32 %v2579_v40, %v2315_v55  ;;  %v2585_v41 = vmul.f32 %v5565_v13, %v6822_v36  ;;  %v2588_v57 = vmul.f32 %v5565_v13, %v5923_v34  ;;  %v2881_v14 = vadd.f32 %v2849_v43, %v6823_v1  ;;  %v2725_v55 = vpop.permute.xlu1 %2724  ;;  %v2721_v60 = vpop.permute.xlu0 %2720 }
 0x28d   : > { %v6098_v59 = vadd.f32 %v2582_v23, %v2318_v5  ;;  %v2587_v45 = vmul.f32 %v5565_v13, %v5925_v6  ;;  %v2590_v21 = vmul.f32 %v5565_v13, %v5956_v32  ;;  %v2589_v63 = vmul.f32 %v5565_v13, %v6824_v3 }
 0x28e   : > { %vm2913_vm2 = vcmp.gt.f32.partialorder %v2881_v14, 0.0  ;;  %v2945_v26 = vmul.f32 0.01, %v2881_v14  ;;  %v2851_v17 = vmul.f32 %v6056_v10, %v2725_v55  ;;  %v2850_v34 = vmul.f32 %v6056_v10, %v2721_v60 }
 0x28f   : > { %v6109_v5 = vadd.f32 %v2581_v24, %v5974_v12  ;;  %v6112_v53 = vadd.f32 %v2584_v11, %v5977_v47  ;;  %v6115_v6 = vadd.f32 %v2583_v18, %v5982_v61  ;;  %v6118_v32 = vadd.f32 %v2586_v27, %v5985_v22 }
 0x290   : > { %v6121_v16 = vadd.f32 %v2585_v41, %v5988_v9  ;;  %v6124_v40 = vadd.f32 %v2588_v57, %v5997_v49  ;;  %v2883_v23 = vadd.f32 %v2851_v17, %v2603_v39  ;;  %v2882_v19 = vadd.f32 %v2850_v34, %v2602_v56  ;;  %v2733_v22 = vpop.permute.xlu1 %2732  ;;  %v2729_v29 = vpop.permute.xlu0 %2728 }
 0x291   : > { %v6127_v12 = vadd.f32 %v2587_v45, %v5999_v31  ;;  %v6130_v47 = vadd.f32 %v2590_v21, %v6001_v51  ;;  %v6133_v61 = vadd.f32 %v2589_v63, %v6005_v58  ;;  %v2977_v43 = vsel %vm2913_vm2, %v2881_v14, %v2945_v26 }
 0x292   : > { %vm2915_vm3 = vcmp.gt.f32.partialorder %v2883_v23, 0.0  ;;  %v2947_v9 = vmul.f32 0.01, %v2883_v23  ;;  %vm2914_vm4 = vcmp.gt.f32.partialorder %v2882_v19, 0.0  ;;  %v2946_v24 = vmul.f32 0.01, %v2882_v19 }
 0x293   : > { %v2592_v49 = vmul.f32 %v5565_v13, %v5992_v20  ;;  %v2591_v31 = vmul.f32 %v5565_v13, %v5994_v38  ;;  %v2853_v56 = vmul.f32 %v6056_v10, %v2733_v22  ;;  %v2852_v51 = vmul.f32 %v6056_v10, %v2729_v29 }
 0x294   : > { %v2594_v58 = vmul.f32 %v5565_v13, %v6029_v50  ;;  %v2593_v39 = vmul.f32 %v5565_v13, %v6031_v44  ;;  %v2979_v52 = vsel %vm2915_vm3, %v2883_v23, %v2947_v9  ;;  %v2978_v11 = vsel %vm2914_vm4, %v2882_v19, %v2946_v24  ;;  %v2741_v20 = vpop.permute.xlu1 %2740  ;;  %v2737_v41 = vpop.permute.xlu0 %2736 }
 0x295   : > { %v3047_v42 = vmul.f32 %v2977_v43, %v2977_v43  ;;  %v3009_v18 = vadd.f32 %v2978_v11, %v2977_v43  ;;  %v3048_v27 = vmul.f32 %v2978_v11, %v2978_v11  ;;  %v2885_v36 = vadd.f32 %v2853_v56, %v2605_v30 }
 0x296   : > { %v3049_v57 = vmul.f32 %v2979_v52, %v2979_v52  ;;  %v2884_v38 = vadd.f32 %v2852_v51, %v6059_v0  ;;  %v2855_v1 = vmul.f32 %v6056_v10, %v2741_v20  ;;  %v2854_v14 = vmul.f32 %v6056_v10, %v2737_v41 }
 0x297   : > { %v3079_v45 = vadd.f32 %v3048_v27, %v3047_v42  ;;  %vm2917_vm5 = vcmp.gt.f32.partialorder %v2885_v36, 0.0  ;;  %v2949_v50 = vmul.f32 0.01, %v2885_v36  ;;  %v3010_v21 = vadd.f32 %v3009_v18, %v2979_v52 }
 0x298   : > { %vm2916_vm6 = vcmp.gt.f32.partialorder %v2884_v38, 0.0  ;;  %v2948_v44 = vmul.f32 0.01, %v2884_v38  ;;  %v2887_v3 = vadd.f32 %v2855_v1, %v6070_v7  ;;  %v2886_v63 = vadd.f32 %v2854_v14, %v6063_v25  ;;  %v2749_v26 = vpop.permute.xlu1 %2748  ;;  %v2745_v17 = vpop.permute.xlu0 %2744 }
 0x299   : > { %v6151_v30 = vadd.f32 %v2592_v49, %v6013_v37  ;;  %v6154_v55 = vadd.f32 %v2591_v31, %v6021_v15  ;;  %v6157_v0 = vadd.f32 %v2594_v58, %v6034_v2  ;;  %v3080_v60 = vadd.f32 %v3079_v45, %v3049_v57 }
 0x29a   : > { %v2981_v34 = vsel %vm2917_vm5, %v2885_v36, %v2949_v50  ;;  %v2980_v23 = vsel %vm2916_vm6, %v2884_v38, %v2948_v44  ;;  %vm2919_vm7 = vcmp.gt.f32.partialorder %v2887_v3, 0.0  ;;  %v2951_v19 = vmul.f32 0.01, %v2887_v3 }
 0x29b   : > { %v3011_v43 = vadd.f32 %v3010_v21, %v2980_v23  ;;  %v3050_v7 = vmul.f32 %v2980_v23, %v2980_v23  ;;  %vm2918_vm8 = vcmp.gt.f32.partialorder %v2886_v63, 0.0  ;;  %v2950_v25 = vmul.f32 0.01, %v2886_v63 }
 0x29c   : > { %v6160_v37 = vadd.f32 %v2593_v39, %v6043_v33  ;;  %v2983_v22 = vsel %vm2919_vm7, %v2887_v3, %v2951_v19  ;;  %v2857_v15 = vmul.f32 %v6056_v10, %v2749_v26  ;;  %v2856_v2 = vmul.f32 %v6056_v10, %v2745_v17  ;;  %v2757_v31 = vpop.permute.xlu1 %2756  ;;  %v2753_v56 = vpop.permute.xlu0 %2752 }
 0x29d   : > { %v3051_v29 = vmul.f32 %v2981_v34, %v2981_v34  ;;  %v3081_v9 = vadd.f32 %v3080_v60, %v3050_v7  ;;  %v3012_v24 = vadd.f32 %v3011_v43, %v2981_v34  ;;  %v2982_v49 = vsel %vm2918_vm8, %v2886_v63, %v2950_v25 }
 0x29e   : > { %v3052_v51 = vmul.f32 %v2982_v49, %v2982_v49  ;;  %v2889_v58 = vadd.f32 %v2857_v15, %v6078_v28  ;;  %v2888_v52 = vadd.f32 %v2856_v2, %v6068_v35  ;;  %v2859_v11 = vmul.f32 %v6056_v10, %v2757_v31 }
 0x29f   : > { %v3053_v33 = vmul.f32 %v2983_v22, %v2983_v22  ;;  %v3082_v39 = vadd.f32 %v3081_v9, %v3051_v29  ;;  %v3013_v42 = vadd.f32 %v3012_v24, %v2982_v49  ;;  %v2858_v18 = vmul.f32 %v6056_v10, %v2753_v56 }
 0x2a0   : > { %vm2921_vm9 = vcmp.gt.f32.partialorder %v2889_v58, 0.0  ;;  %v2953_v27 = vmul.f32 0.01, %v2889_v58  ;;  %vm2920_vm10 = vcmp.gt.f32.partialorder %v2888_v52, 0.0  ;;  %v2952_v36 = vmul.f32 0.01, %v2888_v52  ;;  %v2765_v28 = vpop.permute.xlu1 %2764  ;;  %v2761_v1 = vpop.permute.xlu0 %2760 }
 0x2a1   : > { %v3083_v20 = vadd.f32 %v3082_v39, %v3052_v51  ;;  %v3014_v41 = vadd.f32 %v3013_v42, %v2983_v22  ;;  %v2891_v57 = vadd.f32 %v2859_v11, %v6091_v8  ;;  %v2890_v38 = vadd.f32 %v2858_v18, %v6076_v62 }
 0x2a2   : > { %v2985_v35 = vsel %vm2921_vm9, %v2889_v58, %v2953_v27  ;;  %v2984_v14 = vsel %vm2920_vm10, %v2888_v52, %v2952_v36  ;;  %v2861_v45 = vmul.f32 %v6056_v10, %v2765_v28  ;;  %v2860_v50 = vmul.f32 %v6056_v10, %v2761_v1 }
 0x2a3   : > { %v3055_v21 = vmul.f32 %v2985_v35, %v2985_v35  ;;  %v3084_v44 = vadd.f32 %v3083_v20, %v3053_v33  ;;  %v3015_v3 = vadd.f32 %v3014_v41, %v2984_v14  ;;  %v3054_v63 = vmul.f32 %v2984_v14, %v2984_v14 }
 0x2a4   : > { %vm2923_vm11 = vcmp.gt.f32.partialorder %v2891_v57, 0.0  ;;  %v2955_v60 = vmul.f32 0.01, %v2891_v57  ;;  %vm2922_vm12 = vcmp.gt.f32.partialorder %v2890_v38, 0.0  ;;  %v2954_v26 = vmul.f32 0.01, %v2890_v38  ;;  %v2773_v23 = vpop.permute.xlu1 %2772  ;;  %v2769_v19 = vpop.permute.xlu0 %2768 }
 0x2a5   : > { %v3085_v17 = vadd.f32 %v3084_v44, %v3054_v63  ;;  %v3016_v8 = vadd.f32 %v3015_v3, %v2985_v35  ;;  %v2893_v62 = vadd.f32 %v2861_v45, %v6109_v5  ;;  %v2892_v34 = vadd.f32 %v2860_v50, %v6080_v46 }
 0x2a6   : > { %v2987_v43 = vsel %vm2923_vm11, %v2891_v57, %v2955_v60  ;;  %v2986_v7 = vsel %vm2922_vm12, %v2890_v38, %v2954_v26  ;;  %v2863_v25 = vmul.f32 %v6056_v10, %v2773_v23  ;;  %v2862_v22 = vmul.f32 %v6056_v10, %v2769_v19 }
 0x2a7   : > { %v3057_v15 = vmul.f32 %v2987_v43, %v2987_v43  ;;  %v3086_v2 = vadd.f32 %v3085_v17, %v3055_v21  ;;  %v3017_v29 = vadd.f32 %v3016_v8, %v2986_v7  ;;  %v3056_v9 = vmul.f32 %v2986_v7, %v2986_v7 }
 0x2a8   : > { %vm2925_vm13 = vcmp.gt.f32.partialorder %v2893_v62, 0.0  ;;  %v2957_v24 = vmul.f32 0.01, %v2893_v62  ;;  %vm2924_vm14 = vcmp.gt.f32.partialorder %v2892_v34, 0.0  ;;  %v2956_v49 = vmul.f32 0.01, %v2892_v34  ;;  %v2781_v51 = vpop.permute.xlu1 %2780  ;;  %v2777_v58 = vpop.permute.xlu0 %2776 }
 0x2a9   : > { %v3087_v31 = vadd.f32 %v3086_v2, %v3056_v9  ;;  %v3018_v5 = vadd.f32 %v3017_v29, %v2987_v43  ;;  %v2895_v46 = vadd.f32 %v2863_v25, %v6115_v6  ;;  %v2894_v56 = vadd.f32 %v2862_v22, %v6098_v59 }
 0x2aa   : > { %v2989_v52 = vsel %vm2925_vm13, %v2893_v62, %v2957_v24  ;;  %v2988_v11 = vsel %vm2924_vm14, %v2892_v34, %v2956_v49  ;;  %v2865_v33 = vmul.f32 %v6056_v10, %v2781_v51  ;;  %v2864_v39 = vmul.f32 %v6056_v10, %v2777_v58 }
 0x2ab   : > { %v3059_v42 = vmul.f32 %v2989_v52, %v2989_v52  ;;  %v3088_v18 = vadd.f32 %v3087_v31, %v3057_v15  ;;  %v3019_v27 = vadd.f32 %v3018_v5, %v2988_v11  ;;  %v3058_v36 = vmul.f32 %v2988_v11, %v2988_v11 }
 0x2ac   : > { %vm2927_vm15 = vcmp.gt.f32.partialorder %v2895_v46, 0.0  ;;  %v2959_v20 = vmul.f32 0.01, %v2895_v46  ;;  %vm2926_vm0 = vcmp.gt.f32.partialorder %v2894_v56, 0.0  ;;  %v2958_v41 = vmul.f32 0.01, %v2894_v56  ;;  %v2789_v28 = vpop.permute.xlu1 %2788  ;;  %v2785_v1 = vpop.permute.xlu0 %2784 }
 0x2ad   : > { %v3089_v57 = vadd.f32 %v3088_v18, %v3058_v36  ;;  %v3020_v6 = vadd.f32 %v3019_v27, %v2989_v52  ;;  %v2897_v59 = vadd.f32 %v2865_v33, %v6121_v16  ;;  %v2896_v38 = vadd.f32 %v2864_v39, %v6112_v53 }
 0x2ae   : > { %v2991_v35 = vsel %vm2927_vm15, %v2895_v46, %v2959_v20  ;;  %v2990_v14 = vsel %vm2926_vm0, %v2894_v56, %v2958_v41  ;;  %v2867_v45 = vmul.f32 %v6056_v10, %v2789_v28  ;;  %v2866_v50 = vmul.f32 %v6056_v10, %v2785_v1 }
 0x2af   : > { %v3061_v21 = vmul.f32 %v2991_v35, %v2991_v35  ;;  %v3090_v44 = vadd.f32 %v3089_v57, %v3059_v42  ;;  %v3021_v3 = vadd.f32 %v3020_v6, %v2990_v14  ;;  %v3060_v63 = vmul.f32 %v2990_v14, %v2990_v14 }
 0x2b0   : > { %vm2929_vm1 = vcmp.gt.f32.partialorder %v2897_v59, 0.0  ;;  %v2961_v60 = vmul.f32 0.01, %v2897_v59  ;;  %vm2928_vm2 = vcmp.gt.f32.partialorder %v2896_v38, 0.0  ;;  %v2960_v26 = vmul.f32 0.01, %v2896_v38 }
 0x2b1   : > { %v3091_v17 = vadd.f32 %v3090_v44, %v3060_v63  ;;  %v3022_v16 = vadd.f32 %v3021_v3, %v2991_v35  ;;  %v2899_v53 = vadd.f32 %v2867_v45, %v6127_v12  ;;  %v2898_v8 = vadd.f32 %v2866_v50, %v6118_v32  ;;  %v2797_v62 = vpop.permute.xlu1 %2796  ;;  %v2793_v34 = vpop.permute.xlu0 %2792 }
 0x2b2   : > { %v2993_v23 = vsel %vm2929_vm1, %v2897_v59, %v2961_v60  ;;  %v2992_v19 = vsel %vm2928_vm2, %v2896_v38, %v2960_v26  ;;  %v2869_v43 = vmul.f32 %v6056_v10, %v2797_v62  ;;  %v2868_v7 = vmul.f32 %v6056_v10, %v2793_v34 }
 0x2b3   : > { %v3063_v25 = vmul.f32 %v2993_v23, %v2993_v23  ;;  %v3092_v22 = vadd.f32 %v3091_v17, %v3061_v21  ;;  %v3023_v15 = vadd.f32 %v3022_v16, %v2992_v19  ;;  %v3062_v2 = vmul.f32 %v2992_v19, %v2992_v19 }
 0x2b4   : > { %vm2931_vm3 = vcmp.gt.f32.partialorder %v2899_v53, 0.0  ;;  %v2963_v29 = vmul.f32 0.01, %v2899_v53  ;;  %vm2930_vm4 = vcmp.gt.f32.partialorder %v2898_v8, 0.0  ;;  %v2962_v9 = vmul.f32 0.01, %v2898_v8 }
 0x2b5   : > { %v3093_v24 = vadd.f32 %v3092_v22, %v3062_v2  ;;  %v3024_v12 = vadd.f32 %v3023_v15, %v2993_v23  ;;  %v2901_v32 = vadd.f32 %v2869_v43, %v6133_v61  ;;  %v2900_v49 = vadd.f32 %v2868_v7, %v6124_v40  ;;  %v2805_v31 = vpop.permute.xlu1 %2804  ;;  %v2801_v5 = vpop.permute.xlu0 %2800 }
 0x2b6   : > { %v2995_v46 = vsel %vm2931_vm3, %v2899_v53, %v2963_v29  ;;  %v2994_v56 = vsel %vm2930_vm4, %v2898_v8, %v2962_v9  ;;  %v2871_v51 = vmul.f32 %v6056_v10, %v2805_v31  ;;  %v2870_v58 = vmul.f32 %v6056_v10, %v2801_v5  ;;  %v6825_v9 = vld [vmem:[#allocation59_spill] sm:$0xff]  ;;  %v6826_v31 = vld [vmem:[#allocation46_spill] sm:$0xff] }
 0x2b7   : > { %v3065_v52 = vmul.f32 %v2995_v46, %v2995_v46  ;;  %v3094_v11 = vadd.f32 %v3093_v24, %v3063_v25  ;;  %v3025_v33 = vadd.f32 %v3024_v12, %v2994_v56  ;;  %v3064_v39 = vmul.f32 %v2994_v56, %v2994_v56 }
 0x2b8   : > { %vm2933_vm5 = vcmp.gt.f32.partialorder %v2901_v32, 0.0  ;;  %v2965_v42 = vmul.f32 0.01, %v2901_v32  ;;  %vm2932_vm6 = vcmp.gt.f32.partialorder %v2900_v49, 0.0  ;;  %v2964_v18 = vmul.f32 0.01, %v2900_v49 }
 0x2b9   : > { %v3095_v27 = vadd.f32 %v3094_v11, %v3064_v39  ;;  %v3026_v61 = vadd.f32 %v3025_v33, %v2995_v46  ;;  %v2903_v40 = vadd.f32 %v2871_v51, %v6154_v55  ;;  %v2902_v36 = vadd.f32 %v2870_v58, %v6130_v47  ;;  %v2813_v20 = vpop.permute.xlu1 %2812  ;;  %v2809_v41 = vpop.permute.xlu0 %2808 }
 0x2ba   : > { %v2997_v57 = vsel %vm2933_vm5, %v2901_v32, %v2965_v42  ;;  %v2996_v6 = vsel %vm2932_vm6, %v2900_v49, %v2964_v18  ;;  %v2873_v59 = vmul.f32 %v6056_v10, %v2813_v20  ;;  %v2872_v38 = vmul.f32 %v6056_v10, %v2809_v41  ;;  %v3291_v49 = vld [vmem:[%s6242_s3 + $0x6] ss:$0 sm:$0xff] }
 0x2bb   : > { %v3067_v28 = vmul.f32 %v2997_v57, %v2997_v57  ;;  %v3096_v1 = vadd.f32 %v3095_v27, %v3065_v52  ;;  %v3027_v35 = vadd.f32 %v3026_v61, %v2996_v6  ;;  %v3066_v14 = vmul.f32 %v2996_v6, %v2996_v6  ;;  %v6828_v20 = vld [vmem:[#allocation54_spill] sm:$0xff] }
 0x2bc   : > { %vm2935_vm7 = vcmp.gt.f32.partialorder %v2903_v40, 0.0  ;;  %v2967_v45 = vmul.f32 0.01, %v2903_v40  ;;  %vm2934_vm8 = vcmp.gt.f32.partialorder %v2902_v36, 0.0  ;;  %v2966_v50 = vmul.f32 0.01, %v2902_v36 }
 0x2bd   : > { %v3097_v21 = vadd.f32 %v3096_v1, %v3066_v14  ;;  %v3028_v55 = vadd.f32 %v3027_v35, %v2997_v57  ;;  %v2905_v47 = vadd.f32 %v2873_v59, %v6160_v37  ;;  %v2904_v44 = vadd.f32 %v2872_v38, %v6151_v30  ;;  %v2545_v3 = vpop.permute.xlu1 %2544  ;;  %v2817_v63 = vpop.permute.xlu0 %2816  ;;  %v6829_v57 = vld [vmem:[#allocation45_spill] sm:$0xff] }
 0x2be   : > { %v2595_v60 = vmul.f32 %v5565_v13, %v6074_v54  ;;  %v2999_v26 = vsel %vm2935_vm7, %v2903_v40, %v2967_v45  ;;  %v2998_v17 = vsel %vm2934_vm8, %v2902_v36, %v2966_v50  ;;  %v2874_v16 = vmul.f32 %v6056_v10, %v2817_v63  ;;  %v6827_v36 = vld [vmem:[#allocation50_spill] sm:$0xff]  ;;  %v6830_v59 = vld [vmem:[#allocation61_spill] sm:$0xff] }
 0x2bf   : > { %v3098_v53 = vadd.f32 %v3097_v21, %v3067_v28  ;;  %v3029_v8 = vadd.f32 %v3028_v55, %v2998_v17  ;;  %v3068_v62 = vmul.f32 %v2998_v17, %v2998_v17  ;;  %v2596_v34 = vmul.f32 %v5565_v13, %v2545_v3  ;;  %v6831_v55 = vld [vmem:[#allocation60_spill] sm:$0xff] }
 0x2c0   : > { %vm2937_vm9 = vcmp.gt.f32.partialorder %v2905_v47, 0.0  ;;  %v2969_v23 = vmul.f32 0.01, %v2905_v47  ;;  %vm2936_vm10 = vcmp.gt.f32.partialorder %v2904_v44, 0.0  ;;  %v2968_v37 = vmul.f32 0.01, %v2904_v44 }
 0x2c1   : > { %v3069_v19 = vmul.f32 %v2999_v26, %v2999_v26  ;;  %v3099_v30 = vadd.f32 %v3098_v53, %v3068_v62  ;;  %v3030_v43 = vadd.f32 %v3029_v8, %v2999_v26  ;;  %v2906_v7 = vadd.f32 %v2874_v16, %v6157_v0  ;;  %v2549_v25 = vpop.permute.xlu1 %2548  ;;  %v2821_v54 = vpop.permute.xlu0 %2820 }
 0x2c2   : > { %v2627_v22 = vadd.f32 %v2595_v60, %v6050_v4  ;;  %v3001_v15 = vsel %vm2937_vm9, %v2905_v47, %v2969_v23  ;;  %v3000_v2 = vsel %vm2936_vm10, %v2904_v44, %v2968_v37  ;;  %v2875_v29 = vmul.f32 %v6056_v10, %v2821_v54 }
 0x2c3   : > { %v2332_v13 = vadd.f32 %v6047_v48, %v6825_v9  ;;  %v3100_v24 = vadd.f32 %v3099_v30, %v3069_v19  ;;  %v3031_v12 = vadd.f32 %v3030_v43, %v3000_v2  ;;  %v3070_v32 = vmul.f32 %v3000_v2, %v3000_v2  ;;  %v3292_v48 = vld [vmem:[%s6242_s3 + $0x7] ss:$0 sm:$0xff] }
 0x2c4   : > { %v2301_v0 = vmul.f32 %v3291_v49, %v6826_v31  ;;  %vm2938_vm11 = vcmp.gt.f32.partialorder %v2906_v7, 0.0  ;;  %v2970_v5 = vmul.f32 0.01, %v2906_v7  ;;  %v2907_v46 = vadd.f32 %v2875_v29, %v2627_v22 }
 0x2c5   : > { %v3071_v4 = vmul.f32 %v3001_v15, %v3001_v15  ;;  %v3101_v56 = vadd.f32 %v3100_v24, %v3070_v32  ;;  %v2628_v51 = vadd.f32 %v2596_v34, %v2332_v13  ;;  %v3032_v58 = vadd.f32 %v3031_v12, %v3001_v15  ;;  %v2553_v52 = vpop.permute.xlu1 %2552  ;;  %v2825_v11 = vpop.permute.xlu0 %2824  ;;  %v6832_v13 = vld [vmem:[#allocation48_spill] sm:$0xff]  ;;  %v6833_v12 = vld [vmem:[#allocation47_spill] sm:$0xff] }
 0x2c6   : > { %v3002_v33 = vsel %vm2938_vm11, %v2906_v7, %v2970_v5  ;;  %v2597_v39 = vmul.f32 %v3292_v48, %v2549_v25  ;;  %vm2939_vm12 = vcmp.gt.f32.partialorder %v2907_v46, 0.0  ;;  %v2971_v42 = vmul.f32 0.01, %v2907_v46 }
 0x2c7   : > { %v3102_v18 = vadd.f32 %v3101_v56, %v3071_v4  ;;  %v3033_v27 = vadd.f32 %v3032_v58, %v3002_v33  ;;  %v3072_v61 = vmul.f32 %v3002_v33, %v3002_v33  ;;  %v2876_v40 = vmul.f32 %v6056_v10, %v2825_v11 }
 0x2c8   : > { %v1822_v41 = vadd.f32 %v6828_v20, %v6827_v36  ;;  %v2302_v6 = vmul.f32 %v3291_v49, %v6829_v57  ;;  %v2333_v38 = vadd.f32 %v2301_v0, %v6830_v59  ;;  %v3003_v28 = vsel %vm2939_vm12, %v2907_v46, %v2971_v42 }
 0x2c9   : > { %v3103_v1 = vadd.f32 %v3102_v18, %v3072_v61  ;;  %v3034_v35 = vadd.f32 %v3033_v27, %v3003_v28  ;;  %v3073_v14 = vmul.f32 %v3003_v28, %v3003_v28  ;;  %v2908_v45 = vadd.f32 %v2876_v40, %v2628_v51  ;;  %v2557_v50 = vpop.permute.xlu1 %2556  ;;  %v2829_v21 = vpop.permute.xlu0 %2828 }
 0x2ca   : > { %v2102_v47 = vadd.f32 %v6831_v55, %v1822_v41  ;;  %v2629_v44 = vadd.f32 %v2597_v39, %v2333_v38  ;;  %v2877_v3 = vmul.f32 %v6056_v10, %v2829_v21  ;;  %v2598_v60 = vmul.f32 %v3292_v48, %v2553_v52 }
 0x2cb   : > { %v3104_v63 = vadd.f32 %v3103_v1, %v3073_v14  ;;  %vm2940_vm13 = vcmp.gt.f32.partialorder %v2908_v45, 0.0  ;;  %v2972_v26 = vmul.f32 0.01, %v2908_v45  ;;  %v2599_v8 = vmul.f32 %v3292_v48, %v2557_v50 }
 0x2cc   : > { %v2909_v17 = vadd.f32 %v2877_v3, %v2629_v44  ;;  %v2334_v16 = vadd.f32 %v2302_v6, %v2102_v47 }
 0x2cd   : > { %v3004_v53 = vsel %vm2940_vm13, %v2908_v45, %v2972_v26  ;;  %v2561_v62 = vpop.permute.xlu1 %2560  ;;  %v2833_v34 = vpop.permute.xlu0 %2832  ;;  %v2631_v24 = vadd.f32 %v2599_v8, %v6832_v13 }
 0x2ce   : > { %v3035_v23 = vadd.f32 %v3034_v35, %v3004_v53  ;;  %v3074_v37 = vmul.f32 %v3004_v53, %v3004_v53  ;;  %vm2941_vm14 = vcmp.gt.f32.partialorder %v2909_v17, 0.0  ;;  %v2973_v19 = vmul.f32 0.01, %v2909_v17 }
 0x2cf   : > { %v2630_v30 = vadd.f32 %v2598_v60, %v2334_v16  ;;  %v2600_v43 = vmul.f32 %v3292_v48, %v2561_v62  ;;  %v2878_v7 = vmul.f32 %v6056_v10, %v2833_v34 }
 0x2d0   : > { %v3105_v25 = vadd.f32 %v3104_v63, %v3074_v37  ;;  %v3005_v54 = vsel %vm2941_vm14, %v2909_v17, %v2973_v19 }
 0x2d1   : > { %v3036_v22 = vadd.f32 %v3035_v23, %v3005_v54  ;;  %v3075_v15 = vmul.f32 %v3005_v54, %v3005_v54  ;;  %v2910_v2 = vadd.f32 %v2878_v7, %v2630_v30  ;;  %v2841_v29 = vpop.permute.xlu1 %2840  ;;  %v2837_v9 = vpop.permute.xlu0 %2836  ;;  %v2632_v32 = vadd.f32 %v2600_v43, %v6833_v12 }
 0x2d2   : > { %v2880_v49 = vmul.f32 %v6056_v10, %v2841_v29  ;;  %v2879_v31 = vmul.f32 %v6056_v10, %v2837_v9 }
 0x2d3   : > { %v3106_v0 = vadd.f32 %v3105_v25, %v3075_v15  ;;  %vm2942_vm15 = vcmp.gt.f32.partialorder %v2910_v2, 0.0  ;;  %v2974_v5 = vmul.f32 0.01, %v2910_v2 }
 0x2d4   : > { %v2912_v46 = vadd.f32 %v2880_v49, %v2632_v32  ;;  %v2911_v4 = vadd.f32 %v2879_v31, %v2631_v24 }
 0x2d5   : > { %v3006_v56 = vsel %vm2942_vm15, %v2910_v2, %v2974_v5 }
 0x2d6   : > { %v3037_v51 = vadd.f32 %v3036_v22, %v3006_v56  ;;  %v3076_v58 = vmul.f32 %v3006_v56, %v3006_v56  ;;  %vm2944_vm0 = vcmp.gt.f32.partialorder %v2912_v46, 0.0  ;;  %v2976_v52 = vmul.f32 0.01, %v2912_v46 }
 0x2d7   : > { %vm2943_vm1 = vcmp.gt.f32.partialorder %v2911_v4, 0.0  ;;  %v2975_v11 = vmul.f32 0.01, %v2911_v4 }
 0x2d8   : > { %v3107_v33 = vadd.f32 %v3106_v0, %v3076_v58  ;;  %v3008_v48 = vsel %vm2944_vm0, %v2912_v46, %v2976_v52 }
 0x2d9   : > { %v3007_v39 = vsel %vm2943_vm1, %v2911_v4, %v2975_v11  ;;  %v3078_v27 = vmul.f32 %v3008_v48, %v3008_v48 }
 0x2da   : > { %v3038_v42 = vadd.f32 %v3037_v51, %v3007_v39  ;;  %v3077_v18 = vmul.f32 %v3007_v39, %v3007_v39 }
 0x2dc   : > { %v3039_v10 = vadd.f32 %v3038_v42, %v3008_v48  ;;  %v3108_v61 = vadd.f32 %v3107_v33, %v3077_v18 }
 0x2de   : > { %v3040_v40 = vrot.slane %v3039_v10, 4  ;;  %v3109_v36 = vadd.f32 %v3108_v61, %v3078_v27 }
 0x2e0   : > { %v3041_v20 = vadd.f32 %v3040_v40, %v3039_v10  ;;  %v3110_v41 = vrot.slane %v3109_v36, 4 }
 0x2e2   : > { %v3042_v57 = vrot.slane %v3041_v20, 2  ;;  %v3111_v6 = vadd.f32 %v3110_v41, %v3109_v36 }
 0x2e4   : > { %v3043_v59 = vadd.f32 %v3042_v57, %v3041_v20  ;;  %v3112_v38 = vrot.slane %v3111_v6, 2 }
 0x2e6   : > { %v3044_v28 = vrot.slane %v3043_v59, 1  ;;  %v3113_v1 = vadd.f32 %v3112_v38, %v3111_v6 }
 0x2e8   : > { %v3045_v35 = vadd.f32 %v3044_v28, %v3043_v59  ;;  %v3114_v14 = vrot.slane %v3113_v1, 1 }
 0x2ea   : > { %3046 = vst [vmem:[%s335_s13] sm:$0x1] %v3045_v35  ;;  %v3115_v45 = vadd.f32 %v3114_v14, %v3113_v1 }
 0x2ec   : > { %3116 = vst [vmem:[%s335_s13 + $0x1] sm:$0x1] %v3115_v45 }
 0x2ed PF: > { %s15_s20 = sadd.s32 1, %s3315_s20   ;;  %s6834_s18 = smov %s3311_s19 }
 0x2ee   : > { %p12_p5 = scmp.ge.s32.totalorder %s15_s20, 4   ;;  %s6835_s19 = smov %s6837_s21 }
 0x2f0   :  { %14 = sbr.rel (!%p12_p5) target bundleno = 2 (0x2), region = 84 }

</bundles_post_ra>
